<compile_context>
chip_gen: v7x
topology: tpu7x:2x2x1
jax: 0.10.0
libtpu: 0.0.40
codegen_flags: <defaults>
</compile_context>

<pallas_src>
import functools

import jax
import jax.numpy as jnp
from jax.experimental import pallas as pl
from jax.experimental.pallas import tpu as pltpu

EPS = 1e-6
PAD = 2          # halo needed per side by the 5x5 depthwise convs


def _dwconv_relu(ebuf, c0, n, taps, k, Wp, mid, ext):
    """Depthwise kxk conv (stride 1, zero pad k//2) + ReLU.

    Reads lane-shifted static slices of the row-padded, zero-haloed extended
    scratch `ebuf` (shape (channels, L)); the data span of length `mid`=H*Wp
    starts at lane offset `ext`.  Interior pixels are exact; the per-row pad
    columns carry don't-care values that are either re-zeroed by the caller
    (stage 1) or stripped by the host (stage 2 / final output).
    """
    pk = k // 2
    acc = None
    for i in range(k):                       # kernel row -> lane shift (i-pk)*Wp
        for j in range(k):                   # kernel col -> lane shift (j-pk)
            s = ext + (i - pk) * Wp + (j - pk)
            win = ebuf[c0:c0 + n, s:s + mid]
            t = taps[:, i * k + j:i * k + j + 1]       # (n,1) lane-broadcast
            term = win * t
            acc = term if acc is None else acc + term
    return jnp.maximum(acc, 0.0)


def _lfe_kernel(x_ref, win_ref, bin_ref, t3_ref, t5_ref, t31_ref, t51_ref,
                imask_ref, wout_ref, o_ref, ebuf0, ebuf1, *, Wp, ext):
    F = win_ref.shape[0]                    # hidden_features
    half = F // 2
    mid = x_ref.shape[2]                    # H * Wp (row-padded flat spatial)
    L = ebuf0.shape[1]

    x = x_ref[0].astype(jnp.float32)        # (C, H*Wp), spatial on lanes

    # ---- LayerNorm2d statistics (affine folded into project_in host-side) ----
    mu = jnp.mean(x, axis=0, keepdims=True)
    xc = x - mu
    var = jnp.mean(xc * xc, axis=0, keepdims=True)
    xhat = xc * jax.lax.rsqrt(var + EPS)    # zero on the pad columns

    # ---- project_in (1x1) on the MXU: bf16 operands, f32 accumulate ----
    h = jnp.dot(win_ref[...].astype(jnp.bfloat16), xhat.astype(jnp.bfloat16),
                preferred_element_type=jnp.float32) + bin_ref[...]   # (F, mid)

    imask = imask_ref[...]                  # (1, mid): 1 on image cols, 0 on pads

    # ---- refresh the (tiny) zero halos of the persistent extended buffers ----
    zlead = jnp.zeros((F, ext), jnp.float32)
    ztail = jnp.zeros((F, L - ext - mid), jnp.float32)
    ebuf0[:, 0:ext] = zlead
    ebuf0[:, ext + mid:] = ztail
    ebuf1[:, 0:ext] = zlead
    ebuf1[:, ext + mid:] = ztail

    # ---- stage 1: both depthwise branches read ONE extended buffer ----
    ebuf0[:, ext:ext + mid] = h * imask
    t3 = t3_ref[...]
    t5 = t5_ref[...]
    r3 = _dwconv_relu(ebuf0, 0, F, t3, 3, Wp, mid, ext)    # relu3(dwconv3x3(h))
    r5 = _dwconv_relu(ebuf0, 0, F, t5, 5, Wp, mid, ext)    # relu5(dwconv5x5(h))

    # ---- stage 2: chunk/cross-concat folded away (depthwise == per-channel);
    #      h is dead, so its buffer is reused for the extended r3 ----
    ebuf0[:, ext:ext + mid] = r3 * imask
    ebuf1[:, ext:ext + mid] = r5 * imask
    t31 = t31_ref[...]
    t51 = t51_ref[...]
    a = _dwconv_relu(ebuf0, 0, half, t31[:half], 3, Wp, mid, ext)     # x1[:half]
    b = _dwconv_relu(ebuf1, 0, half, t31[half:], 3, Wp, mid, ext)     # x1[half:]
    c = _dwconv_relu(ebuf0, half, half, t51[:half], 5, Wp, mid, ext)  # x2[:half]
    d = _dwconv_relu(ebuf1, half, half, t51[half:], 5, Wp, mid, ext)  # x2[half:]

    # ---- project_out: final concat fused into a SINGLE K=2F MXU dot ----
    cat = jnp.concatenate([a, b, c, d], axis=0).astype(jnp.bfloat16)  # (2F, mid)
    out = jnp.dot(wout_ref[...].astype(jnp.bfloat16), cat,
                  preferred_element_type=jnp.float32)                 # (C, mid)

    o_ref[0] = (out + x).astype(o_ref.dtype)


def _vmem_limit_bytes():
    """~78% of this generation's VMEM (~100 MiB v5e/v6e, ~50 MiB v7x)."""
    try:
        cap = getattr(pltpu.get_tpu_info(), "vmem_capacity_bytes", None)
        if cap:
            return int(cap) * 25 // 32
    except Exception:
        pass
    return 48 * 1024 * 1024                 # conservative fallback, safe on all gens


def lfe_forward(x_nchw, params):
    N, C, H, W = x_nchw.shape
    F = params["w_in"].shape[0]
    Wp = W + 2 * PAD
    mid = H * Wp
    ext_min = PAD * Wp + PAD                # halo needed before/after the data span
    ext = ((ext_min + 127) // 128) * 128    # lane-align the data-span offset
    L = ext + mid + ext_min

    # Row-padded, lane-dense HBM layout (layout plumbing; stripped afterwards).
    xp = jnp.pad(x_nchw, ((0, 0), (0, 0), (0, 0), (PAD, PAD))).reshape(N, C, mid)

    def const(shape):
        nd = len(shape)
        return pl.BlockSpec(shape, lambda n, nd=nd: (0,) * nd)

    out = pl.pallas_call(
        functools.partial(_lfe_kernel, Wp=Wp, ext=ext),
        out_shape=jax.ShapeDtypeStruct((N, C, mid), x_nchw.dtype),
        grid_spec=pltpu.PrefetchScalarGridSpec(
            num_scalar_prefetch=0,
            grid=(N,),
            in_specs=[
                pl.BlockSpec((1, C, mid), lambda n: (n, 0, 0)),
                const((F, C)),               # project_in weight (LN scale folded)
                const((F, 1)),               # project_in bias   (LN bias folded)
                const((F, 9)),               # dwconv3x3 taps
                const((F, 25)),              # dwconv5x5 taps
                const((F, 9)),               # dwconv3x3_1 taps
                const((F, 25)),              # dwconv5x5_1 taps
                const((1, mid)),             # interior-column mask
                const((C, 2 * F)),           # project_out weight
            ],
            out_specs=pl.BlockSpec((1, C, mid), lambda n: (n, 0, 0)),
            scratch_shapes=[
                pltpu.VMEM((F, L), jnp.float32),   # extended h, reused for r3
                pltpu.VMEM((F, L), jnp.float32),   # extended r5
            ],
        ),
        compiler_params=pltpu.CompilerParams(
            dimension_semantics=("parallel",),
            vmem_limit_bytes=_vmem_limit_bytes(),
        ),
    )(xp, params["w_in"], params["b_in"], params["t3"], params["t5"],
      params["t3_1"], params["t5_1"], params["imask"], params["w_out"])

    return out.reshape(N, C, H, Wp)[:, :, :, PAD:PAD + W]


def lfe_params(w_pi, w_d3, w_d5, w_d31, w_d51, w_po, ln_w, ln_b, H, W):
    hidden, dim = w_pi.shape[0], w_pi.shape[1]
    Wp = W + 2 * PAD

    def taps(w):                             # (F,1,k,k) OIHW -> (F, k*k), row-major
        return w[:, 0].reshape(w.shape[0], -1)

    w_in = w_pi[:, :, 0, 0]                  # (hidden, dim)
    # Fold the LayerNorm2d affine into the bias-free 1x1 project_in:
    #   w_in @ (ln_w*xhat + ln_b) = (w_in*ln_w) @ xhat + (w_in @ ln_b)
    w_in_f = w_in * ln_w[None, :]
    b_in_f = (w_in @ ln_b).reshape(hidden, 1)

    col = jnp.arange(H * Wp, dtype=jnp.int32) % Wp
    imask = ((col >= PAD) & (col < PAD + W)).astype(jnp.float32).reshape(1, H * Wp)

    return dict(
        w_in=w_in_f, b_in=b_in_f,
        w_out=w_po[:, :, 0, 0],              # (dim, 2*hidden)
        t3=taps(w_d3), t5=taps(w_d5), t3_1=taps(w_d31), t5_1=taps(w_d51),
        imask=imask,
    )


# ----------------- plain-JAX reference (for verification only) -----------------
def lfe_reference(x, w_pi, w_d3, w_d5, w_d31, w_d51, w_po, ln_w, ln_b):
    # x: NCHW, weights in PyTorch OIHW layout
    mu = jnp.mean(x, axis=1, keepdims=True)
    var = jnp.mean((x - mu) ** 2, axis=1, keepdims=True)
    y = (x - mu) / jnp.sqrt(var + EPS)
    y = ln_w[None, :, None, None] * y + ln_b[None, :, None, None]

    def conv(v, w, groups, pad):
        return jax.lax.conv_general_dilated(
            v, w, (1, 1), [(pad, pad), (pad, pad)],
            dimension_numbers=("NCHW", "OIHW", "NCHW"),
            feature_group_count=groups)

    h = conv(y, w_pi, 1, 0)
    hidden = h.shape[1]
    r3 = jax.nn.relu(conv(h, w_d3, hidden, 1))
    r5 = jax.nn.relu(conv(h, w_d5, hidden, 2))
    x1 = jnp.concatenate([r3[:, :hidden // 2], r5[:, :hidden // 2]], axis=1)
    x2 = jnp.concatenate([r3[:, hidden // 2:], r5[:, hidden // 2:]], axis=1)
    x1 = jax.nn.relu(conv(x1, w_d31, hidden, 1))
    x2 = jax.nn.relu(conv(x2, w_d51, hidden, 2))
    cat = jnp.concatenate([x1, x2], axis=1)
    return conv(cat, w_po, 1, 0) + x


if __name__ == "__main__":
    dim = 8                      # LFE(dim)
    hidden = int(dim * 2)        # ffn_expansion_factor = 2
    N, H, W = 2, 16, 16

    key = jax.random.PRNGKey(0)
    ks = jax.random.split(key, 7)
    x = jax.random.normal(ks[0], (N, dim, H, W), jnp.float32)

    # PyTorch-shaped parameters (bias=False everywhere)
    w_pi = 0.1 * jax.random.normal(ks[1], (hidden, dim, 1, 1), jnp.float32)      # project_in
    w_d3 = 0.1 * jax.random.normal(ks[2], (hidden, 1, 3, 3), jnp.float32)        # dwconv3x3
    w_d5 = 0.1 * jax.random.normal(ks[3], (hidden, 1, 5, 5), jnp.float32)        # dwconv5x5
    w_d31 = 0.1 * jax.random.normal(ks[4], (hidden, 1, 3, 3), jnp.float32)       # dwconv3x3_1
    w_d51 = 0.1 * jax.random.normal(ks[5], (hidden, 1, 5, 5), jnp.float32)       # dwconv5x5_1
    w_po = 0.1 * jax.random.normal(ks[6], (dim, 2 * hidden, 1, 1), jnp.float32)  # project_out
    ln_w = jnp.ones((dim,), jnp.float32)     # LayerNorm2d default init
    ln_b = jnp.zeros((dim,), jnp.float32)

    params = lfe_params(w_pi, w_d3, w_d5, w_d31, w_d51, w_po, ln_w, ln_b, H, W)

    out = jax.block_until_ready(lfe_forward(x, params))
    ref = jax.block_until_ready(
        lfe_reference(x, w_pi, w_d3, w_d5, w_d31, w_d51, w_po, ln_w, ln_b))

    assert out.shape == (N, dim, H, W)
    # bf16 operands on the MXU for the two 1x1 projections -> modest tolerance.
    assert jnp.allclose(out, ref, atol=5e-3, rtol=5e-3), (
        float(jnp.max(jnp.abs(out - ref))))

    print("KERNEL_OK")
</pallas_src>

<mosaic_0001>
module attributes {stable_mosaic.version = 11 : i64} {
  func.func @_lfe_kernel(%arg0: i32, %arg1: memref<1x8x320xf32, #tpu.memory_space<vmem>>, %arg2: memref<16x8xf32, #tpu.memory_space<vmem>>, %arg3: memref<16x1xf32, #tpu.memory_space<vmem>>, %arg4: memref<16x9xf32, #tpu.memory_space<vmem>>, %arg5: memref<16x25xf32, #tpu.memory_space<vmem>>, %arg6: memref<16x9xf32, #tpu.memory_space<vmem>>, %arg7: memref<16x25xf32, #tpu.memory_space<vmem>>, %arg8: memref<1x320xf32, #tpu.memory_space<vmem>>, %arg9: memref<8x32xf32, #tpu.memory_space<vmem>>, %arg10: memref<1x8x320xf32, #tpu.memory_space<vmem>>, %arg11: memref<16x490xf32, #tpu.memory_space<vmem>>, %arg12: memref<16x490xf32, #tpu.memory_space<vmem>>) attributes {dimension_semantics = [#tpu.dimension_semantics<parallel>], iteration_bounds = array<i64: 2>, scalar_prefetch = 0 : i64, scratch_operands = 2 : i64, tpu.core_type = #tpu.core_type<tc>, window_params = [{transform_indices = @transform_0, window_bounds = array<i64: 1, 8, 320>}, {pipeline_mode = #tpu.pipeline_mode<synchronous>, transform_indices = @transform_1, window_bounds = array<i64: 16, 8>}, {pipeline_mode = #tpu.pipeline_mode<synchronous>, transform_indices = @transform_2, window_bounds = array<i64: 16, 1>}, {pipeline_mode = #tpu.pipeline_mode<synchronous>, transform_indices = @transform_3, window_bounds = array<i64: 16, 9>}, {pipeline_mode = #tpu.pipeline_mode<synchronous>, transform_indices = @transform_4, window_bounds = array<i64: 16, 25>}, {pipeline_mode = #tpu.pipeline_mode<synchronous>, transform_indices = @transform_5, window_bounds = array<i64: 16, 9>}, {pipeline_mode = #tpu.pipeline_mode<synchronous>, transform_indices = @transform_6, window_bounds = array<i64: 16, 25>}, {pipeline_mode = #tpu.pipeline_mode<synchronous>, transform_indices = @transform_7, window_bounds = array<i64: 1, 320>}, {pipeline_mode = #tpu.pipeline_mode<synchronous>, transform_indices = @transform_8, window_bounds = array<i64: 8, 32>}, {transform_indices = @transform_9, window_bounds = array<i64: 1, 8, 320>}]} {
    %c0 = arith.constant 0 : index
    %c0_0 = arith.constant 0 : index
    %c0_1 = arith.constant 0 : index
    %0 = vector.load %arg1[%c0, %c0_0, %c0_1] : memref<1x8x320xf32, #tpu.memory_space<vmem>>, vector<1x8x320xf32>
    %1 = vector.shape_cast %0 : vector<1x8x320xf32> to vector<8x320xf32>
    %cst = arith.constant dense<0.000000e+00> : vector<320xf32>
    %2 = vector.multi_reduction <add>, %1, %cst [0] : vector<8x320xf32> to vector<320xf32>
    %3 = vector.shape_cast %2 : vector<320xf32> to vector<1x320xf32>
    %cst_2 = arith.constant 8.000000e+00 : f32
    %4 = vector.broadcast %cst_2 : f32 to vector<1x320xf32>
    %5 = arith.divf %3, %4 : vector<1x320xf32>
    %6 = vector.broadcast %5 : vector<1x320xf32> to vector<8x320xf32>
    %7 = arith.subf %1, %6 : vector<8x320xf32>
    %8 = arith.mulf %7, %7 : vector<8x320xf32>
    %cst_3 = arith.constant dense<0.000000e+00> : vector<320xf32>
    %9 = vector.multi_reduction <add>, %8, %cst_3 [0] : vector<8x320xf32> to vector<320xf32>
    %10 = vector.shape_cast %9 : vector<320xf32> to vector<1x320xf32>
    %cst_4 = arith.constant 8.000000e+00 : f32
    %11 = vector.broadcast %cst_4 : f32 to vector<1x320xf32>
    %12 = arith.divf %10, %11 : vector<1x320xf32>
    %cst_5 = arith.constant 9.99999997E-7 : f32
    %13 = vector.broadcast %cst_5 : f32 to vector<1x320xf32>
    %14 = arith.addf %12, %13 : vector<1x320xf32>
    %15 = math.rsqrt %14 : vector<1x320xf32>
    %16 = vector.broadcast %15 : vector<1x320xf32> to vector<8x320xf32>
    %17 = arith.mulf %7, %16 : vector<8x320xf32>
    %c0_6 = arith.constant 0 : index
    %c0_7 = arith.constant 0 : index
    %18 = vector.load %arg2[%c0_6, %c0_7] : memref<16x8xf32, #tpu.memory_space<vmem>>, vector<16x8xf32>
    %19 = arith.truncf %18 : vector<16x8xf32> to vector<16x8xbf16>
    %20 = arith.truncf %17 : vector<8x320xf32> to vector<8x320xbf16>
    %cst_8 = arith.constant dense<0.000000e+00> : vector<16x320xf32>
    %21 = tpu.matmul %19, %20, %cst_8 {dimension_numbers = #tpu.dot_dimension_numbers<[1], [0], [0], [1], [0, 0, 1, 1], [], []>} : vector<16x8xbf16>, vector<8x320xbf16>, vector<16x320xf32> -> vector<16x320xf32>
    %c0_9 = arith.constant 0 : index
    %c0_10 = arith.constant 0 : index
    %22 = vector.load %arg3[%c0_9, %c0_10] : memref<16x1xf32, #tpu.memory_space<vmem>>, vector<16x1xf32>
    %23 = vector.broadcast %22 : vector<16x1xf32> to vector<16x320xf32>
    %24 = arith.addf %21, %23 : vector<16x320xf32>
    %c0_11 = arith.constant 0 : index
    %c0_12 = arith.constant 0 : index
    %25 = vector.load %arg8[%c0_11, %c0_12] : memref<1x320xf32, #tpu.memory_space<vmem>>, vector<1x320xf32>
    %cst_13 = arith.constant 0.000000e+00 : f32
    %26 = vector.broadcast %cst_13 : f32 to vector<16x128xf32>
    %cst_14 = arith.constant 0.000000e+00 : f32
    %27 = vector.broadcast %cst_14 : f32 to vector<16x42xf32>
    %c0_15 = arith.constant 0 : index
    %c0_16 = arith.constant 0 : index
    %28 = vector.load %arg11[%c0_15, %c0_16] : memref<16x490xf32, #tpu.memory_space<vmem>>, vector<16x128xf32>
    tpu.vector_store %arg11[%c0_15, %c0_16], %26 {strides = array<i32>} : memref<16x490xf32, #tpu.memory_space<vmem>>, vector<16x128xf32>,
    %c0_17 = arith.constant 0 : index
    %c448 = arith.constant 448 : index
    %29 = vector.load %arg11[%c0_17, %c448] : memref<16x490xf32, #tpu.memory_space<vmem>>, vector<16x42xf32>
    tpu.vector_store %arg11[%c0_17, %c448], %27 {strides = array<i32>} : memref<16x490xf32, #tpu.memory_space<vmem>>, vector<16x42xf32>,
    %c0_18 = arith.constant 0 : index
    %c0_19 = arith.constant 0 : index
    %30 = vector.load %arg12[%c0_18, %c0_19] : memref<16x490xf32, #tpu.memory_space<vmem>>, vector<16x128xf32>
    tpu.vector_store %arg12[%c0_18, %c0_19], %26 {strides = array<i32>} : memref<16x490xf32, #tpu.memory_space<vmem>>, vector<16x128xf32>,
    %c0_20 = arith.constant 0 : index
    %c448_21 = arith.constant 448 : index
    %31 = vector.load %arg12[%c0_20, %c448_21] : memref<16x490xf32, #tpu.memory_space<vmem>>, vector<16x42xf32>
    tpu.vector_store %arg12[%c0_20, %c448_21], %27 {strides = array<i32>} : memref<16x490xf32, #tpu.memory_space<vmem>>, vector<16x42xf32>,
    %32 = vector.broadcast %25 : vector<1x320xf32> to vector<16x320xf32>
    %33 = arith.mulf %24, %32 : vector<16x320xf32>
    %c0_22 = arith.constant 0 : index
    %c128 = arith.constant 128 : index
    %34 = vector.load %arg11[%c0_22, %c128] : memref<16x490xf32, #tpu.memory_space<vmem>>, vector<16x320xf32>
    tpu.vector_store %arg11[%c0_22, %c128], %33 {strides = array<i32>} : memref<16x490xf32, #tpu.memory_space<vmem>>, vector<16x320xf32>,
    %c0_23 = arith.constant 0 : index
    %c0_24 = arith.constant 0 : index
    %35 = vector.load %arg4[%c0_23, %c0_24] : memref<16x9xf32, #tpu.memory_space<vmem>>, vector<16x9xf32>
    %c0_25 = arith.constant 0 : index
    %c0_26 = arith.constant 0 : index
    %36 = vector.load %arg5[%c0_25, %c0_26] : memref<16x25xf32, #tpu.memory_space<vmem>>, vector<16x25xf32>
    %c0_27 = arith.constant 0 : index
    %c107 = arith.constant 107 : index
    %37 = vector.load %arg11[%c0_27, %c107] : memref<16x490xf32, #tpu.memory_space<vmem>>, vector<16x320xf32>
    %38 = vector.extract_strided_slice %35 {offsets = [0, 0], sizes = [16, 1], strides = [1, 1]} : vector<16x9xf32> to vector<16x1xf32>
    %39 = vector.broadcast %38 : vector<16x1xf32> to vector<16x320xf32>
    %40 = arith.mulf %37, %39 : vector<16x320xf32>
    %c0_28 = arith.constant 0 : index
    %c108 = arith.constant 108 : index
    %41 = vector.load %arg11[%c0_28, %c108] : memref<16x490xf32, #tpu.memory_space<vmem>>, vector<16x320xf32>
    %42 = vector.extract_strided_slice %35 {offsets = [0, 1], sizes = [16, 1], strides = [1, 1]} : vector<16x9xf32> to vector<16x1xf32>
    %43 = vector.broadcast %42 : vector<16x1xf32> to vector<16x320xf32>
    %44 = arith.mulf %41, %43 : vector<16x320xf32>
    %45 = arith.addf %40, %44 : vector<16x320xf32>
    %c0_29 = arith.constant 0 : index
    %c109 = arith.constant 109 : index
    %46 = vector.load %arg11[%c0_29, %c109] : memref<16x490xf32, #tpu.memory_space<vmem>>, vector<16x320xf32>
    %47 = vector.extract_strided_slice %35 {offsets = [0, 2], sizes = [16, 1], strides = [1, 1]} : vector<16x9xf32> to vector<16x1xf32>
    %48 = vector.broadcast %47 : vector<16x1xf32> to vector<16x320xf32>
    %49 = arith.mulf %46, %48 : vector<16x320xf32>
    %50 = arith.addf %45, %49 : vector<16x320xf32>
    %c0_30 = arith.constant 0 : index
    %c127 = arith.constant 127 : index
    %51 = vector.load %arg11[%c0_30, %c127] : memref<16x490xf32, #tpu.memory_space<vmem>>, vector<16x320xf32>
    %52 = vector.extract_strided_slice %35 {offsets = [0, 3], sizes = [16, 1], strides = [1, 1]} : vector<16x9xf32> to vector<16x1xf32>
    %53 = vector.broadcast %52 : vector<16x1xf32> to vector<16x320xf32>
    %54 = arith.mulf %51, %53 : vector<16x320xf32>
    %55 = arith.addf %50, %54 : vector<16x320xf32>
    %c0_31 = arith.constant 0 : index
    %c128_32 = arith.constant 128 : index
    %56 = vector.load %arg11[%c0_31, %c128_32] : memref<16x490xf32, #tpu.memory_space<vmem>>, vector<16x320xf32>
    %57 = vector.extract_strided_slice %35 {offsets = [0, 4], sizes = [16, 1], strides = [1, 1]} : vector<16x9xf32> to vector<16x1xf32>
    %58 = vector.broadcast %57 : vector<16x1xf32> to vector<16x320xf32>
    %59 = arith.mulf %56, %58 : vector<16x320xf32>
    %60 = arith.addf %55, %59 : vector<16x320xf32>
    %c0_33 = arith.constant 0 : index
    %c129 = arith.constant 129 : index
    %61 = vector.load %arg11[%c0_33, %c129] : memref<16x490xf32, #tpu.memory_space<vmem>>, vector<16x320xf32>
    %62 = vector.extract_strided_slice %35 {offsets = [0, 5], sizes = [16, 1], strides = [1, 1]} : vector<16x9xf32> to vector<16x1xf32>
    %63 = vector.broadcast %62 : vector<16x1xf32> to vector<16x320xf32>
    %64 = arith.mulf %61, %63 : vector<16x320xf32>
    %65 = arith.addf %60, %64 : vector<16x320xf32>
    %c0_34 = arith.constant 0 : index
    %c147 = arith.constant 147 : index
    %66 = vector.load %arg11[%c0_34, %c147] : memref<16x490xf32, #tpu.memory_space<vmem>>, vector<16x320xf32>
    %67 = vector.extract_strided_slice %35 {offsets = [0, 6], sizes = [16, 1], strides = [1, 1]} : vector<16x9xf32> to vector<16x1xf32>
    %68 = vector.broadcast %67 : vector<16x1xf32> to vector<16x320xf32>
    %69 = arith.mulf %66, %68 : vector<16x320xf32>
    %70 = arith.addf %65, %69 : vector<16x320xf32>
    %c0_35 = arith.constant 0 : index
    %c148 = arith.constant 148 : index
    %71 = vector.load %arg11[%c0_35, %c148] : memref<16x490xf32, #tpu.memory_space<vmem>>, vector<16x320xf32>
    %72 = vector.extract_strided_slice %35 {offsets = [0, 7], sizes = [16, 1], strides = [1, 1]} : vector<16x9xf32> to vector<16x1xf32>
    %73 = vector.broadcast %72 : vector<16x1xf32> to vector<16x320xf32>
    %74 = arith.mulf %71, %73 : vector<16x320xf32>
    %75 = arith.addf %70, %74 : vector<16x320xf32>
    %c0_36 = arith.constant 0 : index
    %c149 = arith.constant 149 : index
    %76 = vector.load %arg11[%c0_36, %c149] : memref<16x490xf32, #tpu.memory_space<vmem>>, vector<16x320xf32>
    %77 = vector.extract_strided_slice %35 {offsets = [0, 8], sizes = [16, 1], strides = [1, 1]} : vector<16x9xf32> to vector<16x1xf32>
    %78 = vector.broadcast %77 : vector<16x1xf32> to vector<16x320xf32>
    %79 = arith.mulf %76, %78 : vector<16x320xf32>
    %80 = arith.addf %75, %79 : vector<16x320xf32>
    %cst_37 = arith.constant 0.000000e+00 : f32
    %81 = vector.broadcast %cst_37 : f32 to vector<16x320xf32>
    %82 = arith.maximumf %80, %81 : vector<16x320xf32>
    %c0_38 = arith.constant 0 : index
    %c86 = arith.constant 86 : index
    %83 = vector.load %arg11[%c0_38, %c86] : memref<16x490xf32, #tpu.memory_space<vmem>>, vector<16x320xf32>
    %84 = vector.extract_strided_slice %36 {offsets = [0, 0], sizes = [16, 1], strides = [1, 1]} : vector<16x25xf32> to vector<16x1xf32>
    %85 = vector.broadcast %84 : vector<16x1xf32> to vector<16x320xf32>
    %86 = arith.mulf %83, %85 : vector<16x320xf32>
    %c0_39 = arith.constant 0 : index
    %c87 = arith.constant 87 : index
    %87 = vector.load %arg11[%c0_39, %c87] : memref<16x490xf32, #tpu.memory_space<vmem>>, vector<16x320xf32>
    %88 = vector.extract_strided_slice %36 {offsets = [0, 1], sizes = [16, 1], strides = [1, 1]} : vector<16x25xf32> to vector<16x1xf32>
    %89 = vector.broadcast %88 : vector<16x1xf32> to vector<16x320xf32>
    %90 = arith.mulf %87, %89 : vector<16x320xf32>
    %91 = arith.addf %86, %90 : vector<16x320xf32>
    %c0_40 = arith.constant 0 : index
    %c88 = arith.constant 88 : index
    %92 = vector.load %arg11[%c0_40, %c88] : memref<16x490xf32, #tpu.memory_space<vmem>>, vector<16x320xf32>
    %93 = vector.extract_strided_slice %36 {offsets = [0, 2], sizes = [16, 1], strides = [1, 1]} : vector<16x25xf32> to vector<16x1xf32>
    %94 = vector.broadcast %93 : vector<16x1xf32> to vector<16x320xf32>
    %95 = arith.mulf %92, %94 : vector<16x320xf32>
    %96 = arith.addf %91, %95 : vector<16x320xf32>
    %c0_41 = arith.constant 0 : index
    %c89 = arith.constant 89 : index
    %97 = vector.load %arg11[%c0_41, %c89] : memref<16x490xf32, #tpu.memory_space<vmem>>, vector<16x320xf32>
    %98 = vector.extract_strided_slice %36 {offsets = [0, 3], sizes = [16, 1], strides = [1, 1]} : vector<16x25xf32> to vector<16x1xf32>
    %99 = vector.broadcast %98 : vector<16x1xf32> to vector<16x320xf32>
    %100 = arith.mulf %97, %99 : vector<16x320xf32>
    %101 = arith.addf %96, %100 : vector<16x320xf32>
    %c0_42 = arith.constant 0 : index
    %c90 = arith.constant 90 : index
    %102 = vector.load %arg11[%c0_42, %c90] : memref<16x490xf32, #tpu.memory_space<vmem>>, vector<16x320xf32>
    %103 = vector.extract_strided_slice %36 {offsets = [0, 4], sizes = [16, 1], strides = [1, 1]} : vector<16x25xf32> to vector<16x1xf32>
    %104 = vector.broadcast %103 : vector<16x1xf32> to vector<16x320xf32>
    %105 = arith.mulf %102, %104 : vector<16x320xf32>
    %106 = arith.addf %101, %105 : vector<16x320xf32>
    %c0_43 = arith.constant 0 : index
    %c106 = arith.constant 106 : index
    %107 = vector.load %arg11[%c0_43, %c106] : memref<16x490xf32, #tpu.memory_space<vmem>>, vector<16x320xf32>
    %108 = vector.extract_strided_slice %36 {offsets = [0, 5], sizes = [16, 1], strides = [1, 1]} : vector<16x25xf32> to vector<16x1xf32>
    %109 = vector.broadcast %108 : vector<16x1xf32> to vector<16x320xf32>
    %110 = arith.mulf %107, %109 : vector<16x320xf32>
    %111 = arith.addf %106, %110 : vector<16x320xf32>
    %c0_44 = arith.constant 0 : index
    %c107_45 = arith.constant 107 : index
    %112 = vector.load %arg11[%c0_44, %c107_45] : memref<16x490xf32, #tpu.memory_space<vmem>>, vector<16x320xf32>
    %113 = vector.extract_strided_slice %36 {offsets = [0, 6], sizes = [16, 1], strides = [1, 1]} : vector<16x25xf32> to vector<16x1xf32>
    %114 = vector.broadcast %113 : vector<16x1xf32> to vector<16x320xf32>
    %115 = arith.mulf %112, %114 : vector<16x320xf32>
    %116 = arith.addf %111, %115 : vector<16x320xf32>
    %c0_46 = arith.constant 0 : index
    %c108_47 = arith.constant 108 : index
    %117 = vector.load %arg11[%c0_46, %c108_47] : memref<16x490xf32, #tpu.memory_space<vmem>>, vector<16x320xf32>
    %118 = vector.extract_strided_slice %36 {offsets = [0, 7], sizes = [16, 1], strides = [1, 1]} : vector<16x25xf32> to vector<16x1xf32>
    %119 = vector.broadcast %118 : vector<16x1xf32> to vector<16x320xf32>
    %120 = arith.mulf %117, %119 : vector<16x320xf32>
    %121 = arith.addf %116, %120 : vector<16x320xf32>
    %c0_48 = arith.constant 0 : index
    %c109_49 = arith.constant 109 : index
    %122 = vector.load %arg11[%c0_48, %c109_49] : memref<16x490xf32, #tpu.memory_space<vmem>>, vector<16x320xf32>
    %123 = vector.extract_strided_slice %36 {offsets = [0, 8], sizes = [16, 1], strides = [1, 1]} : vector<16x25xf32> to vector<16x1xf32>
    %124 = vector.broadcast %123 : vector<16x1xf32> to vector<16x320xf32>
    %125 = arith.mulf %122, %124 : vector<16x320xf32>
    %126 = arith.addf %121, %125 : vector<16x320xf32>
    %c0_50 = arith.constant 0 : index
    %c110 = arith.constant 110 : index
    %127 = vector.load %arg11[%c0_50, %c110] : memref<16x490xf32, #tpu.memory_space<vmem>>, vector<16x320xf32>
    %128 = vector.extract_strided_slice %36 {offsets = [0, 9], sizes = [16, 1], strides = [1, 1]} : vector<16x25xf32> to vector<16x1xf32>
    %129 = vector.broadcast %128 : vector<16x1xf32> to vector<16x320xf32>
    %130 = arith.mulf %127, %129 : vector<16x320xf32>
    %131 = arith.addf %126, %130 : vector<16x320xf32>
    %c0_51 = arith.constant 0 : index
    %c126 = arith.constant 126 : index
    %132 = vector.load %arg11[%c0_51, %c126] : memref<16x490xf32, #tpu.memory_space<vmem>>, vector<16x320xf32>
    %133 = vector.extract_strided_slice %36 {offsets = [0, 10], sizes = [16, 1], strides = [1, 1]} : vector<16x25xf32> to vector<16x1xf32>
    %134 = vector.broadcast %133 : vector<16x1xf32> to vector<16x320xf32>
    %135 = arith.mulf %132, %134 : vector<16x320xf32>
    %136 = arith.addf %131, %135 : vector<16x320xf32>
    %c0_52 = arith.constant 0 : index
    %c127_53 = arith.constant 127 : index
    %137 = vector.load %arg11[%c0_52, %c127_53] : memref<16x490xf32, #tpu.memory_space<vmem>>, vector<16x320xf32>
    %138 = vector.extract_strided_slice %36 {offsets = [0, 11], sizes = [16, 1], strides = [1, 1]} : vector<16x25xf32> to vector<16x1xf32>
    %139 = vector.broadcast %138 : vector<16x1xf32> to vector<16x320xf32>
    %140 = arith.mulf %137, %139 : vector<16x320xf32>
    %141 = arith.addf %136, %140 : vector<16x320xf32>
    %c0_54 = arith.constant 0 : index
    %c128_55 = arith.constant 128 : index
    %142 = vector.load %arg11[%c0_54, %c128_55] : memref<16x490xf32, #tpu.memory_space<vmem>>, vector<16x320xf32>
    %143 = vector.extract_strided_slice %36 {offsets = [0, 12], sizes = [16, 1], strides = [1, 1]} : vector<16x25xf32> to vector<16x1xf32>
    %144 = vector.broadcast %143 : vector<16x1xf32> to vector<16x320xf32>
    %145 = arith.mulf %142, %144 : vector<16x320xf32>
    %146 = arith.addf %141, %145 : vector<16x320xf32>
    %c0_56 = arith.constant 0 : index
    %c129_57 = arith.constant 129 : index
    %147 = vector.load %arg11[%c0_56, %c129_57] : memref<16x490xf32, #tpu.memory_space<vmem>>, vector<16x320xf32>
    %148 = vector.extract_strided_slice %36 {offsets = [0, 13], sizes = [16, 1], strides = [1, 1]} : vector<16x25xf32> to vector<16x1xf32>
    %149 = vector.broadcast %148 : vector<16x1xf32> to vector<16x320xf32>
    %150 = arith.mulf %147, %149 : vector<16x320xf32>
    %151 = arith.addf %146, %150 : vector<16x320xf32>
    %c0_58 = arith.constant 0 : index
    %c130 = arith.constant 130 : index
    %152 = vector.load %arg11[%c0_58, %c130] : memref<16x490xf32, #tpu.memory_space<vmem>>, vector<16x320xf32>
    %153 = vector.extract_strided_slice %36 {offsets = [0, 14], sizes = [16, 1], strides = [1, 1]} : vector<16x25xf32> to vector<16x1xf32>
    %154 = vector.broadcast %153 : vector<16x1xf32> to vector<16x320xf32>
    %155 = arith.mulf %152, %154 : vector<16x320xf32>
    %156 = arith.addf %151, %155 : vector<16x320xf32>
    %c0_59 = arith.constant 0 : index
    %c146 = arith.constant 146 : index
    %157 = vector.load %arg11[%c0_59, %c146] : memref<16x490xf32, #tpu.memory_space<vmem>>, vector<16x320xf32>
    %158 = vector.extract_strided_slice %36 {offsets = [0, 15], sizes = [16, 1], strides = [1, 1]} : vector<16x25xf32> to vector<16x1xf32>
    %159 = vector.broadcast %158 : vector<16x1xf32> to vector<16x320xf32>
    %160 = arith.mulf %157, %159 : vector<16x320xf32>
    %161 = arith.addf %156, %160 : vector<16x320xf32>
    %c0_60 = arith.constant 0 : index
    %c147_61 = arith.constant 147 : index
    %162 = vector.load %arg11[%c0_60, %c147_61] : memref<16x490xf32, #tpu.memory_space<vmem>>, vector<16x320xf32>
    %163 = vector.extract_strided_slice %36 {offsets = [0, 16], sizes = [16, 1], strides = [1, 1]} : vector<16x25xf32> to vector<16x1xf32>
    %164 = vector.broadcast %163 : vector<16x1xf32> to vector<16x320xf32>
    %165 = arith.mulf %162, %164 : vector<16x320xf32>
    %166 = arith.addf %161, %165 : vector<16x320xf32>
    %c0_62 = arith.constant 0 : index
    %c148_63 = arith.constant 148 : index
    %167 = vector.load %arg11[%c0_62, %c148_63] : memref<16x490xf32, #tpu.memory_space<vmem>>, vector<16x320xf32>
    %168 = vector.extract_strided_slice %36 {offsets = [0, 17], sizes = [16, 1], strides = [1, 1]} : vector<16x25xf32> to vector<16x1xf32>
    %169 = vector.broadcast %168 : vector<16x1xf32> to vector<16x320xf32>
    %170 = arith.mulf %167, %169 : vector<16x320xf32>
    %171 = arith.addf %166, %170 : vector<16x320xf32>
    %c0_64 = arith.constant 0 : index
    %c149_65 = arith.constant 149 : index
    %172 = vector.load %arg11[%c0_64, %c149_65] : memref<16x490xf32, #tpu.memory_space<vmem>>, vector<16x320xf32>
    %173 = vector.extract_strided_slice %36 {offsets = [0, 18], sizes = [16, 1], strides = [1, 1]} : vector<16x25xf32> to vector<16x1xf32>
    %174 = vector.broadcast %173 : vector<16x1xf32> to vector<16x320xf32>
    %175 = arith.mulf %172, %174 : vector<16x320xf32>
    %176 = arith.addf %171, %175 : vector<16x320xf32>
    %c0_66 = arith.constant 0 : index
    %c150 = arith.constant 150 : index
    %177 = vector.load %arg11[%c0_66, %c150] : memref<16x490xf32, #tpu.memory_space<vmem>>, vector<16x320xf32>
    %178 = vector.extract_strided_slice %36 {offsets = [0, 19], sizes = [16, 1], strides = [1, 1]} : vector<16x25xf32> to vector<16x1xf32>
    %179 = vector.broadcast %178 : vector<16x1xf32> to vector<16x320xf32>
    %180 = arith.mulf %177, %179 : vector<16x320xf32>
    %181 = arith.addf %176, %180 : vector<16x320xf32>
    %c0_67 = arith.constant 0 : index
    %c166 = arith.constant 166 : index
    %182 = vector.load %arg11[%c0_67, %c166] : memref<16x490xf32, #tpu.memory_space<vmem>>, vector<16x320xf32>
    %183 = vector.extract_strided_slice %36 {offsets = [0, 20], sizes = [16, 1], strides = [1, 1]} : vector<16x25xf32> to vector<16x1xf32>
    %184 = vector.broadcast %183 : vector<16x1xf32> to vector<16x320xf32>
    %185 = arith.mulf %182, %184 : vector<16x320xf32>
    %186 = arith.addf %181, %185 : vector<16x320xf32>
    %c0_68 = arith.constant 0 : index
    %c167 = arith.constant 167 : index
    %187 = vector.load %arg11[%c0_68, %c167] : memref<16x490xf32, #tpu.memory_space<vmem>>, vector<16x320xf32>
    %188 = vector.extract_strided_slice %36 {offsets = [0, 21], sizes = [16, 1], strides = [1, 1]} : vector<16x25xf32> to vector<16x1xf32>
    %189 = vector.broadcast %188 : vector<16x1xf32> to vector<16x320xf32>
    %190 = arith.mulf %187, %189 : vector<16x320xf32>
    %191 = arith.addf %186, %190 : vector<16x320xf32>
    %c0_69 = arith.constant 0 : index
    %c168 = arith.constant 168 : index
    %192 = vector.load %arg11[%c0_69, %c168] : memref<16x490xf32, #tpu.memory_space<vmem>>, vector<16x320xf32>
    %193 = vector.extract_strided_slice %36 {offsets = [0, 22], sizes = [16, 1], strides = [1, 1]} : vector<16x25xf32> to vector<16x1xf32>
    %194 = vector.broadcast %193 : vector<16x1xf32> to vector<16x320xf32>
    %195 = arith.mulf %192, %194 : vector<16x320xf32>
    %196 = arith.addf %191, %195 : vector<16x320xf32>
    %c0_70 = arith.constant 0 : index
    %c169 = arith.constant 169 : index
    %197 = vector.load %arg11[%c0_70, %c169] : memref<16x490xf32, #tpu.memory_space<vmem>>, vector<16x320xf32>
    %198 = vector.extract_strided_slice %36 {offsets = [0, 23], sizes = [16, 1], strides = [1, 1]} : vector<16x25xf32> to vector<16x1xf32>
    %199 = vector.broadcast %198 : vector<16x1xf32> to vector<16x320xf32>
    %200 = arith.mulf %197, %199 : vector<16x320xf32>
    %201 = arith.addf %196, %200 : vector<16x320xf32>
    %c0_71 = arith.constant 0 : index
    %c170 = arith.constant 170 : index
    %202 = vector.load %arg11[%c0_71, %c170] : memref<16x490xf32, #tpu.memory_space<vmem>>, vector<16x320xf32>
    %203 = vector.extract_strided_slice %36 {offsets = [0, 24], sizes = [16, 1], strides = [1, 1]} : vector<16x25xf32> to vector<16x1xf32>
    %204 = vector.broadcast %203 : vector<16x1xf32> to vector<16x320xf32>
    %205 = arith.mulf %202, %204 : vector<16x320xf32>
    %206 = arith.addf %201, %205 : vector<16x320xf32>
    %cst_72 = arith.constant 0.000000e+00 : f32
    %207 = vector.broadcast %cst_72 : f32 to vector<16x320xf32>
    %208 = arith.maximumf %206, %207 : vector<16x320xf32>
    %209 = vector.broadcast %25 : vector<1x320xf32> to vector<16x320xf32>
    %210 = arith.mulf %82, %209 : vector<16x320xf32>
    %c0_73 = arith.constant 0 : index
    %c128_74 = arith.constant 128 : index
    %211 = vector.load %arg11[%c0_73, %c128_74] : memref<16x490xf32, #tpu.memory_space<vmem>>, vector<16x320xf32>
    tpu.vector_store %arg11[%c0_73, %c128_74], %210 {strides = array<i32>} : memref<16x490xf32, #tpu.memory_space<vmem>>, vector<16x320xf32>,
    %212 = vector.broadcast %25 : vector<1x320xf32> to vector<16x320xf32>
    %213 = arith.mulf %208, %212 : vector<16x320xf32>
    %c0_75 = arith.constant 0 : index
    %c128_76 = arith.constant 128 : index
    %214 = vector.load %arg12[%c0_75, %c128_76] : memref<16x490xf32, #tpu.memory_space<vmem>>, vector<16x320xf32>
    tpu.vector_store %arg12[%c0_75, %c128_76], %213 {strides = array<i32>} : memref<16x490xf32, #tpu.memory_space<vmem>>, vector<16x320xf32>,
    %c0_77 = arith.constant 0 : index
    %c0_78 = arith.constant 0 : index
    %215 = vector.load %arg6[%c0_77, %c0_78] : memref<16x9xf32, #tpu.memory_space<vmem>>, vector<16x9xf32>
    %c0_79 = arith.constant 0 : index
    %c0_80 = arith.constant 0 : index
    %216 = vector.load %arg7[%c0_79, %c0_80] : memref<16x25xf32, #tpu.memory_space<vmem>>, vector<16x25xf32>
    %217 = vector.extract_strided_slice %215 {offsets = [0, 0], sizes = [8, 9], strides = [1, 1]} : vector<16x9xf32> to vector<8x9xf32>
    %c0_81 = arith.constant 0 : index
    %c107_82 = arith.constant 107 : index
    %218 = vector.load %arg11[%c0_81, %c107_82] : memref<16x490xf32, #tpu.memory_space<vmem>>, vector<8x320xf32>
    %219 = vector.extract_strided_slice %217 {offsets = [0, 0], sizes = [8, 1], strides = [1, 1]} : vector<8x9xf32> to vector<8x1xf32>
    %220 = vector.broadcast %219 : vector<8x1xf32> to vector<8x320xf32>
    %221 = arith.mulf %218, %220 : vector<8x320xf32>
    %c0_83 = arith.constant 0 : index
    %c108_84 = arith.constant 108 : index
    %222 = vector.load %arg11[%c0_83, %c108_84] : memref<16x490xf32, #tpu.memory_space<vmem>>, vector<8x320xf32>
    %223 = vector.extract_strided_slice %217 {offsets = [0, 1], sizes = [8, 1], strides = [1, 1]} : vector<8x9xf32> to vector<8x1xf32>
    %224 = vector.broadcast %223 : vector<8x1xf32> to vector<8x320xf32>
    %225 = arith.mulf %222, %224 : vector<8x320xf32>
    %226 = arith.addf %221, %225 : vector<8x320xf32>
    %c0_85 = arith.constant 0 : index
    %c109_86 = arith.constant 109 : index
    %227 = vector.load %arg11[%c0_85, %c109_86] : memref<16x490xf32, #tpu.memory_space<vmem>>, vector<8x320xf32>
    %228 = vector.extract_strided_slice %217 {offsets = [0, 2], sizes = [8, 1], strides = [1, 1]} : vector<8x9xf32> to vector<8x1xf32>
    %229 = vector.broadcast %228 : vector<8x1xf32> to vector<8x320xf32>
    %230 = arith.mulf %227, %229 : vector<8x320xf32>
    %231 = arith.addf %226, %230 : vector<8x320xf32>
    %c0_87 = arith.constant 0 : index
    %c127_88 = arith.constant 127 : index
    %232 = vector.load %arg11[%c0_87, %c127_88] : memref<16x490xf32, #tpu.memory_space<vmem>>, vector<8x320xf32>
    %233 = vector.extract_strided_slice %217 {offsets = [0, 3], sizes = [8, 1], strides = [1, 1]} : vector<8x9xf32> to vector<8x1xf32>
    %234 = vector.broadcast %233 : vector<8x1xf32> to vector<8x320xf32>
    %235 = arith.mulf %232, %234 : vector<8x320xf32>
    %236 = arith.addf %231, %235 : vector<8x320xf32>
    %c0_89 = arith.constant 0 : index
    %c128_90 = arith.constant 128 : index
    %237 = vector.load %arg11[%c0_89, %c128_90] : memref<16x490xf32, #tpu.memory_space<vmem>>, vector<8x320xf32>
    %238 = vector.extract_strided_slice %217 {offsets = [0, 4], sizes = [8, 1], strides = [1, 1]} : vector<8x9xf32> to vector<8x1xf32>
    %239 = vector.broadcast %238 : vector<8x1xf32> to vector<8x320xf32>
    %240 = arith.mulf %237, %239 : vector<8x320xf32>
    %241 = arith.addf %236, %240 : vector<8x320xf32>
    %c0_91 = arith.constant 0 : index
    %c129_92 = arith.constant 129 : index
    %242 = vector.load %arg11[%c0_91, %c129_92] : memref<16x490xf32, #tpu.memory_space<vmem>>, vector<8x320xf32>
    %243 = vector.extract_strided_slice %217 {offsets = [0, 5], sizes = [8, 1], strides = [1, 1]} : vector<8x9xf32> to vector<8x1xf32>
    %244 = vector.broadcast %243 : vector<8x1xf32> to vector<8x320xf32>
    %245 = arith.mulf %242, %244 : vector<8x320xf32>
    %246 = arith.addf %241, %245 : vector<8x320xf32>
    %c0_93 = arith.constant 0 : index
    %c147_94 = arith.constant 147 : index
    %247 = vector.load %arg11[%c0_93, %c147_94] : memref<16x490xf32, #tpu.memory_space<vmem>>, vector<8x320xf32>
    %248 = vector.extract_strided_slice %217 {offsets = [0, 6], sizes = [8, 1], strides = [1, 1]} : vector<8x9xf32> to vector<8x1xf32>
    %249 = vector.broadcast %248 : vector<8x1xf32> to vector<8x320xf32>
    %250 = arith.mulf %247, %249 : vector<8x320xf32>
    %251 = arith.addf %246, %250 : vector<8x320xf32>
    %c0_95 = arith.constant 0 : index
    %c148_96 = arith.constant 148 : index
    %252 = vector.load %arg11[%c0_95, %c148_96] : memref<16x490xf32, #tpu.memory_space<vmem>>, vector<8x320xf32>
    %253 = vector.extract_strided_slice %217 {offsets = [0, 7], sizes = [8, 1], strides = [1, 1]} : vector<8x9xf32> to vector<8x1xf32>
    %254 = vector.broadcast %253 : vector<8x1xf32> to vector<8x320xf32>
    %255 = arith.mulf %252, %254 : vector<8x320xf32>
    %256 = arith.addf %251, %255 : vector<8x320xf32>
    %c0_97 = arith.constant 0 : index
    %c149_98 = arith.constant 149 : index
    %257 = vector.load %arg11[%c0_97, %c149_98] : memref<16x490xf32, #tpu.memory_space<vmem>>, vector<8x320xf32>
    %258 = vector.extract_strided_slice %217 {offsets = [0, 8], sizes = [8, 1], strides = [1, 1]} : vector<8x9xf32> to vector<8x1xf32>
    %259 = vector.broadcast %258 : vector<8x1xf32> to vector<8x320xf32>
    %260 = arith.mulf %257, %259 : vector<8x320xf32>
    %261 = arith.addf %256, %260 : vector<8x320xf32>
    %cst_99 = arith.constant 0.000000e+00 : f32
    %262 = vector.broadcast %cst_99 : f32 to vector<8x320xf32>
    %263 = arith.maximumf %261, %262 : vector<8x320xf32>
    %264 = vector.extract_strided_slice %215 {offsets = [8, 0], sizes = [8, 9], strides = [1, 1]} : vector<16x9xf32> to vector<8x9xf32>
    %c0_100 = arith.constant 0 : index
    %c107_101 = arith.constant 107 : index
    %265 = vector.load %arg12[%c0_100, %c107_101] : memref<16x490xf32, #tpu.memory_space<vmem>>, vector<8x320xf32>
    %266 = vector.extract_strided_slice %264 {offsets = [0, 0], sizes = [8, 1], strides = [1, 1]} : vector<8x9xf32> to vector<8x1xf32>
    %267 = vector.broadcast %266 : vector<8x1xf32> to vector<8x320xf32>
    %268 = arith.mulf %265, %267 : vector<8x320xf32>
    %c0_102 = arith.constant 0 : index
    %c108_103 = arith.constant 108 : index
    %269 = vector.load %arg12[%c0_102, %c108_103] : memref<16x490xf32, #tpu.memory_space<vmem>>, vector<8x320xf32>
    %270 = vector.extract_strided_slice %264 {offsets = [0, 1], sizes = [8, 1], strides = [1, 1]} : vector<8x9xf32> to vector<8x1xf32>
    %271 = vector.broadcast %270 : vector<8x1xf32> to vector<8x320xf32>
    %272 = arith.mulf %269, %271 : vector<8x320xf32>
    %273 = arith.addf %268, %272 : vector<8x320xf32>
    %c0_104 = arith.constant 0 : index
    %c109_105 = arith.constant 109 : index
    %274 = vector.load %arg12[%c0_104, %c109_105] : memref<16x490xf32, #tpu.memory_space<vmem>>, vector<8x320xf32>
    %275 = vector.extract_strided_slice %264 {offsets = [0, 2], sizes = [8, 1], strides = [1, 1]} : vector<8x9xf32> to vector<8x1xf32>
    %276 = vector.broadcast %275 : vector<8x1xf32> to vector<8x320xf32>
    %277 = arith.mulf %274, %276 : vector<8x320xf32>
    %278 = arith.addf %273, %277 : vector<8x320xf32>
    %c0_106 = arith.constant 0 : index
    %c127_107 = arith.constant 127 : index
    %279 = vector.load %arg12[%c0_106, %c127_107] : memref<16x490xf32, #tpu.memory_space<vmem>>, vector<8x320xf32>
    %280 = vector.extract_strided_slice %264 {offsets = [0, 3], sizes = [8, 1], strides = [1, 1]} : vector<8x9xf32> to vector<8x1xf32>
    %281 = vector.broadcast %280 : vector<8x1xf32> to vector<8x320xf32>
    %282 = arith.mulf %279, %281 : vector<8x320xf32>
    %283 = arith.addf %278, %282 : vector<8x320xf32>
    %c0_108 = arith.constant 0 : index
    %c128_109 = arith.constant 128 : index
    %284 = vector.load %arg12[%c0_108, %c128_109] : memref<16x490xf32, #tpu.memory_space<vmem>>, vector<8x320xf32>
    %285 = vector.extract_strided_slice %264 {offsets = [0, 4], sizes = [8, 1], strides = [1, 1]} : vector<8x9xf32> to vector<8x1xf32>
    %286 = vector.broadcast %285 : vector<8x1xf32> to vector<8x320xf32>
    %287 = arith.mulf %284, %286 : vector<8x320xf32>
    %288 = arith.addf %283, %287 : vector<8x320xf32>
    %c0_110 = arith.constant 0 : index
    %c129_111 = arith.constant 129 : index
    %289 = vector.load %arg12[%c0_110, %c129_111] : memref<16x490xf32, #tpu.memory_space<vmem>>, vector<8x320xf32>
    %290 = vector.extract_strided_slice %264 {offsets = [0, 5], sizes = [8, 1], strides = [1, 1]} : vector<8x9xf32> to vector<8x1xf32>
    %291 = vector.broadcast %290 : vector<8x1xf32> to vector<8x320xf32>
    %292 = arith.mulf %289, %291 : vector<8x320xf32>
    %293 = arith.addf %288, %292 : vector<8x320xf32>
    %c0_112 = arith.constant 0 : index
    %c147_113 = arith.constant 147 : index
    %294 = vector.load %arg12[%c0_112, %c147_113] : memref<16x490xf32, #tpu.memory_space<vmem>>, vector<8x320xf32>
    %295 = vector.extract_strided_slice %264 {offsets = [0, 6], sizes = [8, 1], strides = [1, 1]} : vector<8x9xf32> to vector<8x1xf32>
    %296 = vector.broadcast %295 : vector<8x1xf32> to vector<8x320xf32>
    %297 = arith.mulf %294, %296 : vector<8x320xf32>
    %298 = arith.addf %293, %297 : vector<8x320xf32>
    %c0_114 = arith.constant 0 : index
    %c148_115 = arith.constant 148 : index
    %299 = vector.load %arg12[%c0_114, %c148_115] : memref<16x490xf32, #tpu.memory_space<vmem>>, vector<8x320xf32>
    %300 = vector.extract_strided_slice %264 {offsets = [0, 7], sizes = [8, 1], strides = [1, 1]} : vector<8x9xf32> to vector<8x1xf32>
    %301 = vector.broadcast %300 : vector<8x1xf32> to vector<8x320xf32>
    %302 = arith.mulf %299, %301 : vector<8x320xf32>
    %303 = arith.addf %298, %302 : vector<8x320xf32>
    %c0_116 = arith.constant 0 : index
    %c149_117 = arith.constant 149 : index
    %304 = vector.load %arg12[%c0_116, %c149_117] : memref<16x490xf32, #tpu.memory_space<vmem>>, vector<8x320xf32>
    %305 = vector.extract_strided_slice %264 {offsets = [0, 8], sizes = [8, 1], strides = [1, 1]} : vector<8x9xf32> to vector<8x1xf32>
    %306 = vector.broadcast %305 : vector<8x1xf32> to vector<8x320xf32>
    %307 = arith.mulf %304, %306 : vector<8x320xf32>
    %308 = arith.addf %303, %307 : vector<8x320xf32>
    %cst_118 = arith.constant 0.000000e+00 : f32
    %309 = vector.broadcast %cst_118 : f32 to vector<8x320xf32>
    %310 = arith.maximumf %308, %309 : vector<8x320xf32>
    %311 = vector.extract_strided_slice %216 {offsets = [0, 0], sizes = [8, 25], strides = [1, 1]} : vector<16x25xf32> to vector<8x25xf32>
    %c8 = arith.constant 8 : index
    %c86_119 = arith.constant 86 : index
    %312 = vector.load %arg11[%c8, %c86_119] : memref<16x490xf32, #tpu.memory_space<vmem>>, vector<8x320xf32>
    %313 = vector.extract_strided_slice %311 {offsets = [0, 0], sizes = [8, 1], strides = [1, 1]} : vector<8x25xf32> to vector<8x1xf32>
    %314 = vector.broadcast %313 : vector<8x1xf32> to vector<8x320xf32>
    %315 = arith.mulf %312, %314 : vector<8x320xf32>
    %c8_120 = arith.constant 8 : index
    %c87_121 = arith.constant 87 : index
    %316 = vector.load %arg11[%c8_120, %c87_121] : memref<16x490xf32, #tpu.memory_space<vmem>>, vector<8x320xf32>
    %317 = vector.extract_strided_slice %311 {offsets = [0, 1], sizes = [8, 1], strides = [1, 1]} : vector<8x25xf32> to vector<8x1xf32>
    %318 = vector.broadcast %317 : vector<8x1xf32> to vector<8x320xf32>
    %319 = arith.mulf %316, %318 : vector<8x320xf32>
    %320 = arith.addf %315, %319 : vector<8x320xf32>
    %c8_122 = arith.constant 8 : index
    %c88_123 = arith.constant 88 : index
    %321 = vector.load %arg11[%c8_122, %c88_123] : memref<16x490xf32, #tpu.memory_space<vmem>>, vector<8x320xf32>
    %322 = vector.extract_strided_slice %311 {offsets = [0, 2], sizes = [8, 1], strides = [1, 1]} : vector<8x25xf32> to vector<8x1xf32>
    %323 = vector.broadcast %322 : vector<8x1xf32> to vector<8x320xf32>
    %324 = arith.mulf %321, %323 : vector<8x320xf32>
    %325 = arith.addf %320, %324 : vector<8x320xf32>
    %c8_124 = arith.constant 8 : index
    %c89_125 = arith.constant 89 : index
    %326 = vector.load %arg11[%c8_124, %c89_125] : memref<16x490xf32, #tpu.memory_space<vmem>>, vector<8x320xf32>
    %327 = vector.extract_strided_slice %311 {offsets = [0, 3], sizes = [8, 1], strides = [1, 1]} : vector<8x25xf32> to vector<8x1xf32>
    %328 = vector.broadcast %327 : vector<8x1xf32> to vector<8x320xf32>
    %329 = arith.mulf %326, %328 : vector<8x320xf32>
    %330 = arith.addf %325, %329 : vector<8x320xf32>
    %c8_126 = arith.constant 8 : index
    %c90_127 = arith.constant 90 : index
    %331 = vector.load %arg11[%c8_126, %c90_127] : memref<16x490xf32, #tpu.memory_space<vmem>>, vector<8x320xf32>
    %332 = vector.extract_strided_slice %311 {offsets = [0, 4], sizes = [8, 1], strides = [1, 1]} : vector<8x25xf32> to vector<8x1xf32>
    %333 = vector.broadcast %332 : vector<8x1xf32> to vector<8x320xf32>
    %334 = arith.mulf %331, %333 : vector<8x320xf32>
    %335 = arith.addf %330, %334 : vector<8x320xf32>
    %c8_128 = arith.constant 8 : index
    %c106_129 = arith.constant 106 : index
    %336 = vector.load %arg11[%c8_128, %c106_129] : memref<16x490xf32, #tpu.memory_space<vmem>>, vector<8x320xf32>
    %337 = vector.extract_strided_slice %311 {offsets = [0, 5], sizes = [8, 1], strides = [1, 1]} : vector<8x25xf32> to vector<8x1xf32>
    %338 = vector.broadcast %337 : vector<8x1xf32> to vector<8x320xf32>
    %339 = arith.mulf %336, %338 : vector<8x320xf32>
    %340 = arith.addf %335, %339 : vector<8x320xf32>
    %c8_130 = arith.constant 8 : index
    %c107_131 = arith.constant 107 : index
    %341 = vector.load %arg11[%c8_130, %c107_131] : memref<16x490xf32, #tpu.memory_space<vmem>>, vector<8x320xf32>
    %342 = vector.extract_strided_slice %311 {offsets = [0, 6], sizes = [8, 1], strides = [1, 1]} : vector<8x25xf32> to vector<8x1xf32>
    %343 = vector.broadcast %342 : vector<8x1xf32> to vector<8x320xf32>
    %344 = arith.mulf %341, %343 : vector<8x320xf32>
    %345 = arith.addf %340, %344 : vector<8x320xf32>
    %c8_132 = arith.constant 8 : index
    %c108_133 = arith.constant 108 : index
    %346 = vector.load %arg11[%c8_132, %c108_133] : memref<16x490xf32, #tpu.memory_space<vmem>>, vector<8x320xf32>
    %347 = vector.extract_strided_slice %311 {offsets = [0, 7], sizes = [8, 1], strides = [1, 1]} : vector<8x25xf32> to vector<8x1xf32>
    %348 = vector.broadcast %347 : vector<8x1xf32> to vector<8x320xf32>
    %349 = arith.mulf %346, %348 : vector<8x320xf32>
    %350 = arith.addf %345, %349 : vector<8x320xf32>
    %c8_134 = arith.constant 8 : index
    %c109_135 = arith.constant 109 : index
    %351 = vector.load %arg11[%c8_134, %c109_135] : memref<16x490xf32, #tpu.memory_space<vmem>>, vector<8x320xf32>
    %352 = vector.extract_strided_slice %311 {offsets = [0, 8], sizes = [8, 1], strides = [1, 1]} : vector<8x25xf32> to vector<8x1xf32>
    %353 = vector.broadcast %352 : vector<8x1xf32> to vector<8x320xf32>
    %354 = arith.mulf %351, %353 : vector<8x320xf32>
    %355 = arith.addf %350, %354 : vector<8x320xf32>
    %c8_136 = arith.constant 8 : index
    %c110_137 = arith.constant 110 : index
    %356 = vector.load %arg11[%c8_136, %c110_137] : memref<16x490xf32, #tpu.memory_space<vmem>>, vector<8x320xf32>
    %357 = vector.extract_strided_slice %311 {offsets = [0, 9], sizes = [8, 1], strides = [1, 1]} : vector<8x25xf32> to vector<8x1xf32>
    %358 = vector.broadcast %357 : vector<8x1xf32> to vector<8x320xf32>
    %359 = arith.mulf %356, %358 : vector<8x320xf32>
    %360 = arith.addf %355, %359 : vector<8x320xf32>
    %c8_138 = arith.constant 8 : index
    %c126_139 = arith.constant 126 : index
    %361 = vector.load %arg11[%c8_138, %c126_139] : memref<16x490xf32, #tpu.memory_space<vmem>>, vector<8x320xf32>
    %362 = vector.extract_strided_slice %311 {offsets = [0, 10], sizes = [8, 1], strides = [1, 1]} : vector<8x25xf32> to vector<8x1xf32>
    %363 = vector.broadcast %362 : vector<8x1xf32> to vector<8x320xf32>
    %364 = arith.mulf %361, %363 : vector<8x320xf32>
    %365 = arith.addf %360, %364 : vector<8x320xf32>
    %c8_140 = arith.constant 8 : index
    %c127_141 = arith.constant 127 : index
    %366 = vector.load %arg11[%c8_140, %c127_141] : memref<16x490xf32, #tpu.memory_space<vmem>>, vector<8x320xf32>
    %367 = vector.extract_strided_slice %311 {offsets = [0, 11], sizes = [8, 1], strides = [1, 1]} : vector<8x25xf32> to vector<8x1xf32>
    %368 = vector.broadcast %367 : vector<8x1xf32> to vector<8x320xf32>
    %369 = arith.mulf %366, %368 : vector<8x320xf32>
    %370 = arith.addf %365, %369 : vector<8x320xf32>
    %c8_142 = arith.constant 8 : index
    %c128_143 = arith.constant 128 : index
    %371 = vector.load %arg11[%c8_142, %c128_143] : memref<16x490xf32, #tpu.memory_space<vmem>>, vector<8x320xf32>
    %372 = vector.extract_strided_slice %311 {offsets = [0, 12], sizes = [8, 1], strides = [1, 1]} : vector<8x25xf32> to vector<8x1xf32>
    %373 = vector.broadcast %372 : vector<8x1xf32> to vector<8x320xf32>
    %374 = arith.mulf %371, %373 : vector<8x320xf32>
    %375 = arith.addf %370, %374 : vector<8x320xf32>
    %c8_144 = arith.constant 8 : index
    %c129_145 = arith.constant 129 : index
    %376 = vector.load %arg11[%c8_144, %c129_145] : memref<16x490xf32, #tpu.memory_space<vmem>>, vector<8x320xf32>
    %377 = vector.extract_strided_slice %311 {offsets = [0, 13], sizes = [8, 1], strides = [1, 1]} : vector<8x25xf32> to vector<8x1xf32>
    %378 = vector.broadcast %377 : vector<8x1xf32> to vector<8x320xf32>
    %379 = arith.mulf %376, %378 : vector<8x320xf32>
    %380 = arith.addf %375, %379 : vector<8x320xf32>
    %c8_146 = arith.constant 8 : index
    %c130_147 = arith.constant 130 : index
    %381 = vector.load %arg11[%c8_146, %c130_147] : memref<16x490xf32, #tpu.memory_space<vmem>>, vector<8x320xf32>
    %382 = vector.extract_strided_slice %311 {offsets = [0, 14], sizes = [8, 1], strides = [1, 1]} : vector<8x25xf32> to vector<8x1xf32>
    %383 = vector.broadcast %382 : vector<8x1xf32> to vector<8x320xf32>
    %384 = arith.mulf %381, %383 : vector<8x320xf32>
    %385 = arith.addf %380, %384 : vector<8x320xf32>
    %c8_148 = arith.constant 8 : index
    %c146_149 = arith.constant 146 : index
    %386 = vector.load %arg11[%c8_148, %c146_149] : memref<16x490xf32, #tpu.memory_space<vmem>>, vector<8x320xf32>
    %387 = vector.extract_strided_slice %311 {offsets = [0, 15], sizes = [8, 1], strides = [1, 1]} : vector<8x25xf32> to vector<8x1xf32>
    %388 = vector.broadcast %387 : vector<8x1xf32> to vector<8x320xf32>
    %389 = arith.mulf %386, %388 : vector<8x320xf32>
    %390 = arith.addf %385, %389 : vector<8x320xf32>
    %c8_150 = arith.constant 8 : index
    %c147_151 = arith.constant 147 : index
    %391 = vector.load %arg11[%c8_150, %c147_151] : memref<16x490xf32, #tpu.memory_space<vmem>>, vector<8x320xf32>
    %392 = vector.extract_strided_slice %311 {offsets = [0, 16], sizes = [8, 1], strides = [1, 1]} : vector<8x25xf32> to vector<8x1xf32>
    %393 = vector.broadcast %392 : vector<8x1xf32> to vector<8x320xf32>
    %394 = arith.mulf %391, %393 : vector<8x320xf32>
    %395 = arith.addf %390, %394 : vector<8x320xf32>
    %c8_152 = arith.constant 8 : index
    %c148_153 = arith.constant 148 : index
    %396 = vector.load %arg11[%c8_152, %c148_153] : memref<16x490xf32, #tpu.memory_space<vmem>>, vector<8x320xf32>
    %397 = vector.extract_strided_slice %311 {offsets = [0, 17], sizes = [8, 1], strides = [1, 1]} : vector<8x25xf32> to vector<8x1xf32>
    %398 = vector.broadcast %397 : vector<8x1xf32> to vector<8x320xf32>
    %399 = arith.mulf %396, %398 : vector<8x320xf32>
    %400 = arith.addf %395, %399 : vector<8x320xf32>
    %c8_154 = arith.constant 8 : index
    %c149_155 = arith.constant 149 : index
    %401 = vector.load %arg11[%c8_154, %c149_155] : memref<16x490xf32, #tpu.memory_space<vmem>>, vector<8x320xf32>
    %402 = vector.extract_strided_slice %311 {offsets = [0, 18], sizes = [8, 1], strides = [1, 1]} : vector<8x25xf32> to vector<8x1xf32>
    %403 = vector.broadcast %402 : vector<8x1xf32> to vector<8x320xf32>
    %404 = arith.mulf %401, %403 : vector<8x320xf32>
    %405 = arith.addf %400, %404 : vector<8x320xf32>
    %c8_156 = arith.constant 8 : index
    %c150_157 = arith.constant 150 : index
    %406 = vector.load %arg11[%c8_156, %c150_157] : memref<16x490xf32, #tpu.memory_space<vmem>>, vector<8x320xf32>
    %407 = vector.extract_strided_slice %311 {offsets = [0, 19], sizes = [8, 1], strides = [1, 1]} : vector<8x25xf32> to vector<8x1xf32>
    %408 = vector.broadcast %407 : vector<8x1xf32> to vector<8x320xf32>
    %409 = arith.mulf %406, %408 : vector<8x320xf32>
    %410 = arith.addf %405, %409 : vector<8x320xf32>
    %c8_158 = arith.constant 8 : index
    %c166_159 = arith.constant 166 : index
    %411 = vector.load %arg11[%c8_158, %c166_159] : memref<16x490xf32, #tpu.memory_space<vmem>>, vector<8x320xf32>
    %412 = vector.extract_strided_slice %311 {offsets = [0, 20], sizes = [8, 1], strides = [1, 1]} : vector<8x25xf32> to vector<8x1xf32>
    %413 = vector.broadcast %412 : vector<8x1xf32> to vector<8x320xf32>
    %414 = arith.mulf %411, %413 : vector<8x320xf32>
    %415 = arith.addf %410, %414 : vector<8x320xf32>
    %c8_160 = arith.constant 8 : index
    %c167_161 = arith.constant 167 : index
    %416 = vector.load %arg11[%c8_160, %c167_161] : memref<16x490xf32, #tpu.memory_space<vmem>>, vector<8x320xf32>
    %417 = vector.extract_strided_slice %311 {offsets = [0, 21], sizes = [8, 1], strides = [1, 1]} : vector<8x25xf32> to vector<8x1xf32>
    %418 = vector.broadcast %417 : vector<8x1xf32> to vector<8x320xf32>
    %419 = arith.mulf %416, %418 : vector<8x320xf32>
    %420 = arith.addf %415, %419 : vector<8x320xf32>
    %c8_162 = arith.constant 8 : index
    %c168_163 = arith.constant 168 : index
    %421 = vector.load %arg11[%c8_162, %c168_163] : memref<16x490xf32, #tpu.memory_space<vmem>>, vector<8x320xf32>
    %422 = vector.extract_strided_slice %311 {offsets = [0, 22], sizes = [8, 1], strides = [1, 1]} : vector<8x25xf32> to vector<8x1xf32>
    %423 = vector.broadcast %422 : vector<8x1xf32> to vector<8x320xf32>
    %424 = arith.mulf %421, %423 : vector<8x320xf32>
    %425 = arith.addf %420, %424 : vector<8x320xf32>
    %c8_164 = arith.constant 8 : index
    %c169_165 = arith.constant 169 : index
    %426 = vector.load %arg11[%c8_164, %c169_165] : memref<16x490xf32, #tpu.memory_space<vmem>>, vector<8x320xf32>
    %427 = vector.extract_strided_slice %311 {offsets = [0, 23], sizes = [8, 1], strides = [1, 1]} : vector<8x25xf32> to vector<8x1xf32>
    %428 = vector.broadcast %427 : vector<8x1xf32> to vector<8x320xf32>
    %429 = arith.mulf %426, %428 : vector<8x320xf32>
    %430 = arith.addf %425, %429 : vector<8x320xf32>
    %c8_166 = arith.constant 8 : index
    %c170_167 = arith.constant 170 : index
    %431 = vector.load %arg11[%c8_166, %c170_167] : memref<16x490xf32, #tpu.memory_space<vmem>>, vector<8x320xf32>
    %432 = vector.extract_strided_slice %311 {offsets = [0, 24], sizes = [8, 1], strides = [1, 1]} : vector<8x25xf32> to vector<8x1xf32>
    %433 = vector.broadcast %432 : vector<8x1xf32> to vector<8x320xf32>
    %434 = arith.mulf %431, %433 : vector<8x320xf32>
    %435 = arith.addf %430, %434 : vector<8x320xf32>
    %cst_168 = arith.constant 0.000000e+00 : f32
    %436 = vector.broadcast %cst_168 : f32 to vector<8x320xf32>
    %437 = arith.maximumf %435, %436 : vector<8x320xf32>
    %438 = vector.extract_strided_slice %216 {offsets = [8, 0], sizes = [8, 25], strides = [1, 1]} : vector<16x25xf32> to vector<8x25xf32>
    %c8_169 = arith.constant 8 : index
    %c86_170 = arith.constant 86 : index
    %439 = vector.load %arg12[%c8_169, %c86_170] : memref<16x490xf32, #tpu.memory_space<vmem>>, vector<8x320xf32>
    %440 = vector.extract_strided_slice %438 {offsets = [0, 0], sizes = [8, 1], strides = [1, 1]} : vector<8x25xf32> to vector<8x1xf32>
    %441 = vector.broadcast %440 : vector<8x1xf32> to vector<8x320xf32>
    %442 = arith.mulf %439, %441 : vector<8x320xf32>
    %c8_171 = arith.constant 8 : index
    %c87_172 = arith.constant 87 : index
    %443 = vector.load %arg12[%c8_171, %c87_172] : memref<16x490xf32, #tpu.memory_space<vmem>>, vector<8x320xf32>
    %444 = vector.extract_strided_slice %438 {offsets = [0, 1], sizes = [8, 1], strides = [1, 1]} : vector<8x25xf32> to vector<8x1xf32>
    %445 = vector.broadcast %444 : vector<8x1xf32> to vector<8x320xf32>
    %446 = arith.mulf %443, %445 : vector<8x320xf32>
    %447 = arith.addf %442, %446 : vector<8x320xf32>
    %c8_173 = arith.constant 8 : index
    %c88_174 = arith.constant 88 : index
    %448 = vector.load %arg12[%c8_173, %c88_174] : memref<16x490xf32, #tpu.memory_space<vmem>>, vector<8x320xf32>
    %449 = vector.extract_strided_slice %438 {offsets = [0, 2], sizes = [8, 1], strides = [1, 1]} : vector<8x25xf32> to vector<8x1xf32>
    %450 = vector.broadcast %449 : vector<8x1xf32> to vector<8x320xf32>
    %451 = arith.mulf %448, %450 : vector<8x320xf32>
    %452 = arith.addf %447, %451 : vector<8x320xf32>
    %c8_175 = arith.constant 8 : index
    %c89_176 = arith.constant 89 : index
    %453 = vector.load %arg12[%c8_175, %c89_176] : memref<16x490xf32, #tpu.memory_space<vmem>>, vector<8x320xf32>
    %454 = vector.extract_strided_slice %438 {offsets = [0, 3], sizes = [8, 1], strides = [1, 1]} : vector<8x25xf32> to vector<8x1xf32>
    %455 = vector.broadcast %454 : vector<8x1xf32> to vector<8x320xf32>
    %456 = arith.mulf %453, %455 : vector<8x320xf32>
    %457 = arith.addf %452, %456 : vector<8x320xf32>
    %c8_177 = arith.constant 8 : index
    %c90_178 = arith.constant 90 : index
    %458 = vector.load %arg12[%c8_177, %c90_178] : memref<16x490xf32, #tpu.memory_space<vmem>>, vector<8x320xf32>
    %459 = vector.extract_strided_slice %438 {offsets = [0, 4], sizes = [8, 1], strides = [1, 1]} : vector<8x25xf32> to vector<8x1xf32>
    %460 = vector.broadcast %459 : vector<8x1xf32> to vector<8x320xf32>
    %461 = arith.mulf %458, %460 : vector<8x320xf32>
    %462 = arith.addf %457, %461 : vector<8x320xf32>
    %c8_179 = arith.constant 8 : index
    %c106_180 = arith.constant 106 : index
    %463 = vector.load %arg12[%c8_179, %c106_180] : memref<16x490xf32, #tpu.memory_space<vmem>>, vector<8x320xf32>
    %464 = vector.extract_strided_slice %438 {offsets = [0, 5], sizes = [8, 1], strides = [1, 1]} : vector<8x25xf32> to vector<8x1xf32>
    %465 = vector.broadcast %464 : vector<8x1xf32> to vector<8x320xf32>
    %466 = arith.mulf %463, %465 : vector<8x320xf32>
    %467 = arith.addf %462, %466 : vector<8x320xf32>
    %c8_181 = arith.constant 8 : index
    %c107_182 = arith.constant 107 : index
    %468 = vector.load %arg12[%c8_181, %c107_182] : memref<16x490xf32, #tpu.memory_space<vmem>>, vector<8x320xf32>
    %469 = vector.extract_strided_slice %438 {offsets = [0, 6], sizes = [8, 1], strides = [1, 1]} : vector<8x25xf32> to vector<8x1xf32>
    %470 = vector.broadcast %469 : vector<8x1xf32> to vector<8x320xf32>
    %471 = arith.mulf %468, %470 : vector<8x320xf32>
    %472 = arith.addf %467, %471 : vector<8x320xf32>
    %c8_183 = arith.constant 8 : index
    %c108_184 = arith.constant 108 : index
    %473 = vector.load %arg12[%c8_183, %c108_184] : memref<16x490xf32, #tpu.memory_space<vmem>>, vector<8x320xf32>
    %474 = vector.extract_strided_slice %438 {offsets = [0, 7], sizes = [8, 1], strides = [1, 1]} : vector<8x25xf32> to vector<8x1xf32>
    %475 = vector.broadcast %474 : vector<8x1xf32> to vector<8x320xf32>
    %476 = arith.mulf %473, %475 : vector<8x320xf32>
    %477 = arith.addf %472, %476 : vector<8x320xf32>
    %c8_185 = arith.constant 8 : index
    %c109_186 = arith.constant 109 : index
    %478 = vector.load %arg12[%c8_185, %c109_186] : memref<16x490xf32, #tpu.memory_space<vmem>>, vector<8x320xf32>
    %479 = vector.extract_strided_slice %438 {offsets = [0, 8], sizes = [8, 1], strides = [1, 1]} : vector<8x25xf32> to vector<8x1xf32>
    %480 = vector.broadcast %479 : vector<8x1xf32> to vector<8x320xf32>
    %481 = arith.mulf %478, %480 : vector<8x320xf32>
    %482 = arith.addf %477, %481 : vector<8x320xf32>
    %c8_187 = arith.constant 8 : index
    %c110_188 = arith.constant 110 : index
    %483 = vector.load %arg12[%c8_187, %c110_188] : memref<16x490xf32, #tpu.memory_space<vmem>>, vector<8x320xf32>
    %484 = vector.extract_strided_slice %438 {offsets = [0, 9], sizes = [8, 1], strides = [1, 1]} : vector<8x25xf32> to vector<8x1xf32>
    %485 = vector.broadcast %484 : vector<8x1xf32> to vector<8x320xf32>
    %486 = arith.mulf %483, %485 : vector<8x320xf32>
    %487 = arith.addf %482, %486 : vector<8x320xf32>
    %c8_189 = arith.constant 8 : index
    %c126_190 = arith.constant 126 : index
    %488 = vector.load %arg12[%c8_189, %c126_190] : memref<16x490xf32, #tpu.memory_space<vmem>>, vector<8x320xf32>
    %489 = vector.extract_strided_slice %438 {offsets = [0, 10], sizes = [8, 1], strides = [1, 1]} : vector<8x25xf32> to vector<8x1xf32>
    %490 = vector.broadcast %489 : vector<8x1xf32> to vector<8x320xf32>
    %491 = arith.mulf %488, %490 : vector<8x320xf32>
    %492 = arith.addf %487, %491 : vector<8x320xf32>
    %c8_191 = arith.constant 8 : index
    %c127_192 = arith.constant 127 : index
    %493 = vector.load %arg12[%c8_191, %c127_192] : memref<16x490xf32, #tpu.memory_space<vmem>>, vector<8x320xf32>
    %494 = vector.extract_strided_slice %438 {offsets = [0, 11], sizes = [8, 1], strides = [1, 1]} : vector<8x25xf32> to vector<8x1xf32>
    %495 = vector.broadcast %494 : vector<8x1xf32> to vector<8x320xf32>
    %496 = arith.mulf %493, %495 : vector<8x320xf32>
    %497 = arith.addf %492, %496 : vector<8x320xf32>
    %c8_193 = arith.constant 8 : index
    %c128_194 = arith.constant 128 : index
    %498 = vector.load %arg12[%c8_193, %c128_194] : memref<16x490xf32, #tpu.memory_space<vmem>>, vector<8x320xf32>
    %499 = vector.extract_strided_slice %438 {offsets = [0, 12], sizes = [8, 1], strides = [1, 1]} : vector<8x25xf32> to vector<8x1xf32>
    %500 = vector.broadcast %499 : vector<8x1xf32> to vector<8x320xf32>
    %501 = arith.mulf %498, %500 : vector<8x320xf32>
    %502 = arith.addf %497, %501 : vector<8x320xf32>
    %c8_195 = arith.constant 8 : index
    %c129_196 = arith.constant 129 : index
    %503 = vector.load %arg12[%c8_195, %c129_196] : memref<16x490xf32, #tpu.memory_space<vmem>>, vector<8x320xf32>
    %504 = vector.extract_strided_slice %438 {offsets = [0, 13], sizes = [8, 1], strides = [1, 1]} : vector<8x25xf32> to vector<8x1xf32>
    %505 = vector.broadcast %504 : vector<8x1xf32> to vector<8x320xf32>
    %506 = arith.mulf %503, %505 : vector<8x320xf32>
    %507 = arith.addf %502, %506 : vector<8x320xf32>
    %c8_197 = arith.constant 8 : index
    %c130_198 = arith.constant 130 : index
    %508 = vector.load %arg12[%c8_197, %c130_198] : memref<16x490xf32, #tpu.memory_space<vmem>>, vector<8x320xf32>
    %509 = vector.extract_strided_slice %438 {offsets = [0, 14], sizes = [8, 1], strides = [1, 1]} : vector<8x25xf32> to vector<8x1xf32>
    %510 = vector.broadcast %509 : vector<8x1xf32> to vector<8x320xf32>
    %511 = arith.mulf %508, %510 : vector<8x320xf32>
    %512 = arith.addf %507, %511 : vector<8x320xf32>
    %c8_199 = arith.constant 8 : index
    %c146_200 = arith.constant 146 : index
    %513 = vector.load %arg12[%c8_199, %c146_200] : memref<16x490xf32, #tpu.memory_space<vmem>>, vector<8x320xf32>
    %514 = vector.extract_strided_slice %438 {offsets = [0, 15], sizes = [8, 1], strides = [1, 1]} : vector<8x25xf32> to vector<8x1xf32>
    %515 = vector.broadcast %514 : vector<8x1xf32> to vector<8x320xf32>
    %516 = arith.mulf %513, %515 : vector<8x320xf32>
    %517 = arith.addf %512, %516 : vector<8x320xf32>
    %c8_201 = arith.constant 8 : index
    %c147_202 = arith.constant 147 : index
    %518 = vector.load %arg12[%c8_201, %c147_202] : memref<16x490xf32, #tpu.memory_space<vmem>>, vector<8x320xf32>
    %519 = vector.extract_strided_slice %438 {offsets = [0, 16], sizes = [8, 1], strides = [1, 1]} : vector<8x25xf32> to vector<8x1xf32>
    %520 = vector.broadcast %519 : vector<8x1xf32> to vector<8x320xf32>
    %521 = arith.mulf %518, %520 : vector<8x320xf32>
    %522 = arith.addf %517, %521 : vector<8x320xf32>
    %c8_203 = arith.constant 8 : index
    %c148_204 = arith.constant 148 : index
    %523 = vector.load %arg12[%c8_203, %c148_204] : memref<16x490xf32, #tpu.memory_space<vmem>>, vector<8x320xf32>
    %524 = vector.extract_strided_slice %438 {offsets = [0, 17], sizes = [8, 1], strides = [1, 1]} : vector<8x25xf32> to vector<8x1xf32>
    %525 = vector.broadcast %524 : vector<8x1xf32> to vector<8x320xf32>
    %526 = arith.mulf %523, %525 : vector<8x320xf32>
    %527 = arith.addf %522, %526 : vector<8x320xf32>
    %c8_205 = arith.constant 8 : index
    %c149_206 = arith.constant 149 : index
    %528 = vector.load %arg12[%c8_205, %c149_206] : memref<16x490xf32, #tpu.memory_space<vmem>>, vector<8x320xf32>
    %529 = vector.extract_strided_slice %438 {offsets = [0, 18], sizes = [8, 1], strides = [1, 1]} : vector<8x25xf32> to vector<8x1xf32>
    %530 = vector.broadcast %529 : vector<8x1xf32> to vector<8x320xf32>
    %531 = arith.mulf %528, %530 : vector<8x320xf32>
    %532 = arith.addf %527, %531 : vector<8x320xf32>
    %c8_207 = arith.constant 8 : index
    %c150_208 = arith.constant 150 : index
    %533 = vector.load %arg12[%c8_207, %c150_208] : memref<16x490xf32, #tpu.memory_space<vmem>>, vector<8x320xf32>
    %534 = vector.extract_strided_slice %438 {offsets = [0, 19], sizes = [8, 1], strides = [1, 1]} : vector<8x25xf32> to vector<8x1xf32>
    %535 = vector.broadcast %534 : vector<8x1xf32> to vector<8x320xf32>
    %536 = arith.mulf %533, %535 : vector<8x320xf32>
    %537 = arith.addf %532, %536 : vector<8x320xf32>
    %c8_209 = arith.constant 8 : index
    %c166_210 = arith.constant 166 : index
    %538 = vector.load %arg12[%c8_209, %c166_210] : memref<16x490xf32, #tpu.memory_space<vmem>>, vector<8x320xf32>
    %539 = vector.extract_strided_slice %438 {offsets = [0, 20], sizes = [8, 1], strides = [1, 1]} : vector<8x25xf32> to vector<8x1xf32>
    %540 = vector.broadcast %539 : vector<8x1xf32> to vector<8x320xf32>
    %541 = arith.mulf %538, %540 : vector<8x320xf32>
    %542 = arith.addf %537, %541 : vector<8x320xf32>
    %c8_211 = arith.constant 8 : index
    %c167_212 = arith.constant 167 : index
    %543 = vector.load %arg12[%c8_211, %c167_212] : memref<16x490xf32, #tpu.memory_space<vmem>>, vector<8x320xf32>
    %544 = vector.extract_strided_slice %438 {offsets = [0, 21], sizes = [8, 1], strides = [1, 1]} : vector<8x25xf32> to vector<8x1xf32>
    %545 = vector.broadcast %544 : vector<8x1xf32> to vector<8x320xf32>
    %546 = arith.mulf %543, %545 : vector<8x320xf32>
    %547 = arith.addf %542, %546 : vector<8x320xf32>
    %c8_213 = arith.constant 8 : index
    %c168_214 = arith.constant 168 : index
    %548 = vector.load %arg12[%c8_213, %c168_214] : memref<16x490xf32, #tpu.memory_space<vmem>>, vector<8x320xf32>
    %549 = vector.extract_strided_slice %438 {offsets = [0, 22], sizes = [8, 1], strides = [1, 1]} : vector<8x25xf32> to vector<8x1xf32>
    %550 = vector.broadcast %549 : vector<8x1xf32> to vector<8x320xf32>
    %551 = arith.mulf %548, %550 : vector<8x320xf32>
    %552 = arith.addf %547, %551 : vector<8x320xf32>
    %c8_215 = arith.constant 8 : index
    %c169_216 = arith.constant 169 : index
    %553 = vector.load %arg12[%c8_215, %c169_216] : memref<16x490xf32, #tpu.memory_space<vmem>>, vector<8x320xf32>
    %554 = vector.extract_strided_slice %438 {offsets = [0, 23], sizes = [8, 1], strides = [1, 1]} : vector<8x25xf32> to vector<8x1xf32>
    %555 = vector.broadcast %554 : vector<8x1xf32> to vector<8x320xf32>
    %556 = arith.mulf %553, %555 : vector<8x320xf32>
    %557 = arith.addf %552, %556 : vector<8x320xf32>
    %c8_217 = arith.constant 8 : index
    %c170_218 = arith.constant 170 : index
    %558 = vector.load %arg12[%c8_217, %c170_218] : memref<16x490xf32, #tpu.memory_space<vmem>>, vector<8x320xf32>
    %559 = vector.extract_strided_slice %438 {offsets = [0, 24], sizes = [8, 1], strides = [1, 1]} : vector<8x25xf32> to vector<8x1xf32>
    %560 = vector.broadcast %559 : vector<8x1xf32> to vector<8x320xf32>
    %561 = arith.mulf %558, %560 : vector<8x320xf32>
    %562 = arith.addf %557, %561 : vector<8x320xf32>
    %cst_219 = arith.constant 0.000000e+00 : f32
    %563 = vector.broadcast %cst_219 : f32 to vector<8x320xf32>
    %564 = arith.maximumf %562, %563 : vector<8x320xf32>
    %565 = tpu.concatenate %263, %310, %437, %564 in 0 : vector<8x320xf32>, vector<8x320xf32>, vector<8x320xf32>, vector<8x320xf32> -> vector<32x320xf32>
    %566 = arith.truncf %565 : vector<32x320xf32> to vector<32x320xbf16>
    %c0_220 = arith.constant 0 : index
    %c0_221 = arith.constant 0 : index
    %567 = vector.load %arg9[%c0_220, %c0_221] : memref<8x32xf32, #tpu.memory_space<vmem>>, vector<8x32xf32>
    %568 = arith.truncf %567 : vector<8x32xf32> to vector<8x32xbf16>
    %cst_222 = arith.constant dense<0.000000e+00> : vector<8x320xf32>
    %569 = tpu.matmul %568, %566, %cst_222 {dimension_numbers = #tpu.dot_dimension_numbers<[1], [0], [0], [1], [0, 0, 1, 1], [], []>} : vector<8x32xbf16>, vector<32x320xbf16>, vector<8x320xf32> -> vector<8x320xf32>
    %570 = arith.addf %569, %1 : vector<8x320xf32>
    %c0_223 = arith.constant 0 : index
    %c0_224 = arith.constant 0 : index
    %c0_225 = arith.constant 0 : index
    %571 = vector.load %arg10[%c0_223, %c0_224, %c0_225] : memref<1x8x320xf32, #tpu.memory_space<vmem>>, vector<1x8x320xf32>
    %572 = vector.shape_cast %571 : vector<1x8x320xf32> to vector<8x320xf32>
    %573 = vector.shape_cast %570 : vector<8x320xf32> to vector<1x8x320xf32>
    tpu.vector_store %arg10[%c0_223, %c0_224, %c0_225], %573 {strides = array<i32>} : memref<1x8x320xf32, #tpu.memory_space<vmem>>, vector<1x8x320xf32>,
    return
  }
  func.func @transform_0(%arg0: i32) -> (i32, i32, i32) {
    %c0_i32 = arith.constant 0 : i32
    %c0_i32_0 = arith.constant 0 : i32
    %c0_i32_1 = arith.constant 0 : i32
    return %arg0, %c0_i32, %c0_i32_0 : i32, i32, i32
  }
  func.func @transform_1(%arg0: i32) -> (i32, i32) {
    %c0_i32 = arith.constant 0 : i32
    %c0_i32_0 = arith.constant 0 : i32
    %c0_i32_1 = arith.constant 0 : i32
    return %c0_i32, %c0_i32_0 : i32, i32
  }
  func.func @transform_2(%arg0: i32) -> (i32, i32) {
    %c0_i32 = arith.constant 0 : i32
    %c0_i32_0 = arith.constant 0 : i32
    %c0_i32_1 = arith.constant 0 : i32
    return %c0_i32, %c0_i32_0 : i32, i32
  }
  func.func @transform_3(%arg0: i32) -> (i32, i32) {
    %c0_i32 = arith.constant 0 : i32
    %c0_i32_0 = arith.constant 0 : i32
    %c0_i32_1 = arith.constant 0 : i32
    return %c0_i32, %c0_i32_0 : i32, i32
  }
  func.func @transform_4(%arg0: i32) -> (i32, i32) {
    %c0_i32 = arith.constant 0 : i32
    %c0_i32_0 = arith.constant 0 : i32
    %c0_i32_1 = arith.constant 0 : i32
    return %c0_i32, %c0_i32_0 : i32, i32
  }
  func.func @transform_5(%arg0: i32) -> (i32, i32) {
    %c0_i32 = arith.constant 0 : i32
    %c0_i32_0 = arith.constant 0 : i32
    %c0_i32_1 = arith.constant 0 : i32
    return %c0_i32, %c0_i32_0 : i32, i32
  }
  func.func @transform_6(%arg0: i32) -> (i32, i32) {
    %c0_i32 = arith.constant 0 : i32
    %c0_i32_0 = arith.constant 0 : i32
    %c0_i32_1 = arith.constant 0 : i32
    return %c0_i32, %c0_i32_0 : i32, i32
  }
  func.func @transform_7(%arg0: i32) -> (i32, i32) {
    %c0_i32 = arith.constant 0 : i32
    %c0_i32_0 = arith.constant 0 : i32
    %c0_i32_1 = arith.constant 0 : i32
    return %c0_i32, %c0_i32_0 : i32, i32
  }
  func.func @transform_8(%arg0: i32) -> (i32, i32) {
    %c0_i32 = arith.constant 0 : i32
    %c0_i32_0 = arith.constant 0 : i32
    %c0_i32_1 = arith.constant 0 : i32
    return %c0_i32, %c0_i32_0 : i32, i32
  }
  func.func @transform_9(%arg0: i32) -> (i32, i32, i32) {
    %c0_i32 = arith.constant 0 : i32
    %c0_i32_0 = arith.constant 0 : i32
    %c0_i32_1 = arith.constant 0 : i32
    return %arg0, %c0_i32, %c0_i32_0 : i32, i32, i32
  }
}

</mosaic_0001>

<bundles_post_ra>
// kernel: tpu_custom_call.1
= control target key start
LH: loop header
LB: loop body
LE: loop exit
PB: predicated region body
PF: predicated region fallthrough
CT: control target
= control target key end

     0   :  { %s9302_s0 = inlined_call_operand.hbm [shape: f32[2,8,320], index: 0, kind: input, shape index: {}]   ;;  %s9303_s1 = inlined_call_operand.vmem [shape: f32[16,8], index: 1, kind: input, shape index: {}]   ;;  %s9304_s2 = inlined_call_operand.vmem [shape: f32[16,1], index: 2, kind: input, shape index: {}]   ;;  %s9305_s3 = inlined_call_operand.vmem [shape: f32[16,9], index: 3, kind: input, shape index: {}]   ;;  %s9306_s4 = inlined_call_operand.vmem [shape: f32[16,25], index: 4, kind: input, shape index: {}]   ;;  %s9307_s5 = inlined_call_operand.vmem [shape: f32[16,9], index: 5, kind: input, shape index: {}]   ;;  %s9308_s6 = inlined_call_operand.hbm [shape: f32[16,25], index: 6, kind: input, shape index: {}]   ;;  %s9309_s7 = inlined_call_operand.vmem [shape: f32[1,320], index: 7, kind: input, shape index: {}]   ;;  %s9310_s8 = inlined_call_operand.vmem [shape: f32[8,32], index: 8, kind: input, shape index: {}]   ;;  %s9311_s9 = inlined_call_operand.hbm [shape: f32[2,8,320], index: 9, kind: output, shape index: {}]  }
   0x1   :  { %9647 = sst [smem:[#allocation189_spill]] %s9308_s6 }
   0x2   :  { %14 = vsyncpa [#allocation5], 0 }
   0x3   :  { %16 = vsyncpa [#allocation5 + $0x1], 0 }
   0x4   :  { %17 = vsyncpa [#allocation8], 0 }
   0x5   :  { %18 = vsyncpa [#allocation6], 0 }
   0x6   :  { %20 = vsyncpa [#allocation6 + $0x1], 0  ;;  %s5305_s30 = smov 0   ;;  %s5307_s10 = smov 0  }
   0x7   :  { %s5309_s11 = smov 0   ;;  %s5311_s12 = smov 0  }
   0x8 LB: > { %s5326_s13 = sadd.s32 4294967295, %s5195_s12   ;;  %s4744_s14 = sadd.s32 4294967294, %s5195_s12   ;;  %s5195_s12 = sphi %s5311_s12, %s10344_s12   ;;  %s5191_s11 = sphi %s5309_s11, %s10348_s11   ;;  %s5187_s10 = sphi %s5307_s10, %s10347_s10   ;;  %s5183_s30 = sphi %s5305_s30, %s10346_s30  }
   0x9   : > { %p46_p0 = scmp.ne.s32.totalorder %s5187_s10, %s5183_s30  ;;  %p9312_p1 = scmp.eq.s32.totalorder %s5326_s13, 0 }
   0xa   : > { %p244_p3 = scmp.eq.s32.totalorder %s4744_s14, 1  ;;  %p4745_p5 = scmp.ge.s32.totalorder %s5195_s12, 1 }
   0xb   : > { %p5335_p4 = por %p9312_p1, %p46_p0  ;;  %p251_p7 = scmp.lt.s32.totalorder %s5195_s12, 3 }
   0xc   : > { %p5340_p6 = por %p244_p3, %p46_p0  ;;  %s5197_s18 = smov [#allocation7]  }
   0xd   : > { %s9648_s15 = scalar_select %p5335_p4, 1, 0 }
   0xe   : > { %s9649_s16 = scalar_select %p5340_p6, 1, 0 }
   0xf   : > { %p5345_p8 = pnand %p4745_p5, %p251_p7  ;;  %s278_s19 = sshll.u32 %s5197_s18, 4  ;;  %s5349_s19 = int_to_ptr.vmem [resolvable:$true] %s278_s19 }
  0x10   : > { %s5361_s21 = sadd.s32 1, %s5195_s12   ;;  %s33_s22 = sadd.s32 1, %s5191_s11 }
  0x11   : > { %s9650_s17 = scalar_select %p5345_p8, 1, 0 }
  0x12   : > { %p4790_p9 = pneg %p5345_p8  ;;  %9652 = sst [smem:[#allocation13_spill]] %s5361_s21 }
  0x13   : > { %s30_s23 = ssub.s32 %s5195_s12, %s5361_s21  ;;  %s9653_s6 = sld [smem:[#allocation189_spill]] }
  0x14   : > { %p5356_p11 = pnand %p4790_p9, %p9312_p1 }
  0x16   : > { %p5069_p13 = pneg %p5356_p11 }
  0x19   : > { %s5067_s26 = scalar_lea.hbm %s9653_s6, 256 }
  0x1a   : > { %p5068_p12 = scmp.ne.s32.totalorder %s9653_s6, %s5067_s26  ;;  %p5074_p5 = scmp.lt.u32.totalorder %s5067_s26, %s9653_s6 }
  0x1c   : > { %p5070_p0 = pnand %p5069_p13, %p5068_p12 }
  0x1e   : > { %p5071_p3 = pneg %p5070_p0 }
  0x20   : > { %p5076_p7 = pnand %p5074_p5, %p5071_p3 }
  0x22   : > { %5079 = shalt.err (!%p5076_p7)
}
  0x23   : > { %s5080_s18 = scalar_lea.vmem %s5349_s19, 256  ;;  %p5088_p2 = scmp.lt.s32.totalorder %s5349_s19, %s5349_s19 }
  0x24   : > { %p5081_p9 = scmp.ne.s32.totalorder %s5349_s19, %s5080_s18  ;;  %p5089_p6 = scmp.lt.s32.totalorder %s5080_s18, %s5080_s18 }
  0x26   : > { %p5083_p10 = pnand %p5081_p9, %p5069_p13  ;;  %p5090_p4 = por %p5089_p6, %p5088_p2 }
  0x28   : > { %p5084_p1 = pneg %p5083_p10 }
  0x2a   : > { %p5091_p8 = pnand %p5090_p4, %p5084_p1 }
  0x2c   : > { %5094 = shalt.err (!%p5091_p8)
}
  0x2d   : > { %s5198_s24 = smov 128   ;;  %s5199_s25 = smov 8  }
  0x2e   : > { %4793 = dma.hbm_to_vmem [thread:$0]  (!%p5356_p11), %s9653_s6, 256, %s5349_s19, [#allocation8], %s5198_s24, %s5198_s24, %s5199_s25  }
  0x2f   : > { %p31_p2 = scmp.eq.s32.totalorder %s30_s23, 0  ;;  %p40_p1 = scmp.ne.s32.totalorder %s5191_s11, %s5187_s10 }
  0x30   : > { %p41_p4 = scmp.eq.s32.totalorder %s5195_s12, 0  ;;  %p4803_p6 = scmp.lt.s32.totalorder %s5195_s12, 2 }
  0x31   : > { %s5392_s28 = scalar_select %p31_p2, %s5191_s11, %s33_s22  }
  0x32   : > { %p42_p8 = por %p41_p4, %p40_p1  ;;  %p9655_p10 = scmp.eq.s32.totalorder %s5326_s13, 1 }
  0x33   : > { %9654 = sst [smem:[#allocation14_spill]] %s5392_s28  ;;  %s298_s14 = sand.u32 1, %s5191_s11  }
  0x34   : > { %p5396_p12 = por %p9655_p10, %p40_p1  ;;  %s4779_s18 = smul.u32 384, %s5195_s12 }
  0x35   : > { %s4778_s21 = smul.u32 24, %s298_s14  ;;  %p5402_p13 = pnand %p4803_p6, %p42_p8 }
  0x36   : > { %s5409_s22 = scalar_lea.hbm %s9302_s0, %s4779_s18  ;;  %s299_s26 = scalar_lea.sflag [#allocation5], %s298_s14 }
  0x37   : > { %s302_s24 = scalar_lea.vmem [#allocation4], %s4778_s21  ;;  %s5095_s27 = scalar_lea.hbm %s5409_s22, 384 }
  0x38   : > { %s310_s25 = sshll.u32 %s302_s24, 4  ;;  %p5096_p11 = scmp.ne.s32.totalorder %s5409_s22, %s5095_s27  ;;  %s5411_s25 = int_to_ptr.vmem [resolvable:$true] %s310_s25 }
  0x39   : > { %p5097_p0 = pneg %p5402_p13  ;;  %s5100_s23 = scalar_lea.hbm %s9302_s0, 768 }
  0x3a   : > { %p5101_p7 = scmp.lt.u32.totalorder %s5409_s22, %s9302_s0  ;;  %p5102_p9 = scmp.lt.u32.totalorder %s5100_s23, %s5095_s27 }
  0x3b   : > { %p5098_p3 = pnand %p5097_p0, %p5096_p11  ;;  %p5104_p1 = scmp.lt.u32.totalorder %s5095_s27, %s5409_s22 }
  0x3c   : > { %p5103_p2 = por %p5102_p9, %p5101_p7 }
  0x3d   : > { %p5099_p5 = pneg %p5098_p3 }
  0x3e   : > { %p5105_p4 = por %p5104_p1, %p5103_p2 }
  0x40   : > { %p5106_p6 = pnand %p5105_p4, %p5099_p5 }
  0x42   : > { %5109 = shalt.err (!%p5106_p6)
}
  0x43   : > { %s5110_s21 = scalar_lea.vmem %s5411_s25, 384  ;;  %s5200_s14 = smov [#allocation4]  }
  0x44   : > { %p5111_p8 = scmp.ne.s32.totalorder %s5411_s25, %s5110_s21  ;;  %s5115_s24 = sshll.u32 %s5200_s14, 4  ;;  %s5116_s24 = int_to_ptr.vmem [resolvable:$false] %s5115_s24 }
  0x45   : > { %s5117_s6 = scalar_lea.vmem %s5116_s24, 768  ;;  %p5118_p3 = scmp.lt.s32.totalorder %s5411_s25, %s5116_s24 }
  0x46   : > { %p5113_p10 = pnand %p5111_p8, %p5097_p0  ;;  %p5119_p7 = scmp.lt.s32.totalorder %s5117_s6, %s5110_s21 }
  0x48   : > { %p5114_p11 = pneg %p5113_p10  ;;  %p5120_p9 = por %p5119_p7, %p5118_p3 }
  0x4a   : > { %p5121_p2 = pnand %p5120_p9, %p5114_p11 }
  0x4c   : > { %5124 = shalt.err (!%p5121_p2)
}
  0x4d   : > { %4797 = dma.hbm_to_vmem [thread:$0]  (!%p5402_p13), %s5409_s22, 384, %s5411_s25, %s299_s26  }
  0x4e   : > { %p9658_p5 = scmp.ne.s32.totalorder %s9650_s17, 0 }
  0x50   : > { %319 = sbr.rel (%p9658_p5) target bundleno = 7147 (0x1beb), region = 56 }
  0x57   : > { %s5441_s28 = sand.u32 1, %s5187_s10   ;;  %p9659_p0 = scmp.ne.s32.totalorder %s9648_s15, 0 }
  0x58   : > { %s9394_s27 = smul.u32 24, %s5441_s28  ;;  %s322_s19 = scalar_lea.sflag [#allocation5], %s5441_s28 }
  0x5a   : > { %s5447_s18 = scalar_lea.vmem [#allocation4], %s9394_s27 }
  0x5b   : > { %5170 = dma.done.wait (%p9659_p0), %s322_s19, 384  }
  0x5c   : > { %5172 = vsyncadd (%p9659_p0), %s322_s19, 4294966912  ;;  %p9660_p13 = scmp.eq.s32.totalorder %s5326_s13, 0 }
  0x5e   : > { %5174 = dma.done.wait (%p9660_p13), [#allocation8], 256   ;;  %p9661_p1 = pmov %p9660_p13 }
  0x5f   : > { %v9329_v0 = vmov 0   ;;  %v5202_v1 = vmov 0.0   ;;  %vm5203_vm0 = vmmov 0   ;;  %v5467_v2 = vld [vmem:[%s9305_s3] sm:$0xff]  ;;  %vm380_vm1 = vcmask 523264   ;;  %v5476_v4 = vld [vmem:[%s9305_s3 + $0x8] sm:$0xff] }
  0x60   : > { %5176 = vsyncadd (%p9661_p1), [#allocation8], 4294967040  ;;  %4895 = vset.pattern.permute.xlu1 %v9329_v0  ;;  %4894 = vset.pattern.permute.xlu0 %v9329_v0  ;;  %546 = vst [vmem:[#allocation2] sm:$0xff] %v5202_v1  ;;  %v435_v3 = vld [vmem:[%s9304_s2] sm:$0xff]  ;;  %v367_v7 = vld [vmem:[%s5447_s18 + $0x10] sm:$0xff]  ;;  %v9333_v12 = vmov 8  }
  0x61   : > { %493 = vmatprep.mubr.bf16.mxu0 %v9329_v0  ;;  %4764 = vmatprep.subr.bf16.mxu1 %v5202_v1  ;;  %v366_v5 = vld [vmem:[%s5447_s18 + $0x8] sm:$0xff]  ;;  %v365_v6 = vld [vmem:[%s5447_s18] sm:$0xff]  ;;  %v381_v10 = vsel %vm380_vm1, %v367_v7, 0.0  ;;  %v9331_v20 = vmov 1   ;;  %v9325_v30 = vmov 2   ;;  %v9323_v38 = vmov 3  }
  0x62   : > { %4766 = vmatprep.mubr.msk.bf16.mxu1 %vm5203_vm0, %v5202_v1  ;;  %597 = vperm.xlu1 %4895, %v5467_v2   ;;  %v374_v8 = vrot.slane %v366_v5, 4  ;;  %v368_v9 = vrot.slane %v365_v6, 4  ;;  %v382_v11 = vrot.slane %v381_v10, 4  ;;  %v436_v18 = vld [vmem:[%s9304_s2 + $0x8] sm:$0xff]  ;;  %v5494_v26 = vld [vmem:[%s9306_s4] sm:$0xff]  ;;  %v9321_v49 = vmov 4  }
  0x63   : > { %439 = vperm.xlu0 %4894, %v435_v3   ;;  %v5518_v42 = vld [vmem:[%s9306_s4 + $0x8] sm:$0xff]  ;;  %v9327_v56 = vmov 5   ;;  %vm451_vm2 = vcmask 1043456   ;;  %vm447_vm3 = vcmask 64512   ;;  %vm548_vm4 = vcmask 867840   ;;  %s5212_s25 = smov 127  }
  0x64   : > { %v375_v13 = vadd.f32 %v374_v8, %v366_v5  ;;  %v369_v14 = vadd.f32 %v368_v9, %v365_v6  ;;  %v383_v15 = vadd.f32 %v382_v11, %v381_v10  ;;  %v9317_v11 = vmov 7   ;;  %549 = vst.msk [vmem:[#allocation2 + $0x18] sm:$0xff] %vm548_vm4, %v5202_v1  ;;  %550 = vst.msk [vmem:[#allocation2 + $0x38] sm:$0xff] %vm548_vm4, %v5202_v1  ;;  %s5213_s26 = smov 126   ;;  %s5214_s23 = smov 108  }
  0x65   : > { %553 = vst.msk [vmem:[#allocation3 + $0x18] sm:$0xff] %vm548_vm4, %v5202_v1  ;;  %554 = vst.msk [vmem:[#allocation3 + $0x38] sm:$0xff] %vm548_vm4, %v5202_v1  ;;  %s5215_s21 = smov 125   ;;  %s5216_s14 = smov 124   ;;  %vm653_vm5 = vcmask 1039360   ;;  %vm716_vm6 = vcmask 1031168  }
  0x66   : > { %602 = vperm.xlu1 %4895, %v5476_v4   ;;  %v376_v16 = vrot.slane %v375_v13, 2  ;;  %v370_v17 = vrot.slane %v369_v14, 2  ;;  %v384_v19 = vrot.slane %v383_v15, 2  ;;  %s5217_s24 = smov 107   ;;  %s5218_s15 = smov 106   ;;  %vm779_vm7 = vcmask 883712  }
  0x67   : > { %4904 = vset.pattern.permute.xlu0 %v9333_v12  ;;  %s5219_s17 = smov 88   ;;  %s5220_s20 = smov 87   ;;  %vm834_vm8 = vcmask 875520   ;;  %vm887_vm9 = vcmask 867328   ;;  %vm9547_vm10 = vcmask 719872   ;;  %vm9546_vm11 = vcmask 711680  }
  0x68   : > { %1019 = vperm.xlu0 %4904, %v5476_v4   ;;  %v377_v21 = vadd.f32 %v376_v16, %v375_v13  ;;  %v371_v22 = vadd.f32 %v370_v17, %v369_v14  ;;  %v385_v23 = vadd.f32 %v384_v19, %v383_v15  ;;  %s5221_s22 = smov 86   ;;  %s9553_s6 = smov 105   ;;  %vm1046_vm12 = vcmask 703488  }
  0x69   : > { %s9551_s27 = smov 104   ;;  %s9434_s19 = smov 85   ;;  %vm1257_vm13 = vcmask 1022976   ;;  %vm1320_vm14 = vcmask 1014784   ;;  %vm1569_vm15 = vcmask 859136   ;;  %vm9542_vm4 = vcmask 556032  }
  0x6a   : > { %4896 = vset.pattern.permute.xlu1 %v9331_v20  ;;  %v378_v24 = vrot.slane %v377_v21, 1  ;;  %v372_v25 = vrot.slane %v371_v22, 1  ;;  %v386_v27 = vrot.slane %v385_v23, 1 }
  0x6b   : > { %618 = vperm.xlu1 %4896, %v5476_v4  }
  0x6c   : > { %4905 = vset.pattern.permute.xlu0 %v9329_v0  ;;  %v379_v28 = vadd.f32 %v378_v24, %v377_v21  ;;  %v373_v29 = vadd.f32 %v372_v25, %v371_v22  ;;  %v387_v31 = vadd.f32 %v386_v27, %v385_v23  ;;  %v429_v21 = vld [vmem:[%s9303_s1] sm:$0xff]  ;;  %v430_v22 = vld [vmem:[%s9303_s1 + $0x8] sm:$0xff] }
  0x6d   : > { %444 = vperm.xlu0 %4905, %v436_v18   ;;  %v431_v27 = vpack.c.bf16 %v430_v22, %v429_v21 }
  0x6e   : > { %v390_v32 = vmul.f32 0.125, %v379_v28  ;;  %v389_v33 = vmul.f32 0.125, %v373_v29  ;;  %v391_v34 = vmul.f32 0.125, %v387_v31 }
  0x6f   : > { %4897 = vset.pattern.permute.xlu1 %v9325_v30 }
  0x70   : > { %677 = vperm.xlu1 %4897, %v5467_v2   ;;  %v5499_v35 = vsub.f32 %v366_v5, %v390_v32  ;;  %v5501_v36 = vsub.f32 %v365_v6, %v389_v33  ;;  %v5503_v37 = vsub.f32 %v367_v7, %v391_v34  ;;  %v9319_v6 = vmov 6  }
  0x71   : > { %1077 = vperm.xlu0 %4905, %v5494_v26  }
  0x72   : > { %v396_v39 = vmul.f32 %v5499_v35, %v5499_v35  ;;  %v395_v40 = vmul.f32 %v5501_v36, %v5501_v36  ;;  %v397_v41 = vmul.f32 %v5503_v37, %v5503_v37 }
  0x74   : > { %4898 = vset.pattern.permute.xlu1 %v9323_v38  ;;  %v404_v43 = vrot.slane %v396_v39, 4  ;;  %v398_v44 = vrot.slane %v395_v40, 4  ;;  %v410_v45 = vsel %vm380_vm1, %v397_v41, 0.0 }
  0x75   : > { %4906 = vset.pattern.permute.xlu0 %v9331_v20  ;;  %744 = vperm.xlu1 %4898, %v5476_v4   ;;  %v411_v48 = vrot.slane %v410_v45, 4 }
  0x76   : > { %614 = vperm.xlu0 %4906, %v5467_v2   ;;  %v405_v46 = vadd.f32 %v404_v43, %v396_v39  ;;  %v399_v47 = vadd.f32 %v398_v44, %v395_v40 }
  0x77   : > { %v412_v52 = vadd.f32 %v411_v48, %v410_v45 }
  0x78   : > { %v406_v50 = vrot.slane %v405_v46, 2  ;;  %v400_v51 = vrot.slane %v399_v47, 2 }
  0x79   : > { %4899 = vset.pattern.permute.xlu1 %v9321_v49  ;;  %v413_v55 = vrot.slane %v412_v52, 2 }
  0x7a   : > { %1098 = vperm.xlu0 %4906, %v5518_v42   ;;  %803 = vperm.xlu1 %4899, %v5467_v2   ;;  %v407_v53 = vadd.f32 %v406_v50, %v405_v46  ;;  %v401_v54 = vadd.f32 %v400_v51, %v399_v47 }
  0x7b   : > { %v414_v59 = vadd.f32 %v413_v55, %v412_v52 }
  0x7c   : > { %v408_v57 = vrot.slane %v407_v53, 1  ;;  %v402_v58 = vrot.slane %v401_v54, 1 }
  0x7d   : > { %v415_v62 = vrot.slane %v414_v59, 1 }
  0x7e   : > { %4909 = vset.pattern.permute.xlu0 %v9325_v30  ;;  %4900 = vset.pattern.permute.xlu1 %v9327_v56  ;;  %v409_v60 = vadd.f32 %v408_v57, %v407_v53  ;;  %v403_v61 = vadd.f32 %v402_v58, %v401_v54 }
  0x7f   : > { %681 = vperm.xlu0 %4909, %v5476_v4   ;;  %860 = vperm.xlu1 %4900, %v5476_v4   ;;  %v416_v5 = vadd.f32 %v415_v62, %v414_v59 }
  0x80   : > { %v418_v63 = vmul.f32 0.125, %v409_v60  ;;  %v417_v3 = vmul.f32 0.125, %v403_v61 }
  0x81   : > { %v419_v9 = vmul.f32 0.125, %v416_v5 }
  0x82   : > { %v421_v7 = vadd.f32 1e-06, %v418_v63  ;;  %v420_v8 = vadd.f32 1e-06, %v417_v3 }
  0x83   : > { %1156 = vperm.xlu0 %4909, %v5494_v26   ;;  %4901 = vset.pattern.permute.xlu1 %v9319_v6  ;;  %v422_v10 = vadd.f32 1e-06, %v419_v9 }
  0x84   : > { %909 = vperm.xlu1 %4901, %v5467_v2   ;;  %5036 = vrsqrt.f32 %v421_v7 }
  0x85   : > { %5038 = vrsqrt.f32 %v420_v8 }
  0x86   : > { %5040 = vrsqrt.f32 %v422_v10 }
  0x87   : > { %4910 = vset.pattern.permute.xlu0 %v9323_v38 }
  0x88   : > { %740 = vperm.xlu0 %4910, %v5467_v2   ;;  %4902 = vset.pattern.permute.xlu1 %v9317_v11 }
  0x89   : > { %966 = vperm.xlu1 %4902, %v5476_v4  }
  0x8c   : > { %1222 = vperm.xlu0 %4910, %v5518_v42  }
  0x8d   : > { %4903 = vset.pattern.permute.xlu1 %v9333_v12 }
  0x8e   : > { %1015 = vperm.xlu1 %4903, %v5467_v2   ;;  %v5037_v13 = vpop.eup %5036 }
  0x8f   : > { %v5039_v14 = vpop.eup %5038  ;;  %v427_v15 = vmul.f32 %v5037_v13, %v5499_v35 }
  0x90   : > { %4913 = vset.pattern.permute.xlu0 %v9321_v49  ;;  %v5041_v16 = vpop.eup %5040  ;;  %v426_v17 = vmul.f32 %v5039_v14, %v5501_v36 }
  0x91   : > { %807 = vperm.xlu0 %4913, %v5476_v4   ;;  %v433_v18 = vpack.c.bf16 %v427_v15, %v427_v15  ;;  %v428_v19 = vmul.f32 %v5041_v16, %v5503_v37 }
  0x92   : > { %4907 = vset.pattern.permute.xlu1 %v9329_v0  ;;  %v432_v23 = vpack.c.bf16 %v426_v17, %v426_v17 }
  0x93   : > { %1082 = vperm.xlu1 %4907, %v5518_v42   ;;  %4751 = vmatprep.subr.msk.bf16.mxu0 %vm451_vm2, %v433_v18  ;;  %v434_v24 = vpack.c.bf16 %v428_v19, %v428_v19 }
  0x94   : > { %v453_v25 = vsel %vm451_vm2, %v432_v23, 0 }
  0x95   : > { %1281 = vperm.xlu0 %4913, %v5494_v26   ;;  %462 = vmatpush1.bf16.msra.mxu0 %v453_v25  ;;  %v459_v28 = vsel %vm451_vm2, %v434_v24, 0  ;;  %v556_v24 = vlaneseq  ;;  %vm9540_vm2 = vcmask 695296  }
  0x96   : > { %4765 = vmatpush3.bf16.msra.mxu1 %v459_v28  ;;  %v545_v28 = vld [vmem:[%s9309_s7] sm:$0x7] }
  0x97   : > { %4908 = vset.pattern.permute.xlu1 %v9331_v20  ;;  %4770 = vmatprep.subr.bf16.mxu1 %v5202_v1  ;;  %v557_v25 = vshrl.u32 %v556_v24, 7 }
  0x98   : > { %1094 = vperm.xlu1 %4908, %v5494_v26   ;;  %4752 = vmatmul.mubr.msk.bf16.vlgmr.msra.gmra.mrb[0].mxu0 %vm447_vm3, %v431_v27 }
  0x99   : > { %4914 = vset.pattern.permute.xlu0 %v9327_v56  ;;  %4767 = vmatmul.mubr.msk.bf16.vlgmr.msra.gmra.mrb[0].mxu1 %vm447_vm3, %v431_v27  ;;  %v558_v27 = vsub.s32 0, %v557_v25  ;;  %vm9541_vm3 = vcmask 687104  }
  0x9a   : > { %856 = vperm.xlu0 %4914, %v5467_v2   ;;  %4597 = vmatprep.mubr.bf16.mxu0 %v9329_v0 }
  0x9b   : > { %4774 = vmatprep.mubr.msk.bf16.mxu1 %vm5203_vm0, %v5202_v1  ;;  %vm9548_vm0 = vcmask 850944  }
  0x9c   : > { %4911 = vset.pattern.permute.xlu1 %v9325_v30 }
  0x9d   : > { %1160 = vperm.xlu1 %4911, %v5518_v42  }
  0x9e   : > { %1348 = vperm.xlu0 %4914, %v5518_v42  }
  0xa1   : > { %4912 = vset.pattern.permute.xlu1 %v9323_v38 }
  0xa2   : > { %1218 = vperm.xlu1 %4912, %v5494_v26   ;;  %4917 = vset.pattern.permute.xlu0 %v9319_v6 }
  0xa3   : > { %913 = vperm.xlu0 %4917, %v5476_v4  }
  0xa6   : > { %4915 = vset.pattern.permute.xlu1 %v9321_v49 }
  0xa7   : > { %1285 = vperm.xlu1 %4915, %v5518_v42   ;;  %1406 = vperm.xlu0 %4917, %v5494_v26  }
  0xab   : > { %4916 = vset.pattern.permute.xlu1 %v9327_v56  ;;  %4918 = vset.pattern.permute.xlu0 %v9317_v11 }
  0xac   : > { %1344 = vperm.xlu1 %4916, %v5494_v26  }
  0xb0   : > { %4919 = vset.pattern.permute.xlu1 %v9319_v6 }
  0xe1   : > { %v5576_v31 = vpop.permute.xlu1 %597 }
  0xe2   : > { %v5574_v29 = vpop.permute.xlu0 %439 }
  0xe5   : > { %v5578_v32 = vpop.permute.xlu1 %602 }
  0xe7   : > { %v5580_v4 = vpop.permute.xlu0 %1019 }
  0xea   : > { %v5582_v33 = vpop.permute.xlu1 %618 }
  0xeb   : > { %v625_v41 = vmul.f32 0.0, %v5582_v33 }
  0xec   : > { %v5584_v34 = vpop.permute.xlu0 %444 }
  0xef   : > { %v5588_v36 = vpop.permute.xlu1 %677 }
  0xf0   : > { %v5586_v35 = vpop.permute.xlu0 %1077  ;;  %v684_v45 = vmul.f32 0.0, %v5588_v36 }
  0xf1   : > { %9662 = vst [vmem:[#allocation15_spill] sm:$0xff] %v5586_v35 }
  0xf4   : > { %v5596_v39 = vpop.permute.xlu1 %744 }
  0xf5   : > { %v5594_v37 = vpop.permute.xlu0 %614  ;;  %v751_v55 = vmul.f32 0.0, %v5596_v39 }
  0xf6   : > { %v621_v40 = vmul.f32 0.0, %v5594_v37 }
  0xf8   : > { %637 = vrot.lane.b32.xlu1 %v621_v40, %s5212_s25  ;;  %v566_v40 = vsub.s32 2, %v557_v25 }
  0xf9   : > { %v5601_v43 = vpop.permute.xlu0 %1098  ;;  %v5603_v44 = vpop.permute.xlu1 %803 }
  0xfa   : > { %v1105_v50 = vmul.f32 0.0, %v5601_v43 }
  0xfc   : > { %645 = vrot.lane.b32.xlu1 %v625_v41, %s5212_s25  ;;  %v5682_v41 = vrot.slane %v545_v28, %v558_v27 }
  0xfe   : > { %v5607_v1 = vpop.permute.xlu0 %681  ;;  %v5610_v47 = vpop.permute.xlu1 %860 }
  0xff   : > { %v688_v46 = vmul.f32 0.0, %v5607_v1 }
 0x100   : > { %700 = vrot.lane.b32.xlu1 %v684_v45, %s5213_s26 }
 0x101   : > { %708 = vrot.lane.b32.xlu0 %v688_v46, %s5213_s26  ;;  %v5684_v46 = vrot.slane %v545_v28, %v566_v40 }
 0x102   : > { %v5614_v48 = vpop.permute.xlu0 %1156 }
 0x103   : > { %v5617_v51 = vpop.permute.xlu1 %909  ;;  %v1163_v7 = vmul.f32 0.0, %v5614_v48 }
 0x105   : > { %1125 = vrot.lane.b32.xlu0 %v1105_v50, %s5212_s25 }
 0x107   : > { %v5620_v52 = vpop.permute.xlu0 %740 }
 0x108   : > { %v747_v53 = vmul.f32 0.0, %v5620_v52  ;;  %v5623_v54 = vpop.permute.xlu1 %966 }
 0x10a   : > { %763 = vrot.lane.b32.xlu1 %v747_v53, %s5214_s23 }
 0x10b   : > { %v5627_v57 = vpop.permute.xlu0 %1222 }
 0x10c   : > { %v1229_v58 = vmul.f32 0.0, %v5627_v57 }
 0x10d   : > { %v5631_v59 = vpop.permute.xlu1 %1015 }
 0x10e   : > { %1249 = vrot.lane.b32.xlu0 %v1229_v58, %s5215_s21  ;;  %771 = vrot.lane.b32.xlu1 %v751_v55, %s5214_s23 }
 0x110   : > { %v5634_v60 = vpop.permute.xlu0 %807 }
 0x112   : > { %v5636_v61 = vpop.permute.xlu1 %1082 }
 0x113   : > { %9663 = vst [vmem:[#allocation16_spill] sm:$0xff] %v5636_v61 }
 0x114   : > { %v5638_v62 = vpop.permute.xlu0 %1281 }
 0x115   : > { %v1288_v17 = vmul.f32 0.0, %v5638_v62 }
 0x117   : > { %v5640_v63 = vpop.permute.xlu1 %1094 }
 0x118   : > { %v1101_v3 = vmul.f32 0.0, %v5640_v63 }
 0x119   : > { %v5643_v5 = vpop.permute.xlu0 %856 }
 0x11a   : > { %1117 = vrot.lane.b32.xlu1 %v1101_v3, %s5212_s25 }
 0x11c   : > { %v5647_v8 = vpop.permute.xlu1 %1160 }
 0x11d   : > { %v5649_v9 = vpop.permute.xlu0 %1348  ;;  %v1167_v13 = vmul.f32 0.0, %v5647_v8 }
 0x11e   : > { %1179 = vrot.lane.b32.xlu1 %v1163_v7, %s5213_s26  ;;  %v1355_v10 = vmul.f32 0.0, %v5649_v9 }
 0x120   : > { %1375 = vrot.lane.b32.xlu0 %v1355_v10, %s5214_s23 }
 0x121   : > { %v5655_v14 = vpop.permute.xlu1 %1218 }
 0x122   : > { %1187 = vrot.lane.b32.xlu1 %v1167_v13, %s5213_s26  ;;  %v1225_v15 = vmul.f32 0.0, %v5655_v14  ;;  %v5668_v21 = vpop.permute.xlu0 %913 }
 0x124   : > { %962 = vperm.xlu0 %4918, %v5467_v2  }
 0x126   : > { %1241 = vrot.lane.b32.xlu1 %v1225_v15, %s5215_s21  ;;  %v5661_v16 = vpop.permute.xlu1 %1285  ;;  %v5673_v2 = vpop.permute.xlu0 %1406 }
 0x127   : > { %v1292_v18 = vmul.f32 0.0, %v5661_v16  ;;  %v1413_v23 = vmul.f32 0.0, %v5673_v2 }
 0x12a   : > { %1304 = vrot.lane.b32.xlu1 %v1288_v17, %s5216_s14 }
 0x12b   : > { %v5666_v19 = vpop.permute.xlu1 %1344 }
 0x12c   : > { %v1351_v22 = vmul.f32 0.0, %v5666_v19 }
 0x12e   : > { %1312 = vrot.lane.b32.xlu1 %v1292_v18, %s5216_s14 }
 0x132   : > { %1367 = vrot.lane.b32.xlu1 %v1351_v22, %s5214_s23 }
 0x136   : > { %1410 = vperm.xlu1 %4919, %v5518_v42  }
 0x13a   : > { %1429 = vrot.lane.b32.xlu1 %v1413_v23, %s5217_s24 }
 0x13b   : > { %4920 = vset.pattern.permute.xlu1 %v9317_v11 }
 0x16b   : > { %v495_v45 = vpop.f32.mrb[0].mxu0 }
 0x16c   : > { %v496_v50 = vadd.f32 %v495_v45, %v5574_v29  ;;  %v497_v53 = vpop.f32.mrb[1].mxu0  ;;  %v538_v55 = vpop.f32.mrb[0].mxu1 }
 0x16d   : > { %v499_v58 = vpop.f32.mrb[2].mxu0  ;;  %v539_v3 = vadd.f32 %v538_v55, %v5574_v29  ;;  %v4768_v7 = vpop.f32.mrb[1].mxu1 }
 0x16e   : > { %v5689_v10 = vmul.f32 %v5682_v41, %v496_v50  ;;  %v5691_v13 = vpop.f32.mrb[3].mxu0  ;;  %v541_v15 = vpop.f32.mrb[2].mxu1  ;;  %v562_v50 = vsub.s32 1, %v557_v25  ;;  %v498_v7 = vadd.f32 %v497_v53, %v5574_v29 }
 0x16f   : > { %v573_v17 = vmul.f32 %v5684_v46, %v539_v3  ;;  %v542_v18 = vadd.f32 %v541_v15, %v5584_v34  ;;  %v4769_v22 = vpop.f32.mrb[3].mxu1 }
 0x170   : > { %v685_v23 = vmul.f32 %v5588_v36, %v5689_v10  ;;  %v622_v24 = vmul.f32 %v5594_v37, %v5689_v10  ;;  %v810_v40 = vmul.f32 %v5603_v44, %v5689_v10  ;;  %v748_v45 = vmul.f32 %v5620_v52, %v5689_v10 }
 0x171   : > { %579 = vst.msk [vmem:[#allocation2 + $0x18] sm:$0xff] %vm380_vm1, %v573_v17  ;;  %v576_v27 = vmul.f32 %v5684_v46, %v542_v18  ;;  %v863_v55 = vmul.f32 %v5643_v5, %v5689_v10  ;;  %v1164_v3 = vmul.f32 %v5614_v48, %v5689_v10  ;;  %v5717_v15 = vrot.slane %v545_v28, %v562_v50 }
 0x172   : > { %702 = vrot.lane.b32.xlu1 %v685_v23, %s5213_s26  ;;  %639 = vrot.lane.b32.xlu0 %v622_v24, %s5212_s25  ;;  %v916_v17 = vmul.f32 %v5617_v51, %v5689_v10  ;;  %v1289_v25 = vmul.f32 %v5638_v62, %v5689_v10  ;;  %v1414_v22 = vmul.f32 %v5673_v2, %v5689_v10 }
 0x173   : > { %582 = vst.msk [vmem:[#allocation2 + $0x38] sm:$0xff] %vm380_vm1, %v576_v27  ;;  %v5726_v18 = vmul.f32 %v5717_v15, %v498_v7  ;;  %v5737_v53 = vpop.permute.xlu0 %708  ;;  %v1102_v7 = vmul.f32 %v5640_v63, %v5689_v10 }
 0x175   : > { %v686_v29 = vmul.f32 %v5588_v36, %v5726_v18  ;;  %v864_v28 = vmul.f32 %v5643_v5, %v5726_v18 }
 0x176   : > { %822 = vrot.lane.b32.xlu1 %v810_v40, %s5217_s24  ;;  %765 = vrot.lane.b32.xlu0 %v748_v45, %s5214_s23 }
 0x177   : > { %v5739_v23 = vpop.permute.xlu0 %1125 }
 0x178   : > { %9664 = vst [vmem:[#allocation17_spill] sm:$0xff] %v5739_v23 }
 0x17a   : > { %875 = vrot.lane.b32.xlu1 %v863_v55, %s5218_s15  ;;  %1181 = vrot.lane.b32.xlu0 %v1164_v3, %s5213_s26  ;;  %v1022_v55 = vmul.f32 %v5631_v59, %v5689_v10  ;;  %v1103_v3 = vmul.f32 %v5640_v63, %v5726_v18 }
 0x17e   : > { %928 = vrot.lane.b32.xlu1 %v916_v17, %s5219_s17  ;;  %1306 = vrot.lane.b32.xlu0 %v1289_v25, %s5216_s14  ;;  %v1227_v17 = vmul.f32 %v5655_v14, %v5726_v18  ;;  %v500_v25 = vadd.f32 %v499_v58, %v5584_v34 }
 0x180   : > { %v5741_v24 = vpop.permute.xlu0 %1249 }
 0x181   : > { %9665 = vst [vmem:[#allocation18_spill] sm:$0xff] %v5741_v24 }
 0x182   : > { %1431 = vrot.lane.b32.xlu0 %v1414_v22, %s5217_s24  ;;  %v1226_v22 = vmul.f32 %v5655_v14, %v5689_v10 }
 0x186   : > { %704 = vrot.lane.b32.xlu0 %v686_v29, %s5213_s26  ;;  %v1353_v29 = vmul.f32 %v5666_v19, %v5726_v18 }
 0x18a   : > { %877 = vrot.lane.b32.xlu0 %v864_v28, %s5218_s15  ;;  %v5770_v28 = vld [vmem:[#allocation2 + $0x18] sm:$0xff] }
 0x18b   : > { %v624_v58 = vmul.f32 %v5594_v37, %v5770_v28 }
 0x192   : > { %v5743_v27 = vpop.permute.xlu0 %1375 }
 0x193   : > { %9666 = vst [vmem:[#allocation19_spill] sm:$0xff] %v5743_v27 }
 0x1a3   : > { %v5745_v40 = vpop.permute.xlu0 %962 }
 0x1a4   : > { %v969_v45 = vmul.f32 %v5745_v40, %v5689_v10  ;;  %v970_v50 = vmul.f32 %v5745_v40, %v5726_v18 }
 0x1a6   : > { %981 = vrot.lane.b32.xlu1 %v969_v45, %s5220_s20  ;;  %983 = vrot.lane.b32.xlu0 %v970_v50, %s5220_s20  ;;  %v5775_v45 = vmul.f32 %v5682_v41, %v500_v25  ;;  %v1352_v50 = vmul.f32 %v5666_v19, %v5689_v10  ;;  %v749_v25 = vmul.f32 %v5620_v52, %v5726_v18 }
 0x1a8   : > { %v1230_v11 = vmul.f32 %v5627_v57, %v5775_v45  ;;  %v1356_v30 = vmul.f32 %v5649_v9, %v5775_v45 }
 0x1aa   : > { %1034 = vrot.lane.b32.xlu1 %v1022_v55, %s5221_s22  ;;  %1121 = vrot.lane.b32.xlu0 %v1103_v3, %s5212_s25  ;;  %v5781_v55 = vpop.permute.xlu1 %637  ;;  %v623_v3 = vmul.f32 %v5594_v37, %v5726_v18 }
 0x1ae   : > { %1119 = vrot.lane.b32.xlu1 %v1102_v7, %s5212_s25  ;;  %1245 = vrot.lane.b32.xlu0 %v1227_v17, %s5215_s21  ;;  %v626_v7 = vmul.f32 %v5582_v33, %v5775_v45  ;;  %v5789_v17 = vpop.permute.xlu1 %645 }
 0x1b2   : > { %1243 = vrot.lane.b32.xlu1 %v1226_v22, %s5215_s21  ;;  %1371 = vrot.lane.b32.xlu0 %v1353_v29, %s5214_s23  ;;  %v750_v22 = vmul.f32 %v5620_v52, %v5770_v28  ;;  %v5799_v37 = vpop.permute.xlu1 %700  ;;  %v811_v29 = vmul.f32 %v5603_v44, %v5726_v18  ;;  %v812_v52 = vmul.f32 %v5603_v44, %v5770_v28 }
 0x1b3   : > { %v1165_v44 = vmul.f32 %v5614_v48, %v5726_v18 }
 0x1b6   : > { %1369 = vrot.lane.b32.xlu1 %v1352_v50, %s5214_s23  ;;  %643 = vrot.lane.b32.xlu0 %v624_v58, %s5212_s25  ;;  %v752_v50 = vmul.f32 %v5596_v39, %v5775_v45  ;;  %v917_v58 = vmul.f32 %v5617_v51, %v5726_v18 }
 0x1ba   : > { %641 = vrot.lane.b32.xlu1 %v623_v3, %s5212_s25  ;;  %647 = vrot.lane.b32.xlu0 %v626_v7, %s5212_s25  ;;  %v5811_v3 = vpop.permute.xlu1 %763  ;;  %v1023_v7 = vmul.f32 %v5631_v59, %v5726_v18 }
 0x1be   : > { %767 = vrot.lane.b32.xlu1 %v749_v25, %s5214_s23  ;;  %769 = vrot.lane.b32.xlu0 %v750_v22, %s5214_s23  ;;  %v866_v25 = vmul.f32 %v5610_v47, %v5775_v45  ;;  %v5819_v22 = vpop.permute.xlu1 %771 }
 0x1c2   : > { %824 = vrot.lane.b32.xlu1 %v811_v29, %s5217_s24  ;;  %773 = vrot.lane.b32.xlu0 %v752_v50, %s5214_s23  ;;  %v918_v29 = vmul.f32 %v5617_v51, %v5770_v28  ;;  %v5829_v50 = vpop.permute.xlu1 %1117  ;;  %v1024_v51 = vmul.f32 %v5631_v59, %v5770_v28  ;;  %v689_v59 = vmul.f32 %v5607_v1, %v5775_v45 }
 0x1c3   : > { %9667 = vst [vmem:[#allocation20_spill] sm:$0xff] %v5829_v50 }
 0x1c6   : > { %930 = vrot.lane.b32.xlu1 %v917_v58, %s5219_s17  ;;  %826 = vrot.lane.b32.xlu0 %v812_v52, %s5217_s24  ;;  %v1290_v58 = vmul.f32 %v5638_v62, %v5726_v18  ;;  %v972_v52 = vmul.f32 %v5623_v54, %v5775_v45 }
 0x1ca   : > { %1036 = vrot.lane.b32.xlu1 %v1023_v7, %s5221_s22  ;;  %881 = vrot.lane.b32.xlu0 %v866_v25, %s5218_s15  ;;  %v1415_v7 = vmul.f32 %v5673_v2, %v5726_v18  ;;  %v5841_v25 = vpop.permute.xlu1 %1179 }
 0x1cb   : > { %9668 = vst [vmem:[#allocation21_spill] sm:$0xff] %v5841_v25 }
 0x1ce   : > { %1183 = vrot.lane.b32.xlu1 %v1165_v44, %s5213_s26  ;;  %932 = vrot.lane.b32.xlu0 %v918_v29, %s5219_s17  ;;  %v687_v44 = vmul.f32 %v5588_v36, %v5770_v28  ;;  %v1166_v29 = vmul.f32 %v5614_v48, %v5770_v28  ;;  %v813_v36 = vmul.f32 %v5634_v60, %v5775_v45 }
 0x1cf   : > { %v502_v48 = vadd.f32 %v5691_v13, %v5584_v34  ;;  %v919_v34 = vmul.f32 %v5668_v21, %v5775_v45 }
 0x1d2   : > { %1308 = vrot.lane.b32.xlu1 %v1290_v58, %s5216_s14  ;;  %987 = vrot.lane.b32.xlu0 %v972_v52, %s5220_s20  ;;  %v5851_v58 = vpop.permute.xlu1 %1187  ;;  %v1168_v52 = vmul.f32 %v5647_v8, %v5775_v45 }
 0x1d3   : > { %9669 = vst [vmem:[#allocation22_spill] sm:$0xff] %v5851_v58 }
 0x1d6   : > { %1433 = vrot.lane.b32.xlu1 %v1415_v7, %s5217_s24  ;;  %1038 = vrot.lane.b32.xlu0 %v1024_v51, %s5221_s22  ;;  %v1291_v7 = vmul.f32 %v5638_v62, %v5770_v28  ;;  %v5865_v51 = vpop.permute.xlu1 %1241 }
 0x1d7   : > { %9670 = vst [vmem:[#allocation23_spill] sm:$0xff] %v5865_v51 }
 0x1da   : > { %706 = vrot.lane.b32.xlu1 %v687_v44, %s5213_s26  ;;  %1185 = vrot.lane.b32.xlu0 %v1166_v29, %s5213_s26  ;;  %v865_v44 = vmul.f32 %v5643_v5, %v5770_v28  ;;  %v5872_v29 = vmul.f32 %v5717_v15, %v502_v48  ;;  %v5880_v62 = vpop.permute.xlu1 %1304  ;;  %v971_v5 = vmul.f32 %v5745_v40, %v5770_v28 }
 0x1db   : > { %9671 = vst [vmem:[#allocation24_spill] sm:$0xff] %v5880_v62  ;;  %v1025_v48 = vmul.f32 %v5580_v4, %v5775_v45  ;;  %v1104_v40 = vmul.f32 %v5640_v63, %v5770_v28 }
 0x1dc   : > { %v690_v13 = vmul.f32 %v5607_v1, %v5872_v29 }
 0x1de   : > { %710 = vrot.lane.b32.xlu1 %v689_v59, %s5213_s26  ;;  %1189 = vrot.lane.b32.xlu0 %v1168_v52, %s5213_s26  ;;  %v1293_v59 = vmul.f32 %v5661_v16, %v5775_v45  ;;  %v5888_v52 = vpop.permute.xlu1 %1312 }
 0x1df   : > { %9672 = vst [vmem:[#allocation25_spill] sm:$0xff] %v5888_v52 }
 0x1e2   : > { %828 = vrot.lane.b32.xlu1 %v813_v36, %s5217_s24  ;;  %1310 = vrot.lane.b32.xlu0 %v1291_v7, %s5216_s14  ;;  %v814_v36 = vmul.f32 %v5634_v60, %v5872_v29 }
 0x1e4   : > { %v5896_v7 = vpop.permute.xlu0 %639 }
 0x1e6   : > { %879 = vrot.lane.b32.xlu1 %v865_v44, %s5218_s15  ;;  %1314 = vrot.lane.b32.xlu0 %v1293_v59, %s5216_s14  ;;  %v920_v44 = vmul.f32 %v5668_v21, %v5872_v29  ;;  %v5900_v59 = vpop.permute.xlu1 %1367 }
 0x1e7   : > { %9673 = vst [vmem:[#allocation26_spill] sm:$0xff] %v5900_v59 }
 0x1ea   : > { %934 = vrot.lane.b32.xlu1 %v919_v34, %s5219_s17  ;;  %712 = vrot.lane.b32.xlu0 %v690_v13, %s5213_s26  ;;  %v1026_v34 = vmul.f32 %v5580_v4, %v5872_v29  ;;  %v5908_v13 = vpop.permute.xlu0 %765 }
 0x1ee   : > { %985 = vrot.lane.b32.xlu1 %v971_v5, %s5220_s20  ;;  %830 = vrot.lane.b32.xlu0 %v814_v36, %s5217_s24  ;;  %v5912_v5 = vpop.permute.xlu1 %1410  ;;  %v1106_v36 = vmul.f32 %v5601_v43, %v5775_v45 }
 0x1f2   : > { %1040 = vrot.lane.b32.xlu1 %v1025_v48, %s5221_s22  ;;  %936 = vrot.lane.b32.xlu0 %v920_v44, %s5219_s17  ;;  %v1107_v48 = vmul.f32 %v5601_v43, %v5872_v29  ;;  %v5920_v63 = vpop.permute.xlu1 %1429  ;;  %v5922_v44 = vpop.permute.xlu0 %1181 }
 0x1f3   : > { %9674 = vst [vmem:[#allocation27_spill] sm:$0xff] %v5920_v63  ;;  %9675 = vst [vmem:[#allocation28_spill] sm:$0xff] %v5922_v44 }
 0x1f6   : > { %1123 = vrot.lane.b32.xlu1 %v1104_v40, %s5212_s25  ;;  %1042 = vrot.lane.b32.xlu0 %v1026_v34, %s5221_s22  ;;  %v1228_v40 = vmul.f32 %v5655_v14, %v5770_v28  ;;  %v1231_v34 = vmul.f32 %v5627_v57, %v5872_v29  ;;  %v5936_v6 = vpop.permute.xlu1 %702  ;;  %v5938_v49 = vpop.permute.xlu0 %1306  ;;  %v1354_v14 = vmul.f32 %v5666_v19, %v5770_v28 }
 0x1f7   : > { %9676 = vst [vmem:[#allocation29_spill] sm:$0xff] %v5938_v49 }
 0x1fa   : > { %1127 = vrot.lane.b32.xlu1 %v1106_v36, %s5212_s25  ;;  %1129 = vrot.lane.b32.xlu0 %v1107_v48, %s5212_s25  ;;  %v1357_v36 = vmul.f32 %v5649_v9, %v5872_v29  ;;  %v5934_v48 = vld [vmem:[#allocation2 + $0x38] sm:$0xff]  ;;  %v5950_v38 = vpop.permute.xlu0 %1431 }
 0x1fb   : > { %9677 = vst [vmem:[#allocation30_spill] sm:$0xff] %v5950_v38  ;;  %v868_v19 = vmul.f32 %v5610_v47, %v5934_v48  ;;  %v974_v56 = vmul.f32 %v5623_v54, %v5934_v48  ;;  %v1108_v38 = vmul.f32 %v5601_v43, %v5934_v48 }
 0x1fe   : > { %1247 = vrot.lane.b32.xlu1 %v1228_v40, %s5215_s21  ;;  %1253 = vrot.lane.b32.xlu0 %v1231_v34, %s5215_s21  ;;  %v628_v40 = vmul.f32 %v5582_v33, %v5934_v48  ;;  %v5948_v34 = vpop.permute.xlu1 %822 }
 0x202   : > { %1251 = vrot.lane.b32.xlu1 %v1230_v11, %s5215_s21  ;;  %1379 = vrot.lane.b32.xlu0 %v1357_v36, %s5214_s23  ;;  %v754_v11 = vmul.f32 %v5596_v39, %v5934_v48  ;;  %v627_v36 = vmul.f32 %v5582_v33, %v5872_v29  ;;  %v867_v33 = vmul.f32 %v5610_v47, %v5872_v29 }
 0x203   : > { %v1295_v47 = vmul.f32 %v5661_v16, %v5934_v48 }
 0x206   : > { %1373 = vrot.lane.b32.xlu1 %v1354_v14, %s5214_s23  ;;  %651 = vrot.lane.b32.xlu0 %v628_v40, %s5212_s25  ;;  %v5962_v14 = vpop.permute.xlu1 %875  ;;  %v5964_v40 = vpop.permute.xlu0 %704 }
 0x20a   : > { %1377 = vrot.lane.b32.xlu1 %v1356_v30, %s5214_s23  ;;  %777 = vrot.lane.b32.xlu0 %v754_v11, %s5214_s23  ;;  %v753_v30 = vmul.f32 %v5596_v39, %v5872_v29  ;;  %v5976_v11 = vpop.permute.xlu1 %928  ;;  %v5978_v0 = vpop.permute.xlu0 %877  ;;  %v973_v39 = vmul.f32 %v5623_v54, %v5872_v29  ;;  %v1416_v54 = vmul.f32 %v5673_v2, %v5770_v28 }
 0x20e   : > { %649 = vrot.lane.b32.xlu1 %v627_v36, %s5212_s25  ;;  %885 = vrot.lane.b32.xlu0 %v868_v19, %s5218_s15  ;;  %v1170_v19 = vmul.f32 %v5647_v8, %v5934_v48 }
 0x212   : > { %775 = vrot.lane.b32.xlu1 %v753_v30, %s5214_s23  ;;  %991 = vrot.lane.b32.xlu0 %v974_v56, %s5220_s20 }
 0x216   : > { %883 = vrot.lane.b32.xlu1 %v867_v33, %s5218_s15  ;;  %1193 = vrot.lane.b32.xlu0 %v1170_v19, %s5213_s26  ;;  %v1169_v33 = vmul.f32 %v5647_v8, %v5872_v29 }
 0x218   : > { %v5986_v36 = vpop.permute.xlu1 %981  ;;  %v5988_v56 = vpop.permute.xlu0 %983 }
 0x21a   : > { %989 = vrot.lane.b32.xlu1 %v973_v39, %s5220_s20  ;;  %1318 = vrot.lane.b32.xlu0 %v1295_v47, %s5216_s14  ;;  %v1294_v39 = vmul.f32 %v5661_v16, %v5872_v29  ;;  %v1418_v47 = vmul.f32 %v5912_v5, %v5775_v45  ;;  %v815_v16 = vmul.f32 %v5634_v60, %v5934_v48 }
 0x21b   : > { %v1027_v60 = vmul.f32 %v5580_v4, %v5934_v48  ;;  %v1232_v4 = vmul.f32 %v5627_v57, %v5934_v48 }
 0x21c   : > { %v5994_v30 = vpop.permute.xlu1 %1034  ;;  %v5996_v20 = vpop.permute.xlu0 %1121 }
 0x21d   : > { %9678 = vst [vmem:[#allocation31_spill] sm:$0xff] %v5994_v30  ;;  %9679 = vst [vmem:[#allocation32_spill] sm:$0xff] %v5996_v20 }
 0x21e   : > { %1191 = vrot.lane.b32.xlu1 %v1169_v33, %s5213_s26  ;;  %1435 = vrot.lane.b32.xlu0 %v1416_v54, %s5217_s24  ;;  %v691_v33 = vmul.f32 %v5607_v1, %v5934_v48  ;;  %v1420_v54 = vmul.f32 %v5912_v5, %v5934_v48  ;;  %v921_v1 = vmul.f32 %v5668_v21, %v5934_v48 }
 0x220   : > { %v6004_v19 = vpop.permute.xlu1 %1119  ;;  %v6006_v12 = vpop.permute.xlu0 %1245 }
 0x221   : > { %9680 = vst [vmem:[#allocation33_spill] sm:$0xff] %v6004_v19  ;;  %9681 = vst [vmem:[#allocation34_spill] sm:$0xff] %v6006_v12 }
 0x222   : > { %1316 = vrot.lane.b32.xlu1 %v1294_v39, %s5216_s14  ;;  %1439 = vrot.lane.b32.xlu0 %v1418_v47, %s5217_s24 }
 0x224   : > { %v6014_v8 = vpop.permute.xlu1 %1243  ;;  %v6016_v2 = vpop.permute.xlu0 %1371 }
 0x225   : > { %9682 = vst [vmem:[#allocation35_spill] sm:$0xff] %v6014_v8  ;;  %9683 = vst [vmem:[#allocation36_spill] sm:$0xff] %v6016_v2 }
 0x226   : > { %714 = vrot.lane.b32.xlu1 %v691_v33, %s5213_s26  ;;  %1443 = vrot.lane.b32.xlu0 %v1420_v54, %s5217_s24  ;;  %v9685_v33 = vmov 8  }
 0x228   : > { %v6026_v39 = vpop.permute.xlu1 %1369  ;;  %v6028_v47 = vpop.permute.xlu0 %643 }
 0x229   : > { %9684 = vst [vmem:[#allocation37_spill] sm:$0xff] %v6026_v39 }
 0x22a   : > { %832 = vrot.lane.b32.xlu1 %v815_v16, %s5217_s24  ;;  %1472 = vperm.xlu0 %4918, %v5518_v42  }
 0x22c   : > { %v6034_v27 = vpop.permute.xlu1 %641  ;;  %v6036_v52 = vpop.permute.xlu0 %647 }
 0x22e   : > { %938 = vrot.lane.b32.xlu1 %v921_v1, %s5219_s17  ;;  %4921 = vset.pattern.permute.xlu0 %v9685_v33 }
 0x230   : > { %v6042_v54 = vpop.permute.xlu1 %767  ;;  %v6044_v63 = vpop.permute.xlu0 %769 }
 0x232   : > { %1044 = vrot.lane.b32.xlu1 %v1027_v60, %s5221_s22  ;;  %v1358_v60 = vmul.f32 %v5649_v9, %v5934_v48 }
 0x234   : > { %v6047_v16 = vpop.permute.xlu1 %824  ;;  %v6049_v21 = vpop.permute.xlu0 %773 }
 0x236   : > { %1131 = vrot.lane.b32.xlu1 %v1108_v38, %s5212_s25  ;;  %v1417_v38 = vmul.f32 0.0, %v5912_v5 }
 0x238   : > { %v6054_v1 = vpop.permute.xlu1 %930  ;;  %v6056_v2 = vpop.permute.xlu0 %826 }
 0x23a   : > { %1255 = vrot.lane.b32.xlu1 %v1232_v4, %s5215_s21  ;;  %v1419_v4 = vmul.f32 %v5912_v5, %v5872_v29 }
 0x23c   : > { %v6061_v24 = vpop.permute.xlu1 %1036  ;;  %v6065_v58 = vpop.permute.xlu0 %881 }
 0x23d   : > { %9686 = vst [vmem:[#allocation38_spill] sm:$0xff] %v6061_v24  ;;  %9687 = vst [vmem:[#allocation39_spill] sm:$0xff] %v6065_v58 }
 0x23e   : > { %1381 = vrot.lane.b32.xlu1 %v1358_v60, %s5214_s23 }
 0x240   : > { %v6068_v43 = vpop.permute.xlu1 %1183  ;;  %v6072_v59 = vpop.permute.xlu0 %932 }
 0x241   : > { %9688 = vst [vmem:[#allocation40_spill] sm:$0xff] %v6068_v43 }
 0x242   : > { %1437 = vrot.lane.b32.xlu1 %v1417_v38, %s5217_s24 }
 0x244   : > { %v6074_v57 = vpop.permute.xlu1 %1308  ;;  %v6081_v39 = vpop.permute.xlu0 %987 }
 0x245   : > { %9689 = vst [vmem:[#allocation41_spill] sm:$0xff] %v6074_v57  ;;  %9691 = vst [vmem:[#allocation43_spill] sm:$0xff] %v6081_v39 }
 0x246   : > { %1441 = vrot.lane.b32.xlu1 %v1419_v4, %s5217_s24 }
 0x248   : > { %v6079_v9 = vpop.permute.xlu1 %1433  ;;  %v6087_v38 = vpop.permute.xlu0 %1038 }
 0x249   : > { %9690 = vst [vmem:[#allocation42_spill] sm:$0xff] %v6079_v9  ;;  %9692 = vst [vmem:[#allocation44_spill] sm:$0xff] %v6087_v38 }
 0x24a   : > { %1468 = vperm.xlu1 %4920, %v5494_v26  }
 0x24c   : > { %v6084_v60 = vpop.permute.xlu1 %706  ;;  %v6093_v57 = vpop.permute.xlu0 %1185 }
 0x24d   : > { %9693 = vst [vmem:[#allocation45_spill] sm:$0xff] %v6093_v57 }
 0x24e   : > { %4922 = vset.pattern.permute.xlu1 %v9685_v33 }
 0x250   : > { %v6089_v62 = vpop.permute.xlu1 %710  ;;  %v6097_v4 = vpop.permute.xlu0 %1189 }
 0x251   : > { %9694 = vst [vmem:[#allocation46_spill] sm:$0xff] %v6097_v4 }
 0x254   : > { %v6091_v49 = vpop.permute.xlu1 %828  ;;  %v6103_v26 = vpop.permute.xlu0 %1310 }
 0x255   : > { %9696 = vst [vmem:[#allocation48_spill] sm:$0xff] %v6103_v26 }
 0x258   : > { %v6095_v5 = vpop.permute.xlu1 %879  ;;  %v6107_v33 = vpop.permute.xlu0 %1314 }
 0x259   : > { %9698 = vst [vmem:[#allocation50_spill] sm:$0xff] %v6107_v33 }
 0x25c   : > { %v6099_v9 = vpop.permute.xlu1 %934  ;;  %v6113_v8 = vpop.permute.xlu0 %712 }
 0x25d   : > { %9695 = vst [vmem:[#allocation47_spill] sm:$0xff] %v6099_v9 }
 0x260   : > { %v6101_v23 = vpop.permute.xlu1 %985  ;;  %v6117_v25 = vpop.permute.xlu0 %830 }
 0x264   : > { %v6105_v12 = vpop.permute.xlu1 %1040  ;;  %v6123_v43 = vpop.permute.xlu0 %936 }
 0x265   : > { %9697 = vst [vmem:[#allocation49_spill] sm:$0xff] %v6105_v12  ;;  %9704 = vst [vmem:[#allocation56_spill] sm:$0xff] %v6123_v43 }
 0x268   : > { %v6109_v61 = vpop.permute.xlu1 %1123  ;;  %v6127_v20 = vpop.permute.xlu0 %1042 }
 0x269   : > { %9699 = vst [vmem:[#allocation51_spill] sm:$0xff] %v6109_v61  ;;  %9706 = vst [vmem:[#allocation58_spill] sm:$0xff] %v6127_v20 }
 0x26c   : > { %v6111_v51 = vpop.permute.xlu1 %1127 }
 0x26d   : > { %9700 = vst [vmem:[#allocation52_spill] sm:$0xff] %v6111_v51  ;;  %v6133_v51 = vpop.permute.xlu0 %1129 }
 0x26e   : > { %9707 = vst [vmem:[#allocation59_spill] sm:$0xff] %v6133_v51 }
 0x270   : > { %v6115_v57 = vpop.permute.xlu1 %1247 }
 0x271   : > { %9701 = vst [vmem:[#allocation53_spill] sm:$0xff] %v6115_v57  ;;  %v6137_v57 = vpop.permute.xlu0 %1253 }
 0x272   : > { %9709 = vst [vmem:[#allocation61_spill] sm:$0xff] %v6137_v57 }
 0x274   : > { %v6119_v4 = vpop.permute.xlu1 %1251 }
 0x275   : > { %9702 = vst [vmem:[#allocation54_spill] sm:$0xff] %v6119_v4 }
 0x278   : > { %v6121_v44 = vpop.permute.xlu1 %1373 }
 0x279   : > { %9703 = vst [vmem:[#allocation55_spill] sm:$0xff] %v6121_v44  ;;  %v6143_v44 = vpop.permute.xlu0 %1379 }
 0x27a   : > { %9712 = vst [vmem:[#allocation64_spill] sm:$0xff] %v6143_v44 }
 0x27c   : > { %v6125_v26 = vpop.permute.xlu1 %1377 }
 0x27d   : > { %9705 = vst [vmem:[#allocation57_spill] sm:$0xff] %v6125_v26  ;;  %v6147_v26 = vpop.permute.xlu0 %651 }
 0x280   : > { %v6129_v33 = vpop.permute.xlu1 %649 }
 0x281   : > { %v6153_v39 = vpop.permute.xlu0 %777 }
 0x284   : > { %v6131_v61 = vpop.permute.xlu1 %775 }
 0x285   : > { %v6157_v38 = vpop.permute.xlu0 %885 }
 0x286   : > { %9715 = vst [vmem:[#allocation67_spill] sm:$0xff] %v6157_v38 }
 0x288   : > { %v6135_v35 = vpop.permute.xlu1 %883 }
 0x289   : > { %9708 = vst [vmem:[#allocation60_spill] sm:$0xff] %v6135_v35 }
 0x28c   : > { %v6139_v50 = vpop.permute.xlu1 %989 }
 0x28d   : > { %9710 = vst [vmem:[#allocation62_spill] sm:$0xff] %v6139_v50  ;;  %v6161_v50 = vpop.permute.xlu0 %991 }
 0x28e   : > { %9717 = vst [vmem:[#allocation69_spill] sm:$0xff] %v6161_v50 }
 0x290   : > { %v6141_v4 = vpop.permute.xlu1 %1191 }
 0x291   : > { %9711 = vst [vmem:[#allocation63_spill] sm:$0xff] %v6141_v4  ;;  %v6165_v44 = vpop.permute.xlu0 %1193 }
 0x292   : > { %9719 = vst [vmem:[#allocation71_spill] sm:$0xff] %v6165_v44 }
 0x294   : > { %v6145_v19 = vpop.permute.xlu1 %1316 }
 0x295   : > { %9713 = vst [vmem:[#allocation65_spill] sm:$0xff] %v6145_v19  ;;  %v6169_v43 = vpop.permute.xlu0 %1318 }
 0x296   : > { %9721 = vst [vmem:[#allocation73_spill] sm:$0xff] %v6169_v43 }
 0x298   : > { %v6149_v20 = vpop.permute.xlu1 %714 }
 0x299   : > { %v6173_v24 = vpop.permute.xlu0 %1435 }
 0x29a   : > { %9723 = vst [vmem:[#allocation75_spill] sm:$0xff] %v6173_v24 }
 0x29c   : > { %v6151_v12 = vpop.permute.xlu1 %832 }
 0x2a0   : > { %v6155_v51 = vpop.permute.xlu1 %938 }
 0x2a1   : > { %9714 = vst [vmem:[#allocation66_spill] sm:$0xff] %v6155_v51  ;;  %v6177_v51 = vpop.permute.xlu0 %1439 }
 0x2a2   : > { %9725 = vst [vmem:[#allocation77_spill] sm:$0xff] %v6177_v51 }
 0x2a4   : > { %v6159_v57 = vpop.permute.xlu1 %1044 }
 0x2a5   : > { %9716 = vst [vmem:[#allocation68_spill] sm:$0xff] %v6159_v57  ;;  %v6181_v57 = vpop.permute.xlu0 %1443 }
 0x2a6   : > { %9727 = vst [vmem:[#allocation79_spill] sm:$0xff] %v6181_v57 }
 0x2a8   : > { %v6163_v4 = vpop.permute.xlu1 %1131 }
 0x2a9   : > { %9718 = vst [vmem:[#allocation70_spill] sm:$0xff] %v6163_v4  ;;  %v6183_v4 = vld [vmem:[#allocation2] sm:$0xff]  ;;  %v1473_v43 = vpop.permute.xlu0 %1472 }
 0x2aa   : > { %v1479_v51 = vmul.f32 %v6183_v4, %v1473_v43 }
 0x2ac   : > { %v6167_v19 = vpop.permute.xlu1 %1255 }
 0x2ad   : > { %9720 = vst [vmem:[#allocation72_spill] sm:$0xff] %v6167_v19 }
 0x2b0   : > { %v6171_v9 = vpop.permute.xlu1 %1381 }
 0x2b1   : > { %9722 = vst [vmem:[#allocation74_spill] sm:$0xff] %v6171_v9 }
 0x2b4   : > { %v6175_v30 = vpop.permute.xlu1 %1437 }
 0x2b5   : > { %9724 = vst [vmem:[#allocation76_spill] sm:$0xff] %v6175_v30 }
 0x2b8   : > { %v6179_v38 = vpop.permute.xlu1 %1441 }
 0x2b9   : > { %9726 = vst [vmem:[#allocation78_spill] sm:$0xff] %v6179_v38  ;;  %v1481_v38 = vmul.f32 %v1473_v43, %v5872_v29 }
 0x2c9   : > { %v1469_v50 = vpop.permute.xlu1 %1468 }
 0x2ca   : > { %v1475_v44 = vmul.f32 %v6183_v4, %v1469_v50  ;;  %v1477_v19 = vmul.f32 %v1469_v50, %v5726_v18  ;;  %v1476_v30 = vmul.f32 %v1469_v50, %v5689_v10  ;;  %v1478_v57 = vmul.f32 %v1469_v50, %v5770_v28 }
 0x2cb   : > { %v9388_v50 = vmov 9  }
 0x2cc   : > { %1491 = vrot.lane.b32.xlu1 %v1475_v44, %s5218_s15  ;;  %1495 = vrot.lane.b32.xlu0 %v1477_v19, %s5218_s15  ;;  %v1480_v44 = vmul.f32 %v1473_v43, %v5775_v45  ;;  %v6202_v19 = vld [vmem:[%s9306_s4] sm:$0xff] }
 0x2d0   : > { %1493 = vrot.lane.b32.xlu1 %v1476_v30, %s5218_s15  ;;  %1499 = vrot.lane.b32.xlu0 %v1479_v51, %s5218_s15  ;;  %v1482_v51 = vmul.f32 %v1473_v43, %v5934_v48 }
 0x2d4   : > { %1497 = vrot.lane.b32.xlu1 %v1478_v57, %s5218_s15  ;;  %1503 = vrot.lane.b32.xlu0 %v1481_v38, %s5218_s15 }
 0x2d8   : > { %1501 = vrot.lane.b32.xlu1 %v1480_v44, %s5218_s15  ;;  %1530 = vperm.xlu0 %4921, %v6202_v19  }
 0x2dc   : > { %1505 = vrot.lane.b32.xlu1 %v1482_v51, %s5218_s15  ;;  %4924 = vset.pattern.permute.xlu0 %v9388_v50 }
 0x2e0   : > { %1534 = vperm.xlu1 %4922, %v5518_v42  }
 0x2e4   : > { %4923 = vset.pattern.permute.xlu1 %v9388_v50 }
 0x33e   : > { %v6210_v30 = vpop.permute.xlu1 %1491  ;;  %v6212_v57 = vpop.permute.xlu0 %1495 }
 0x33f   : > { %9728 = vst [vmem:[#allocation80_spill] sm:$0xff] %v6210_v30  ;;  %9729 = vst [vmem:[#allocation81_spill] sm:$0xff] %v6212_v57 }
 0x342   : > { %v6214_v38 = vpop.permute.xlu1 %1493  ;;  %v6216_v44 = vpop.permute.xlu0 %1499 }
 0x343   : > { %9730 = vst [vmem:[#allocation82_spill] sm:$0xff] %v6214_v38  ;;  %9731 = vst [vmem:[#allocation83_spill] sm:$0xff] %v6216_v44 }
 0x346   : > { %v6218_v24 = vpop.permute.xlu1 %1497  ;;  %v6220_v43 = vpop.permute.xlu0 %1503 }
 0x347   : > { %9732 = vst [vmem:[#allocation84_spill] sm:$0xff] %v6218_v24  ;;  %9733 = vst [vmem:[#allocation85_spill] sm:$0xff] %v6220_v43 }
 0x34a   : > { %v6222_v51 = vpop.permute.xlu1 %1501 }
 0x34b   : > { %9734 = vst [vmem:[#allocation86_spill] sm:$0xff] %v6222_v51 }
 0x34e   : > { %v6228_v50 = vpop.permute.xlu1 %1505 }
 0x34f   : > { %9735 = vst [vmem:[#allocation87_spill] sm:$0xff] %v6228_v50 }
 0x357   : > { %v1531_v42 = vpop.permute.xlu0 %1530 }
 0x358   : > { %v1538_v9 = vmul.f32 %v1531_v42, %v5689_v10  ;;  %v1537_v58 = vmul.f32 %v6183_v4, %v1531_v42  ;;  %v1540_v44 = vmul.f32 %v1531_v42, %v5770_v28  ;;  %v1539_v24 = vmul.f32 %v1531_v42, %v5726_v18 }
 0x35a   : > { %1555 = vrot.lane.b32.xlu0 %v1538_v9, %s9553_s6  ;;  %1553 = vrot.lane.b32.xlu1 %v1537_v58, %s9553_s6 }
 0x35e   : > { %1559 = vrot.lane.b32.xlu0 %v1540_v44, %s9553_s6  ;;  %1557 = vrot.lane.b32.xlu1 %v1539_v24, %s9553_s6  ;;  %v6245_v24 = vld [vmem:[%s9306_s4 + $0x8] sm:$0xff]  ;;  %v9398_v44 = vmov 10  }
 0x35f   : > { %v1535_v43 = vpop.permute.xlu1 %1534 }
 0x360   : > { %v1542_v51 = vmul.f32 %v1535_v43, %v5775_v45  ;;  %v1541_v57 = vmul.f32 %v6183_v4, %v1535_v43  ;;  %v1544_v58 = vmul.f32 %v1535_v43, %v5934_v48  ;;  %v1543_v9 = vmul.f32 %v1535_v43, %v5872_v29 }
 0x362   : > { %1563 = vrot.lane.b32.xlu0 %v1542_v51, %s9553_s6  ;;  %1561 = vrot.lane.b32.xlu1 %v1541_v57, %s9553_s6 }
 0x366   : > { %1567 = vrot.lane.b32.xlu0 %v1544_v58, %s9553_s6  ;;  %1565 = vrot.lane.b32.xlu1 %v1543_v9, %s9553_s6  ;;  %s10160_s6 = smov 46  }
 0x36a   : > { %1597 = vperm.xlu0 %4924, %v6245_v24   ;;  %1593 = vperm.xlu1 %4923, %v6202_v19  }
 0x36e   : > { %4925 = vset.pattern.permute.xlu0 %v9398_v44  ;;  %4926 = vset.pattern.permute.xlu1 %v9398_v44 }
 0x3cc   : > { %v6251_v57 = vpop.permute.xlu1 %1553  ;;  %v6253_v43 = vpop.permute.xlu0 %1555 }
 0x3cd   : > { %9736 = vst [vmem:[#allocation88_spill] sm:$0xff] %v6251_v57  ;;  %9737 = vst [vmem:[#allocation89_spill] sm:$0xff] %v6253_v43 }
 0x3d0   : > { %v6255_v51 = vpop.permute.xlu1 %1557  ;;  %v6257_v42 = vpop.permute.xlu0 %1559 }
 0x3d1   : > { %9738 = vst [vmem:[#allocation90_spill] sm:$0xff] %v6255_v51  ;;  %9739 = vst [vmem:[#allocation91_spill] sm:$0xff] %v6257_v42 }
 0x3d4   : > { %v6259_v58 = vpop.permute.xlu1 %1561  ;;  %v6261_v9 = vpop.permute.xlu0 %1563 }
 0x3d5   : > { %9740 = vst [vmem:[#allocation92_spill] sm:$0xff] %v6259_v58  ;;  %9741 = vst [vmem:[#allocation93_spill] sm:$0xff] %v6261_v9 }
 0x3d8   : > { %v6263_v50 = vpop.permute.xlu1 %1565  ;;  %v6265_v30 = vpop.permute.xlu0 %1567 }
 0x3d9   : > { %9742 = vst [vmem:[#allocation94_spill] sm:$0xff] %v6263_v50  ;;  %9743 = vst [vmem:[#allocation95_spill] sm:$0xff] %v6265_v30 }
 0x3e9   : > { %v1594_v38 = vpop.permute.xlu1 %1593  ;;  %v1598_v57 = vpop.permute.xlu0 %1597 }
 0x3ea   : > { %v1602_v35 = vmul.f32 %v1594_v38, %v5726_v18  ;;  %v1600_v44 = vmul.f32 %v6183_v4, %v1594_v38  ;;  %v1604_v42 = vmul.f32 %v6183_v4, %v1598_v57  ;;  %v1601_v58 = vmul.f32 %v1594_v38, %v5689_v10 }
 0x3eb   : > { %v1606_v30 = vmul.f32 %v1598_v57, %v5872_v29  ;;  %v1603_v50 = vmul.f32 %v1594_v38, %v5770_v28 }
 0x3ec   : > { %1620 = vrot.lane.b32.xlu0 %v1602_v35, %s9551_s27  ;;  %1616 = vrot.lane.b32.xlu1 %v1600_v44, %s9551_s27  ;;  %v1605_v35 = vmul.f32 %v1598_v57, %v5775_v45  ;;  %v1607_v44 = vmul.f32 %v1598_v57, %v5934_v48 }
 0x3f0   : > { %1624 = vrot.lane.b32.xlu0 %v1604_v42, %s9551_s27  ;;  %1618 = vrot.lane.b32.xlu1 %v1601_v58, %s9551_s27  ;;  %v9406_v42 = vmov 11  }
 0x3f4   : > { %1628 = vrot.lane.b32.xlu0 %v1606_v30, %s9551_s27  ;;  %1622 = vrot.lane.b32.xlu1 %v1603_v50, %s9551_s27 }
 0x3f8   : > { %1656 = vperm.xlu0 %4925, %v6202_v19   ;;  %1626 = vrot.lane.b32.xlu1 %v1605_v35, %s9551_s27 }
 0x3fc   : > { %1630 = vrot.lane.b32.xlu1 %v1607_v44, %s9551_s27  ;;  %4928 = vset.pattern.permute.xlu0 %v9406_v42  ;;  %s10183_s27 = smov 45  }
 0x400   : > { %1660 = vperm.xlu1 %4926, %v6245_v24  }
 0x404   : > { %4927 = vset.pattern.permute.xlu1 %v9406_v42 }
 0x45e   : > { %v6287_v30 = vpop.permute.xlu1 %1616  ;;  %v6289_v50 = vpop.permute.xlu0 %1620 }
 0x45f   : > { %9744 = vst [vmem:[#allocation96_spill] sm:$0xff] %v6287_v30  ;;  %9745 = vst [vmem:[#allocation97_spill] sm:$0xff] %v6289_v50 }
 0x462   : > { %v6291_v38 = vpop.permute.xlu1 %1618  ;;  %v6293_v58 = vpop.permute.xlu0 %1624 }
 0x463   : > { %9746 = vst [vmem:[#allocation98_spill] sm:$0xff] %v6291_v38  ;;  %9747 = vst [vmem:[#allocation99_spill] sm:$0xff] %v6293_v58 }
 0x466   : > { %v6295_v35 = vpop.permute.xlu1 %1622  ;;  %v6297_v57 = vpop.permute.xlu0 %1628 }
 0x467   : > { %9748 = vst [vmem:[#allocation100_spill] sm:$0xff] %v6295_v35  ;;  %9749 = vst [vmem:[#allocation101_spill] sm:$0xff] %v6297_v57 }
 0x46a   : > { %v6299_v44 = vpop.permute.xlu1 %1626 }
 0x46b   : > { %9750 = vst [vmem:[#allocation102_spill] sm:$0xff] %v6299_v44 }
 0x46e   : > { %v6305_v42 = vpop.permute.xlu1 %1630 }
 0x46f   : > { %9751 = vst [vmem:[#allocation103_spill] sm:$0xff] %v6305_v42 }
 0x477   : > { %v1657_v9 = vpop.permute.xlu0 %1656 }
 0x478   : > { %v1664_v51 = vmul.f32 %v1657_v9, %v5689_v10  ;;  %v1663_v43 = vmul.f32 %v6183_v4, %v1657_v9  ;;  %v1666_v50 = vmul.f32 %v1657_v9, %v5770_v28  ;;  %v1665_v58 = vmul.f32 %v1657_v9, %v5726_v18 }
 0x479   : > { %v9413_v9 = vmov 12  }
 0x47a   : > { %1681 = vrot.lane.b32.xlu0 %v1664_v51, %s5219_s17  ;;  %1679 = vrot.lane.b32.xlu1 %v1663_v43, %s5219_s17 }
 0x47e   : > { %1685 = vrot.lane.b32.xlu0 %v1666_v50, %s5219_s17  ;;  %1683 = vrot.lane.b32.xlu1 %v1665_v58, %s5219_s17 }
 0x47f   : > { %v1661_v57 = vpop.permute.xlu1 %1660 }
 0x480   : > { %v1668_v44 = vmul.f32 %v1661_v57, %v5775_v45  ;;  %v1667_v35 = vmul.f32 %v6183_v4, %v1661_v57  ;;  %v1670_v43 = vmul.f32 %v1661_v57, %v5934_v48  ;;  %v1669_v51 = vmul.f32 %v1661_v57, %v5872_v29 }
 0x482   : > { %1689 = vrot.lane.b32.xlu0 %v1668_v44, %s5219_s17  ;;  %1687 = vrot.lane.b32.xlu1 %v1667_v35, %s5219_s17 }
 0x486   : > { %1693 = vrot.lane.b32.xlu0 %v1670_v43, %s5219_s17  ;;  %1691 = vrot.lane.b32.xlu1 %v1669_v51, %s5219_s17 }
 0x48a   : > { %1722 = vperm.xlu0 %4928, %v6245_v24   ;;  %1718 = vperm.xlu1 %4927, %v6202_v19  }
 0x48e   : > { %4929 = vset.pattern.permute.xlu0 %v9413_v9  ;;  %4930 = vset.pattern.permute.xlu1 %v9413_v9 }
 0x4ec   : > { %v6323_v50 = vpop.permute.xlu1 %1679  ;;  %v6325_v58 = vpop.permute.xlu0 %1681 }
 0x4ed   : > { %9752 = vst [vmem:[#allocation104_spill] sm:$0xff] %v6323_v50  ;;  %9753 = vst [vmem:[#allocation105_spill] sm:$0xff] %v6325_v58 }
 0x4f0   : > { %v6327_v35 = vpop.permute.xlu1 %1683  ;;  %v6329_v57 = vpop.permute.xlu0 %1685 }
 0x4f1   : > { %9754 = vst [vmem:[#allocation106_spill] sm:$0xff] %v6327_v35  ;;  %9755 = vst [vmem:[#allocation107_spill] sm:$0xff] %v6329_v57 }
 0x4f4   : > { %v6331_v44 = vpop.permute.xlu1 %1687  ;;  %v6333_v43 = vpop.permute.xlu0 %1689 }
 0x4f5   : > { %9756 = vst [vmem:[#allocation108_spill] sm:$0xff] %v6331_v44  ;;  %9757 = vst [vmem:[#allocation109_spill] sm:$0xff] %v6333_v43 }
 0x4f8   : > { %v6335_v51 = vpop.permute.xlu1 %1691  ;;  %v6337_v42 = vpop.permute.xlu0 %1693 }
 0x4f9   : > { %9758 = vst [vmem:[#allocation110_spill] sm:$0xff] %v6335_v51  ;;  %9759 = vst [vmem:[#allocation111_spill] sm:$0xff] %v6337_v42 }
 0x509   : > { %v1719_v30 = vpop.permute.xlu1 %1718  ;;  %v1723_v50 = vpop.permute.xlu0 %1722 }
 0x50a   : > { %v1727_v38 = vmul.f32 %v1719_v30, %v5726_v18  ;;  %v1725_v9 = vmul.f32 %v6183_v4, %v1719_v30  ;;  %v1729_v57 = vmul.f32 %v6183_v4, %v1723_v50  ;;  %v1726_v44 = vmul.f32 %v1719_v30, %v5689_v10 }
 0x50b   : > { %v1731_v42 = vmul.f32 %v1723_v50, %v5872_v29  ;;  %v1728_v51 = vmul.f32 %v1719_v30, %v5770_v28 }
 0x50c   : > { %1745 = vrot.lane.b32.xlu0 %v1727_v38, %s5220_s20  ;;  %1741 = vrot.lane.b32.xlu1 %v1725_v9, %s5220_s20  ;;  %v1730_v38 = vmul.f32 %v1723_v50, %v5775_v45  ;;  %v1732_v9 = vmul.f32 %v1723_v50, %v5934_v48 }
 0x510   : > { %1749 = vrot.lane.b32.xlu0 %v1729_v57, %s5220_s20  ;;  %1743 = vrot.lane.b32.xlu1 %v1726_v44, %s5220_s20  ;;  %v9421_v57 = vmov 13  }
 0x514   : > { %1753 = vrot.lane.b32.xlu0 %v1731_v42, %s5220_s20  ;;  %1747 = vrot.lane.b32.xlu1 %v1728_v51, %s5220_s20 }
 0x518   : > { %1780 = vperm.xlu0 %4929, %v6202_v19   ;;  %1751 = vrot.lane.b32.xlu1 %v1730_v38, %s5220_s20 }
 0x51c   : > { %1755 = vrot.lane.b32.xlu1 %v1732_v9, %s5220_s20  ;;  %4932 = vset.pattern.permute.xlu0 %v9421_v57 }
 0x520   : > { %1784 = vperm.xlu1 %4930, %v6245_v24  }
 0x524   : > { %4931 = vset.pattern.permute.xlu1 %v9421_v57 }
 0x57e   : > { %v6359_v42 = vpop.permute.xlu1 %1741  ;;  %v6361_v30 = vpop.permute.xlu0 %1745 }
 0x57f   : > { %9760 = vst [vmem:[#allocation112_spill] sm:$0xff] %v6359_v42  ;;  %9761 = vst [vmem:[#allocation113_spill] sm:$0xff] %v6361_v30 }
 0x582   : > { %v6363_v44 = vpop.permute.xlu1 %1743  ;;  %v6365_v51 = vpop.permute.xlu0 %1749 }
 0x583   : > { %9762 = vst [vmem:[#allocation114_spill] sm:$0xff] %v6365_v51 }
 0x586   : > { %v6367_v38 = vpop.permute.xlu1 %1747  ;;  %v6369_v50 = vpop.permute.xlu0 %1753 }
 0x587   : > { %9763 = vst [vmem:[#allocation115_spill] sm:$0xff] %v6367_v38  ;;  %9764 = vst [vmem:[#allocation116_spill] sm:$0xff] %v6369_v50 }
 0x58a   : > { %v6371_v9 = vpop.permute.xlu1 %1751 }
 0x58b   : > { %9765 = vst [vmem:[#allocation117_spill] sm:$0xff] %v6371_v9 }
 0x58e   : > { %v6377_v57 = vpop.permute.xlu1 %1755 }
 0x58f   : > { %9766 = vst [vmem:[#allocation118_spill] sm:$0xff] %v6377_v57 }
 0x597   : > { %v1781_v43 = vpop.permute.xlu0 %1780 }
 0x598   : > { %v1787_v35 = vmul.f32 %v1781_v43, %v5689_v10  ;;  %v1788_v58 = vmul.f32 %v1781_v43, %v5726_v18  ;;  %v1789_v30 = vmul.f32 %v1781_v43, %v5770_v28 }
 0x59a   : > { %1801 = vrot.lane.b32.xlu0 %v1788_v58, %s5221_s22  ;;  %1799 = vrot.lane.b32.xlu1 %v1787_v35, %s5221_s22  ;;  %v9428_v58 = vmov 14  }
 0x59e   : > { %1803 = vrot.lane.b32.xlu1 %v1789_v30, %s5221_s22 }
 0x59f   : > { %v1785_v51 = vpop.permute.xlu1 %1784 }
 0x5a0   : > { %v1790_v50 = vmul.f32 %v1785_v51, %v5775_v45  ;;  %v1791_v9 = vmul.f32 %v1785_v51, %v5872_v29  ;;  %v1792_v38 = vmul.f32 %v1785_v51, %v5934_v48 }
 0x5a2   : > { %1807 = vrot.lane.b32.xlu1 %v1791_v9, %s5221_s22  ;;  %1805 = vrot.lane.b32.xlu0 %v1790_v50, %s5221_s22 }
 0x5a6   : > { %1832 = vperm.xlu1 %4931, %v6202_v19   ;;  %1809 = vrot.lane.b32.xlu0 %v1792_v38, %s5221_s22 }
 0x5aa   : > { %1836 = vperm.xlu0 %4932, %v6245_v24   ;;  %4934 = vset.pattern.permute.xlu1 %v9428_v58 }
 0x5ae   : > { %4933 = vset.pattern.permute.xlu0 %v9428_v58 }
 0x60c   : > { %v6391_v35 = vpop.permute.xlu1 %1799  ;;  %v6393_v43 = vpop.permute.xlu0 %1801 }
 0x60d   : > { %9767 = vst [vmem:[#allocation119_spill] sm:$0xff] %v6391_v35  ;;  %9768 = vst [vmem:[#allocation120_spill] sm:$0xff] %v6393_v43 }
 0x610   : > { %v6395_v30 = vpop.permute.xlu1 %1803 }
 0x611   : > { %9769 = vst [vmem:[#allocation121_spill] sm:$0xff] %v6395_v30 }
 0x614   : > { %v6397_v50 = vpop.permute.xlu0 %1805  ;;  %v6399_v51 = vpop.permute.xlu1 %1807 }
 0x615   : > { %9770 = vst [vmem:[#allocation122_spill] sm:$0xff] %v6397_v50  ;;  %9771 = vst [vmem:[#allocation123_spill] sm:$0xff] %v6399_v51 }
 0x618   : > { %v6401_v9 = vpop.permute.xlu0 %1809 }
 0x619   : > { %9772 = vst [vmem:[#allocation124_spill] sm:$0xff] %v6401_v9 }
 0x625   : > { %v1833_v38 = vpop.permute.xlu1 %1832 }
 0x626   : > { %v1839_v57 = vmul.f32 %v1833_v38, %v5689_v10  ;;  %v1841_v42 = vmul.f32 %v1833_v38, %v5770_v28  ;;  %v1840_v35 = vmul.f32 %v1833_v38, %v5726_v18 }
 0x628   : > { %1855 = vrot.lane.b32.xlu0 %v1841_v42, %s9434_s19  ;;  %1851 = vrot.lane.b32.xlu1 %v1839_v57, %s9434_s19  ;;  %v9436_v57 = vmov 15  }
 0x629   : > { %v1837_v58 = vpop.permute.xlu0 %1836 }
 0x62a   : > { %v1843_v30 = vmul.f32 %v1837_v58, %v5872_v29  ;;  %v1842_v9 = vmul.f32 %v1837_v58, %v5775_v45  ;;  %v1844_v50 = vmul.f32 %v1837_v58, %v5934_v48 }
 0x62c   : > { %1859 = vrot.lane.b32.xlu0 %v1843_v30, %s9434_s19  ;;  %1853 = vrot.lane.b32.xlu1 %v1840_v35, %s9434_s19 }
 0x630   : > { %1885 = vperm.xlu0 %4933, %v6202_v19   ;;  %1857 = vrot.lane.b32.xlu1 %v1842_v9, %s9434_s19 }
 0x634   : > { %1861 = vrot.lane.b32.xlu1 %v1844_v50, %s9434_s19  ;;  %4936 = vset.pattern.permute.xlu0 %v9436_v57  ;;  %s9445_s19 = smov 84  }
 0x638   : > { %1889 = vperm.xlu1 %4934, %v6245_v24  }
 0x63c   : > { %4935 = vset.pattern.permute.xlu1 %v9436_v57 }
 0x69a   : > { %v6419_v42 = vpop.permute.xlu1 %1851  ;;  %v6421_v35 = vpop.permute.xlu0 %1855 }
 0x69b   : > { %9773 = vst [vmem:[#allocation125_spill] sm:$0xff] %v6419_v42  ;;  %9774 = vst [vmem:[#allocation126_spill] sm:$0xff] %v6421_v35 }
 0x69e   : > { %v6423_v30 = vpop.permute.xlu1 %1853  ;;  %v6425_v38 = vpop.permute.xlu0 %1859 }
 0x69f   : > { %9775 = vst [vmem:[#allocation127_spill] sm:$0xff] %v6423_v30  ;;  %9776 = vst [vmem:[#allocation128_spill] sm:$0xff] %v6425_v38 }
 0x6a2   : > { %v6427_v9 = vpop.permute.xlu1 %1857 }
 0x6a3   : > { %9777 = vst [vmem:[#allocation129_spill] sm:$0xff] %v6427_v9 }
 0x6a6   : > { %v6433_v57 = vpop.permute.xlu1 %1861 }
 0x6a7   : > { %9778 = vst [vmem:[#allocation130_spill] sm:$0xff] %v6433_v57 }
 0x6af   : > { %v1886_v58 = vpop.permute.xlu0 %1885 }
 0x6b0   : > { %v1892_v50 = vmul.f32 %v1886_v58, %v5689_v10  ;;  %v1893_v51 = vmul.f32 %v1886_v58, %v5726_v18  ;;  %v1894_v35 = vmul.f32 %v1886_v58, %v5770_v28 }
 0x6b2   : > { %1906 = vrot.lane.b32.xlu0 %v1893_v51, %s9445_s19  ;;  %1904 = vrot.lane.b32.xlu1 %v1892_v50, %s9445_s19  ;;  %v9447_v51 = vmov 16  }
 0x6b6   : > { %1908 = vrot.lane.b32.xlu1 %v1894_v35, %s9445_s19 }
 0x6b7   : > { %v1890_v42 = vpop.permute.xlu1 %1889 }
 0x6b8   : > { %v1895_v38 = vmul.f32 %v1890_v42, %v5775_v45  ;;  %v1896_v9 = vmul.f32 %v1890_v42, %v5872_v29  ;;  %v1897_v30 = vmul.f32 %v1890_v42, %v5934_v48 }
 0x6ba   : > { %1912 = vrot.lane.b32.xlu1 %v1896_v9, %s9445_s19  ;;  %1910 = vrot.lane.b32.xlu0 %v1895_v38, %s9445_s19 }
 0x6be   : > { %1938 = vperm.xlu1 %4935, %v6202_v19   ;;  %1914 = vrot.lane.b32.xlu0 %v1897_v30, %s9445_s19  ;;  %s9454_s19 = smov 68  }
 0x6c2   : > { %1942 = vperm.xlu0 %4936, %v6245_v24   ;;  %4938 = vset.pattern.permute.xlu1 %v9447_v51 }
 0x6c6   : > { %4937 = vset.pattern.permute.xlu0 %v9447_v51 }
 0x724   : > { %v6447_v35 = vpop.permute.xlu1 %1904  ;;  %v6449_v58 = vpop.permute.xlu0 %1906 }
 0x725   : > { %9779 = vst [vmem:[#allocation131_spill] sm:$0xff] %v6447_v35  ;;  %9780 = vst [vmem:[#allocation132_spill] sm:$0xff] %v6449_v58 }
 0x728   : > { %v6451_v9 = vpop.permute.xlu1 %1908 }
 0x729   : > { %9781 = vst [vmem:[#allocation133_spill] sm:$0xff] %v6451_v9 }
 0x72c   : > { %v6453_v38 = vpop.permute.xlu0 %1910  ;;  %v6455_v42 = vpop.permute.xlu1 %1912 }
 0x72d   : > { %9782 = vst [vmem:[#allocation134_spill] sm:$0xff] %v6453_v38  ;;  %9783 = vst [vmem:[#allocation135_spill] sm:$0xff] %v6455_v42 }
 0x730   : > { %v6457_v50 = vpop.permute.xlu0 %1914 }
 0x731   : > { %9784 = vst [vmem:[#allocation136_spill] sm:$0xff] %v6457_v50 }
 0x73d   : > { %v1939_v30 = vpop.permute.xlu1 %1938 }
 0x73e   : > { %v1945_v57 = vmul.f32 %v1939_v30, %v5689_v10  ;;  %v1947_v43 = vmul.f32 %v1939_v30, %v5770_v28  ;;  %v1946_v35 = vmul.f32 %v1939_v30, %v5726_v18 }
 0x740   : > { %1961 = vrot.lane.b32.xlu0 %v1947_v43, %s9454_s19  ;;  %1957 = vrot.lane.b32.xlu1 %v1945_v57, %s9454_s19  ;;  %v9456_v43 = vmov 17  }
 0x741   : > { %v1943_v51 = vpop.permute.xlu0 %1942 }
 0x742   : > { %v1949_v9 = vmul.f32 %v1943_v51, %v5872_v29  ;;  %v1948_v50 = vmul.f32 %v1943_v51, %v5775_v45  ;;  %v1950_v38 = vmul.f32 %v1943_v51, %v5934_v48 }
 0x744   : > { %1965 = vrot.lane.b32.xlu0 %v1949_v9, %s9454_s19  ;;  %1959 = vrot.lane.b32.xlu1 %v1946_v35, %s9454_s19 }
 0x748   : > { %1991 = vperm.xlu0 %4937, %v6202_v19   ;;  %1963 = vrot.lane.b32.xlu1 %v1948_v50, %s9454_s19 }
 0x74c   : > { %1967 = vrot.lane.b32.xlu1 %v1950_v38, %s9454_s19  ;;  %4940 = vset.pattern.permute.xlu0 %v9456_v43  ;;  %s9464_s19 = smov 67  }
 0x750   : > { %1995 = vperm.xlu1 %4938, %v6245_v24  }
 0x754   : > { %4939 = vset.pattern.permute.xlu1 %v9456_v43 }
 0x7b2   : > { %v6475_v57 = vpop.permute.xlu1 %1957  ;;  %v6477_v35 = vpop.permute.xlu0 %1961 }
 0x7b3   : > { %9785 = vst [vmem:[#allocation137_spill] sm:$0xff] %v6475_v57  ;;  %9786 = vst [vmem:[#allocation138_spill] sm:$0xff] %v6477_v35 }
 0x7b6   : > { %v6479_v9 = vpop.permute.xlu1 %1959  ;;  %v6481_v30 = vpop.permute.xlu0 %1965 }
 0x7b7   : > { %9787 = vst [vmem:[#allocation139_spill] sm:$0xff] %v6479_v9  ;;  %9788 = vst [vmem:[#allocation140_spill] sm:$0xff] %v6481_v30 }
 0x7ba   : > { %v6483_v50 = vpop.permute.xlu1 %1963 }
 0x7bb   : > { %9789 = vst [vmem:[#allocation141_spill] sm:$0xff] %v6483_v50 }
 0x7be   : > { %v6489_v43 = vpop.permute.xlu1 %1967 }
 0x7bf   : > { %9790 = vst [vmem:[#allocation142_spill] sm:$0xff] %v6489_v43  ;;  %v6516_v43 = vld [vmem:[#allocation2 + $0x18] sm:$0xff] }
 0x7c7   : > { %v1992_v51 = vpop.permute.xlu0 %1991 }
 0x7c8   : > { %v1998_v38 = vmul.f32 %v1992_v51, %v5689_v10  ;;  %v1999_v42 = vmul.f32 %v1992_v51, %v5726_v18  ;;  %v2000_v35 = vmul.f32 %v1992_v51, %v5770_v28  ;;  %v9466_v28 = vmov 18  }
 0x7ca   : > { %2012 = vrot.lane.b32.xlu0 %v1999_v42, %s9464_s19  ;;  %2010 = vrot.lane.b32.xlu1 %v1998_v38, %s9464_s19 }
 0x7ce   : > { %2014 = vrot.lane.b32.xlu1 %v2000_v35, %s9464_s19 }
 0x7cf   : > { %v1996_v57 = vpop.permute.xlu1 %1995 }
 0x7d0   : > { %v2001_v30 = vmul.f32 %v1996_v57, %v5775_v45  ;;  %v2002_v50 = vmul.f32 %v1996_v57, %v5872_v29  ;;  %v2003_v9 = vmul.f32 %v1996_v57, %v5934_v48 }
 0x7d2   : > { %2018 = vrot.lane.b32.xlu1 %v2002_v50, %s9464_s19  ;;  %2016 = vrot.lane.b32.xlu0 %v2001_v30, %s9464_s19 }
 0x7d6   : > { %2044 = vperm.xlu1 %4939, %v6202_v19   ;;  %2020 = vrot.lane.b32.xlu0 %v2003_v9, %s9464_s19  ;;  %s9473_s19 = smov 66  }
 0x7da   : > { %2048 = vperm.xlu0 %4940, %v6245_v24   ;;  %4942 = vset.pattern.permute.xlu1 %v9466_v28 }
 0x7de   : > { %4941 = vset.pattern.permute.xlu0 %v9466_v28 }
 0x83c   : > { %v6503_v42 = vpop.permute.xlu1 %2010  ;;  %v6505_v35 = vpop.permute.xlu0 %2012 }
 0x83d   : > { %9791 = vst [vmem:[#allocation143_spill] sm:$0xff] %v6503_v42  ;;  %9792 = vst [vmem:[#allocation144_spill] sm:$0xff] %v6505_v35 }
 0x840   : > { %v6507_v50 = vpop.permute.xlu1 %2014 }
 0x841   : > { %9793 = vst [vmem:[#allocation145_spill] sm:$0xff] %v6507_v50 }
 0x844   : > { %v6509_v30 = vpop.permute.xlu0 %2016  ;;  %v6511_v57 = vpop.permute.xlu1 %2018 }
 0x845   : > { %9794 = vst [vmem:[#allocation146_spill] sm:$0xff] %v6509_v30  ;;  %9795 = vst [vmem:[#allocation147_spill] sm:$0xff] %v6511_v57 }
 0x848   : > { %v6513_v51 = vpop.permute.xlu0 %2020 }
 0x849   : > { %9796 = vst [vmem:[#allocation148_spill] sm:$0xff] %v6513_v51 }
 0x855   : > { %v2045_v9 = vpop.permute.xlu1 %2044 }
 0x856   : > { %v2051_v38 = vmul.f32 %v2045_v9, %v5689_v10  ;;  %v2053_v58 = vmul.f32 %v6516_v43, %v2045_v9  ;;  %v2052_v50 = vmul.f32 %v2045_v9, %v5726_v18 }
 0x858   : > { %2067 = vrot.lane.b32.xlu0 %v2053_v58, %s9473_s19  ;;  %2063 = vrot.lane.b32.xlu1 %v2051_v38, %s9473_s19  ;;  %v9475_v58 = vmov 19  }
 0x859   : > { %v2049_v28 = vpop.permute.xlu0 %2048 }
 0x85a   : > { %v2055_v30 = vmul.f32 %v2049_v28, %v5872_v29  ;;  %v2054_v51 = vmul.f32 %v2049_v28, %v5775_v45  ;;  %v2056_v57 = vmul.f32 %v2049_v28, %v5934_v48 }
 0x85c   : > { %2071 = vrot.lane.b32.xlu0 %v2055_v30, %s9473_s19  ;;  %2065 = vrot.lane.b32.xlu1 %v2052_v50, %s9473_s19 }
 0x860   : > { %2097 = vperm.xlu0 %4941, %v6202_v19   ;;  %2069 = vrot.lane.b32.xlu1 %v2054_v51, %s9473_s19 }
 0x864   : > { %2073 = vrot.lane.b32.xlu1 %v2056_v57, %s9473_s19  ;;  %4944 = vset.pattern.permute.xlu0 %v9475_v58  ;;  %s9484_s19 = smov 65  }
 0x868   : > { %2101 = vperm.xlu1 %4942, %v6245_v24  }
 0x86c   : > { %4943 = vset.pattern.permute.xlu1 %v9475_v58 }
 0x8ca   : > { %v6533_v30 = vpop.permute.xlu1 %2063  ;;  %v6535_v50 = vpop.permute.xlu0 %2067 }
 0x8cb   : > { %9797 = vst [vmem:[#allocation149_spill] sm:$0xff] %v6533_v30  ;;  %9798 = vst [vmem:[#allocation150_spill] sm:$0xff] %v6535_v50 }
 0x8ce   : > { %v6537_v9 = vpop.permute.xlu1 %2065  ;;  %v6539_v38 = vpop.permute.xlu0 %2071 }
 0x8cf   : > { %9799 = vst [vmem:[#allocation151_spill] sm:$0xff] %v6537_v9  ;;  %9800 = vst [vmem:[#allocation152_spill] sm:$0xff] %v6539_v38 }
 0x8d2   : > { %v6541_v51 = vpop.permute.xlu1 %2069 }
 0x8d3   : > { %9801 = vst [vmem:[#allocation153_spill] sm:$0xff] %v6541_v51 }
 0x8d6   : > { %v6547_v58 = vpop.permute.xlu1 %2073 }
 0x8d7   : > { %9802 = vst [vmem:[#allocation154_spill] sm:$0xff] %v6547_v58 }
 0x8df   : > { %v2098_v28 = vpop.permute.xlu0 %2097 }
 0x8e0   : > { %v2104_v57 = vmul.f32 %v2098_v28, %v5689_v10  ;;  %v2105_v42 = vmul.f32 %v2098_v28, %v5726_v18  ;;  %v2106_v50 = vmul.f32 %v6516_v43, %v2098_v28 }
 0x8e2   : > { %2118 = vrot.lane.b32.xlu0 %v2105_v42, %s9484_s19  ;;  %2116 = vrot.lane.b32.xlu1 %v2104_v57, %s9484_s19  ;;  %v9486_v42 = vmov 20  }
 0x8e6   : > { %2120 = vrot.lane.b32.xlu1 %v2106_v50, %s9484_s19 }
 0x8e7   : > { %v2102_v30 = vpop.permute.xlu1 %2101 }
 0x8e8   : > { %v2107_v38 = vmul.f32 %v2102_v30, %v5775_v45  ;;  %v2108_v51 = vmul.f32 %v2102_v30, %v5872_v29  ;;  %v2109_v9 = vmul.f32 %v2102_v30, %v5934_v48 }
 0x8ea   : > { %2124 = vrot.lane.b32.xlu1 %v2108_v51, %s9484_s19  ;;  %2122 = vrot.lane.b32.xlu0 %v2107_v38, %s9484_s19 }
 0x8ee   : > { %2150 = vperm.xlu1 %4943, %v6202_v19   ;;  %2126 = vrot.lane.b32.xlu0 %v2109_v9, %s9484_s19  ;;  %s9491_s19 = smov 64  }
 0x8f2   : > { %2154 = vperm.xlu0 %4944, %v6245_v24   ;;  %4946 = vset.pattern.permute.xlu1 %v9486_v42 }
 0x8f6   : > { %4945 = vset.pattern.permute.xlu0 %v9486_v42 }
 0x954   : > { %v6561_v50 = vpop.permute.xlu1 %2116  ;;  %v6563_v28 = vpop.permute.xlu0 %2118 }
 0x955   : > { %9803 = vst [vmem:[#allocation155_spill] sm:$0xff] %v6561_v50  ;;  %9804 = vst [vmem:[#allocation156_spill] sm:$0xff] %v6563_v28 }
 0x958   : > { %v6565_v51 = vpop.permute.xlu1 %2120 }
 0x959   : > { %9805 = vst [vmem:[#allocation157_spill] sm:$0xff] %v6565_v51 }
 0x95c   : > { %v6567_v38 = vpop.permute.xlu0 %2122  ;;  %v6569_v30 = vpop.permute.xlu1 %2124 }
 0x95d   : > { %9806 = vst [vmem:[#allocation158_spill] sm:$0xff] %v6567_v38  ;;  %9807 = vst [vmem:[#allocation159_spill] sm:$0xff] %v6569_v30 }
 0x960   : > { %v6571_v57 = vpop.permute.xlu0 %2126 }
 0x961   : > { %9808 = vst [vmem:[#allocation160_spill] sm:$0xff] %v6571_v57 }
 0x96d   : > { %v2151_v9 = vpop.permute.xlu1 %2150 }
 0x96e   : > { %v2157_v58 = vmul.f32 %v2151_v9, %v5689_v10  ;;  %v2159_v35 = vmul.f32 %v6516_v43, %v2151_v9  ;;  %v2158_v50 = vmul.f32 %v2151_v9, %v5726_v18 }
 0x970   : > { %2173 = vrot.lane.b32.xlu0 %v2159_v35, %s9491_s19  ;;  %2169 = vrot.lane.b32.xlu1 %v2157_v58, %s9491_s19  ;;  %v9493_v35 = vmov 21  }
 0x971   : > { %v2155_v42 = vpop.permute.xlu0 %2154 }
 0x972   : > { %v2161_v51 = vmul.f32 %v2155_v42, %v5872_v29  ;;  %v2160_v57 = vmul.f32 %v2155_v42, %v5775_v45  ;;  %v2162_v38 = vmul.f32 %v2155_v42, %v5934_v48 }
 0x974   : > { %2177 = vrot.lane.b32.xlu0 %v2161_v51, %s9491_s19  ;;  %2171 = vrot.lane.b32.xlu1 %v2158_v50, %s9491_s19 }
 0x978   : > { %2202 = vperm.xlu0 %4945, %v6202_v19   ;;  %2175 = vrot.lane.b32.xlu1 %v2160_v57, %s9491_s19 }
 0x97c   : > { %2179 = vrot.lane.b32.xlu1 %v2162_v38, %s9491_s19  ;;  %4948 = vset.pattern.permute.xlu0 %v9493_v35  ;;  %s9503_s19 = smov 48  }
 0x980   : > { %2206 = vperm.xlu1 %4946, %v6245_v24  }
 0x984   : > { %4947 = vset.pattern.permute.xlu1 %v9493_v35 }
 0x9e2   : > { %v6589_v58 = vpop.permute.xlu1 %2169  ;;  %v6591_v50 = vpop.permute.xlu0 %2173 }
 0x9e3   : > { %9809 = vst [vmem:[#allocation161_spill] sm:$0xff] %v6589_v58  ;;  %9810 = vst [vmem:[#allocation162_spill] sm:$0xff] %v6591_v50 }
 0x9e6   : > { %v6593_v51 = vpop.permute.xlu1 %2171  ;;  %v6595_v9 = vpop.permute.xlu0 %2177 }
 0x9e7   : > { %9811 = vst [vmem:[#allocation163_spill] sm:$0xff] %v6593_v51  ;;  %9812 = vst [vmem:[#allocation164_spill] sm:$0xff] %v6595_v9  ;;  %v6611_v51 = vld [vmem:[#allocation2 + $0x38] sm:$0xff] }
 0x9ea   : > { %v6597_v57 = vpop.permute.xlu1 %2175 }
 0x9eb   : > { %9813 = vst [vmem:[#allocation165_spill] sm:$0xff] %v6597_v57 }
 0x9ee   : > { %v6603_v35 = vpop.permute.xlu1 %2179 }
 0x9ef   : > { %9814 = vst [vmem:[#allocation166_spill] sm:$0xff] %v6603_v35 }
 0x9f7   : > { %v2203_v48 = vpop.permute.xlu0 %2202 }
 0x9f8   : > { %v2209_v42 = vmul.f32 %v2203_v48, %v5689_v10  ;;  %v2210_v38 = vmul.f32 %v2203_v48, %v5726_v18  ;;  %v2211_v50 = vmul.f32 %v6516_v43, %v2203_v48 }
 0x9fa   : > { %2223 = vrot.lane.b32.xlu0 %v2210_v38, %s9503_s19  ;;  %2221 = vrot.lane.b32.xlu1 %v2209_v42, %s9503_s19 }
 0x9fe   : > { %2225 = vrot.lane.b32.xlu1 %v2211_v50, %s9503_s19  ;;  %v9505_v50 = vmov 22  }
 0x9ff   : > { %v2207_v58 = vpop.permute.xlu1 %2206 }
 0xa00   : > { %v2212_v9 = vmul.f32 %v2207_v58, %v5775_v45  ;;  %v2213_v57 = vmul.f32 %v2207_v58, %v5872_v29  ;;  %v2214_v38 = vmul.f32 %v6611_v51, %v2207_v58 }
 0xa02   : > { %2229 = vrot.lane.b32.xlu1 %v2213_v57, %s9503_s19  ;;  %2227 = vrot.lane.b32.xlu0 %v2212_v9, %s9503_s19 }
 0xa06   : > { %2255 = vperm.xlu1 %4947, %v6202_v19   ;;  %2231 = vrot.lane.b32.xlu0 %v2214_v38, %s9503_s19  ;;  %s9512_s19 = smov 47  }
 0xa0a   : > { %2259 = vperm.xlu0 %4948, %v6245_v24   ;;  %4950 = vset.pattern.permute.xlu1 %v9505_v50 }
 0xa0e   : > { %4949 = vset.pattern.permute.xlu0 %v9505_v50 }
 0xa6c   : > { %v6619_v48 = vpop.permute.xlu1 %2221  ;;  %v6621_v57 = vpop.permute.xlu0 %2223 }
 0xa6d   : > { %9815 = vst [vmem:[#allocation167_spill] sm:$0xff] %v6619_v48  ;;  %9816 = vst [vmem:[#allocation168_spill] sm:$0xff] %v6621_v57 }
 0xa70   : > { %v6623_v9 = vpop.permute.xlu1 %2225 }
 0xa71   : > { %9817 = vst [vmem:[#allocation169_spill] sm:$0xff] %v6623_v9 }
 0xa74   : > { %v6625_v42 = vpop.permute.xlu0 %2227  ;;  %v6627_v58 = vpop.permute.xlu1 %2229 }
 0xa75   : > { %9818 = vst [vmem:[#allocation170_spill] sm:$0xff] %v6625_v42  ;;  %9819 = vst [vmem:[#allocation171_spill] sm:$0xff] %v6627_v58 }
 0xa78   : > { %v6629_v35 = vpop.permute.xlu0 %2231 }
 0xa79   : > { %9820 = vst [vmem:[#allocation172_spill] sm:$0xff] %v6629_v35 }
 0xa85   : > { %v2256_v38 = vpop.permute.xlu1 %2255 }
 0xa86   : > { %v2262_v30 = vmul.f32 %v2256_v38, %v5689_v10  ;;  %v2264_v28 = vmul.f32 %v6516_v43, %v2256_v38  ;;  %v2263_v48 = vmul.f32 %v2256_v38, %v5726_v18 }
 0xa88   : > { %2278 = vrot.lane.b32.xlu0 %v2264_v28, %s9512_s19  ;;  %2274 = vrot.lane.b32.xlu1 %v2262_v30, %s9512_s19  ;;  %v9514_v28 = vmov 23  }
 0xa89   : > { %v2260_v50 = vpop.permute.xlu0 %2259 }
 0xa8a   : > { %v2266_v9 = vmul.f32 %v2260_v50, %v5872_v29  ;;  %v2265_v35 = vmul.f32 %v2260_v50, %v5775_v45  ;;  %v2267_v42 = vmul.f32 %v6611_v51, %v2260_v50 }
 0xa8c   : > { %2282 = vrot.lane.b32.xlu0 %v2266_v9, %s9512_s19  ;;  %2276 = vrot.lane.b32.xlu1 %v2263_v48, %s9512_s19 }
 0xa90   : > { %2308 = vperm.xlu0 %4949, %v6202_v19   ;;  %2280 = vrot.lane.b32.xlu1 %v2265_v35, %s9512_s19 }
 0xa94   : > { %2284 = vrot.lane.b32.xlu1 %v2267_v42, %s9512_s19  ;;  %4952 = vset.pattern.permute.xlu0 %v9514_v28  ;;  %s9522_s19 = smov 46  }
 0xa98   : > { %2312 = vperm.xlu1 %4950, %v6245_v24  }
 0xa9c   : > { %4951 = vset.pattern.permute.xlu1 %v9514_v28 }
 0xafa   : > { %v6647_v30 = vpop.permute.xlu1 %2274  ;;  %v6649_v48 = vpop.permute.xlu0 %2278 }
 0xafb   : > { %9821 = vst [vmem:[#allocation173_spill] sm:$0xff] %v6647_v30  ;;  %9822 = vst [vmem:[#allocation174_spill] sm:$0xff] %v6649_v48 }
 0xafe   : > { %v6651_v9 = vpop.permute.xlu1 %2276  ;;  %v6653_v38 = vpop.permute.xlu0 %2282 }
 0xaff   : > { %9823 = vst [vmem:[#allocation175_spill] sm:$0xff] %v6651_v9  ;;  %9824 = vst [vmem:[#allocation176_spill] sm:$0xff] %v6653_v38 }
 0xb02   : > { %v6655_v35 = vpop.permute.xlu1 %2280 }
 0xb03   : > { %9825 = vst [vmem:[#allocation177_spill] sm:$0xff] %v6655_v35 }
 0xb06   : > { %v6661_v28 = vpop.permute.xlu1 %2284 }
 0xb07   : > { %9826 = vst [vmem:[#allocation178_spill] sm:$0xff] %v6661_v28 }
 0xb0f   : > { %v2309_v50 = vpop.permute.xlu0 %2308 }
 0xb10   : > { %v2315_v42 = vmul.f32 %v2309_v50, %v5689_v10  ;;  %v2316_v58 = vmul.f32 %v2309_v50, %v5726_v18  ;;  %v2317_v48 = vmul.f32 %v6516_v43, %v2309_v50 }
 0xb12   : > { %2329 = vrot.lane.b32.xlu0 %v2316_v58, %s9522_s19  ;;  %2327 = vrot.lane.b32.xlu1 %v2315_v42, %s9522_s19  ;;  %v9524_v58 = vmov 24  }
 0xb16   : > { %2331 = vrot.lane.b32.xlu1 %v2317_v48, %s9522_s19 }
 0xb17   : > { %v2313_v9 = vpop.permute.xlu1 %2312 }
 0xb18   : > { %v2318_v38 = vmul.f32 %v2313_v9, %v5775_v45  ;;  %v2319_v35 = vmul.f32 %v2313_v9, %v5872_v29  ;;  %v2320_v30 = vmul.f32 %v6611_v51, %v2313_v9 }
 0xb1a   : > { %2335 = vrot.lane.b32.xlu1 %v2319_v35, %s9522_s19  ;;  %2333 = vrot.lane.b32.xlu0 %v2318_v38, %s9522_s19 }
 0xb1e   : > { %2361 = vperm.xlu1 %4951, %v6202_v19   ;;  %2337 = vrot.lane.b32.xlu0 %v2320_v30, %s9522_s19  ;;  %s9531_s19 = smov 45  }
 0xb22   : > { %2365 = vperm.xlu0 %4952, %v6245_v24   ;;  %4954 = vset.pattern.permute.xlu1 %v9524_v58 }
 0xb26   : > { %4953 = vset.pattern.permute.xlu0 %v9524_v58 }
 0xb84   : > { %v6675_v48 = vpop.permute.xlu1 %2327  ;;  %v6677_v50 = vpop.permute.xlu0 %2329 }
 0xb85   : > { %9827 = vst [vmem:[#allocation179_spill] sm:$0xff] %v6677_v50 }
 0xb88   : > { %v6679_v35 = vpop.permute.xlu1 %2331 }
 0xb89   : > { %9828 = vst [vmem:[#allocation180_spill] sm:$0xff] %v6679_v35 }
 0xb8c   : > { %v6681_v38 = vpop.permute.xlu0 %2333  ;;  %v6683_v9 = vpop.permute.xlu1 %2335 }
 0xb8d   : > { %9829 = vst [vmem:[#allocation181_spill] sm:$0xff] %v6681_v38  ;;  %9830 = vst [vmem:[#allocation182_spill] sm:$0xff] %v6683_v9 }
 0xb90   : > { %v6685_v42 = vpop.permute.xlu0 %2337 }
 0xb91   : > { %9831 = vst [vmem:[#allocation183_spill] sm:$0xff] %v6685_v42 }
 0xb9d   : > { %v2362_v30 = vpop.permute.xlu1 %2361 }
 0xb9e   : > { %v2368_v28 = vmul.f32 %v2362_v30, %v5689_v10  ;;  %v2370_v57 = vmul.f32 %v6516_v43, %v2362_v30  ;;  %v2369_v50 = vmul.f32 %v2362_v30, %v5726_v18 }
 0xba0   : > { %2384 = vrot.lane.b32.xlu0 %v2370_v57, %s9531_s19  ;;  %2380 = vrot.lane.b32.xlu1 %v2368_v28, %s9531_s19  ;;  %v9832_v57 = vmov 1   ;;  %v9833_v28 = vmov 0  }
 0xba1   : > { %v2366_v58 = vpop.permute.xlu0 %2365 }
 0xba2   : > { %v2372_v35 = vmul.f32 %v2366_v58, %v5872_v29  ;;  %v2371_v42 = vmul.f32 %v2366_v58, %v5775_v45  ;;  %v2373_v9 = vmul.f32 %v6611_v51, %v2366_v58 }
 0xba4   : > { %2388 = vrot.lane.b32.xlu0 %v2372_v35, %s9531_s19  ;;  %2382 = vrot.lane.b32.xlu1 %v2369_v50, %s9531_s19 }
 0xba8   : > { %2414 = vperm.xlu0 %4953, %v6202_v19   ;;  %2386 = vrot.lane.b32.xlu1 %v2371_v42, %s9531_s19 }
 0xbac   : > { %2390 = vrot.lane.b32.xlu1 %v2373_v9, %s9531_s19  ;;  %4956 = vset.pattern.permute.xlu0 %v9832_v57  ;;  %s9538_s19 = smov 44  }
 0xbb0   : > { %2418 = vperm.xlu1 %4954, %v6245_v24  }
 0xbb4   : > { %4955 = vset.pattern.permute.xlu1 %v9833_v28 }
 0xc12   : > { %v6703_v30 = vpop.permute.xlu1 %2380  ;;  %v6705_v35 = vpop.permute.xlu0 %2384 }
 0xc13   : > { %9834 = vst [vmem:[#allocation184_spill] sm:$0xff] %v6705_v35 }
 0xc16   : > { %v6707_v50 = vpop.permute.xlu1 %2382  ;;  %v6709_v38 = vpop.permute.xlu0 %2388 }
 0xc17   : > { %9835 = vst [vmem:[#allocation185_spill] sm:$0xff] %v6707_v50  ;;  %9836 = vst [vmem:[#allocation186_spill] sm:$0xff] %v6709_v38 }
 0xc1a   : > { %v6711_v19 = vpop.permute.xlu1 %2386 }
 0xc1b   : > { %9837 = vst [vmem:[#allocation187_spill] sm:$0xff] %v6711_v19 }
 0xc1e   : > { %v6717_v24 = vpop.permute.xlu1 %2390 }
 0xc1f   : > { %9838 = vst [vmem:[#allocation188_spill] sm:$0xff] %v6717_v24  ;;  %v722_v24 = vsel %vm716_vm6, %v6113_v8, %v6149_v20 }
 0xc27   : > { %v2415_v42 = vpop.permute.xlu0 %2414 }
 0xc28   : > { %v2421_v58 = vmul.f32 %v2415_v42, %v5689_v10  ;;  %v2422_v9 = vmul.f32 %v2415_v42, %v5726_v18  ;;  %v2423_v28 = vmul.f32 %v6516_v43, %v2415_v42  ;;  %v717_v42 = vsel %vm716_vm6, %v5799_v37, %v5936_v6 }
 0xc29   : > { %v609_v37 = vmul.f32 %v6183_v4, %v5578_v32 }
 0xc2a   : > { %2435 = vrot.lane.b32.xlu0 %v2422_v9, %s9538_s19  ;;  %2433 = vrot.lane.b32.xlu1 %v2421_v58, %s9538_s19 }
 0xc2e   : > { %2437 = vrot.lane.b32.xlu1 %v2423_v28, %s9538_s19  ;;  %v654_v28 = vsel %vm653_vm5, %v5781_v55, %v5896_v7  ;;  %v780_v55 = vsel %vm779_vm7, %v5811_v3, %v5908_v13  ;;  %v781_v3 = vsel %vm779_vm7, %v5908_v13, %v6042_v54  ;;  %v608_v13 = vmul.f32 %v6516_v43, %v5576_v31 }
 0xc2f   : > { %v2419_v57 = vpop.permute.xlu1 %2418 }
 0xc30   : > { %v2424_v38 = vmul.f32 %v2419_v57, %v5775_v45  ;;  %v2425_v19 = vmul.f32 %v2419_v57, %v5872_v29  ;;  %v2426_v35 = vmul.f32 %v6611_v51, %v2419_v57 }
 0xc32   : > { %2441 = vrot.lane.b32.xlu1 %v2425_v19, %s9538_s19  ;;  %2439 = vrot.lane.b32.xlu0 %v2424_v38, %s9538_s19  ;;  %v605_v38 = vmul.f32 %v6183_v4, %v5576_v31  ;;  %v606_v19 = vmul.f32 %v5576_v31, %v5689_v10  ;;  %v657_v4 = vsel %vm653_vm5, %v5789_v17, %v6036_v52 }
 0xc33   : > { %v720_v17 = vsel %vm716_vm6, %v5737_v53, %v6089_v62 }
 0xc34   : > { %v668_v57 = vadd.f32 %v654_v28, %v605_v38  ;;  %v718_v28 = vsel %vm716_vm6, %v5936_v6, %v5964_v40  ;;  %v607_v38 = vmul.f32 %v5576_v31, %v5726_v18  ;;  %v719_v6 = vsel %vm716_vm6, %v5964_v40, %v6084_v60 }
 0xc35   : > { %v835_v40 = vsel %vm834_vm8, %v5948_v34, %v6047_v16 }
 0xc36   : > { %2474 = vrot.lane.b32.xlu1 %v5682_v41, %s5217_s24  ;;  %2443 = vrot.lane.b32.xlu0 %v2426_v35, %s9538_s19  ;;  %v655_v35 = vsel %vm653_vm5, %v5896_v7, %v6034_v27  ;;  %v731_v9 = vadd.f32 %v717_v42, %v668_v57  ;;  %v656_v7 = vsel %vm653_vm5, %v6034_v27, %v6028_v47  ;;  %s9549_s19 = smov 21  }
 0xc37   : > { %v669_v58 = vadd.f32 %v655_v35, %v606_v19  ;;  %v658_v27 = vsel %vm653_vm5, %v6036_v52, %v6129_v33  ;;  %v670_v19 = vadd.f32 %v656_v7, %v607_v38  ;;  %v610_v42 = vmul.f32 %v5578_v32, %v5775_v45 }
 0xc38   : > { %v794_v57 = vadd.f32 %v780_v55, %v731_v9  ;;  %v659_v9 = vsel %vm653_vm5, %v6129_v33, %v6147_v26  ;;  %v671_v7 = vadd.f32 %v6028_v47, %v608_v13  ;;  %v672_v38 = vadd.f32 %v657_v4, %v609_v37 }
 0xc39   : > { %v732_v35 = vadd.f32 %v718_v28, %v669_v58  ;;  %v611_v58 = vmul.f32 %v5578_v32, %v5872_v29  ;;  %v733_v28 = vadd.f32 %v719_v6, %v670_v19  ;;  %v673_v52 = vadd.f32 %v658_v27, %v610_v42 }
 0xc3a   : > { %2478 = vrot.lane.b32.xlu1 %v5684_v46, %s5217_s24  ;;  %2476 = vrot.lane.b32.xlu0 %v5717_v15, %s5217_s24  ;;  %v847_v31 = vadd.f32 %v5948_v34, %v794_v57  ;;  %v734_v53 = vadd.f32 %v6084_v60, %v671_v7  ;;  %v721_v34 = vsel %vm716_vm6, %v6089_v62, %v6113_v8 }
 0xc3b   : > { %v795_v55 = vadd.f32 %v781_v3, %v732_v35  ;;  %v674_v33 = vadd.f32 %v659_v9, %v611_v58  ;;  %v782_v35 = vsel %vm779_vm7, %v6042_v54, %v6044_v63  ;;  %v735_v3 = vadd.f32 %v720_v17, %v672_v38  ;;  %v9840_v38 = vld [vmem:[#allocation39_spill] sm:$0xff] }
 0xc3c   : > { %v796_v47 = vadd.f32 %v782_v35, %v733_v28  ;;  %v612_v37 = vmul.f32 %v6611_v51, %v5578_v32  ;;  %v736_v57 = vadd.f32 %v721_v34, %v673_v52  ;;  %v900_v27 = vadd.f32 %v5962_v14, %v847_v31  ;;  %v9841_v35 = vld [vmem:[#allocation31_spill] sm:$0xff] }
 0xc3d   : > { %v848_v50 = vadd.f32 %v835_v40, %v795_v55  ;;  %v737_v6 = vadd.f32 %v722_v24, %v674_v33  ;;  %v888_v19 = vsel %vm887_vm9, %v5962_v14, %v5978_v0  ;;  %v783_v54 = vsel %vm779_vm7, %v5819_v22, %v6049_v21 }
 0xc3e   : > { %v784_v62 = vsel %vm779_vm7, %v6049_v21, %v6131_v61  ;;  %v941_v32 = vsel %vm9547_vm10, %v5976_v11, %v6054_v1  ;;  %v836_v60 = vsel %vm834_vm8, %v6047_v16, %v6056_v2  ;;  %v675_v24 = vadd.f32 %v6147_v26, %v612_v37  ;;  %v9843_v37 = vld [vmem:[#allocation67_spill] sm:$0xff] }
 0xc3f   : > { %v901_v8 = vadd.f32 %v888_v19, %v848_v50  ;;  %v797_v14 = vadd.f32 %v6044_v63, %v734_v53  ;;  %v798_v4 = vadd.f32 %v783_v54, %v735_v3  ;;  %v889_v22 = vsel %vm887_vm9, %v5978_v0, %v6095_v5 }
 0xc40   : > { %v785_v21 = vsel %vm779_vm7, %v6131_v61, %v6153_v39  ;;  %v849_v50 = vadd.f32 %v836_v60, %v796_v47  ;;  %v799_v42 = vadd.f32 %v784_v62, %v736_v57  ;;  %v738_v13 = vadd.f32 %v6149_v20, %v675_v24  ;;  %v9842_v47 = vld [vmem:[#allocation38_spill] sm:$0xff]  ;;  %v9844_v62 = vld [vmem:[#allocation47_spill] sm:$0xff]  ;;  %v9846_v24 = vld [vmem:[#allocation56_spill] sm:$0xff] }
 0xc41   : > { %v800_v40 = vadd.f32 %v785_v21, %v737_v6  ;;  %v838_v63 = vsel %vm834_vm8, %v6117_v25, %v6151_v12  ;;  %v953_v16 = vadd.f32 %v5976_v11, %v900_v27  ;;  %v954_v26 = vadd.f32 %v941_v32, %v901_v8  ;;  %v9845_v60 = vld [vmem:[#allocation66_spill] sm:$0xff]  ;;  %v9847_v21 = vld [vmem:[#allocation44_spill] sm:$0xff] }
 0xc42   : > { %v902_v0 = vadd.f32 %v889_v22, %v849_v50  ;;  %v851_v9 = vadd.f32 %v6091_v49, %v798_v4  ;;  %v850_v61 = vadd.f32 %v6056_v2, %v797_v14  ;;  %v837_v20 = vsel %vm834_vm8, %v6091_v49, %v6117_v25  ;;  %v9839_v25 = vld [vmem:[#allocation60_spill] sm:$0xff] }
 0xc43   : > { %v1006_v55 = vadd.f32 %v5986_v36, %v953_v16  ;;  %v852_v28 = vadd.f32 %v837_v20, %v799_v42  ;;  %v801_v17 = vadd.f32 %v6153_v39, %v738_v13  ;;  %v853_v52 = vadd.f32 %v838_v63, %v800_v40 }
 0xc44   : > { %v942_v7 = vsel %vm9547_vm10, %v6054_v1, %v6072_v59  ;;  %v903_v2 = vadd.f32 %v6095_v5, %v850_v61  ;;  %v995_v49 = vsel %vm9546_vm11, %v5988_v56, %v6101_v23  ;;  %v890_v33 = vsel %vm887_vm9, %v9840_v38, %v9839_v25  ;;  %v9849_v61 = vld [vmem:[#allocation62_spill] sm:$0xff] }
 0xc45   : > { %v994_v39 = vsel %vm9546_vm11, %v5986_v36, %v5988_v56  ;;  %v1059_v53 = vadd.f32 %v9841_v35, %v1006_v55  ;;  %v955_v3 = vadd.f32 %v942_v7, %v902_v0  ;;  %v1047_v1 = vsel %vm1046_vm12, %v9841_v35, %v9842_v47  ;;  %v9851_v7 = vld [vmem:[#allocation69_spill] sm:$0xff] }
 0xc46   : > { %v1007_v34 = vadd.f32 %v994_v39, %v954_v26  ;;  %v904_v5 = vadd.f32 %v9840_v38, %v851_v9  ;;  %v891_v57 = vsel %vm887_vm9, %v9839_v25, %v9843_v37  ;;  %v905_v27 = vadd.f32 %v890_v33, %v852_v28  ;;  %v9848_v26 = vld [vmem:[#allocation43_spill] sm:$0xff] }
 0xc47   : > { %v1008_v6 = vadd.f32 %v995_v49, %v955_v3  ;;  %v854_v19 = vadd.f32 %v6151_v12, %v801_v17  ;;  %v906_v54 = vadd.f32 %v891_v57, %v853_v52  ;;  %v956_v32 = vadd.f32 %v6072_v59, %v903_v2  ;;  %v9850_v17 = vld [vmem:[#allocation49_spill] sm:$0xff]  ;;  %v9853_v3 = vld [vmem:[#allocation58_spill] sm:$0xff] }
 0xc48   : > { %v957_v8 = vadd.f32 %v9844_v62, %v904_v5  ;;  %v944_v14 = vsel %vm9547_vm10, %v9846_v24, %v9845_v60  ;;  %v1067_v4 = vmax.f32 %v1059_v53, 0.0  ;;  %v1060_v22 = vadd.f32 %v1047_v1, %v1007_v34  ;;  %v9852_v53 = vld [vmem:[#allocation68_spill] sm:$0xff] }
 0xc49   : > { %v1048_v50 = vsel %vm1046_vm12, %v9842_v47, %v9847_v21  ;;  %v1009_v12 = vadd.f32 %v6101_v23, %v956_v32  ;;  %v943_v42 = vsel %vm9547_vm10, %v9844_v62, %v9846_v24  ;;  %v907_v59 = vadd.f32 %v9843_v37, %v854_v19 }
 0xc4a   : > { %v1061_v13 = vadd.f32 %v1048_v50, %v1008_v6  ;;  %v958_v40 = vadd.f32 %v943_v42, %v905_v27  ;;  %v959_v63 = vadd.f32 %v944_v14, %v906_v54  ;;  %v1010_v9 = vadd.f32 %v9848_v26, %v957_v8  ;;  %v9855_v42 = vld [vmem:[#allocation20_spill] sm:$0xff] }
 0xc4b   : > { %v996_v20 = vsel %vm9546_vm11, %v9848_v26, %v9849_v61  ;;  %v1068_v23 = vmax.f32 %v1060_v22, 0.0  ;;  %v1062_v28 = vadd.f32 %v9847_v21, %v1009_v12  ;;  %v997_v2 = vsel %vm9546_vm11, %v9849_v61, %v9851_v7  ;;  %v9854_v12 = vld [vmem:[#allocation33_spill] sm:$0xff] }
 0xc4c   : > { %v1063_v52 = vadd.f32 %v9850_v17, %v1010_v9  ;;  %v1069_v49 = vmax.f32 %v1061_v13, 0.0  ;;  %v1011_v25 = vadd.f32 %v996_v20, %v958_v40  ;;  %v960_v38 = vadd.f32 %v9845_v60, %v907_v59  ;;  %v6920_v40 = vld [vmem:[#allocation2] sm:$0xff]  ;;  %v9856_v59 = vld [vmem:[#allocation15_spill] sm:$0xff]  ;;  %v9858_v9 = vld [vmem:[#allocation40_spill] sm:$0xff] }
 0xc4d   : > { %v1012_v33 = vadd.f32 %v997_v2, %v959_v63  ;;  %v1050_v34 = vsel %vm1046_vm12, %v9853_v3, %v9852_v53  ;;  %v1070_v57 = vmax.f32 %v1062_v28, 0.0  ;;  %v1049_v6 = vsel %vm1046_vm12, %v9850_v17, %v9853_v3  ;;  %v9860_v20 = vld [vmem:[#allocation21_spill] sm:$0xff]  ;;  %v9861_v17 = vld [vmem:[#allocation35_spill] sm:$0xff] }
 0xc4e   : > { %v1071_v27 = vmax.f32 %v1063_v52, 0.0  ;;  %v1064_v19 = vadd.f32 %v1049_v6, %v1011_v25  ;;  %v1013_v54 = vadd.f32 %v9851_v7, %v960_v38  ;;  %v1133_v13 = vsel %vm653_vm5, %v9855_v42, %v9854_v12  ;;  %v9862_v52 = vld [vmem:[#allocation23_spill] sm:$0xff]  ;;  %v9869_v6 = vld [vmem:[#allocation17_spill] sm:$0xff] }
 0xc4f   : > { %v1065_v62 = vadd.f32 %v1050_v34, %v1012_v33  ;;  %v1085_v63 = vmul.f32 %v6920_v40, %v9856_v59  ;;  %v1258_v7 = vsel %vm1257_vm13, %v9862_v52, %v9861_v17  ;;  %v1088_v38 = vmul.f32 %v6516_v43, %v9856_v59  ;;  %v9866_v34 = vld [vmem:[#allocation34_spill] sm:$0xff]  ;;  %v9868_v43 = vld [vmem:[#allocation52_spill] sm:$0xff] }
 0xc50   : > { %v1066_v60 = vadd.f32 %v9852_v53, %v1013_v54  ;;  %v1072_v14 = vmax.f32 %v1064_v19, 0.0  ;;  %v9870_v54 = vld [vmem:[#allocation41_spill] sm:$0xff] }
 0xc51   : > { %v1073_v24 = vmax.f32 %v1065_v62, 0.0  ;;  %v1147_v26 = vadd.f32 %v1133_v13, %v1085_v63  ;;  %v9871_v62 = vld [vmem:[#allocation29_spill] sm:$0xff] }
 0xc52   : > { %v1074_v21 = vmax.f32 %v1066_v60, 0.0  ;;  %v9872_v60 = vld [vmem:[#allocation63_spill] sm:$0xff]  ;;  %v9876_v13 = vld [vmem:[#allocation37_spill] sm:$0xff] }
 0xc9c   : > { %v6825_v58 = vpop.permute.xlu1 %2433  ;;  %v6838_v31 = vpop.permute.xlu0 %2435 }
 0xca0   : > { %v6840_v11 = vpop.permute.xlu1 %2437 }
 0xca4   : > { %v6864_v36 = vpop.permute.xlu0 %2439  ;;  %v6866_v56 = vpop.permute.xlu1 %2441 }
 0xca8   : > { %v6881_v16 = vpop.permute.xlu0 %2443  ;;  %v2475_v0 = vpop.permute.xlu1 %2474 }
 0xca9   : > { %v2486_v55 = vmul.f32 %v2475_v0, %v1067_v4  ;;  %v2490_v8 = vmul.f32 %v2475_v0, %v1071_v27  ;;  %v1136_v27 = vsel %vm653_vm5, %v9869_v6, %v9868_v43 }
 0xcab   : > { %2502 = vrot.lane.b32.xlu0 %v2486_v55, %s9549_s19 }
 0xcac   : > { %v2477_v39 = vpop.permute.xlu0 %2476  ;;  %v2479_v35 = vpop.permute.xlu1 %2478 }
 0xcad   : > { %v2480_v47 = vsel %vm834_vm8, %v2475_v0, %v2477_v39  ;;  %v2481_v1 = vsel %vm834_vm8, %v2477_v39, %v2479_v35  ;;  %v2489_v32 = vmul.f32 %v2479_v35, %v1070_v57  ;;  %v2493_v50 = vmul.f32 %v2479_v35, %v1074_v21  ;;  %v9857_v0 = vld [vmem:[#allocation32_spill] sm:$0xff]  ;;  %v9864_v39 = vld [vmem:[#allocation70_spill] sm:$0xff]  ;;  %v9865_v35 = vld [vmem:[#allocation59_spill] sm:$0xff] }
 0xcae   : > { %v2487_v5 = vmul.f32 %v2480_v47, %v1068_v23  ;;  %v2488_v37 = vmul.f32 %v2481_v1, %v1069_v49  ;;  %v2491_v4 = vmul.f32 %v2480_v47, %v1072_v14  ;;  %v2492_v22 = vmul.f32 %v2481_v1, %v1073_v24  ;;  %v9863_v49 = vld [vmem:[#allocation16_spill] sm:$0xff]  ;;  %v9867_v1 = vld [vmem:[#allocation51_spill] sm:$0xff]  ;;  %v9873_v24 = vld [vmem:[#allocation46_spill] sm:$0xff] }
 0xcaf   : > { %v1092_v25 = vmul.f32 %v6611_v51, %v9863_v49  ;;  %v1091_v33 = vmul.f32 %v9863_v49, %v5872_v29  ;;  %v1138_v53 = vsel %vm653_vm5, %v9865_v35, %v9864_v39  ;;  %v1259_v51 = vsel %vm1257_vm13, %v9861_v17, %v9866_v34 }
 0xcb0   : > { %2506 = vrot.lane.b32.xlu0 %v2488_v37, %s9549_s19  ;;  %2504 = vrot.lane.b32.xlu1 %v2487_v5, %s9549_s19  ;;  %v1135_v5 = vsel %vm653_vm5, %v9857_v0, %v9867_v1  ;;  %v1137_v37 = vsel %vm653_vm5, %v9868_v43, %v9865_v35  ;;  %v1087_v57 = vmul.f32 %v9856_v59, %v5726_v18  ;;  %v9874_v18 = vld [vmem:[#allocation24_spill] sm:$0xff] }
 0xcb1   : > { %v1154_v3 = vadd.f32 %v9864_v39, %v1092_v25  ;;  %v1090_v19 = vmul.f32 %v9863_v49, %v5775_v45  ;;  %v1199_v14 = vsel %vm716_vm6, %v9873_v24, %v9872_v60  ;;  %v9883_v25 = vld [vmem:[#allocation72_spill] sm:$0xff] }
 0xcb2   : > { %v1149_v21 = vadd.f32 %v1135_v5, %v1087_v57 }
 0xcb4   : > { %2510 = vrot.lane.b32.xlu0 %v2490_v8, %s9549_s19  ;;  %2508 = vrot.lane.b32.xlu1 %v2489_v32, %s9549_s19  ;;  %v1322_v8 = vsel %vm1320_vm14, %v9871_v62, %v9870_v54  ;;  %v1150_v32 = vadd.f32 %v9867_v1, %v1088_v38 }
 0xcb8   : > { %2514 = vrot.lane.b32.xlu0 %v2492_v22, %s9549_s19  ;;  %2512 = vrot.lane.b32.xlu1 %v2491_v4, %s9549_s19  ;;  %v1153_v4 = vadd.f32 %v1138_v53, %v1091_v33  ;;  %v1321_v22 = vsel %vm1320_vm14, %v9874_v18, %v9871_v62  ;;  %v9893_v18 = vld [vmem:[#allocation25_spill] sm:$0xff] }
 0xcbc   : > { %2537 = vrot.lane.b32.xlu0 %v5682_v41, %s5221_s22  ;;  %2516 = vrot.lane.b32.xlu1 %v2493_v50, %s9549_s19  ;;  %v1134_v41 = vsel %vm653_vm5, %v9854_v12, %v9857_v0  ;;  %v1152_v50 = vadd.f32 %v1137_v37, %v1090_v19  ;;  %v9875_v12 = vld [vmem:[#allocation71_spill] sm:$0xff]  ;;  %v9886_v37 = vld [vmem:[#allocation65_spill] sm:$0xff]  ;;  %s5253_s19 = smov 42  }
 0xcbd   : > { %v1216_v42 = vadd.f32 %v9875_v12, %v1154_v3  ;;  %v9885_v3 = vld [vmem:[#allocation36_spill] sm:$0xff]  ;;  %v9889_v19 = vld [vmem:[#allocation27_spill] sm:$0xff] }
 0xcbf   : > { %v1279_v33 = vadd.f32 %v9883_v25, %v1216_v42 }
 0xcc0   : > { %2541 = vrot.lane.b32.xlu0 %v5684_v46, %s5221_s22  ;;  %2539 = vrot.lane.b32.xlu1 %v5717_v15, %s5221_s22  ;;  %v1086_v46 = vmul.f32 %v9856_v59, %v5689_v10  ;;  %v9859_v15 = vld [vmem:[#allocation28_spill] sm:$0xff]  ;;  %v1089_v10 = vmul.f32 %v6920_v40, %v9863_v49  ;;  %v9877_v59 = vld [vmem:[#allocation26_spill] sm:$0xff] }
 0xcc1   : > { %v1196_v61 = vsel %vm716_vm6, %v9859_v15, %v9858_v9  ;;  %v1195_v55 = vsel %vm716_vm6, %v9860_v20, %v9859_v15  ;;  %v1383_v63 = vsel %vm779_vm7, %v9877_v59, %v9876_v13  ;;  %v1200_v15 = vsel %vm716_vm6, %v9872_v60, %v9875_v12  ;;  %v9879_v20 = vld [vmem:[#allocation22_spill] sm:$0xff]  ;;  %v9891_v60 = vld [vmem:[#allocation73_spill] sm:$0xff] }
 0xcc2   : > { %v1148_v23 = vadd.f32 %v1134_v41, %v1086_v46  ;;  %v1209_v28 = vadd.f32 %v1195_v55, %v1147_v26  ;;  %v1151_v0 = vadd.f32 %v1136_v27, %v1089_v10  ;;  %v9878_v26 = vld [vmem:[#allocation45_spill] sm:$0xff]  ;;  %v1198_v55 = vsel %vm716_vm6, %v9879_v20, %v9873_v24  ;;  %v9882_v49 = vld [vmem:[#allocation18_spill] sm:$0xff] }
 0xcc3   : > { %v1197_v46 = vsel %vm716_vm6, %v9858_v9, %v9878_v26  ;;  %v1215_v52 = vadd.f32 %v1200_v15, %v1153_v4  ;;  %v9884_v10 = vld [vmem:[#allocation61_spill] sm:$0xff]  ;;  %v9888_v27 = vld [vmem:[#allocation30_spill] sm:$0xff]  ;;  %v1342_v24 = vadd.f32 %v9891_v60, %v1279_v33 }
 0xcc4   : > { %v1210_v2 = vadd.f32 %v1196_v61, %v1148_v23  ;;  %v1272_v47 = vadd.f32 %v1258_v7, %v1209_v28  ;;  %v1214_v61 = vadd.f32 %v1199_v14, %v1152_v50  ;;  %v1212_v23 = vadd.f32 %v9878_v26, %v1150_v32  ;;  %v9880_v28 = vld [vmem:[#allocation53_spill] sm:$0xff]  ;;  %v9892_v14 = vld [vmem:[#allocation48_spill] sm:$0xff]  ;;  %v9894_v50 = vld [vmem:[#allocation55_spill] sm:$0xff] }
 0xcc5   : > { %v1260_v17 = vsel %vm1257_vm13, %v9866_v34, %v9880_v28  ;;  %v1211_v7 = vadd.f32 %v1197_v46, %v1149_v21  ;;  %v1263_v38 = vsel %vm1257_vm13, %v9884_v10, %v9883_v25  ;;  %v1213_v35 = vadd.f32 %v1198_v55, %v1151_v0  ;;  %v9897_v20 = vld [vmem:[#allocation74_spill] sm:$0xff]  ;;  %v9898_v55 = vld [vmem:[#allocation64_spill] sm:$0xff] }
 0xcc6   : > { %v1273_v29 = vadd.f32 %v1259_v51, %v1210_v2  ;;  %v1335_v45 = vadd.f32 %v1321_v22, %v1272_v47  ;;  %v9881_v2 = vld [vmem:[#allocation54_spill] sm:$0xff]  ;;  %v1275_v39 = vadd.f32 %v9880_v28, %v1212_v23  ;;  %v1384_v34 = vsel %vm779_vm7, %v9876_v13, %v9885_v3  ;;  %v9896_v13 = vld [vmem:[#allocation19_spill] sm:$0xff] }
 0xcc7   : > { %v1261_v9 = vsel %vm1257_vm13, %v9882_v49, %v9881_v2  ;;  %v1262_v53 = vsel %vm1257_vm13, %v9881_v2, %v9884_v10  ;;  %v1274_v47 = vadd.f32 %v1260_v17, %v1211_v7  ;;  %v1278_v6 = vadd.f32 %v1263_v38, %v1215_v52  ;;  %v9899_v7 = vld [vmem:[#allocation75_spill] sm:$0xff]  ;;  %v9900_v49 = vld [vmem:[#allocation77_spill] sm:$0xff]  ;;  %v9902_v33 = vld [vmem:[#allocation78_spill] sm:$0xff] }
 0xcc8   : > { %v1336_v41 = vadd.f32 %v1322_v8, %v1273_v29  ;;  %v1397_v51 = vadd.f32 %v1383_v63, %v1335_v45  ;;  %v1277_v1 = vadd.f32 %v1262_v53, %v1214_v61  ;;  %v1276_v43 = vadd.f32 %v1261_v9, %v1213_v35  ;;  %v9887_v29 = vld [vmem:[#allocation50_spill] sm:$0xff]  ;;  %v9895_v45 = vld [vmem:[#allocation57_spill] sm:$0xff]  ;;  %v9901_v9 = vld [vmem:[#allocation76_spill] sm:$0xff] }
 0xcc9   : > { %v1325_v57 = vsel %vm1320_vm14, %v9887_v29, %v9886_v37  ;;  %v1445_v62 = vsel %vm834_vm8, %v9889_v19, %v9888_v27  ;;  %v9890_v8 = vld [vmem:[#allocation42_spill] sm:$0xff]  ;;  %v1323_v4 = vsel %vm1320_vm14, %v9870_v54, %v9892_v14  ;;  %v1324_v22 = vsel %vm1320_vm14, %v9893_v18, %v9887_v29  ;;  %v9903_v35 = vld [vmem:[#allocation79_spill] sm:$0xff]  ;;  %v9907_v29 = vld [vmem:[#allocation84_spill] sm:$0xff] }
 0xcca   : > { %v1398_v5 = vadd.f32 %v1384_v34, %v1336_v41  ;;  %v1446_v32 = vsel %vm834_vm8, %v9888_v27, %v9890_v8  ;;  %v1338_v21 = vadd.f32 %v9892_v14, %v1275_v39  ;;  %v1385_v12 = vsel %vm779_vm7, %v9885_v3, %v9894_v50  ;;  %v9904_v34 = vld [vmem:[#allocation82_spill] sm:$0xff]  ;;  %v9911_v18 = vld [vmem:[#allocation87_spill] sm:$0xff] }
 0xccb   : > { %v1337_v42 = vadd.f32 %v1323_v4, %v1274_v47  ;;  %v1386_v59 = vsel %vm779_vm7, %v9896_v13, %v9895_v45  ;;  %v1326_v63 = vsel %vm1320_vm14, %v9886_v37, %v9891_v60  ;;  %v1340_v54 = vadd.f32 %v1325_v57, %v1277_v1  ;;  %v9906_v1 = vld [vmem:[#allocation81_spill] sm:$0xff]  ;;  %v9914_v13 = vld [vmem:[#allocation90_spill] sm:$0xff] }
 0xccc   : > { %v1460_v0 = vadd.f32 %v1446_v32, %v1398_v5  ;;  %v1339_v41 = vadd.f32 %v1324_v22, %v1276_v43  ;;  %v1341_v26 = vadd.f32 %v1326_v63, %v1278_v6  ;;  %v1459_v46 = vadd.f32 %v1445_v62, %v1397_v51  ;;  %v9905_v51 = vld [vmem:[#allocation80_spill] sm:$0xff]  ;;  %v9908_v62 = vld [vmem:[#allocation86_spill] sm:$0xff]  ;;  %v9910_v60 = vld [vmem:[#allocation85_spill] sm:$0xff] }
 0xccd   : > { %v1399_v15 = vadd.f32 %v1385_v12, %v1337_v42  ;;  %v1400_v61 = vadd.f32 %v9894_v50, %v1338_v21  ;;  %v1388_v23 = vsel %vm779_vm7, %v9898_v55, %v9897_v20  ;;  %v1404_v28 = vadd.f32 %v9897_v20, %v1342_v24  ;;  %v9912_v21 = vld [vmem:[#allocation89_spill] sm:$0xff]  ;;  %v9913_v50 = vld [vmem:[#allocation88_spill] sm:$0xff] }
 0xcce   : > { %v1387_v17 = vsel %vm779_vm7, %v9895_v45, %v9898_v55  ;;  %v1401_v52 = vadd.f32 %v1386_v59, %v1339_v41  ;;  %v1447_v2 = vsel %vm834_vm8, %v9890_v8, %v9899_v7  ;;  %v1448_v25 = vsel %vm834_vm8, %v9901_v9, %v9900_v49  ;;  %v9909_v8 = vld [vmem:[#allocation83_spill] sm:$0xff]  ;;  %v9917_v20 = vld [vmem:[#allocation92_spill] sm:$0xff] }
 0xccf   : > { %v1462_v10 = vadd.f32 %v9899_v7, %v1400_v61  ;;  %v1402_v38 = vadd.f32 %v1387_v17, %v1340_v54  ;;  %v1449_v39 = vsel %vm834_vm8, %v9900_v49, %v9902_v33  ;;  %v1450_v53 = vsel %vm834_vm8, %v9902_v33, %v9903_v35  ;;  %v9915_v41 = vld [vmem:[#allocation91_spill] sm:$0xff]  ;;  %v9916_v61 = vld [vmem:[#allocation93_spill] sm:$0xff]  ;;  %v9920_v49 = vld [vmem:[#allocation98_spill] sm:$0xff] }
 0xcd0   : > { %v1403_v3 = vadd.f32 %v1388_v23, %v1341_v26  ;;  %v1507_v47 = vsel %vm887_vm9, %v9905_v51, %v9904_v34  ;;  %v1508_v5 = vsel %vm887_vm9, %v9904_v34, %v9906_v1  ;;  %v1461_v43 = vadd.f32 %v1447_v2, %v1399_v15  ;;  %v9918_v23 = vld [vmem:[#allocation94_spill] sm:$0xff]  ;;  %v9919_v7 = vld [vmem:[#allocation95_spill] sm:$0xff]  ;;  %v9921_v9 = vld [vmem:[#allocation96_spill] sm:$0xff] }
 0xcd1   : > { %v1463_v37 = vadd.f32 %v1448_v25, %v1401_v52  ;;  %v1509_v57 = vsel %vm887_vm9, %v9906_v1, %v9907_v29  ;;  %v1466_v6 = vadd.f32 %v9903_v35, %v1404_v28  ;;  %v1464_v27 = vadd.f32 %v1449_v39, %v1402_v38  ;;  %v9922_v38 = vld [vmem:[#allocation97_spill] sm:$0xff]  ;;  %v9923_v39 = vld [vmem:[#allocation100_spill] sm:$0xff] }
 0xcd2   : > { %v1465_v19 = vadd.f32 %v1450_v53, %v1403_v3  ;;  %v1510_v32 = vsel %vm887_vm9, %v9909_v8, %v9908_v62  ;;  %v1511_v24 = vsel %vm887_vm9, %v9908_v62, %v9910_v60  ;;  %v1521_v14 = vadd.f32 %v1507_v47, %v1459_v46  ;;  %v9924_v53 = vld [vmem:[#allocation102_spill] sm:$0xff]  ;;  %v9925_v3 = vld [vmem:[#allocation99_spill] sm:$0xff] }
 0xcd3   : > { %v1522_v4 = vadd.f32 %v1508_v5, %v1460_v0  ;;  %v1512_v22 = vsel %vm887_vm9, %v9910_v60, %v9911_v18  ;;  %v1570_v12 = vsel %vm1569_vm15, %v9913_v50, %v9912_v21  ;;  %v1523_v42 = vadd.f32 %v1509_v57, %v1461_v43  ;;  %v9926_v5 = vld [vmem:[#allocation101_spill] sm:$0xff]  ;;  %v9927_v57 = vld [vmem:[#allocation103_spill] sm:$0xff] }
 0xcd4   : > { %v1524_v45 = vadd.f32 %v9907_v29, %v1462_v10  ;;  %v1571_v59 = vsel %vm1569_vm15, %v9912_v21, %v9914_v13  ;;  %v1525_v63 = vadd.f32 %v1510_v32, %v1463_v37  ;;  %v1526_v54 = vadd.f32 %v1511_v24, %v1464_v27  ;;  %v9928_v27 = vld [vmem:[#allocation105_spill] sm:$0xff] }
 0xcd5   : > { %v1528_v0 = vadd.f32 %v9911_v18, %v1466_v6  ;;  %v1572_v26 = vsel %vm1569_vm15, %v9914_v13, %v9915_v41  ;;  %v1527_v46 = vadd.f32 %v1512_v22, %v1465_v19  ;;  %v1584_v15 = vadd.f32 %v1570_v12, %v1521_v14  ;;  %v9929_v19 = vld [vmem:[#allocation104_spill] sm:$0xff]  ;;  %v9931_v22 = vld [vmem:[#allocation107_spill] sm:$0xff]  ;;  %v9932_v50 = vld [vmem:[#allocation109_spill] sm:$0xff] }
 0xcd6   : > { %v1573_v55 = vsel %vm1569_vm15, %v9917_v20, %v9916_v61  ;;  %v1574_v28 = vsel %vm1569_vm15, %v9916_v61, %v9918_v23  ;;  %v1587_v17 = vadd.f32 %v9915_v41, %v1524_v45  ;;  %v1585_v52 = vadd.f32 %v1571_v59, %v1522_v4  ;;  %v9930_v4 = vld [vmem:[#allocation106_spill] sm:$0xff]  ;;  %v9933_v12 = vld [vmem:[#allocation108_spill] sm:$0xff]  ;;  %v9935_v41 = vld [vmem:[#allocation111_spill] sm:$0xff] }
 0xcd7   : > { %v1575_v2 = vsel %vm1569_vm15, %v9918_v23, %v9919_v7  ;;  %v1633_v25 = vsel %vm9548_vm0, %v9921_v9, %v9920_v49  ;;  %v1586_v10 = vadd.f32 %v1572_v26, %v1523_v42  ;;  %v1634_v33 = vsel %vm9548_vm0, %v9920_v49, %v9922_v38  ;;  %v9937_v61 = vld [vmem:[#allocation113_spill] sm:$0xff]  ;;  %v9940_v9 = vld [vmem:[#allocation114_spill] sm:$0xff] }
 0xcd8   : > { %v1635_v35 = vsel %vm9548_vm0, %v9922_v38, %v9923_v39  ;;  %v1636_v34 = vsel %vm9548_vm0, %v9925_v3, %v9924_v53  ;;  %v1588_v51 = vadd.f32 %v1573_v55, %v1525_v63  ;;  %v1591_v47 = vadd.f32 %v9919_v7, %v1528_v0  ;;  %v9934_v63 = vld [vmem:[#allocation110_spill] sm:$0xff]  ;;  %v9939_v49 = vld [vmem:[#allocation117_spill] sm:$0xff] }
 0xcd9   : > { %v1589_v1 = vadd.f32 %v1574_v28, %v1526_v54  ;;  %v1637_v43 = vsel %vm9548_vm0, %v9924_v53, %v9926_v5  ;;  %v1590_v37 = vadd.f32 %v1575_v2, %v1527_v46  ;;  %v1647_v29 = vadd.f32 %v1633_v25, %v1584_v15  ;;  %v9936_v46 = vld [vmem:[#allocation112_spill] sm:$0xff] }
 0xcda   : > { %v1638_v6 = vsel %vm9548_vm0, %v9926_v5, %v9927_v57  ;;  %v1695_v62 = vsel %vm9547_vm10, %v9929_v19, %v9928_v27  ;;  %v1648_v8 = vadd.f32 %v1634_v33, %v1585_v52  ;;  %v1649_v32 = vadd.f32 %v1635_v35, %v1586_v10  ;;  %v9941_v10 = vld [vmem:[#allocation116_spill] sm:$0xff]  ;;  %v9942_v35 = vld [vmem:[#allocation118_spill] sm:$0xff] }
 0xcdb   : > { %v1650_v60 = vadd.f32 %v9923_v39, %v1587_v17  ;;  %v1651_v24 = vadd.f32 %v1636_v34, %v1588_v51  ;;  %v1652_v14 = vadd.f32 %v1637_v43, %v1589_v1  ;;  %v1696_v18 = vsel %vm9547_vm10, %v9928_v27, %v9930_v4  ;;  %v9938_v17 = vld [vmem:[#allocation115_spill] sm:$0xff]  ;;  %v9943_v51 = vld [vmem:[#allocation120_spill] sm:$0xff] }
 0xcdc   : > { %v1697_v21 = vsel %vm9547_vm10, %v9930_v4, %v9931_v22  ;;  %v1698_v42 = vsel %vm9547_vm10, %v9933_v12, %v9932_v50  ;;  %v1653_v45 = vadd.f32 %v1638_v6, %v1590_v37  ;;  %v1654_v13 = vadd.f32 %v9927_v57, %v1591_v47  ;;  %v9944_v47 = vld [vmem:[#allocation119_spill] sm:$0xff]  ;;  %v9945_v37 = vld [vmem:[#allocation121_spill] sm:$0xff]  ;;  %v9947_v6 = vld [vmem:[#allocation122_spill] sm:$0xff] }
 0xcdd   : > { %v1709_v59 = vadd.f32 %v1695_v62, %v1647_v29  ;;  %v1699_v54 = vsel %vm9547_vm10, %v9932_v50, %v9934_v63  ;;  %v1712_v0 = vadd.f32 %v9931_v22, %v1650_v60  ;;  %v1700_v26 = vsel %vm9547_vm10, %v9934_v63, %v9935_v41  ;;  %v9946_v57 = vld [vmem:[#allocation123_spill] sm:$0xff]  ;;  %v9952_v63 = vld [vmem:[#allocation128_spill] sm:$0xff] }
 0xcde   : > { %v1757_v15 = vsel %vm9546_vm11, %v9936_v46, %v6363_v44  ;;  %v1758_v20 = vsel %vm9546_vm11, %v6363_v44, %v9937_v61  ;;  %v1710_v55 = vadd.f32 %v1696_v18, %v1648_v8  ;;  %v1711_v23 = vadd.f32 %v1697_v21, %v1649_v32  ;;  %v9948_v32 = vld [vmem:[#allocation124_spill] sm:$0xff]  ;;  %v9949_v4 = vld [vmem:[#allocation127_spill] sm:$0xff]  ;;  %v9950_v18 = vld [vmem:[#allocation125_spill] sm:$0xff] }
 0xcdf   : > { %v1713_v28 = vadd.f32 %v1698_v42, %v1651_v24  ;;  %v1759_v52 = vsel %vm9546_vm11, %v9937_v61, %v9938_v17  ;;  %v1716_v7 = vadd.f32 %v9935_v41, %v1654_v13  ;;  %v1714_v2 = vadd.f32 %v1699_v54, %v1652_v14  ;;  %v9951_v42 = vld [vmem:[#allocation126_spill] sm:$0xff]  ;;  %v9953_v54 = vld [vmem:[#allocation129_spill] sm:$0xff] }
 0xce0   : > { %v1760_v25 = vsel %vm9546_vm11, %v9940_v9, %v9939_v49  ;;  %v1761_v38 = vsel %vm9546_vm11, %v9939_v49, %v9941_v10  ;;  %v1715_v33 = vadd.f32 %v1700_v26, %v1653_v45  ;;  %v1771_v44 = vadd.f32 %v1757_v15, %v1709_v59  ;;  %v9954_v41 = vld [vmem:[#allocation130_spill] sm:$0xff] }
 0xce1   : > { %v1772_v39 = vadd.f32 %v1758_v20, %v1710_v55  ;;  %v1762_v53 = vsel %vm9546_vm11, %v9941_v10, %v9942_v35  ;;  %v1773_v3 = vadd.f32 %v1759_v52, %v1711_v23  ;;  %v1774_v34 = vadd.f32 %v9938_v17, %v1712_v0  ;;  %v9955_v20 = vld [vmem:[#allocation132_spill] sm:$0xff]  ;;  %v9956_v55 = vld [vmem:[#allocation131_spill] sm:$0xff]  ;;  %v9957_v52 = vld [vmem:[#allocation133_spill] sm:$0xff] }
 0xce2   : > { %v1811_v1 = vsel %vm1046_vm12, %v9944_v47, %v9943_v51  ;;  %v1775_v5 = vadd.f32 %v1760_v25, %v1713_v28  ;;  %v1776_v43 = vadd.f32 %v1761_v38, %v1714_v2  ;;  %v1812_v29 = vsel %vm1046_vm12, %v9943_v51, %v9945_v37  ;;  %v9958_v25 = vld [vmem:[#allocation135_spill] sm:$0xff]  ;;  %v9959_v10 = vld [vmem:[#allocation134_spill] sm:$0xff]  ;;  %v9962_v51 = vld [vmem:[#allocation137_spill] sm:$0xff] }
 0xce3   : > { %v1813_v27 = vsel %vm1046_vm12, %v9947_v6, %v9946_v57  ;;  %v1777_v19 = vadd.f32 %v1762_v53, %v1715_v33  ;;  %v1778_v62 = vadd.f32 %v9942_v35, %v1716_v7  ;;  %v1823_v8 = vadd.f32 %v9944_v47, %v1771_v44  ;;  %v9960_v35 = vld [vmem:[#allocation136_spill] sm:$0xff] }
 0xce4   : > { %v1814_v60 = vsel %vm1046_vm12, %v9946_v57, %v9948_v32  ;;  %v1824_v24 = vadd.f32 %v1811_v1, %v1772_v39  ;;  %v1826_v14 = vadd.f32 %v9945_v37, %v1774_v34  ;;  %v1864_v22 = vsel %vm9540_vm2, %v9950_v18, %v9949_v4  ;;  %v9961_v34 = vld [vmem:[#allocation139_spill] sm:$0xff]  ;;  %v9963_v1 = vld [vmem:[#allocation138_spill] sm:$0xff]  ;;  %v9964_v57 = vld [vmem:[#allocation140_spill] sm:$0xff] }
 0xce5   : > { %v1825_v21 = vadd.f32 %v1812_v29, %v1773_v3  ;;  %v1827_v50 = vadd.f32 %v9947_v6, %v1775_v5  ;;  %v1828_v12 = vadd.f32 %v1813_v27, %v1776_v43  ;;  %v1865_v45 = vsel %vm9540_vm2, %v9949_v4, %v9951_v42  ;;  %v9965_v6 = vld [vmem:[#allocation141_spill] sm:$0xff]  ;;  %v9967_v4 = vld [vmem:[#allocation144_spill] sm:$0xff] }
 0xce6   : > { %v1829_v13 = vadd.f32 %v1814_v60, %v1777_v19  ;;  %v1830_v59 = vadd.f32 %v9948_v32, %v1778_v62  ;;  %v1866_v0 = vsel %vm9540_vm2, %v9953_v54, %v9952_v63  ;;  %v1867_v26 = vsel %vm9540_vm2, %v9952_v63, %v9954_v41  ;;  %v9966_v32 = vld [vmem:[#allocation142_spill] sm:$0xff]  ;;  %v9970_v63 = vld [vmem:[#allocation147_spill] sm:$0xff] }
 0xce7   : > { %v1879_v46 = vadd.f32 %v9951_v42, %v1826_v14  ;;  %v1876_v15 = vadd.f32 %v9950_v18, %v1823_v8  ;;  %v1877_v61 = vadd.f32 %v1864_v22, %v1824_v24  ;;  %v1917_v23 = vsel %vm9541_vm3, %v9956_v55, %v9955_v20  ;;  %v9968_v18 = vld [vmem:[#allocation143_spill] sm:$0xff]  ;;  %v9969_v42 = vld [vmem:[#allocation145_spill] sm:$0xff] }
 0xce8   : > { %v1878_v28 = vadd.f32 %v1865_v45, %v1825_v21  ;;  %v1880_v17 = vadd.f32 %v9953_v54, %v1827_v50  ;;  %v1918_v7 = vsel %vm9541_vm3, %v9955_v20, %v9957_v52  ;;  %v1881_v2 = vadd.f32 %v1866_v0, %v1828_v12  ;;  %v9971_v54 = vld [vmem:[#allocation146_spill] sm:$0xff]  ;;  %v9974_v20 = vld [vmem:[#allocation149_spill] sm:$0xff] }
 0xce9   : > { %v1882_v49 = vadd.f32 %v1867_v26, %v1829_v13  ;;  %v1883_v9 = vadd.f32 %v9954_v41, %v1830_v59  ;;  %v1919_v38 = vsel %vm9541_vm3, %v9959_v10, %v9958_v25  ;;  %v1929_v33 = vadd.f32 %v9956_v55, %v1876_v15  ;;  %v9972_v41 = vld [vmem:[#allocation148_spill] sm:$0xff] }
 0xcea   : > { %v1930_v44 = vadd.f32 %v1917_v23, %v1877_v61  ;;  %v1932_v39 = vadd.f32 %v9957_v52, %v1879_v46  ;;  %v1920_v53 = vsel %vm9541_vm3, %v9958_v25, %v9960_v35  ;;  %v1931_v3 = vadd.f32 %v1918_v7, %v1878_v28  ;;  %v9973_v61 = vld [vmem:[#allocation151_spill] sm:$0xff]  ;;  %v9976_v7 = vld [vmem:[#allocation152_spill] sm:$0xff] }
 0xceb   : > { %v1970_v47 = vsel %vm9542_vm4, %v9962_v51, %v9961_v34  ;;  %v1971_v5 = vsel %vm9542_vm4, %v9961_v34, %v9963_v1  ;;  %vm9545_vm2 = vcmask 547840   ;;  %v1933_v43 = vadd.f32 %v9959_v10, %v1880_v17  ;;  %v9975_v17 = vld [vmem:[#allocation150_spill] sm:$0xff] }
 0xcec   : > { %v1934_v37 = vadd.f32 %v1919_v38, %v1881_v2  ;;  %v1936_v29 = vadd.f32 %v9960_v35, %v1883_v9  ;;  %v1972_v27 = vsel %vm9542_vm4, %v9965_v6, %v9964_v57  ;;  %v1935_v19 = vadd.f32 %v1920_v53, %v1882_v49  ;;  %v9977_v2 = vld [vmem:[#allocation153_spill] sm:$0xff]  ;;  %v9978_v38 = vld [vmem:[#allocation154_spill] sm:$0xff]  ;;  %v9979_v53 = vld [vmem:[#allocation156_spill] sm:$0xff] }
 0xced   : > { %v1985_v62 = vadd.f32 %v9963_v1, %v1932_v39  ;;  %v1982_v8 = vadd.f32 %v9962_v51, %v1929_v33  ;;  %v1973_v60 = vsel %vm9542_vm4, %v9964_v57, %v9966_v32  ;;  %v1983_v24 = vadd.f32 %v1970_v47, %v1930_v44 }
 0xcee   : > { %v1984_v14 = vadd.f32 %v1971_v5, %v1931_v3  ;;  %v2023_v22 = vsel %vm9545_vm2, %v9968_v18, %v9967_v4  ;;  %vm9543_vm3 = vcmask 539648   ;;  %v1986_v21 = vadd.f32 %v9965_v6, %v1933_v43  ;;  %v9980_v3 = vld [vmem:[#allocation155_spill] sm:$0xff]  ;;  %v9981_v5 = vld [vmem:[#allocation157_spill] sm:$0xff] }
 0xcef   : > { %v1987_v50 = vadd.f32 %v1972_v27, %v1934_v37  ;;  %v1989_v12 = vadd.f32 %v9966_v32, %v1936_v29  ;;  %v2024_v45 = vsel %vm9545_vm2, %v9967_v4, %v9969_v42  ;;  %v1988_v13 = vadd.f32 %v1973_v60, %v1935_v19  ;;  %v9982_v6 = vld [vmem:[#allocation159_spill] sm:$0xff]  ;;  %v9983_v27 = vld [vmem:[#allocation158_spill] sm:$0xff]  ;;  %v9984_v32 = vld [vmem:[#allocation160_spill] sm:$0xff] }
 0xcf0   : > { %v2035_v59 = vadd.f32 %v9968_v18, %v1982_v8  ;;  %v2025_v0 = vsel %vm9545_vm2, %v9971_v54, %v9970_v63  ;;  %v2026_v26 = vsel %vm9545_vm2, %v9970_v63, %v9972_v41  ;;  %v2036_v46 = vadd.f32 %v2023_v22, %v1983_v24  ;;  %v9985_v24 = vld [vmem:[#allocation163_spill] sm:$0xff]  ;;  %v9989_v63 = vld [vmem:[#allocation165_spill] sm:$0xff] }
 0xcf1   : > { %v2038_v15 = vadd.f32 %v9969_v42, %v1985_v62  ;;  %v2076_v55 = vsel %vm9543_vm3, %v9974_v20, %v9973_v61  ;;  %vm9544_vm4 = vcmask 531456   ;;  %v2037_v23 = vadd.f32 %v2024_v45, %v1984_v14  ;;  %v9986_v14 = vld [vmem:[#allocation161_spill] sm:$0xff] }
 0xcf2   : > { %v2039_v28 = vadd.f32 %v9971_v54, %v1986_v21  ;;  %v2077_v52 = vsel %vm9543_vm3, %v9973_v61, %v9975_v17  ;;  %v2078_v49 = vsel %vm9543_vm3, %v9977_v2, %v9976_v7  ;;  %v2040_v9 = vadd.f32 %v2025_v0, %v1987_v50  ;;  %v9987_v50 = vld [vmem:[#allocation162_spill] sm:$0xff] }
 0xcf3   : > { %v2041_v25 = vadd.f32 %v2026_v26, %v1988_v13  ;;  %v2042_v10 = vadd.f32 %v9972_v41, %v1989_v12  ;;  %v2079_v33 = vsel %vm9543_vm3, %v9976_v7, %v9978_v38  ;;  %v2091_v44 = vadd.f32 %v9975_v17, %v2038_v15  ;;  %v9990_v15 = vld [vmem:[#allocation166_spill] sm:$0xff]  ;;  %v9993_v7 = vld [vmem:[#allocation169_spill] sm:$0xff] }
 0xcf4   : > { %v2088_v39 = vadd.f32 %v9974_v20, %v2035_v59  ;;  %v2089_v35 = vadd.f32 %v2076_v55, %v2036_v46  ;;  %v2129_v34 = vsel %vm9544_vm4, %v9980_v3, %v9979_v53  ;;  %v2090_v51 = vadd.f32 %v2077_v52, %v2037_v23  ;;  %v9988_v59 = vld [vmem:[#allocation164_spill] sm:$0xff]  ;;  %v9992_v55 = vld [vmem:[#allocation167_spill] sm:$0xff] }
 0xcf5   : > { %v2092_v47 = vadd.f32 %v9977_v2, %v2039_v28  ;;  %v2093_v1 = vadd.f32 %v2078_v49, %v2040_v9  ;;  %v2130_v43 = vsel %vm9544_vm4, %v9979_v53, %v9981_v5  ;;  %v2094_v37 = vadd.f32 %v2079_v33, %v2041_v25  ;;  %v9991_v20 = vld [vmem:[#allocation168_spill] sm:$0xff]  ;;  %v9994_v25 = vld [vmem:[#allocation171_spill] sm:$0xff]  ;;  %v9996_v33 = vld [vmem:[#allocation173_spill] sm:$0xff] }
 0xcf6   : > { %v2095_v29 = vadd.f32 %v9978_v38, %v2042_v10  ;;  %v2141_v57 = vadd.f32 %v9980_v3, %v2088_v39  ;;  %v2131_v19 = vsel %vm9544_vm4, %v9983_v27, %v9982_v6  ;;  %v2142_v62 = vadd.f32 %v2129_v34, %v2089_v35  ;;  %v9995_v10 = vld [vmem:[#allocation170_spill] sm:$0xff] }
 0xcf7   : > { %v2144_v8 = vadd.f32 %v9981_v5, %v2091_v44  ;;  %v2132_v60 = vsel %vm9544_vm4, %v9982_v6, %v9984_v32  ;;  %v2181_v4 = vsel %vm380_vm1, %v9986_v14, %v9985_v24  ;;  %v2143_v22 = vadd.f32 %v2130_v43, %v2090_v51  ;;  %v9998_v5 = vld [vmem:[#allocation174_spill] sm:$0xff] }
 0xcf8   : > { %v2145_v21 = vadd.f32 %v9983_v27, %v2092_v47  ;;  %v2182_v12 = vsel %vm380_vm1, %v9985_v24, %v9987_v50  ;;  %vm2233_vm3 = vcmask 392192   ;;  %v2146_v42 = vadd.f32 %v2131_v19, %v2093_v1  ;;  %v9997_v47 = vld [vmem:[#allocation175_spill] sm:$0xff] }
 0xcf9   : > { %v2148_v45 = vadd.f32 %v9984_v32, %v2095_v29  ;;  %v2193_v13 = vadd.f32 %v9986_v14, %v2141_v57  ;;  %v2183_v54 = vsel %vm380_vm1, %v9989_v63, %v9988_v59  ;;  %v2147_v0 = vadd.f32 %v2132_v60, %v2094_v37  ;;  %v10000_v32 = vld [vmem:[#allocation180_spill] sm:$0xff] }
 0xcfa   : > { %v2196_v41 = vadd.f32 %v9987_v50, %v2144_v8  ;;  %v2194_v26 = vadd.f32 %v2181_v4, %v2142_v62  ;;  %vm9555_vm4 = vcmask 171008   ;;  %v2195_v46 = vadd.f32 %v2182_v12, %v2143_v22  ;;  %v9999_v62 = vld [vmem:[#allocation179_spill] sm:$0xff]  ;;  %v10001_v4 = vld [vmem:[#allocation172_spill] sm:$0xff] }
 0xcfb   : > { %v2184_v61 = vsel %vm380_vm1, %v9988_v59, %v9990_v15  ;;  %v2234_v23 = vsel %vm2233_vm3, %v9992_v55, %v9991_v20  ;;  %v2246_v28 = vadd.f32 %v9992_v55, %v2193_v13  ;;  %v2197_v17 = vadd.f32 %v9989_v63, %v2145_v21  ;;  %v10004_v63 = vld [vmem:[#allocation177_spill] sm:$0xff]  ;;  %v10005_v55 = vld [vmem:[#allocation176_spill] sm:$0xff] }
 0xcfc   : > { %v2198_v52 = vadd.f32 %v2183_v54, %v2146_v42  ;;  %v2235_v2 = vsel %vm2233_vm3, %v9991_v20, %v9993_v7  ;;  %vm2286_vm2 = vcmask 384000   ;;  %v2236_v38 = vsel %vm2233_vm3, %v9995_v10, %v9994_v25  ;;  %v10003_v42 = vld [vmem:[#allocation184_spill] sm:$0xff] }
 0xcfd   : > { %v2299_v44 = vadd.f32 %v9996_v33, %v2246_v28  ;;  %v2199_v53 = vadd.f32 %v2184_v61, %v2147_v0  ;;  %v2200_v3 = vadd.f32 %v9990_v15, %v2148_v45  ;;  %v2247_v34 = vadd.f32 %v2234_v23, %v2194_v26  ;;  %v10006_v28 = vld [vmem:[#allocation178_spill] sm:$0xff] }
 0xcfe   : > { %vm2339_vm11 = vcmask 375808   ;;  %v2249_v51 = vadd.f32 %v9993_v7, %v2196_v41  ;;  %v2287_v1 = vsel %vm2286_vm2, %v9996_v33, %v9997_v47  ;;  %v2288_v43 = vsel %vm2286_vm2, %v9997_v47, %v9998_v5 }
 0xcff   : > { %v2352_v37 = vadd.f32 %v6675_v48, %v2299_v44  ;;  %v2248_v29 = vadd.f32 %v2235_v2, %v2195_v46  ;;  %v2250_v57 = vadd.f32 %v9995_v10, %v2197_v17  ;;  %v2251_v6 = vadd.f32 %v2236_v38, %v2198_v52  ;;  %v10007_v2 = vld [vmem:[#allocation181_spill] sm:$0xff]  ;;  %v10009_v38 = vld [vmem:[#allocation183_spill] sm:$0xff] }
 0xd00   : > { %vm2392_vm10 = vcmask 367616   ;;  %v2340_v8 = vsel %vm2339_vm11, %v6675_v48, %v9999_v62  ;;  %v2341_v60 = vsel %vm2339_vm11, %v9999_v62, %v10000_v32  ;;  %v2300_v22 = vadd.f32 %v2287_v1, %v2247_v34  ;;  %v10002_v48 = vld [vmem:[#allocation185_spill] sm:$0xff]  ;;  %v10011_v62 = vld [vmem:[#allocation186_spill] sm:$0xff] }
 0xd01   : > { %v2405_v24 = vadd.f32 %v6703_v30, %v2352_v37  ;;  %v2301_v21 = vadd.f32 %v2288_v43, %v2248_v29  ;;  %vm9642_vm0 = vcmask 359424   ;;  %v2253_v50 = vadd.f32 %v10001_v4, %v2200_v3  ;;  %v10010_v29 = vld [vmem:[#allocation187_spill] sm:$0xff] }
 0xd02   : > { %v2393_v12 = vsel %vm2392_vm10, %v6703_v30, %v10002_v48  ;;  %v2394_v45 = vsel %vm2392_vm10, %v10002_v48, %v10003_v42  ;;  %v2302_v59 = vadd.f32 %v9998_v5, %v2249_v51  ;;  %v2303_v54 = vadd.f32 %v10004_v63, %v2250_v57 }
 0xd03   : > { %v2458_v13 = vadd.f32 %v6825_v58, %v2405_v24  ;;  %v2353_v0 = vadd.f32 %v2340_v8, %v2300_v22  ;;  %v2354_v41 = vadd.f32 %v2341_v60, %v2301_v21  ;;  %v2446_v15 = vsel %vm9642_vm0, %v6825_v58, %v6838_v31 }
 0xd04   : > { %v2447_v30 = vsel %vm9642_vm0, %v6838_v31, %v6840_v11  ;;  %v2289_v23 = vsel %vm2286_vm2, %v10004_v63, %v10005_v55  ;;  %v2290_v17 = vsel %vm2286_vm2, %v10005_v55, %v10006_v28  ;;  %v2355_v7 = vadd.f32 %v10000_v32, %v2302_v59  ;;  %v10012_v32 = vld [vmem:[#allocation188_spill] sm:$0xff] }
 0xd05   : > { %v2406_v52 = vadd.f32 %v2393_v12, %v2353_v0  ;;  %v2407_v58 = vadd.f32 %v2394_v45, %v2354_v41  ;;  %v2304_v47 = vadd.f32 %v2289_v23, %v2251_v6  ;;  %v2306_v43 = vadd.f32 %v10006_v28, %v2253_v50 }
 0xd06   : > { %v2408_v37 = vadd.f32 %v10003_v42, %v2355_v7  ;;  %v2395_v8 = vsel %vm2392_vm10, %v10010_v29, %v10011_v62  ;;  %v2396_v6 = vsel %vm2392_vm10, %v10011_v62, %v10012_v32  ;;  %v2448_v21 = vsel %vm9642_vm0, %v6864_v36, %v6866_v56 }
 0xd07   : > { %v2459_v44 = vadd.f32 %v2446_v15, %v2406_v52  ;;  %v2460_v3 = vadd.f32 %v2447_v30, %v2407_v58  ;;  %v2449_v50 = vsel %vm9642_vm0, %v6866_v56, %v6881_v16  ;;  %v2359_v59 = vadd.f32 %v10009_v38, %v2306_v43 }
 0xd08   : > { %v2461_v24 = vadd.f32 %v6840_v11, %v2408_v37  ;;  %v10014_v58 = vmov 2  }
 0xd09   : > { %v2467_v60 = vmax.f32 %v2459_v44, 0.0 }
 0xd0a   : > { %v2469_v63 = vmax.f32 %v2461_v24, 0.0 }
 0xd1d   : > { %v2503_v18 = vpop.permute.xlu0 %2502 }
 0xd22   : > { %v2507_v49 = vpop.permute.xlu0 %2506  ;;  %v2505_v9 = vpop.permute.xlu1 %2504 }
 0xd23   : > { %v7294_v39 = vsel %vm9555_vm4, %v2503_v18, %v2505_v9  ;;  %v7297_v35 = vsel %vm9555_vm4, %v2505_v9, %v2507_v49  ;;  %v2237_v18 = vsel %vm2233_vm3, %v9994_v25, %v10001_v4  ;;  %v2466_v9 = vmax.f32 %v2458_v13, 0.0  ;;  %v10008_v25 = vld [vmem:[#allocation182_spill] sm:$0xff] }
 0xd24   : > { %2531 = vst [vmem:[#allocation2 + $0x8] sm:$0xff] %v7294_v39  ;;  %2532 = vst [vmem:[#allocation2 + $0x10] sm:$0xff] %v7297_v35  ;;  %v2252_v31 = vadd.f32 %v2237_v18, %v2199_v53  ;;  %v2342_v10 = vsel %vm2339_vm11, %v10007_v2, %v10008_v25  ;;  %v2343_v33 = vsel %vm2339_vm11, %v10008_v25, %v10009_v38 }
 0xd26   : > { %v2511_v27 = vpop.permute.xlu0 %2510  ;;  %v2509_v19 = vpop.permute.xlu1 %2508  ;;  %v2305_v1 = vadd.f32 %v2290_v17, %v2252_v31  ;;  %v7395_v17 = vld [vmem:[%s9307_s5] sm:$0xff] }
 0xd27   : > { %v2521_v14 = vsel %vm9555_vm4, %v2507_v49, %v2509_v19  ;;  %v2356_v49 = vadd.f32 %v10007_v2, %v2303_v54 }
 0xd28   : > { %2533 = vst.msk [vmem:[#allocation2 + $0x18] sm:$0xff] %vm380_vm1, %v2521_v14  ;;  %v2358_v19 = vadd.f32 %v2343_v33, %v2305_v1  ;;  %v2468_v14 = vmax.f32 %v2460_v3, 0.0 }
 0xd29   : > { %v2409_v57 = vadd.f32 %v10010_v29, %v2356_v49 }
 0xd2a   : > { %v2515_v26 = vpop.permute.xlu0 %2514  ;;  %v2513_v46 = vpop.permute.xlu1 %2512  ;;  %v2411_v45 = vadd.f32 %v2396_v6, %v2358_v19 }
 0xd2b   : > { %v7340_v61 = vsel %vm9555_vm4, %v2511_v27, %v2513_v46  ;;  %v7343_v20 = vsel %vm9555_vm4, %v2513_v46, %v2515_v26  ;;  %v2357_v27 = vadd.f32 %v2342_v10, %v2304_v47  ;;  %v2462_v4 = vadd.f32 %v6864_v36, %v2409_v57 }
 0xd2c   : > { %2534 = vst [vmem:[#allocation2 + $0x28] sm:$0xff] %v7340_v61  ;;  %2535 = vst [vmem:[#allocation2 + $0x30] sm:$0xff] %v7343_v20  ;;  %v2464_v41 = vadd.f32 %v2449_v50, %v2411_v45  ;;  %v2412_v36 = vadd.f32 %v10012_v32, %v2359_v59  ;;  %v10015_v57 = vmov 3   ;;  %v10019_v50 = vmov 1  }
 0xd2d   : > { %v2410_v42 = vadd.f32 %v2395_v8, %v2357_v27  ;;  %v2470_v54 = vmax.f32 %v2462_v4, 0.0 }
 0xd2e   : > { %v2538_v34 = vpop.permute.xlu0 %2537  ;;  %v2517_v51 = vpop.permute.xlu1 %2516  ;;  %v2465_v15 = vadd.f32 %v6881_v16, %v2412_v36  ;;  %v2472_v30 = vmax.f32 %v2464_v41, 0.0  ;;  %v10013_v16 = vmov 5  }
 0xd2f   : > { %v2549_v53 = vmul.f32 %v2538_v34, %v2466_v9  ;;  %v2524_v5 = vsel %vm9555_vm4, %v2515_v26, %v2517_v51  ;;  %v2463_v0 = vadd.f32 %v2448_v21, %v2410_v42  ;;  %v2553_v56 = vmul.f32 %v2538_v34, %v2470_v54  ;;  %v7429_v37 = vld [vmem:[#allocation2 + $0x18] sm:$0xff] }
 0xd30   : > { %2536 = vst.msk [vmem:[#allocation2 + $0x38] sm:$0xff] %vm380_vm1, %v2524_v5  ;;  %v2473_v28 = vmax.f32 %v2465_v15, 0.0  ;;  %vm2581_vm4 = vcmask 343040  }
 0xd31   : > { %2565 = vrot.lane.b32.xlu1 %v2549_v53, %s5253_s19  ;;  %v2471_v46 = vmax.f32 %v2463_v0, 0.0 }
 0xd32   : > { %v2542_v18 = vpop.permute.xlu0 %2541  ;;  %v2540_v22 = vpop.permute.xlu1 %2539 }
 0xd33   : > { %v2543_v48 = vsel %vm1046_vm12, %v2538_v34, %v2540_v22  ;;  %v2544_v12 = vsel %vm1046_vm12, %v2540_v22, %v2542_v18  ;;  %v2552_v26 = vmul.f32 %v2542_v18, %v2469_v63  ;;  %v2556_v52 = vmul.f32 %v2542_v18, %v2473_v28 }
 0xd34   : > { %v2550_v11 = vmul.f32 %v2543_v48, %v2467_v60  ;;  %v2551_v13 = vmul.f32 %v2544_v12, %v2468_v14  ;;  %v2554_v55 = vmul.f32 %v2543_v48, %v2471_v46  ;;  %v2555_v23 = vmul.f32 %v2544_v12, %v2472_v30 }
 0xd35   : > { %v10017_v60 = vmov 4  }
 0xd36   : > { %2569 = vrot.lane.b32.xlu1 %v2551_v13, %s5253_s19  ;;  %2567 = vrot.lane.b32.xlu0 %v2550_v11, %s5253_s19  ;;  %v10021_v11 = vmov 6  }
 0xd3a   : > { %2573 = vrot.lane.b32.xlu1 %v2553_v56, %s5253_s19  ;;  %2571 = vrot.lane.b32.xlu0 %v2552_v26, %s5253_s19 }
 0xd3e   : > { %2577 = vrot.lane.b32.xlu1 %v2555_v23, %s5253_s19  ;;  %2575 = vrot.lane.b32.xlu0 %v2554_v55, %s5253_s19 }
 0xd42   : > { %2610 = vperm.xlu1 %4955, %v7395_v17   ;;  %2579 = vrot.lane.b32.xlu0 %v2556_v52, %s5253_s19  ;;  %s10151_s19 = smov 47  }
 0xd46   : > { %2618 = vperm.xlu0 %4956, %v7395_v17   ;;  %4960 = vset.pattern.permute.xlu1 %v10013_v16 }
 0xd4a   : > { %4957 = vset.pattern.permute.xlu0 %v10014_v58 }
 0xda3   : > { %v2566_v31 = vpop.permute.xlu1 %2565 }
 0xda8   : > { %v2568_v7 = vpop.permute.xlu0 %2567  ;;  %v2570_v2 = vpop.permute.xlu1 %2569 }
 0xda9   : > { %v7403_v49 = vsel %vm2581_vm4, %v2566_v31, %v2568_v7  ;;  %v7406_v9 = vsel %vm2581_vm4, %v2568_v7, %v2570_v2  ;;  %v10034_v31 = vmov 7  }
 0xdaa   : > { %2594 = vst [vmem:[#allocation3 + $0x8] sm:$0xff] %v7403_v49  ;;  %2595 = vst [vmem:[#allocation3 + $0x10] sm:$0xff] %v7406_v9 }
 0xdac   : > { %v2572_v25 = vpop.permute.xlu0 %2571  ;;  %v2574_v10 = vpop.permute.xlu1 %2573 }
 0xdad   : > { %v2584_v38 = vsel %vm2581_vm4, %v2570_v2, %v2572_v25 }
 0xdae   : > { %2596 = vst.msk [vmem:[#allocation3 + $0x18] sm:$0xff] %vm380_vm1, %v2584_v38 }
 0xdb0   : > { %v2576_v33 = vpop.permute.xlu0 %2575  ;;  %v2578_v44 = vpop.permute.xlu1 %2577 }
 0xdb1   : > { %v7413_v3 = vsel %vm2581_vm4, %v2574_v10, %v2576_v33  ;;  %v7416_v34 = vsel %vm2581_vm4, %v2576_v33, %v2578_v44  ;;  %v10036_v33 = vmov 8  }
 0xdb2   : > { %2597 = vst [vmem:[#allocation3 + $0x28] sm:$0xff] %v7413_v3  ;;  %2598 = vst [vmem:[#allocation3 + $0x30] sm:$0xff] %v7416_v34 }
 0xdb4   : > { %v2580_v51 = vpop.permute.xlu0 %2579 }
 0xdb5   : > { %v2587_v47 = vsel %vm2581_vm4, %v2578_v44, %v2580_v51  ;;  %vm10181_vm4 = vcmask 711680  }
 0xdb6   : > { %2599 = vst.msk [vmem:[#allocation3 + $0x38] sm:$0xff] %vm380_vm1, %v2587_v47 }
 0xdc1   : > { %v7468_v13 = vpop.permute.xlu1 %2610 }
 0xdc2   : > { %10022 = vst [vmem:[#allocation38_spill] sm:$0xff] %v7468_v13 }
 0xdc5   : > { %v2619_v1 = vpop.permute.xlu0 %2618 }
 0xdc6   : > { %v2623_v53 = vmul.f32 %v2619_v1, %v7297_v35  ;;  %v2621_v5 = vmul.f32 %v6920_v40, %v2619_v1  ;;  %v2622_v43 = vmul.f32 %v2619_v1, %v7294_v39  ;;  %v2624_v29 = vmul.f32 %v2619_v1, %v7429_v37 }
 0xdc8   : > { %2633 = vrot.lane.b32.xlu0 %v2623_v53, %s5212_s25  ;;  %2629 = vrot.lane.b32.xlu1 %v2621_v5, %s5212_s25  ;;  %v10038_v5 = vmov 0  }
 0xdcc   : > { %2649 = vperm.xlu0 %4957, %v7395_v17   ;;  %2631 = vrot.lane.b32.xlu1 %v2622_v43, %s5212_s25 }
 0xdd0   : > { %2635 = vrot.lane.b32.xlu1 %v2624_v29, %s5212_s25  ;;  %4958 = vset.pattern.permute.xlu0 %v10015_v57 }
 0xe3a   : > { %v7434_v27 = vpop.permute.xlu0 %2633  ;;  %v7470_v59 = vpop.permute.xlu1 %2629 }
 0xe3b   : > { %10016 = vst [vmem:[#allocation60_spill] sm:$0xff] %v7434_v27  ;;  %10023 = vst [vmem:[#allocation67_spill] sm:$0xff] %v7470_v59 }
 0xe3e   : > { %v7472_v63 = vpop.permute.xlu1 %2631 }
 0xe3f   : > { %10024 = vst [vmem:[#allocation47_spill] sm:$0xff] %v7472_v63 }
 0xe42   : > { %v7474_v54 = vpop.permute.xlu1 %2635 }
 0xe43   : > { %10025 = vst [vmem:[#allocation66_spill] sm:$0xff] %v7474_v54 }
 0xe4b   : > { %v2650_v19 = vpop.permute.xlu0 %2649 }
 0xe4c   : > { %v2654_v62 = vmul.f32 %v2650_v19, %v7297_v35  ;;  %v2652_v8 = vmul.f32 %v6920_v40, %v2650_v19  ;;  %v2653_v32 = vmul.f32 %v2650_v19, %v7294_v39  ;;  %v2655_v6 = vmul.f32 %v2650_v19, %v7429_v37 }
 0xe4e   : > { %2664 = vrot.lane.b32.xlu0 %v2654_v62, %s5213_s26  ;;  %2660 = vrot.lane.b32.xlu1 %v2652_v8, %s5213_s26  ;;  %v7529_v8 = vld [vmem:[%s9307_s5 + $0x8] sm:$0xff] }
 0xe52   : > { %2680 = vperm.xlu0 %4958, %v7395_v17   ;;  %2662 = vrot.lane.b32.xlu1 %v2653_v32, %s5213_s26 }
 0xe56   : > { %2666 = vrot.lane.b32.xlu1 %v2655_v6, %s5213_s26  ;;  %4959 = vset.pattern.permute.xlu0 %v10017_v60 }
 0xec0   : > { %v7446_v24 = vpop.permute.xlu0 %2664  ;;  %v7476_v0 = vpop.permute.xlu1 %2660 }
 0xec1   : > { %10018 = vst [vmem:[#allocation39_spill] sm:$0xff] %v7446_v24  ;;  %10026 = vst [vmem:[#allocation56_spill] sm:$0xff] %v7476_v0  ;;  %v8087_v0 = vld [vmem:[#allocation3 + $0x28] sm:$0xff] }
 0xec2   : > { %10097 = vst [vmem:[#allocation19_spill] sm:$0xff] %v8087_v0 }
 0xec4   : > { %v7478_v41 = vpop.permute.xlu1 %2662 }
 0xec5   : > { %10027 = vst [vmem:[#allocation44_spill] sm:$0xff] %v7478_v41 }
 0xec8   : > { %v7480_v36 = vpop.permute.xlu1 %2666 }
 0xec9   : > { %10028 = vst [vmem:[#allocation43_spill] sm:$0xff] %v7480_v36 }
 0xed1   : > { %v2681_v14 = vpop.permute.xlu0 %2680 }
 0xed2   : > { %v2685_v4 = vmul.f32 %v2681_v14, %v7297_v35  ;;  %v2683_v18 = vmul.f32 %v6920_v40, %v2681_v14  ;;  %v2684_v22 = vmul.f32 %v2681_v14, %v7294_v39  ;;  %v2686_v21 = vmul.f32 %v2681_v14, %v7429_v37 }
 0xed4   : > { %2695 = vrot.lane.b32.xlu0 %v2685_v4, %s5214_s23  ;;  %2691 = vrot.lane.b32.xlu1 %v2683_v18, %s5214_s23 }
 0xed8   : > { %2711 = vperm.xlu0 %4959, %v7395_v17   ;;  %2693 = vrot.lane.b32.xlu1 %v2684_v22, %s5214_s23 }
 0xedc   : > { %2697 = vrot.lane.b32.xlu1 %v2686_v21, %s5214_s23  ;;  %4965 = vset.pattern.permute.xlu0 %v10019_v50 }
 0xf46   : > { %v7458_v48 = vpop.permute.xlu0 %2695  ;;  %v7482_v56 = vpop.permute.xlu1 %2691 }
 0xf47   : > { %10020 = vst [vmem:[#allocation31_spill] sm:$0xff] %v7458_v48  ;;  %10029 = vst [vmem:[#allocation62_spill] sm:$0xff] %v7482_v56 }
 0xf4a   : > { %v7484_v26 = vpop.permute.xlu1 %2693 }
 0xf4b   : > { %10030 = vst [vmem:[#allocation49_spill] sm:$0xff] %v7484_v26 }
 0xf4e   : > { %v7486_v46 = vpop.permute.xlu1 %2697 }
 0xf4f   : > { %10031 = vst [vmem:[#allocation69_spill] sm:$0xff] %v7486_v46 }
 0xf57   : > { %v2712_v12 = vpop.permute.xlu0 %2711 }
 0xf58   : > { %v2714_v40 = vmul.f32 %v2712_v12, %v7294_v39  ;;  %v2716_v42 = vmul.f32 %v2712_v12, %v7429_v37  ;;  %v2715_v45 = vmul.f32 %v2712_v12, %v7297_v35 }
 0xf5a   : > { %2724 = vrot.lane.b32.xlu0 %v2716_v42, %s5217_s24  ;;  %2720 = vrot.lane.b32.xlu1 %v2714_v40, %s5217_s24  ;;  %v7556_v40 = vld [vmem:[#allocation2] sm:$0xff] }
 0xf5e   : > { %2722 = vrot.lane.b32.xlu1 %v2715_v45, %s5217_s24 }
 0xf62   : > { %2737 = vperm.xlu1 %4960, %v7395_v17  }
 0xf66   : > { %4961 = vset.pattern.permute.xlu1 %v10021_v11 }
 0xfcc   : > { %v7488_v15 = vpop.permute.xlu1 %2720 }
 0xfcd   : > { %10032 = vst [vmem:[#allocation68_spill] sm:$0xff] %v7488_v15 }
 0xfd0   : > { %v7490_v30 = vpop.permute.xlu1 %2722 }
 0xfd1   : > { %10033 = vst [vmem:[#allocation58_spill] sm:$0xff] %v7490_v30 }
 0xfe1   : > { %v2738_v55 = vpop.permute.xlu1 %2737 }
 0xfe2   : > { %v2740_v23 = vmul.f32 %v2738_v55, %v7294_v39  ;;  %v2741_v28 = vmul.f32 %v2738_v55, %v7297_v35  ;;  %v2742_v52 = vmul.f32 %v2738_v55, %v7429_v37  ;;  %v7564_v55 = vld [vmem:[#allocation3 + $0x18] sm:$0xff] }
 0xfe4   : > { %2748 = vrot.lane.b32.xlu1 %v2741_v28, %s5218_s15  ;;  %2746 = vrot.lane.b32.xlu0 %v2740_v23, %s5218_s15 }
 0xfe8   : > { %2763 = vperm.xlu1 %4961, %v7395_v17   ;;  %2750 = vrot.lane.b32.xlu0 %v2742_v52, %s5218_s15 }
 0xfec   : > { %4962 = vset.pattern.permute.xlu1 %v10034_v31 }
0x1056   : > { %v7500_v7 = vpop.permute.xlu1 %2748 }
0x1057   : > { %10035 = vst [vmem:[#allocation33_spill] sm:$0xff] %v7500_v7 }
0x1067   : > { %v2764_v2 = vpop.permute.xlu1 %2763 }
0x1068   : > { %v2766_v25 = vmul.f32 %v2764_v2, %v7294_v39  ;;  %v2767_v10 = vmul.f32 %v2764_v2, %v7297_v35  ;;  %v2768_v38 = vmul.f32 %v2764_v2, %v7429_v37 }
0x106a   : > { %2774 = vrot.lane.b32.xlu1 %v2767_v10, %s5219_s17  ;;  %2772 = vrot.lane.b32.xlu0 %v2766_v25, %s5219_s17 }
0x106e   : > { %2789 = vperm.xlu1 %4962, %v7395_v17   ;;  %2776 = vrot.lane.b32.xlu0 %v2768_v38, %s5219_s17 }
0x1072   : > { %4963 = vset.pattern.permute.xlu1 %v10036_v33 }
0x10dc   : > { %v7510_v44 = vpop.permute.xlu1 %2774 }
0x10dd   : > { %10037 = vst [vmem:[#allocation20_spill] sm:$0xff] %v7510_v44 }
0x10ed   : > { %v2790_v51 = vpop.permute.xlu1 %2789 }
0x10ee   : > { %v2792_v47 = vmul.f32 %v2790_v51, %v7294_v39  ;;  %v2793_v1 = vmul.f32 %v2790_v51, %v7297_v35  ;;  %v2794_v53 = vmul.f32 %v2790_v51, %v7429_v37 }
0x10f0   : > { %2800 = vrot.lane.b32.xlu1 %v2793_v1, %s5220_s20  ;;  %2798 = vrot.lane.b32.xlu0 %v2792_v47, %s5220_s20 }
0x10f4   : > { %2815 = vperm.xlu1 %4963, %v7395_v17   ;;  %2802 = vrot.lane.b32.xlu0 %v2794_v53, %s5220_s20 }
0x10f8   : > { %4964 = vset.pattern.permute.xlu1 %v10038_v5 }
0x1162   : > { %v7520_v43 = vpop.permute.xlu1 %2800 }
0x1163   : > { %10039 = vst [vmem:[#allocation15_spill] sm:$0xff] %v7520_v43  ;;  %v10086_v43 = vmov 22  }
0x1173   : > { %v2816_v29 = vpop.permute.xlu1 %2815 }
0x1174   : > { %v2818_v19 = vmul.f32 %v2816_v29, %v7294_v39  ;;  %v2819_v62 = vmul.f32 %v2816_v29, %v7297_v35  ;;  %v2820_v17 = vmul.f32 %v2816_v29, %v7429_v37  ;;  %v7537_v39 = vpop.permute.xlu0 %2724 }
0x1175   : > { %10040 = vst [vmem:[#allocation32_spill] sm:$0xff] %v7537_v39 }
0x1176   : > { %2826 = vrot.lane.b32.xlu1 %v2819_v62, %s5221_s22  ;;  %2824 = vrot.lane.b32.xlu0 %v2818_v19, %s5221_s22 }
0x1178   : > { %v7539_v35 = vpop.permute.xlu0 %2746 }
0x1179   : > { %10041 = vst [vmem:[#allocation40_spill] sm:$0xff] %v7539_v35 }
0x117a   : > { %2850 = vperm.xlu1 %4964, %v7529_v8   ;;  %2828 = vrot.lane.b32.xlu0 %v2820_v17, %s5221_s22 }
0x117c   : > { %v7541_v32 = vpop.permute.xlu0 %2750 }
0x117d   : > { %10042 = vst [vmem:[#allocation28_spill] sm:$0xff] %v7541_v32 }
0x117e   : > { %2858 = vperm.xlu0 %4965, %v7529_v8   ;;  %4969 = vset.pattern.permute.xlu1 %v10013_v16 }
0x1180   : > { %v7543_v6 = vpop.permute.xlu0 %2772 }
0x1181   : > { %10043 = vst [vmem:[#allocation21_spill] sm:$0xff] %v7543_v6 }
0x1182   : > { %4966 = vset.pattern.permute.xlu0 %v10014_v58 }
0x1184   : > { %v7545_v14 = vpop.permute.xlu0 %2776 }
0x1185   : > { %10044 = vst [vmem:[#allocation35_spill] sm:$0xff] %v7545_v14 }
0x1188   : > { %v7547_v37 = vpop.permute.xlu0 %2798 }
0x1189   : > { %10045 = vst [vmem:[#allocation23_spill] sm:$0xff] %v7547_v37 }
0x118c   : > { %v7549_v4 = vpop.permute.xlu0 %2802 }
0x118d   : > { %10046 = vst [vmem:[#allocation16_spill] sm:$0xff] %v7549_v4  ;;  %v10087_v4 = vmov 24  }
0x11e8   : > { %v7551_v18 = vpop.permute.xlu0 %2824 }
0x11e9   : > { %10047 = vst [vmem:[#allocation70_spill] sm:$0xff] %v7551_v18 }
0x11ec   : > { %v7553_v22 = vpop.permute.xlu0 %2828 }
0x11ed   : > { %10048 = vst [vmem:[#allocation59_spill] sm:$0xff] %v7553_v22 }
0x11fd   : > { %v2859_v21 = vpop.permute.xlu0 %2858 }
0x11fe   : > { %v2863_v12 = vmul.f32 %v2859_v21, %v7406_v9  ;;  %v2861_v42 = vmul.f32 %v7556_v40, %v2859_v21  ;;  %v2862_v45 = vmul.f32 %v2859_v21, %v7403_v49  ;;  %v2864_v23 = vmul.f32 %v2859_v21, %v7564_v55 }
0x1200   : > { %2873 = vrot.lane.b32.xlu0 %v2863_v12, %s5212_s25  ;;  %2869 = vrot.lane.b32.xlu1 %v2861_v42, %s5212_s25 }
0x1204   : > { %2889 = vperm.xlu0 %4966, %v7529_v8   ;;  %2871 = vrot.lane.b32.xlu1 %v2862_v45, %s5212_s25  ;;  %v7603_v45 = vpop.permute.xlu1 %2826 }
0x1205   : > { %10052 = vst [vmem:[#allocation17_spill] sm:$0xff] %v7603_v45 }
0x1208   : > { %2875 = vrot.lane.b32.xlu1 %v2864_v23, %s5212_s25  ;;  %4967 = vset.pattern.permute.xlu0 %v10015_v57  ;;  %v7605_v23 = vpop.permute.xlu1 %2850 }
0x1209   : > { %10053 = vst [vmem:[#allocation41_spill] sm:$0xff] %v7605_v23 }
0x1272   : > { %v7569_v28 = vpop.permute.xlu0 %2873 }
0x1273   : > { %10049 = vst [vmem:[#allocation34_spill] sm:$0xff] %v7569_v28  ;;  %v7955_v28 = vld [vmem:[#allocation2 + $0x28] sm:$0xff] }
0x1283   : > { %v2890_v52 = vpop.permute.xlu0 %2889 }
0x1284   : > { %v2894_v2 = vmul.f32 %v2890_v52, %v7406_v9  ;;  %v2892_v25 = vmul.f32 %v7556_v40, %v2890_v52  ;;  %v2893_v10 = vmul.f32 %v2890_v52, %v7403_v49  ;;  %v2895_v38 = vmul.f32 %v2890_v52, %v7564_v55  ;;  %v7607_v52 = vpop.permute.xlu1 %2869 }
0x1285   : > { %10054 = vst [vmem:[#allocation29_spill] sm:$0xff] %v7607_v52 }
0x1286   : > { %2904 = vrot.lane.b32.xlu0 %v2894_v2, %s5213_s26  ;;  %2900 = vrot.lane.b32.xlu1 %v2892_v25, %s5213_s26 }
0x1288   : > { %v7609_v2 = vpop.permute.xlu1 %2871 }
0x1289   : > { %10055 = vst [vmem:[#allocation63_spill] sm:$0xff] %v7609_v2 }
0x128a   : > { %2920 = vperm.xlu0 %4967, %v7529_v8   ;;  %2902 = vrot.lane.b32.xlu1 %v2893_v10, %s5213_s26 }
0x128c   : > { %v7611_v25 = vpop.permute.xlu1 %2875 }
0x128d   : > { %10056 = vst [vmem:[#allocation46_spill] sm:$0xff] %v7611_v25  ;;  %v7958_v25 = vld [vmem:[#allocation2 + $0x30] sm:$0xff] }
0x128e   : > { %2906 = vrot.lane.b32.xlu1 %v2895_v38, %s5213_s26  ;;  %4968 = vset.pattern.permute.xlu0 %v10017_v60 }
0x12f8   : > { %v7581_v51 = vpop.permute.xlu0 %2904  ;;  %v7613_v10 = vpop.permute.xlu1 %2900 }
0x12f9   : > { %10050 = vst [vmem:[#allocation51_spill] sm:$0xff] %v7581_v51  ;;  %10057 = vst [vmem:[#allocation24_spill] sm:$0xff] %v7613_v10 }
0x12fc   : > { %v7615_v38 = vpop.permute.xlu1 %2902 }
0x12fd   : > { %10058 = vst [vmem:[#allocation71_spill] sm:$0xff] %v7615_v38 }
0x1309   : > { %v2921_v47 = vpop.permute.xlu0 %2920 }
0x130a   : > { %v2925_v1 = vmul.f32 %v2921_v47, %v7406_v9  ;;  %v2923_v53 = vmul.f32 %v7556_v40, %v2921_v47  ;;  %v2924_v29 = vmul.f32 %v2921_v47, %v7403_v49  ;;  %v2926_v19 = vmul.f32 %v2921_v47, %v7564_v55  ;;  %v7617_v47 = vpop.permute.xlu1 %2906 }
0x130b   : > { %10059 = vst [vmem:[#allocation37_spill] sm:$0xff] %v7617_v47 }
0x130c   : > { %2935 = vrot.lane.b32.xlu0 %v2925_v1, %s5214_s23  ;;  %2931 = vrot.lane.b32.xlu1 %v2923_v53, %s5214_s23 }
0x1310   : > { %2951 = vperm.xlu0 %4968, %v7529_v8   ;;  %2933 = vrot.lane.b32.xlu1 %v2924_v29, %s5214_s23 }
0x1314   : > { %2937 = vrot.lane.b32.xlu1 %v2926_v19, %s5214_s23  ;;  %4974 = vset.pattern.permute.xlu0 %v10019_v50 }
0x137e   : > { %v7593_v62 = vpop.permute.xlu0 %2935  ;;  %v7619_v1 = vpop.permute.xlu1 %2931 }
0x137f   : > { %10051 = vst [vmem:[#allocation52_spill] sm:$0xff] %v7593_v62  ;;  %10060 = vst [vmem:[#allocation26_spill] sm:$0xff] %v7619_v1 }
0x1382   : > { %v7621_v53 = vpop.permute.xlu1 %2933 }
0x1383   : > { %10061 = vst [vmem:[#allocation45_spill] sm:$0xff] %v7621_v53 }
0x1386   : > { %v7623_v29 = vpop.permute.xlu1 %2937 }
0x1387   : > { %10062 = vst [vmem:[#allocation22_spill] sm:$0xff] %v7623_v29 }
0x138f   : > { %v2952_v17 = vpop.permute.xlu0 %2951 }
0x1390   : > { %v2954_v21 = vmul.f32 %v2952_v17, %v7403_v49  ;;  %v2956_v12 = vmul.f32 %v2952_v17, %v7564_v55  ;;  %v2955_v42 = vmul.f32 %v2952_v17, %v7406_v9 }
0x1392   : > { %2964 = vrot.lane.b32.xlu0 %v2956_v12, %s5217_s24  ;;  %2960 = vrot.lane.b32.xlu1 %v2954_v21, %s5217_s24 }
0x1396   : > { %2962 = vrot.lane.b32.xlu1 %v2955_v42, %s5217_s24 }
0x139a   : > { %2977 = vperm.xlu1 %4969, %v7529_v8  }
0x139e   : > { %4970 = vset.pattern.permute.xlu1 %v10021_v11 }
0x1404   : > { %v7625_v19 = vpop.permute.xlu1 %2960 }
0x1405   : > { %10063 = vst [vmem:[#allocation53_spill] sm:$0xff] %v7625_v19 }
0x1408   : > { %v7627_v17 = vpop.permute.xlu1 %2962 }
0x1409   : > { %10064 = vst [vmem:[#allocation54_spill] sm:$0xff] %v7627_v17 }
0x1419   : > { %v2978_v21 = vpop.permute.xlu1 %2977 }
0x141a   : > { %v2980_v12 = vmul.f32 %v2978_v21, %v7403_v49  ;;  %v2981_v42 = vmul.f32 %v2978_v21, %v7406_v9  ;;  %v2982_v22 = vmul.f32 %v2978_v21, %v7564_v55 }
0x141c   : > { %2988 = vrot.lane.b32.xlu1 %v2981_v42, %s5218_s15  ;;  %2986 = vrot.lane.b32.xlu0 %v2980_v12, %s5218_s15 }
0x1420   : > { %3003 = vperm.xlu1 %4970, %v7529_v8   ;;  %2990 = vrot.lane.b32.xlu0 %v2982_v22, %s5218_s15 }
0x1424   : > { %4971 = vset.pattern.permute.xlu1 %v10034_v31 }
0x148e   : > { %v7637_v18 = vpop.permute.xlu1 %2988 }
0x148f   : > { %10065 = vst [vmem:[#allocation18_spill] sm:$0xff] %v7637_v18 }
0x149f   : > { %v3004_v45 = vpop.permute.xlu1 %3003 }
0x14a0   : > { %v3006_v37 = vmul.f32 %v3004_v45, %v7403_v49  ;;  %v3007_v19 = vmul.f32 %v3004_v45, %v7406_v9  ;;  %v3008_v12 = vmul.f32 %v3004_v45, %v7564_v55 }
0x14a2   : > { %3014 = vrot.lane.b32.xlu1 %v3007_v19, %s5219_s17  ;;  %3012 = vrot.lane.b32.xlu0 %v3006_v37, %s5219_s17 }
0x14a6   : > { %3029 = vperm.xlu1 %4971, %v7529_v8   ;;  %3016 = vrot.lane.b32.xlu0 %v3008_v12, %s5219_s17 }
0x14aa   : > { %4972 = vset.pattern.permute.xlu1 %v10036_v33 }
0x1514   : > { %v7647_v22 = vpop.permute.xlu1 %3014 }
0x1515   : > { %10066 = vst [vmem:[#allocation72_spill] sm:$0xff] %v7647_v22 }
0x1525   : > { %v3030_v21 = vpop.permute.xlu1 %3029 }
0x1526   : > { %v3032_v42 = vmul.f32 %v3030_v21, %v7403_v49  ;;  %v3033_v18 = vmul.f32 %v3030_v21, %v7406_v9  ;;  %v3034_v37 = vmul.f32 %v3030_v21, %v7564_v55 }
0x1528   : > { %3040 = vrot.lane.b32.xlu1 %v3033_v18, %s5220_s20  ;;  %3038 = vrot.lane.b32.xlu0 %v3032_v42, %s5220_s20  ;;  %v7663_v18 = vld [vmem:[#allocation7] sm:$0xff] }
0x152c   : > { %3055 = vperm.xlu1 %4972, %v7529_v8   ;;  %3042 = vrot.lane.b32.xlu0 %v3034_v37, %s5220_s20 }
0x1530   : > { %4973 = vset.pattern.permute.xlu1 %v10038_v5 }
0x159a   : > { %v7657_v45 = vpop.permute.xlu1 %3040 }
0x159b   : > { %10067 = vst [vmem:[#allocation61_spill] sm:$0xff] %v7657_v45 }
0x15ab   : > { %v3056_v19 = vpop.permute.xlu1 %3055 }
0x15ac   : > { %v3058_v12 = vmul.f32 %v3056_v19, %v7403_v49  ;;  %v3059_v22 = vmul.f32 %v3056_v19, %v7406_v9  ;;  %v3060_v21 = vmul.f32 %v3056_v19, %v7564_v55  ;;  %v7671_v49 = vpop.permute.xlu0 %2964 }
0x15ad   : > { %10068 = vst [vmem:[#allocation36_spill] sm:$0xff] %v7671_v49 }
0x15ae   : > { %3066 = vrot.lane.b32.xlu1 %v3059_v22, %s5221_s22  ;;  %3064 = vrot.lane.b32.xlu0 %v3058_v12, %s5221_s22 }
0x15b0   : > { %v7673_v9 = vpop.permute.xlu0 %2986 }
0x15b1   : > { %10069 = vst [vmem:[#allocation65_spill] sm:$0xff] %v7673_v9 }
0x15b2   : > { %3090 = vperm.xlu1 %4973, %v7663_v18   ;;  %3068 = vrot.lane.b32.xlu0 %v3060_v21, %s5221_s22 }
0x15b4   : > { %v7675_v8 = vpop.permute.xlu0 %2990 }
0x15b5   : > { %10070 = vst [vmem:[#allocation50_spill] sm:$0xff] %v7675_v8  ;;  %v10085_v8 = vmov 21  }
0x15b6   : > { %3098 = vperm.xlu0 %4974, %v7663_v18   ;;  %4979 = vset.pattern.permute.xlu1 %v10014_v58 }
0x15b8   : > { %v7677_v22 = vpop.permute.xlu0 %3012 }
0x15b9   : > { %10071 = vst [vmem:[#allocation30_spill] sm:$0xff] %v7677_v22 }
0x15ba   : > { %4975 = vset.pattern.permute.xlu0 %v10014_v58 }
0x15bc   : > { %v7679_v42 = vpop.permute.xlu0 %3016 }
0x15bd   : > { %10072 = vst [vmem:[#allocation27_spill] sm:$0xff] %v7679_v42 }
0x15c0   : > { %v7681_v55 = vpop.permute.xlu0 %3038 }
0x15c1   : > { %10073 = vst [vmem:[#allocation42_spill] sm:$0xff] %v7681_v55  ;;  %v7696_v55 = vld [vmem:[#allocation2 + $0x38] sm:$0xff] }
0x15c4   : > { %v7683_v37 = vpop.permute.xlu0 %3042 }
0x15c5   : > { %10074 = vst [vmem:[#allocation73_spill] sm:$0xff] %v7683_v37 }
0x1620   : > { %v7685_v19 = vpop.permute.xlu0 %3064 }
0x1621   : > { %10075 = vst [vmem:[#allocation48_spill] sm:$0xff] %v7685_v19 }
0x1624   : > { %v7687_v12 = vpop.permute.xlu0 %3068 }
0x1625   : > { %10076 = vst [vmem:[#allocation25_spill] sm:$0xff] %v7687_v12 }
0x1635   : > { %v3099_v21 = vpop.permute.xlu0 %3098 }
0x1636   : > { %v3103_v58 = vmul.f32 %v3099_v21, %v7343_v20  ;;  %v3101_v45 = vmul.f32 %v7556_v40, %v3099_v21  ;;  %v3102_v22 = vmul.f32 %v3099_v21, %v7340_v61  ;;  %v3104_v19 = vmul.f32 %v3099_v21, %v7696_v55 }
0x1638   : > { %3113 = vrot.lane.b32.xlu0 %v3103_v58, %s5212_s25  ;;  %3109 = vrot.lane.b32.xlu1 %v3101_v45, %s5212_s25 }
0x163c   : > { %3129 = vperm.xlu0 %4975, %v7663_v18   ;;  %3111 = vrot.lane.b32.xlu1 %v3102_v22, %s5212_s25 }
0x1640   : > { %3115 = vrot.lane.b32.xlu1 %v3104_v19, %s5212_s25  ;;  %4976 = vset.pattern.permute.xlu0 %v10015_v57 }
0x16aa   : > { %v7701_v12 = vpop.permute.xlu0 %3113 }
0x16bb   : > { %v3130_v37 = vpop.permute.xlu0 %3129 }
0x16bc   : > { %v3134_v58 = vmul.f32 %v3130_v37, %v7343_v20  ;;  %v3132_v45 = vmul.f32 %v7556_v40, %v3130_v37  ;;  %v3133_v22 = vmul.f32 %v3130_v37, %v7340_v61  ;;  %v3135_v19 = vmul.f32 %v3130_v37, %v7696_v55 }
0x16be   : > { %3144 = vrot.lane.b32.xlu0 %v3134_v58, %s5213_s26  ;;  %3140 = vrot.lane.b32.xlu1 %v3132_v45, %s5213_s26 }
0x16c2   : > { %3160 = vperm.xlu0 %4976, %v7663_v18   ;;  %3142 = vrot.lane.b32.xlu1 %v3133_v22, %s5213_s26  ;;  %v7723_v22 = vld [vmem:[#allocation7 + $0x8] sm:$0xff] }
0x16c6   : > { %3146 = vrot.lane.b32.xlu1 %v3135_v19, %s5213_s26  ;;  %4977 = vset.pattern.permute.xlu0 %v10017_v60  ;;  %v10081_v19 = vmov 15  }
0x1730   : > { %v7713_v21 = vpop.permute.xlu0 %3144 }
0x1741   : > { %v3161_v42 = vpop.permute.xlu0 %3160 }
0x1742   : > { %v3165_v9 = vmul.f32 %v3161_v42, %v7343_v20  ;;  %v3163_v58 = vmul.f32 %v7556_v40, %v3161_v42  ;;  %v3164_v45 = vmul.f32 %v3161_v42, %v7340_v61  ;;  %v3166_v37 = vmul.f32 %v3161_v42, %v7696_v55 }
0x1743   : > { %v10079_v42 = vmov 12  }
0x1744   : > { %3175 = vrot.lane.b32.xlu0 %v3165_v9, %s5215_s21  ;;  %3171 = vrot.lane.b32.xlu1 %v3163_v58, %s5215_s21  ;;  %v10077_v9 = vmov 9   ;;  %v10082_v58 = vmov 16  }
0x1748   : > { %3191 = vperm.xlu0 %4977, %v7663_v18   ;;  %3173 = vrot.lane.b32.xlu1 %v3164_v45, %s5215_s21  ;;  %v10083_v45 = vmov 18  }
0x174c   : > { %4978 = vset.pattern.permute.xlu0 %v10019_v50  ;;  %3177 = vrot.lane.b32.xlu1 %v3166_v37, %s5215_s21  ;;  %v10078_v50 = vmov 10   ;;  %v10084_v37 = vmov 19  }
0x174d   : > { %3794 = vperm.xlu0 %4978, %v7723_v22  }
0x1751   : > { %4981 = vset.pattern.permute.xlu0 %v10017_v60  ;;  %v10080_v60 = vmov 13  }
0x1752   : > { %3887 = vperm.xlu0 %4981, %v7723_v22  }
0x1756   : > { %4983 = vset.pattern.permute.xlu0 %v10021_v11 }
0x1757   : > { %3253 = vperm.xlu0 %4983, %v7663_v18  }
0x175b   : > { %4986 = vset.pattern.permute.xlu0 %v10034_v31 }
0x175c   : > { %3980 = vperm.xlu0 %4986, %v7723_v22  }
0x1760   : > { %4988 = vset.pattern.permute.xlu0 %v10077_v9 }
0x1761   : > { %3346 = vperm.xlu0 %4988, %v7663_v18  }
0x1765   : > { %4991 = vset.pattern.permute.xlu0 %v10078_v50 }
0x1766   : > { %4073 = vperm.xlu0 %4991, %v7723_v22  }
0x176a   : > { %4993 = vset.pattern.permute.xlu0 %v10079_v42 }
0x176b   : > { %3439 = vperm.xlu0 %4993, %v7663_v18  }
0x176f   : > { %4996 = vset.pattern.permute.xlu0 %v10080_v60 }
0x1770   : > { %4161 = vperm.xlu0 %4996, %v7723_v22  }
0x1774   : > { %4998 = vset.pattern.permute.xlu0 %v10081_v19 }
0x1775   : > { %3517 = vperm.xlu0 %4998, %v7663_v18  }
0x1779   : > { %5001 = vset.pattern.permute.xlu0 %v10082_v58 }
0x177a   : > { %4239 = vperm.xlu0 %5001, %v7723_v22  }
0x177e   : > { %5003 = vset.pattern.permute.xlu0 %v10083_v45 }
0x177f   : > { %3595 = vperm.xlu0 %5003, %v7663_v18  }
0x1783   : > { %5006 = vset.pattern.permute.xlu0 %v10084_v37 }
0x1784   : > { %4317 = vperm.xlu0 %5006, %v7723_v22  }
0x1788   : > { %5008 = vset.pattern.permute.xlu0 %v10085_v8 }
0x1789   : > { %3673 = vperm.xlu0 %5008, %v7663_v18  }
0x178d   : > { %5011 = vset.pattern.permute.xlu0 %v10086_v43 }
0x178e   : > { %4395 = vperm.xlu0 %5011, %v7723_v22  }
0x1792   : > { %5013 = vset.pattern.permute.xlu0 %v10087_v4 }
0x1793   : > { %3751 = vperm.xlu0 %5013, %v7663_v18  }
0x17b6   : > { %v7756_v17 = vpop.permute.xlu0 %3175 }
0x17c7   : > { %v7758_v49 = vpop.permute.xlu0 %3191 }
0x17c8   : > { %v3194_v1 = vmul.f32 %v7556_v40, %v7758_v49  ;;  %v3195_v62 = vmul.f32 %v7758_v49, %v7340_v61 }
0x17ca   : > { %3202 = vrot.lane.b32.xlu1 %v3194_v1, %s5216_s14 }
0x17cc   : > { %v7763_v53 = vpop.permute.xlu0 %3794 }
0x17cd   : > { %v3797_v29 = vmul.f32 %v7556_v40, %v7763_v53  ;;  %v3799_v10 = vmul.f32 %v7763_v53, %v7416_v34 }
0x17ce   : > { %3204 = vrot.lane.b32.xlu1 %v3195_v62, %s5216_s14 }
0x17cf   : > { %3805 = vrot.lane.b32.xlu0 %v3797_v29, %s5212_s25  ;;  %v10091_v29 = vmov 17  }
0x17d2   : > { %3825 = vperm.xlu1 %4979, %v7723_v22  }
0x17d3   : > { %3809 = vrot.lane.b32.xlu0 %v3799_v10, %s5212_s25 }
0x17d6   : > { %4980 = vset.pattern.permute.xlu1 %v10015_v57  ;;  %v7796_v57 = vpop.permute.xlu1 %3066 }
0x17d7   : > { %3856 = vperm.xlu1 %4980, %v7723_v22   ;;  %10089 = vst [vmem:[#allocation55_spill] sm:$0xff] %v7796_v57 }
0x17db   : > { %4982 = vset.pattern.permute.xlu1 %v10013_v16  ;;  %v10088_v16 = vmov 11  }
0x17dc   : > { %3222 = vperm.xlu1 %4982, %v7663_v18  }
0x17e0   : > { %3918 = vperm.xlu1 %4982, %v7723_v22  }
0x17e4   : > { %4984 = vset.pattern.permute.xlu1 %v10021_v11  ;;  %v7800_v11 = vpop.permute.xlu1 %3090 }
0x17e5   : > { %3949 = vperm.xlu1 %4984, %v7723_v22  }
0x17e9   : > { %4985 = vset.pattern.permute.xlu1 %v10034_v31  ;;  %v10090_v31 = vmov 14  }
0x17ea   : > { %3284 = vperm.xlu1 %4985, %v7663_v18  }
0x17ee   : > { %4987 = vset.pattern.permute.xlu1 %v10036_v33  ;;  %v7804_v33 = vpop.permute.xlu1 %3109 }
0x17ef   : > { %3315 = vperm.xlu1 %4987, %v7663_v18  }
0x17f2   : > { %v7807_v62 = vpop.permute.xlu1 %3111 }
0x17f3   : > { %4011 = vperm.xlu1 %4987, %v7723_v22  }
0x17f6   : > { %v7812_v10 = vpop.permute.xlu1 %3115 }
0x17f7   : > { %4989 = vset.pattern.permute.xlu1 %v10077_v9 }
0x17f8   : > { %4042 = vperm.xlu1 %4989, %v7723_v22  }
0x17fa   : > { %v7815_v1 = vpop.permute.xlu1 %3140 }
0x17fc   : > { %4990 = vset.pattern.permute.xlu1 %v10078_v50 }
0x17fd   : > { %3377 = vperm.xlu1 %4990, %v7663_v18  }
0x17fe   : > { %v7820_v9 = vpop.permute.xlu1 %3142 }
0x1801   : > { %4992 = vset.pattern.permute.xlu1 %v10088_v16  ;;  %v10093_v16 = vmov 23  }
0x1802   : > { %3408 = vperm.xlu1 %4992, %v7663_v18   ;;  %v7824_v50 = vpop.permute.xlu1 %3146 }
0x1806   : > { %4104 = vperm.xlu1 %4992, %v7723_v22  }
0x180a   : > { %4994 = vset.pattern.permute.xlu1 %v10079_v42  ;;  %v7828_v42 = vpop.permute.xlu1 %3171 }
0x180b   : > { %4135 = vperm.xlu1 %4994, %v7723_v22  }
0x180f   : > { %4995 = vset.pattern.permute.xlu1 %v10080_v60  ;;  %v10092_v60 = vmov 20  }
0x1810   : > { %3465 = vperm.xlu1 %4995, %v7663_v18  }
0x1814   : > { %4997 = vset.pattern.permute.xlu1 %v10090_v31 }
0x1815   : > { %3491 = vperm.xlu1 %4997, %v7663_v18  }
0x1819   : > { %4187 = vperm.xlu1 %4997, %v7723_v22  }
0x181d   : > { %4999 = vset.pattern.permute.xlu1 %v10081_v19  ;;  %v7832_v19 = vpop.permute.xlu1 %3173 }
0x181e   : > { %4213 = vperm.xlu1 %4999, %v7723_v22  }
0x1822   : > { %5000 = vset.pattern.permute.xlu1 %v10082_v58  ;;  %v7835_v58 = vpop.permute.xlu1 %3177 }
0x1823   : > { %3543 = vperm.xlu1 %5000, %v7663_v18  }
0x1827   : > { %5002 = vset.pattern.permute.xlu1 %v10091_v29 }
0x1828   : > { %3569 = vperm.xlu1 %5002, %v7663_v18  }
0x182c   : > { %4265 = vperm.xlu1 %5002, %v7723_v22  }
0x1830   : > { %5004 = vset.pattern.permute.xlu1 %v10083_v45 }
0x1831   : > { %4291 = vperm.xlu1 %5004, %v7723_v22  }
0x1835   : > { %5005 = vset.pattern.permute.xlu1 %v10084_v37 }
0x1836   : > { %3621 = vperm.xlu1 %5005, %v7663_v18  }
0x183a   : > { %5007 = vset.pattern.permute.xlu1 %v10092_v60 }
0x183b   : > { %3647 = vperm.xlu1 %5007, %v7663_v18  }
0x183c   : > { %v7839_v45 = vpop.permute.xlu1 %3202 }
0x183f   : > { %4343 = vperm.xlu1 %5007, %v7723_v22  }
0x1840   : > { %v7843_v37 = vpop.permute.xlu1 %3204 }
0x1843   : > { %5009 = vset.pattern.permute.xlu1 %v10085_v8 }
0x1844   : > { %4369 = vperm.xlu1 %5009, %v7723_v22  }
0x1848   : > { %5010 = vset.pattern.permute.xlu1 %v10086_v43 }
0x1849   : > { %3699 = vperm.xlu1 %5010, %v7663_v18  }
0x184d   : > { %5012 = vset.pattern.permute.xlu1 %v10093_v16  ;;  %v3798_v16 = vmul.f32 %v7763_v53, %v7413_v3 }
0x184e   : > { %3725 = vperm.xlu1 %5012, %v7663_v18  }
0x1851   : > { %v3826_v31 = vpop.permute.xlu1 %3825 }
0x1852   : > { %4421 = vperm.xlu1 %5012, %v7723_v22   ;;  %v3828_v29 = vmul.f32 %v7556_v40, %v3826_v31  ;;  %v3830_v43 = vmul.f32 %v3826_v31, %v7416_v34 }
0x1854   : > { %3836 = vrot.lane.b32.xlu0 %v3828_v29, %s5213_s26 }
0x1856   : > { %5014 = vset.pattern.permute.xlu1 %v10087_v4  ;;  %v3857_v8 = vpop.permute.xlu1 %3856 }
0x1857   : > { %4447 = vperm.xlu1 %5014, %v7723_v22   ;;  %v3859_v60 = vmul.f32 %v7556_v40, %v3857_v8  ;;  %v3861_v4 = vmul.f32 %v3857_v8, %v7416_v34 }
0x1858   : > { %3840 = vrot.lane.b32.xlu0 %v3830_v43, %s5213_s26  ;;  %v7865_v43 = vld [vmem:[#allocation3 + $0x38] sm:$0xff] }
0x185b   : > { %5015 = vset.pattern.permute.xlu1 %v10038_v5  ;;  %v3223_v18 = vpop.permute.xlu1 %3222  ;;  %v3800_v5 = vmul.f32 %v7763_v53, %v7865_v43  ;;  %v3831_v53 = vmul.f32 %v3826_v31, %v7865_v43 }
0x185c   : > { %3786 = vperm.xlu1 %5015, %v7723_v22   ;;  %3867 = vrot.lane.b32.xlu0 %v3859_v60, %s5215_s21  ;;  %v3196_v22 = vmul.f32 %v7758_v49, %v7343_v20  ;;  %v3888_v60 = vpop.permute.xlu0 %3887  ;;  %v3225_v51 = vmul.f32 %v7556_v40, %v3223_v18  ;;  %v3226_v23 = vmul.f32 %v3223_v18, %v7340_v61 }
0x185d   : > { %v3890_v38 = vmul.f32 %v7556_v40, %v3888_v60  ;;  %v3892_v14 = vmul.f32 %v3888_v60, %v7416_v34  ;;  %v3893_v2 = vmul.f32 %v3888_v60, %v7865_v43 }
0x185f   : > { %v7861_v29 = vpop.permute.xlu1 %3918 }
0x1860   : > { %3807 = vrot.lane.b32.xlu1 %v3798_v16, %s5212_s25  ;;  %3871 = vrot.lane.b32.xlu0 %v3861_v4, %s5215_s21  ;;  %v3829_v16 = vmul.f32 %v3826_v31, %v7413_v3  ;;  %v3254_v47 = vpop.permute.xlu0 %3253  ;;  %v3862_v31 = vmul.f32 %v3857_v8, %v7865_v43 }
0x1864   : > { %3811 = vrot.lane.b32.xlu1 %v3800_v5, %s5212_s25  ;;  %3206 = vrot.lane.b32.xlu0 %v3196_v22, %s5216_s14  ;;  %v7873_v57 = vpop.permute.xlu1 %3949  ;;  %v3860_v22 = vmul.f32 %v3857_v8, %v7413_v3  ;;  %v3923_v8 = vmul.f32 %v7861_v29, %v7416_v34  ;;  %s10094_s25 = smov 105  }
0x1868   : > { %3838 = vrot.lane.b32.xlu1 %v3829_v16, %s5213_s26  ;;  %3898 = vrot.lane.b32.xlu0 %v3890_v38, %s5216_s14  ;;  %v3227_v16 = vmul.f32 %v3223_v18, %v7343_v20 }
0x1869   : > { %v7879_v4 = vpop.permute.xlu1 %3284 }
0x186a   : > { %v3290_v39 = vmul.f32 %v7879_v4, %v7696_v55 }
0x186c   : > { %3842 = vrot.lane.b32.xlu1 %v3831_v53, %s5213_s26  ;;  %3902 = vrot.lane.b32.xlu0 %v3892_v14, %s5216_s14  ;;  %v7897_v14 = vpop.permute.xlu0 %3980  ;;  %v3197_v53 = vmul.f32 %v7758_v49, %v7696_v55  ;;  %s10095_s26 = smov 104  }
0x186d   : > { %v3984_v15 = vmul.f32 %v7897_v14, %v7413_v3 }
0x186e   : > { %v7885_v5 = vpop.permute.xlu1 %3315 }
0x186f   : > { %v3319_v48 = vmul.f32 %v7955_v28, %v7885_v5 }
0x1870   : > { %3869 = vrot.lane.b32.xlu1 %v3860_v22, %s5215_s21  ;;  %3233 = vrot.lane.b32.xlu0 %v3225_v51, %s5214_s23  ;;  %v3921_v22 = vmul.f32 %v7556_v40, %v7861_v29  ;;  %v3891_v51 = vmul.f32 %v3888_v60, %v7413_v3  ;;  %v3228_v60 = vmul.f32 %v3223_v18, %v7696_v55 }
0x1872   : > { %v7891_v38 = vpop.permute.xlu1 %4011 }
0x1874   : > { %3873 = vrot.lane.b32.xlu1 %v3862_v31, %s5215_s21  ;;  %3237 = vrot.lane.b32.xlu0 %v3227_v16, %s5214_s23  ;;  %v7910_v31 = vpop.permute.xlu0 %3346  ;;  %v3256_v16 = vmul.f32 %v7556_v40, %v3254_v47  ;;  %s10113_s21 = smov 84  }
0x1877   : > { %v7903_v52 = vpop.permute.xlu1 %4042 }
0x1878   : > { %3208 = vrot.lane.b32.xlu1 %v3197_v53, %s5216_s14  ;;  %3929 = vrot.lane.b32.xlu0 %v3921_v22, %s5214_s23  ;;  %v7922_v22 = vpop.permute.xlu0 %4073  ;;  %v4048_v41 = vmul.f32 %v7903_v52, %v7865_v43 }
0x187c   : > { %3900 = vrot.lane.b32.xlu1 %v3891_v51, %s5216_s14  ;;  %3933 = vrot.lane.b32.xlu0 %v3923_v8, %s5214_s23  ;;  %v7914_v49 = vpop.permute.xlu1 %3377  ;;  %v3258_v51 = vmul.f32 %v3254_v47, %v7343_v20  ;;  %v3922_v20 = vmul.f32 %v7861_v29, %v7413_v3 }
0x1880   : > { %3904 = vrot.lane.b32.xlu1 %v3893_v2, %s5216_s14  ;;  %3264 = vrot.lane.b32.xlu0 %v3256_v16, %s5217_s24  ;;  %v3952_v2 = vmul.f32 %v7556_v40, %v7873_v57  ;;  %v7933_v16 = vpop.permute.xlu0 %3439  ;;  %s10118_s14 = smov 68  }
0x1881   : > { %v7920_v53 = vpop.permute.xlu1 %3408 }
0x1882   : > { %v3411_v54 = vmul.f32 %v7556_v40, %v7920_v53 }
0x1884   : > { %3235 = vrot.lane.b32.xlu1 %v3226_v23, %s5214_s23  ;;  %3268 = vrot.lane.b32.xlu0 %v3258_v51, %s5217_s24  ;;  %v3954_v23 = vmul.f32 %v7873_v57, %v7416_v34  ;;  %v7945_v18 = vpop.permute.xlu0 %4161  ;;  %v3924_v51 = vmul.f32 %v7861_v29, %v7865_v43 }
0x1885   : > { %v7928_v8 = vpop.permute.xlu1 %4104 }
0x1888   : > { %3239 = vrot.lane.b32.xlu1 %v3228_v60, %s5214_s23  ;;  %3960 = vrot.lane.b32.xlu0 %v3952_v2, %s5217_s24  ;;  %v3287_v60 = vmul.f32 %v7556_v40, %v7879_v4  ;;  %v7962_v6 = vpop.permute.xlu0 %3517 }
0x188a   : > { %v7937_v61 = vpop.permute.xlu1 %4135 }
0x188c   : > { %3931 = vrot.lane.b32.xlu1 %v3922_v20, %s5214_s23  ;;  %3964 = vrot.lane.b32.xlu0 %v3954_v23, %s5217_s24  ;;  %v3257_v20 = vmul.f32 %v7955_v28, %v3254_v47  ;;  %v3289_v23 = vmul.f32 %v7958_v25, %v7879_v4  ;;  %v7975_v32 = vpop.permute.xlu0 %4239 }
0x188f   : > { %v7951_v2 = vpop.permute.xlu1 %3465 }
0x1890   : > { %3935 = vrot.lane.b32.xlu1 %v3924_v51, %s5214_s23  ;;  %3295 = vrot.lane.b32.xlu0 %v3287_v60, %s5218_s15  ;;  %v3983_v51 = vmul.f32 %v7556_v40, %v7897_v14  ;;  %v3259_v60 = vmul.f32 %v3254_v47, %v7696_v55  ;;  %v3955_v47 = vmul.f32 %v7873_v57, %v7865_v43  ;;  %s10109_s23 = smov 85  }
0x1894   : > { %3266 = vrot.lane.b32.xlu1 %v3257_v20, %s5217_s24  ;;  %3299 = vrot.lane.b32.xlu0 %v3289_v23, %s5218_s15  ;;  %v7966_v29 = vpop.permute.xlu1 %3491  ;;  %v3953_v20 = vmul.f32 %v7873_v57, %v7413_v3  ;;  %v3985_v23 = vmul.f32 %v7897_v14, %v7416_v34 }
0x1898   : > { %3270 = vrot.lane.b32.xlu1 %v3259_v60, %s5217_s24  ;;  %3991 = vrot.lane.b32.xlu0 %v3983_v51, %s5218_s15  ;;  %v7973_v44 = vpop.permute.xlu1 %4187  ;;  %v3318_v51 = vmul.f32 %v7556_v40, %v7885_v5  ;;  %v7989_v60 = vpop.permute.xlu0 %3595 }
0x189c   : > { %3962 = vrot.lane.b32.xlu1 %v3953_v20, %s5217_s24  ;;  %3995 = vrot.lane.b32.xlu0 %v3985_v23, %s5218_s15  ;;  %v3288_v20 = vmul.f32 %v7955_v28, %v7879_v4  ;;  %v3320_v23 = vmul.f32 %v7958_v25, %v7885_v5  ;;  %v8001_v57 = vpop.permute.xlu0 %4317  ;;  %v3986_v4 = vmul.f32 %v7897_v14, %v7865_v43 }
0x189d   : > { %v7983_v35 = vpop.permute.xlu1 %4213 }
0x18a0   : > { %3966 = vrot.lane.b32.xlu1 %v3955_v47, %s5217_s24  ;;  %3326 = vrot.lane.b32.xlu0 %v3318_v51, %s10094_s25  ;;  %v4014_v47 = vmul.f32 %v7556_v40, %v7891_v38  ;;  %v8017_v30 = vpop.permute.xlu0 %3673  ;;  %s10124_s24 = smov 67  }
0x18a2   : > { %v7993_v7 = vpop.permute.xlu1 %3543 }
0x18a4   : > { %3297 = vrot.lane.b32.xlu1 %v3288_v20, %s5218_s15  ;;  %3330 = vrot.lane.b32.xlu0 %v3320_v23, %s10094_s25  ;;  %v4016_v20 = vmul.f32 %v7891_v38, %v7416_v34  ;;  %v8029_v46 = vpop.permute.xlu0 %4395 }
0x18a7   : > { %v8007_v51 = vpop.permute.xlu1 %3569 }
0x18a8   : > { %3301 = vrot.lane.b32.xlu1 %v3290_v39, %s5218_s15  ;;  %4022 = vrot.lane.b32.xlu0 %v4014_v47, %s10094_s25  ;;  %v3349_v39 = vmul.f32 %v7556_v40, %v7910_v31 }
0x18ab   : > { %v8015_v23 = vpop.permute.xlu1 %4265 }
0x18ac   : > { %3993 = vrot.lane.b32.xlu1 %v3984_v15, %s5218_s15  ;;  %4026 = vrot.lane.b32.xlu0 %v4016_v20, %s10094_s25  ;;  %v3351_v15 = vmul.f32 %v7958_v25, %v7910_v31  ;;  %v3321_v20 = vmul.f32 %v7885_v5, %v7696_v55 }
0x18b0   : > { %3997 = vrot.lane.b32.xlu1 %v3986_v4, %s5218_s15  ;;  %3357 = vrot.lane.b32.xlu0 %v3349_v39, %s10095_s26  ;;  %v8027_v47 = vpop.permute.xlu1 %4291  ;;  %v4045_v4 = vmul.f32 %v7556_v40, %v7903_v52  ;;  %v8043_v39 = vpop.permute.xlu0 %3751  ;;  %s10129_s15 = smov 66  }
0x18b1   : > { %10096 = vst [vmem:[#allocation57_spill] sm:$0xff] %v8043_v39 }
0x18b4   : > { %3328 = vrot.lane.b32.xlu1 %v3319_v48, %s10094_s25  ;;  %3361 = vrot.lane.b32.xlu0 %v3351_v15, %s10095_s26  ;;  %v4015_v48 = vmul.f32 %v7891_v38, %v7413_v3  ;;  %v4047_v15 = vmul.f32 %v7903_v52, %v7416_v34  ;;  %v8053_v26 = vpop.permute.xlu0 %3805  ;;  %v3350_v34 = vmul.f32 %v7955_v28, %v7910_v31 }
0x18b5   : > { %v8037_v14 = vpop.permute.xlu1 %3621 }
0x18b8   : > { %3332 = vrot.lane.b32.xlu1 %v3321_v20, %s10094_s25  ;;  %4053 = vrot.lane.b32.xlu0 %v4045_v4, %s10095_s26  ;;  %v4017_v20 = vmul.f32 %v7891_v38, %v7865_v43  ;;  %v3380_v4 = vmul.f32 %v7556_v40, %v7914_v49  ;;  %v8065_v3 = vpop.permute.xlu0 %3809 }
0x18ba   : > { %v8047_v56 = vpop.permute.xlu1 %3647 }
0x18bc   : > { %4024 = vrot.lane.b32.xlu1 %v4015_v48, %s10094_s25  ;;  %4057 = vrot.lane.b32.xlu0 %v4047_v15, %s10095_s26  ;;  %v3382_v48 = vmul.f32 %v7958_v25, %v7914_v49 }
0x18be   : > { %v8057_v5 = vpop.permute.xlu1 %4343 }
0x18c0   : > { %4028 = vrot.lane.b32.xlu1 %v4017_v20, %s10094_s25  ;;  %3388 = vrot.lane.b32.xlu0 %v3380_v4, %s5219_s17  ;;  %v3352_v20 = vmul.f32 %v7910_v31, %v7696_v55  ;;  %v4076_v4 = vmul.f32 %v7556_v40, %v7922_v22  ;;  %s10206_s25 = smov 44  }
0x18c3   : > { %v8071_v15 = vpop.permute.xlu1 %4369 }
0x18c4   : > { %3359 = vrot.lane.b32.xlu1 %v3350_v34, %s10095_s26  ;;  %3392 = vrot.lane.b32.xlu0 %v3382_v48, %s5219_s17  ;;  %v4046_v34 = vmul.f32 %v8087_v0, %v7903_v52  ;;  %v8091_v48 = vld [vmem:[#allocation3 + $0x30] sm:$0xff] }
0x18c5   : > { %10098 = vst [vmem:[#allocation74_spill] sm:$0xff] %v8091_v48  ;;  %v4078_v31 = vmul.f32 %v8091_v48, %v7922_v22 }
0x18c6   : > { %v8075_v38 = vpop.permute.xlu0 %3836 }
0x18c8   : > { %3363 = vrot.lane.b32.xlu1 %v3352_v20, %s10095_s26  ;;  %4084 = vrot.lane.b32.xlu0 %v4076_v4, %s5219_s17  ;;  %v8083_v36 = vpop.permute.xlu1 %3699 }
0x18ca   : > { %v8085_v24 = vpop.permute.xlu0 %3840 }
0x18cc   : > { %4055 = vrot.lane.b32.xlu1 %v4046_v34, %s10095_s26  ;;  %4088 = vrot.lane.b32.xlu0 %v4078_v31, %s5219_s17  ;;  %v3413_v34 = vmul.f32 %v7958_v25, %v7920_v53  ;;  %v3381_v31 = vmul.f32 %v7955_v28, %v7914_v49 }
0x18cd   : > { %v8097_v20 = vpop.permute.xlu1 %3725 }
0x18ce   : > { %v8099_v4 = vpop.permute.xlu0 %3867 }
0x18cf   : > { %10099 = vst [vmem:[#allocation64_spill] sm:$0xff] %v8099_v4 }
0x18d0   : > { %4059 = vrot.lane.b32.xlu1 %v4048_v41, %s10095_s26  ;;  %3419 = vrot.lane.b32.xlu0 %v3411_v54, %s5220_s20  ;;  %v4107_v54 = vmul.f32 %v7556_v40, %v7928_v8  ;;  %v3383_v41 = vmul.f32 %v7914_v49, %v7696_v55  ;;  %v3442_v40 = vmul.f32 %v7955_v28, %v7933_v16  ;;  %s10322_s26 = smov 21  }
0x18d1   : > { %v8107_v27 = vpop.permute.xlu1 %4421 }
0x18d2   : > { %10100 = vst [vmem:[#allocation75_spill] sm:$0xff] %v8107_v27  ;;  %v8109_v59 = vpop.permute.xlu0 %3871 }
0x18d3   : > { %10101 = vst [vmem:[#allocation77_spill] sm:$0xff] %v8109_v59 }
0x18d4   : > { %3423 = vrot.lane.b32.xlu0 %v3413_v34, %s5220_s20  ;;  %3390 = vrot.lane.b32.xlu1 %v3381_v31, %s5219_s17  ;;  %v4109_v34 = vmul.f32 %v8091_v48, %v7928_v8  ;;  %v4077_v31 = vmul.f32 %v8087_v0, %v7922_v22 }
0x18d6   : > { %v8117_v52 = vpop.permute.xlu0 %3206  ;;  %v8119_v63 = vpop.permute.xlu1 %4447 }
0x18d7   : > { %10102 = vst [vmem:[#allocation76_spill] sm:$0xff] %v8119_v63  ;;  %v3444_v63 = vmul.f32 %v7933_v16, %v7696_v55 }
0x18d8   : > { %4115 = vrot.lane.b32.xlu0 %v4107_v54, %s5220_s20  ;;  %3394 = vrot.lane.b32.xlu1 %v3383_v41, %s5219_s17  ;;  %v4079_v54 = vmul.f32 %v7922_v22, %v7865_v43  ;;  %v4139_v22 = vmul.f32 %v8091_v48, %v7937_v61 }
0x18da   : > { %v8127_v13 = vpop.permute.xlu0 %3898 }
0x18db   : > { %10103 = vst [vmem:[#allocation78_spill] sm:$0xff] %v8127_v13  ;;  %v8133_v59 = vpop.permute.xlu1 %3786 }
0x18dc   : > { %4119 = vrot.lane.b32.xlu0 %v4109_v34, %s5220_s20  ;;  %4086 = vrot.lane.b32.xlu1 %v4077_v31, %s5219_s17  ;;  %v3412_v31 = vmul.f32 %v7955_v28, %v7920_v53 }
0x18de   : > { %v8139_v49 = vpop.permute.xlu0 %3902 }
0x18df   : > { %10104 = vst [vmem:[#allocation79_spill] sm:$0xff] %v8139_v49  ;;  %v8143_v41 = vpop.permute.xlu1 %3807 }
0x18e0   : > { %3448 = vrot.lane.b32.xlu0 %v3442_v40, %s5221_s22  ;;  %4090 = vrot.lane.b32.xlu1 %v4079_v54, %s5219_s17  ;;  %v3414_v54 = vmul.f32 %v7920_v53, %v7696_v55  ;;  %v3470_v53 = vmul.f32 %v7951_v2, %v7696_v55  ;;  %s10135_s17 = smov 65  }
0x18e2   : > { %v8149_v34 = vpop.permute.xlu0 %3233 }
0x18e3   : > { %10105 = vst [vmem:[#allocation82_spill] sm:$0xff] %v8149_v34  ;;  %v8153_v13 = vpop.permute.xlu1 %3811  ;;  %v3468_v34 = vmul.f32 %v7955_v28, %v7951_v2 }
0x18e4   : > { %3452 = vrot.lane.b32.xlu0 %v3444_v63, %s5221_s22  ;;  %3421 = vrot.lane.b32.xlu1 %v3412_v31, %s5220_s20  ;;  %v4108_v31 = vmul.f32 %v8087_v0, %v7928_v8 }
0x18e6   : > { %v8159_v40 = vpop.permute.xlu0 %3237 }
0x18e7   : > { %10106 = vst [vmem:[#allocation80_spill] sm:$0xff] %v8159_v40  ;;  %v8163_v49 = vpop.permute.xlu1 %3838 }
0x18e8   : > { %4146 = vrot.lane.b32.xlu0 %v4139_v22, %s5221_s22  ;;  %3425 = vrot.lane.b32.xlu1 %v3414_v54, %s5220_s20  ;;  %v4110_v54 = vmul.f32 %v7928_v8, %v7865_v43  ;;  %v4138_v8 = vmul.f32 %v8087_v0, %v7937_v61 }
0x18ea   : > { %v8169_v63 = vpop.permute.xlu0 %3929 }
0x18eb   : > { %10107 = vst [vmem:[#allocation81_spill] sm:$0xff] %v8169_v63  ;;  %v8173_v4 = vpop.permute.xlu1 %3842  ;;  %v3443_v63 = vmul.f32 %v7958_v25, %v7933_v16 }
0x18ec   : > { %10108 = vst [vmem:[#allocation84_spill] sm:$0xff] %v8173_v4  ;;  %3474 = vrot.lane.b32.xlu0 %v3468_v34, %s10109_s23  ;;  %4117 = vrot.lane.b32.xlu1 %v4108_v31, %s5220_s20  ;;  %v4165_v34 = vmul.f32 %v8091_v48, %v7945_v18 }
0x18ee   : > { %v8179_v22 = vpop.permute.xlu0 %3933 }
0x18ef   : > { %10110 = vst [vmem:[#allocation86_spill] sm:$0xff] %v8179_v22  ;;  %v8183_v40 = vpop.permute.xlu1 %3869  ;;  %v4140_v22 = vmul.f32 %v7937_v61, %v7865_v43 }
0x18f0   : > { %3478 = vrot.lane.b32.xlu0 %v3470_v53, %s10109_s23  ;;  %4121 = vrot.lane.b32.xlu1 %v4110_v54, %s5220_s20  ;;  %v3494_v53 = vmul.f32 %v7955_v28, %v7966_v29  ;;  %s10141_s20 = smov 64  }
0x18f2   : > { %v8191_v31 = vpop.permute.xlu0 %3264 }
0x18f3   : > { %10111 = vst [vmem:[#allocation83_spill] sm:$0xff] %v8191_v31  ;;  %v8193_v4 = vpop.permute.xlu1 %3873 }
0x18f4   : > { %4172 = vrot.lane.b32.xlu0 %v4165_v34, %s10109_s23  ;;  %3450 = vrot.lane.b32.xlu1 %v3443_v63, %s5221_s22  ;;  %v3496_v63 = vmul.f32 %v7966_v29, %v7696_v55 }
0x18f6   : > { %v8201_v54 = vpop.permute.xlu0 %3268 }
0x18f7   : > { %10112 = vst [vmem:[#allocation85_spill] sm:$0xff] %v8201_v54  ;;  %v8203_v16 = vpop.permute.xlu1 %3208  ;;  %v3469_v54 = vmul.f32 %v7958_v25, %v7951_v2 }
0x18f8   : > { %3500 = vrot.lane.b32.xlu0 %v3494_v53, %s10113_s21  ;;  %4144 = vrot.lane.b32.xlu1 %v4138_v8, %s5221_s22  ;;  %v4191_v8 = vmul.f32 %v8091_v48, %v7973_v44 }
0x18fa   : > { %v8211_v34 = vpop.permute.xlu0 %3960 }
0x18fb   : > { %10114 = vst [vmem:[#allocation87_spill] sm:$0xff] %v8211_v34  ;;  %v8213_v31 = vpop.permute.xlu1 %3900  ;;  %v4164_v34 = vmul.f32 %v8087_v0, %v7945_v18 }
0x18fc   : > { %3504 = vrot.lane.b32.xlu0 %v3496_v63, %s10113_s21  ;;  %4148 = vrot.lane.b32.xlu1 %v4140_v22, %s5221_s22  ;;  %v3520_v22 = vmul.f32 %v7955_v28, %v7962_v6  ;;  %s10148_s22 = smov 48  }
0x18fe   : > { %v8221_v53 = vpop.permute.xlu0 %3964 }
0x18ff   : > { %10115 = vst [vmem:[#allocation89_spill] sm:$0xff] %v8221_v53  ;;  %v8223_v61 = vpop.permute.xlu1 %3904  ;;  %v4166_v53 = vmul.f32 %v7945_v18, %v7865_v43 }
0x1900   : > { %10116 = vst [vmem:[#allocation88_spill] sm:$0xff] %v8223_v61  ;;  %4198 = vrot.lane.b32.xlu0 %v4191_v8, %s10113_s21  ;;  %3476 = vrot.lane.b32.xlu1 %v3469_v54, %s10109_s23  ;;  %v3522_v54 = vmul.f32 %v7962_v6, %v7696_v55 }
0x1902   : > { %v8231_v63 = vpop.permute.xlu0 %3295 }
0x1903   : > { %10117 = vst [vmem:[#allocation90_spill] sm:$0xff] %v8231_v63  ;;  %v8233_v2 = vpop.permute.xlu1 %3235  ;;  %v3495_v63 = vmul.f32 %v7958_v25, %v7966_v29 }
0x1904   : > { %3526 = vrot.lane.b32.xlu0 %v3520_v22, %s10118_s14  ;;  %4170 = vrot.lane.b32.xlu1 %v4164_v34, %s10109_s23  ;;  %v4217_v34 = vmul.f32 %v8091_v48, %v7983_v35 }
0x1906   : > { %v8241_v8 = vpop.permute.xlu0 %3299 }
0x1907   : > { %10119 = vst [vmem:[#allocation91_spill] sm:$0xff] %v8241_v8  ;;  %v8243_v61 = vpop.permute.xlu1 %3239  ;;  %v4190_v8 = vmul.f32 %v8087_v0, %v7973_v44 }
0x1908   : > { %3530 = vrot.lane.b32.xlu0 %v3522_v54, %s10118_s14  ;;  %4174 = vrot.lane.b32.xlu1 %v4166_v53, %s10109_s23  ;;  %v3546_v53 = vmul.f32 %v7955_v28, %v7993_v7 }
0x190a   : > { %v8251_v22 = vpop.permute.xlu0 %3991 }
0x190b   : > { %10120 = vst [vmem:[#allocation93_spill] sm:$0xff] %v8251_v22  ;;  %v8253_v18 = vpop.permute.xlu1 %3931  ;;  %v4192_v22 = vmul.f32 %v7973_v44, %v7865_v43 }
0x190c   : > { %10121 = vst [vmem:[#allocation92_spill] sm:$0xff] %v8253_v18  ;;  %4224 = vrot.lane.b32.xlu0 %v4217_v34, %s10118_s14  ;;  %3502 = vrot.lane.b32.xlu1 %v3495_v63, %s10113_s21  ;;  %v3548_v63 = vmul.f32 %v7993_v7, %v7696_v55 }
0x190e   : > { %v8261_v54 = vpop.permute.xlu0 %3995 }
0x190f   : > { %10122 = vst [vmem:[#allocation94_spill] sm:$0xff] %v8261_v54  ;;  %v8263_v29 = vpop.permute.xlu1 %3935  ;;  %v3521_v54 = vmul.f32 %v7958_v25, %v7962_v6 }
0x1910   : > { %10123 = vst [vmem:[#allocation95_spill] sm:$0xff] %v8263_v29  ;;  %3552 = vrot.lane.b32.xlu0 %v3546_v53, %s10124_s24  ;;  %4196 = vrot.lane.b32.xlu1 %v4190_v8, %s10113_s21  ;;  %v4243_v8 = vmul.f32 %v8091_v48, %v7975_v32  ;;  %v4216_v29 = vmul.f32 %v8087_v0, %v7983_v35 }
0x1912   : > { %v8271_v34 = vpop.permute.xlu0 %3326 }
0x1913   : > { %v8273_v18 = vpop.permute.xlu1 %3266 }
0x1914   : > { %3556 = vrot.lane.b32.xlu0 %v3548_v63, %s10124_s24  ;;  %4200 = vrot.lane.b32.xlu1 %v4192_v22, %s10113_s21  ;;  %v3572_v22 = vmul.f32 %v7955_v28, %v8007_v51 }
0x1916   : > { %v8281_v53 = vpop.permute.xlu0 %3330 }
0x1917   : > { %10125 = vst [vmem:[#allocation98_spill] sm:$0xff] %v8281_v53  ;;  %v8283_v44 = vpop.permute.xlu1 %3270  ;;  %v4218_v53 = vmul.f32 %v7983_v35, %v7865_v43 }
0x1918   : > { %10126 = vst [vmem:[#allocation96_spill] sm:$0xff] %v8283_v44  ;;  %4250 = vrot.lane.b32.xlu0 %v4243_v8, %s10124_s24  ;;  %3528 = vrot.lane.b32.xlu1 %v3521_v54, %s10118_s14  ;;  %v3574_v54 = vmul.f32 %v8007_v51, %v7696_v55 }
0x191a   : > { %v8291_v63 = vpop.permute.xlu0 %4022 }
0x191b   : > { %10127 = vst [vmem:[#allocation97_spill] sm:$0xff] %v8291_v63  ;;  %v8293_v6 = vpop.permute.xlu1 %3962  ;;  %v3547_v63 = vmul.f32 %v7958_v25, %v7993_v7 }
0x191c   : > { %10128 = vst [vmem:[#allocation100_spill] sm:$0xff] %v8293_v6  ;;  %3578 = vrot.lane.b32.xlu0 %v3572_v22, %s10129_s15  ;;  %4222 = vrot.lane.b32.xlu1 %v4216_v29, %s10118_s14  ;;  %v4269_v29 = vmul.f32 %v8091_v48, %v8015_v23 }
0x191e   : > { %v8301_v8 = vpop.permute.xlu0 %4026 }
0x191f   : > { %10130 = vst [vmem:[#allocation102_spill] sm:$0xff] %v8301_v8  ;;  %v8303_v44 = vpop.permute.xlu1 %3966  ;;  %v4242_v8 = vmul.f32 %v8087_v0, %v7975_v32 }
0x1920   : > { %10131 = vst [vmem:[#allocation99_spill] sm:$0xff] %v8303_v44  ;;  %3582 = vrot.lane.b32.xlu0 %v3574_v54, %s10129_s15  ;;  %4226 = vrot.lane.b32.xlu1 %v4218_v53, %s10118_s14  ;;  %v3598_v53 = vmul.f32 %v7955_v28, %v7989_v60  ;;  %v4244_v44 = vmul.f32 %v7975_v32, %v7865_v43  ;;  %s4781_s14 = smul.u32 384, %s5326_s13 }
0x1922   : > { %v8311_v22 = vpop.permute.xlu0 %3357  ;;  %s9257_s13 = scalar_lea.hbm %s9311_s9, %s4781_s14 }
0x1923   : > { %10132 = vst [vmem:[#allocation101_spill] sm:$0xff] %v8311_v22  ;;  %v8313_v35 = vpop.permute.xlu1 %3297 }
0x1924   : > { %4276 = vrot.lane.b32.xlu0 %v4269_v29, %s10129_s15  ;;  %3554 = vrot.lane.b32.xlu1 %v3547_v63, %s10124_s24  ;;  %v3600_v63 = vmul.f32 %v7989_v60, %v7696_v55 }
0x1926   : > { %v8321_v54 = vpop.permute.xlu0 %3361 }
0x1927   : > { %10133 = vst [vmem:[#allocation103_spill] sm:$0xff] %v8321_v54  ;;  %v8323_v7 = vpop.permute.xlu1 %3301  ;;  %v3573_v54 = vmul.f32 %v7958_v25, %v8007_v51 }
0x1928   : > { %10134 = vst [vmem:[#allocation105_spill] sm:$0xff] %v8323_v7  ;;  %3604 = vrot.lane.b32.xlu0 %v3598_v53, %s10135_s17  ;;  %4248 = vrot.lane.b32.xlu1 %v4242_v8, %s10124_s24  ;;  %v4295_v8 = vmul.f32 %v8091_v48, %v8027_v47  ;;  %v3149_v7 = vsel %vm716_vm6, %v7820_v9, %v7713_v21 }
0x192a   : > { %v8331_v29 = vpop.permute.xlu0 %4053 }
0x192b   : > { %10136 = vst [vmem:[#allocation104_spill] sm:$0xff] %v8331_v29  ;;  %v8333_v6 = vpop.permute.xlu1 %3993  ;;  %v4268_v29 = vmul.f32 %v8087_v0, %v8015_v23 }
0x192c   : > { %10137 = vst [vmem:[#allocation106_spill] sm:$0xff] %v8333_v6  ;;  %3608 = vrot.lane.b32.xlu0 %v3600_v63, %s10135_s17  ;;  %4252 = vrot.lane.b32.xlu1 %v4244_v44, %s10124_s24  ;;  %v3624_v44 = vmul.f32 %v7955_v28, %v8037_v14  ;;  %v3599_v6 = vmul.f32 %v7958_v25, %v7989_v60  ;;  %s10341_s24 = smul.u32 24, %s5441_s28 }
0x192e   : > { %v8341_v53 = vpop.permute.xlu0 %4057 }
0x192f   : > { %10138 = vst [vmem:[#allocation107_spill] sm:$0xff] %v8341_v53  ;;  %v8343_v32 = vpop.permute.xlu1 %3997  ;;  %v4270_v53 = vmul.f32 %v8015_v23, %v7865_v43 }
0x1930   : > { %10139 = vst [vmem:[#allocation109_spill] sm:$0xff] %v8343_v32  ;;  %4302 = vrot.lane.b32.xlu0 %v4295_v8, %s10135_s17  ;;  %3580 = vrot.lane.b32.xlu1 %v3573_v54, %s10129_s15  ;;  %v3626_v54 = vmul.f32 %v8037_v14, %v7696_v55 }
0x1932   : > { %v8351_v63 = vpop.permute.xlu0 %3388 }
0x1933   : > { %10140 = vst [vmem:[#allocation108_spill] sm:$0xff] %v8351_v63  ;;  %v8353_v51 = vpop.permute.xlu1 %3328  ;;  %v3148_v63 = vsel %vm716_vm6, %v7815_v1, %v7820_v9  ;;  %v3179_v9 = vsel %vm1257_vm13, %v7828_v42, %v7832_v19 }
0x1934   : > { %3630 = vrot.lane.b32.xlu0 %v3624_v44, %s10141_s20  ;;  %4274 = vrot.lane.b32.xlu1 %v4268_v29, %s10129_s15  ;;  %v4321_v29 = vmul.f32 %v8091_v48, %v8001_v57 }
0x1936   : > { %v8361_v8 = vpop.permute.xlu0 %3392 }
0x1937   : > { %10142 = vst [vmem:[#allocation110_spill] sm:$0xff] %v8361_v8  ;;  %v8363_v32 = vpop.permute.xlu1 %3332  ;;  %v4294_v8 = vmul.f32 %v8087_v0, %v8027_v47 }
0x1938   : > { %10143 = vst [vmem:[#allocation111_spill] sm:$0xff] %v8363_v32  ;;  %3634 = vrot.lane.b32.xlu0 %v3626_v54, %s10141_s20  ;;  %4278 = vrot.lane.b32.xlu1 %v4270_v53, %s10129_s15  ;;  %v3650_v53 = vmul.f32 %v7955_v28, %v8047_v56  ;;  %v3094_v32 = vmul.f32 %v7955_v28, %v7800_v11  ;;  %s363_s15 = scalar_lea.vmem [#allocation9], %s10341_s24 }
0x193a   : > { %v8371_v44 = vpop.permute.xlu0 %4084 }
0x193b   : > { %10144 = vst [vmem:[#allocation112_spill] sm:$0xff] %v8371_v44  ;;  %v8373_v23 = vpop.permute.xlu1 %4024  ;;  %v8387_v44 = vld [vmem:[#allocation2] sm:$0xff] }
0x193c   : > { %10145 = vst [vmem:[#allocation113_spill] sm:$0xff] %v8373_v23  ;;  %4328 = vrot.lane.b32.xlu0 %v4321_v29, %s10141_s20  ;;  %3606 = vrot.lane.b32.xlu1 %v3599_v6, %s10135_s17  ;;  %10149 = vst [vmem:[#allocation114_spill] sm:$0xff] %v8387_v44  ;;  %v3093_v29 = vmul.f32 %v8387_v44, %v7800_v11  ;;  %v3117_v6 = vsel %vm653_vm5, %v7804_v33, %v7807_v62 }
0x193d   : > { %v4296_v23 = vmul.f32 %v8027_v47, %v7865_v43  ;;  %v3095_v33 = vmul.f32 %v7958_v25, %v7800_v11  ;;  %v3119_v47 = vsel %vm653_vm5, %v7701_v12, %v7812_v10 }
0x193e   : > { %v8381_v54 = vpop.permute.xlu0 %4088 }
0x193f   : > { %10146 = vst [vmem:[#allocation115_spill] sm:$0xff] %v8381_v54  ;;  %v8383_v60 = vpop.permute.xlu1 %4028  ;;  %v3652_v54 = vmul.f32 %v8047_v56, %v7696_v55 }
0x1940   : > { %10147 = vst [vmem:[#allocation117_spill] sm:$0xff] %v8383_v60  ;;  %3656 = vrot.lane.b32.xlu0 %v3650_v53, %s10148_s22  ;;  %4300 = vrot.lane.b32.xlu1 %v4294_v8, %s10135_s17  ;;  %v3118_v8 = vsel %vm653_vm5, %v7807_v62, %v7701_v12  ;;  %v3096_v62 = vmul.f32 %v7800_v11, %v7696_v55 }
0x1941   : > { %v3125_v22 = vadd.f32 %v3118_v8, %v3094_v32  ;;  %v3150_v12 = vsel %vm716_vm6, %v7713_v21, %v7824_v50  ;;  %v3126_v11 = vadd.f32 %v3119_v47, %v3095_v33  ;;  %v3180_v32 = vsel %vm1257_vm13, %v7832_v19, %v7756_v17 }
0x1942   : > { %v8398_v60 = vpop.permute.xlu0 %3419  ;;  %v3127_v1 = vadd.f32 %v7812_v10, %v3096_v62  ;;  %v4320_v19 = vmul.f32 %v8087_v0, %v8001_v57  ;;  %v8466_v62 = vmul.f32 %v7958_v25, %v8017_v30 }
0x1943   : > { %10150 = vst [vmem:[#allocation116_spill] sm:$0xff] %v8398_v60  ;;  %v8403_v53 = vpop.permute.xlu1 %3359  ;;  %v3124_v60 = vadd.f32 %v3117_v6, %v3093_v29  ;;  %v3181_v6 = vsel %vm1257_vm13, %v7756_v17, %v7835_v58  ;;  %v3157_v10 = vadd.f32 %v3150_v12, %v3126_v11  ;;  %v5054_v12 = vld [vmem:[#allocation2 + $0x38] sm:$0xff] }
0x1944   : > { %3660 = vrot.lane.b32.xlu0 %v3652_v54, %s10148_s22  ;;  %4304 = vrot.lane.b32.xlu1 %v4296_v23, %s10135_s17  ;;  %v3625_v23 = vmul.f32 %v7958_v25, %v8037_v14  ;;  %v4347_v54 = vmul.f32 %v8091_v48, %v8057_v5  ;;  %v3156_v14 = vadd.f32 %v3149_v7, %v3125_v22  ;;  %s4664_s17 = sshll.u32 %s363_s15, 4  ;;  %s9259_s17 = int_to_ptr.vmem [resolvable:$true] %s4664_s17 }
0x1945   : > { %v3155_v29 = vadd.f32 %v3148_v63, %v3124_v60  ;;  %v3158_v8 = vadd.f32 %v7824_v50, %v3127_v1  ;;  %v3676_v63 = vmul.f32 %v7955_v28, %v8017_v30  ;;  %v8452_v7 = vadd.f32 %v3181_v6, %v3157_v10 }
0x1946   : > { %v8429_v55 = vpop.permute.xlu0 %3423  ;;  %v3187_v33 = vadd.f32 %v3180_v32, %v3156_v14  ;;  %v4322_v60 = vmul.f32 %v8001_v57, %v7865_v43  ;;  %v3210_v50 = vsel %vm1320_vm14, %v7839_v45, %v7843_v37  ;;  %v8477_v45 = vmul.f32 %v8091_v48, %v8029_v46 }
0x1947   : > { %v8438_v21 = vpop.permute.xlu1 %3363  ;;  %v3186_v42 = vadd.f32 %v3179_v9, %v3155_v29  ;;  %v8455_v17 = vadd.f32 %v7835_v58, %v3158_v8  ;;  %v8471_v58 = vmul.f32 %v8087_v0, %v8029_v46  ;;  %v8481_v57 = vmul.f32 %v8029_v46, %v7865_v43 }
0x1948   : > { %4354 = vrot.lane.b32.xlu0 %v4347_v54, %s10148_s22  ;;  %3632 = vrot.lane.b32.xlu1 %v3625_v23, %s10141_s20  ;;  %v3678_v23 = vmul.f32 %v5054_v12, %v8017_v30  ;;  %v8485_v54 = vmul.f32 %v7955_v28, %v8043_v39  ;;  %v8488_v30 = vmul.f32 %v5054_v12, %v8043_v39  ;;  %v10154_v39 = vld [vmem:[#allocation84_spill] sm:$0xff] }
0x1949   : > { %10152 = vst [vmem:[#allocation118_spill] sm:$0xff] %v8481_v57  ;;  %v3217_v11 = vadd.f32 %v3210_v50, %v3186_v42  ;;  %v3651_v1 = vmul.f32 %v7958_v25, %v8047_v56  ;;  %v4346_v9 = vmul.f32 %v8087_v0, %v8057_v5  ;;  %v8496_v32 = vmul.f32 %v8057_v5, %v7865_v43 }
0x194a   : > { %v8450_v22 = vpop.permute.xlu0 %4115  ;;  %v8502_v29 = vmul.f32 %v8087_v0, %v8071_v15  ;;  %v4373_v14 = vmul.f32 %v8091_v48, %v8071_v15  ;;  %v8508_v6 = vmul.f32 %v8071_v15, %v7865_v43  ;;  %v3702_v56 = vmul.f32 %v7955_v28, %v8083_v36 }
0x194b   : > { %v8462_v47 = vpop.permute.xlu1 %4055  ;;  %v8516_v5 = vmul.f32 %v7958_v25, %v8083_v36  ;;  %v3704_v8 = vmul.f32 %v5054_v12, %v8083_v36  ;;  %v8521_v42 = vmul.f32 %v7955_v28, %v8097_v20  ;;  %v8527_v15 = vmul.f32 %v7958_v25, %v8097_v20 }
0x194c   : > { %3682 = vrot.lane.b32.xlu0 %v3676_v63, %s10151_s19  ;;  %4326 = vrot.lane.b32.xlu1 %v4320_v19, %s10141_s20  ;;  %v8530_v19 = vmul.f32 %v5054_v12, %v8097_v20  ;;  %v8534_v63 = vmul.f32 %v8091_v48, %v8107_v27  ;;  %v3813_v36 = vsel %vm653_vm5, %v8053_v26, %v8143_v41 }
0x194d   : > { %10153 = vst [vmem:[#allocation120_spill] sm:$0xff] %v8527_v15  ;;  %v3211_v28 = vsel %vm1320_vm14, %v7843_v37, %v8117_v52  ;;  %v3814_v25 = vsel %vm653_vm5, %v8143_v41, %v8065_v3  ;;  %v3815_v20 = vsel %vm653_vm5, %v8065_v3, %v8153_v13  ;;  %v3790_v26 = vmul.f32 %v8087_v0, %v8133_v59 }
0x194e   : > { %v8498_v46 = vpop.permute.xlu0 %4119  ;;  %v3791_v12 = vmul.f32 %v8091_v48, %v8133_v59  ;;  %v3792_v37 = vmul.f32 %v8133_v59, %v7865_v43  ;;  %v3845_v3 = vsel %vm716_vm6, %v8163_v49, %v8085_v24  ;;  %v3846_v0 = vsel %vm716_vm6, %v8085_v24, %v10154_v39  ;;  %v10156_v48 = vld [vmem:[#allocation77_spill] sm:$0xff]  ;;  %v10157_v24 = vld [vmem:[#allocation82_spill] sm:$0xff] }
0x194f   : > { %v8512_v10 = vpop.permute.xlu1 %4059  ;;  %v3821_v43 = vadd.f32 %v3814_v25, %v3790_v26  ;;  %v10158_v25 = vld [vmem:[#allocation78_spill] sm:$0xff]  ;;  %v10159_v26 = vld [vmem:[#allocation83_spill] sm:$0xff] }
0x1950   : > { %3686 = vrot.lane.b32.xlu0 %v3678_v23, %s10151_s19  ;;  %4330 = vrot.lane.b32.xlu1 %v4322_v60, %s10141_s20  ;;  %v3789_v60 = vmul.f32 %v8387_v44, %v8133_v59  ;;  %v3844_v23 = vsel %vm716_vm6, %v8075_v38, %v8163_v49  ;;  %v3218_v59 = vadd.f32 %v3211_v28, %v3187_v33 }
0x1951   : > { %v3822_v27 = vadd.f32 %v3815_v20, %v3791_v12  ;;  %v3823_v38 = vadd.f32 %v8153_v13, %v3792_v37  ;;  %v3876_v49 = vsel %vm1257_vm13, %v8183_v40, %v10156_v48  ;;  %v3852_v33 = vadd.f32 %v3845_v3, %v3821_v43  ;;  %v10162_v43 = vld [vmem:[#allocation90_spill] sm:$0xff] }
0x1952   : > { %v8550_v50 = vpop.permute.xlu0 %3448  ;;  %v3820_v44 = vadd.f32 %v3813_v36, %v3789_v60  ;;  %v10155_v36 = vld [vmem:[#allocation64_spill] sm:$0xff]  ;;  %v3877_v13 = vsel %vm1257_vm13, %v10156_v48, %v8193_v4  ;;  %v3906_v20 = vsel %vm1320_vm14, %v10158_v25, %v8213_v31 }
0x1953   : > { %v8561_v41 = vpop.permute.xlu1 %3390  ;;  %v3875_v60 = vsel %vm1257_vm13, %v10155_v36, %v8183_v40  ;;  %v3854_v28 = vadd.f32 %v10154_v39, %v3823_v38  ;;  %v3212_v40 = vsel %vm1320_vm14, %v8117_v52, %v8203_v16  ;;  %v3883_v39 = vadd.f32 %v3876_v49, %v3852_v33  ;;  %v10163_v36 = vld [vmem:[#allocation88_spill] sm:$0xff] }
0x1954   : > { %4380 = vrot.lane.b32.xlu0 %v4373_v14, %s10151_s19  ;;  %3658 = vrot.lane.b32.xlu1 %v3651_v1, %s10148_s22  ;;  %v3851_v15 = vadd.f32 %v3844_v23, %v3820_v44  ;;  %v3241_v14 = vsel %vm779_vm7, %v10157_v24, %v8233_v2  ;;  %v3853_v1 = vadd.f32 %v3846_v0, %v3822_v27  ;;  %v10161_v23 = vld [vmem:[#allocation79_spill] sm:$0xff]  ;;  %vm10170_vm13 = vcmask 850944  }
0x1955   : > { %v3272_v27 = vsel %vm834_vm8, %v10159_v26, %v8273_v18  ;;  %v3885_v48 = vadd.f32 %v8193_v4, %v3854_v28  ;;  %v3248_v12 = vadd.f32 %v3241_v14, %v3217_v11  ;;  %v3220_v52 = vadd.f32 %v8203_v16, %v8455_v17  ;;  %v10164_v16 = vld [vmem:[#allocation80_spill] sm:$0xff] }
0x1956   : > { %v8581_v57 = vpop.permute.xlu0 %3452  ;;  %v3882_v0 = vadd.f32 %v3875_v60, %v3851_v15  ;;  %v3884_v37 = vadd.f32 %v3877_v13, %v3853_v1  ;;  %v3907_v3 = vsel %vm1320_vm14, %v8213_v31, %v10161_v23  ;;  %v3303_v38 = vsel %vm887_vm9, %v10162_v43, %v8313_v35  ;;  %v10166_v1 = vld [vmem:[#allocation81_spill] sm:$0xff]  ;;  %v10167_v13 = vld [vmem:[#allocation86_spill] sm:$0xff]  ;;  %v10174_v43 = vld [vmem:[#allocation108_spill] sm:$0xff] }
0x1957   : > { %v8587_v44 = vpop.permute.xlu1 %3394  ;;  %v3908_v4 = vsel %vm1320_vm14, %v10161_v23, %v10163_v36  ;;  %v3279_v11 = vadd.f32 %v3272_v27, %v3248_v12  ;;  %v3242_v31 = vsel %vm779_vm7, %v8233_v2, %v10164_v16  ;;  %v3251_v17 = vadd.f32 %v8243_v61, %v3220_v52  ;;  %v10165_v2 = vld [vmem:[#allocation92_spill] sm:$0xff]  ;;  %v10172_v12 = vld [vmem:[#allocation85_spill] sm:$0xff] }
0x1958   : > { %3708 = vrot.lane.b32.xlu0 %v3702_v56, %s10160_s6  ;;  %4352 = vrot.lane.b32.xlu1 %v4346_v9, %s10148_s22  ;;  %v3219_v9 = vadd.f32 %v3212_v40, %v8452_v7  ;;  %v3913_v15 = vadd.f32 %v3906_v20, %v3882_v0  ;;  %v3334_v49 = vsel %vm1569_vm15, %v8271_v34, %v8353_v51  ;;  %v10173_v23 = vld [vmem:[#allocation105_spill] sm:$0xff]  ;;  %vm10175_vm14 = vcmask 719872  }
0x1959   : > { %v3914_v7 = vadd.f32 %v3907_v3, %v3883_v39  ;;  %v3916_v24 = vadd.f32 %v10163_v36, %v3885_v48  ;;  %v3243_v14 = vsel %vm779_vm7, %v10164_v16, %v8243_v61  ;;  %v3310_v33 = vadd.f32 %v3303_v38, %v3279_v11  ;;  %v10171_v61 = vld [vmem:[#allocation95_spill] sm:$0xff]  ;;  %v10176_v16 = vld [vmem:[#allocation100_spill] sm:$0xff] }
0x195a   : > { %v8609_v56 = vpop.permute.xlu0 %4146  ;;  %v3937_v28 = vsel %vm779_vm7, %v10166_v1, %v10165_v2  ;;  %v3938_v34 = vsel %vm779_vm7, %v10165_v2, %v10167_v13  ;;  %v3915_v26 = vadd.f32 %v3908_v4, %v3884_v37  ;;  %v3249_v27 = vadd.f32 %v3242_v31, %v3218_v59  ;;  %v10177_v31 = vld [vmem:[#allocation87_spill] sm:$0xff]  ;;  %v10180_v1 = vld [vmem:[#allocation116_spill] sm:$0xff] }
0x195b   : > { %v8615_v60 = vpop.permute.xlu1 %4086  ;;  %v3939_v0 = vsel %vm779_vm7, %v10167_v13, %v10171_v61  ;;  %v3341_v39 = vadd.f32 %v3334_v49, %v3310_v33  ;;  %v3273_v52 = vsel %vm834_vm8, %v8273_v18, %v10172_v12  ;;  %v3396_v38 = vsel %vm10175_vm14, %v10174_v43, %v8561_v41  ;;  %v10178_v49 = vld [vmem:[#allocation111_spill] sm:$0xff]  ;;  %v10188_v43 = vld [vmem:[#allocation94_spill] sm:$0xff]  ;;  %vm10189_vm14 = vmmov %vm10181_vm4 }
0x195c   : > { %3712 = vrot.lane.b32.xlu0 %v3704_v8, %s10160_s6  ;;  %4356 = vrot.lane.b32.xlu1 %v8496_v32, %s10148_s22  ;;  %v10168_v8 = vld [vmem:[#allocation96_spill] sm:$0xff]  ;;  %v10169_v32 = vld [vmem:[#allocation101_spill] sm:$0xff]  ;;  %v3250_v59 = vadd.f32 %v3243_v14, %v3219_v9  ;;  %v3944_v37 = vadd.f32 %v3937_v28, %v3913_v15  ;;  %v3945_v36 = vadd.f32 %v3938_v34, %v3914_v7  ;;  %vm10195_vm0 = vmmov %vm10189_vm14 }
0x195d   : > { %v3282_v40 = vadd.f32 %v10168_v8, %v3251_v17  ;;  %v3365_v25 = vsel %vm10170_vm13, %v10169_v32, %v8403_v53  ;;  %v3947_v11 = vadd.f32 %v10171_v61, %v3916_v24  ;;  %v3274_v18 = vsel %vm834_vm8, %v10172_v12, %v10168_v8  ;;  %v10179_v9 = vld [vmem:[#allocation89_spill] sm:$0xff]  ;;  %vm10182_vm13 = vmmov %vm10181_vm4 }
0x195e   : > { %v8641_v20 = vpop.permute.xlu0 %3474  ;;  %v3372_v4 = vadd.f32 %v3365_v25, %v3341_v39  ;;  %v3968_v17 = vsel %vm834_vm8, %v10177_v31, %v10176_v16  ;;  %v3946_v2 = vadd.f32 %v3939_v0, %v3915_v26  ;;  %v3969_v15 = vsel %vm834_vm8, %v10176_v16, %v10179_v9  ;;  %v10185_v26 = vld [vmem:[#allocation91_spill] sm:$0xff]  ;;  %v10186_v0 = vld [vmem:[#allocation106_spill] sm:$0xff] }
0x195f   : > { %v8646_v48 = vpop.permute.xlu1 %4090  ;;  %v3313_v3 = vadd.f32 %v10173_v23, %v3282_v40  ;;  %v3281_v34 = vadd.f32 %v3274_v18, %v3250_v59  ;;  %v3975_v8 = vadd.f32 %v3968_v17, %v3944_v37  ;;  %v10184_v40 = vld [vmem:[#allocation99_spill] sm:$0xff]  ;;  %v3305_v61 = vsel %vm887_vm9, %v10185_v26, %v10173_v23  ;;  %v10190_v17 = vld [vmem:[#allocation98_spill] sm:$0xff] }
0x1960   : > { %4406 = vrot.lane.b32.xlu0 %v8477_v45, %s10160_s6  ;;  %3684 = vrot.lane.b32.xlu1 %v8466_v62, %s10151_s19  ;;  %v3280_v62 = vadd.f32 %v3273_v52, %v3249_v27  ;;  %v3403_v7 = vadd.f32 %v3396_v38, %v3372_v4  ;;  %v3970_v32 = vsel %vm834_vm8, %v10179_v9, %v10184_v40  ;;  %v10191_v9 = vld [vmem:[#allocation109_spill] sm:$0xff] }
0x1961   : > { %v3344_v33 = vadd.f32 %v10178_v49, %v3313_v3  ;;  %v3304_v27 = vsel %vm887_vm9, %v8313_v35, %v10185_v26  ;;  %v3976_v52 = vadd.f32 %v3969_v15, %v3945_v36  ;;  %v3978_v3 = vadd.f32 %v10184_v40, %v3947_v11  ;;  %v10199_v26 = vld [vmem:[#allocation110_spill] sm:$0xff] }
0x1962   : > { %v8667_v45 = vpop.permute.xlu0 %3478  ;;  %v4000_v38 = vsel %vm887_vm9, %v10186_v0, %v10188_v43  ;;  %v3977_v37 = vadd.f32 %v3970_v32, %v3946_v2  ;;  %v3311_v36 = vadd.f32 %v3304_v27, %v3280_v62  ;;  %v3312_v11 = vadd.f32 %v3305_v61, %v3281_v34  ;;  %v10192_v62 = vld [vmem:[#allocation103_spill] sm:$0xff]  ;;  %v10196_v34 = vld [vmem:[#allocation113_spill] sm:$0xff]  ;;  %v10198_v32 = vld [vmem:[#allocation102_spill] sm:$0xff] }
0x1963   : > { %v3422_v24 = vpop.permute.xlu1 %3421  ;;  %v3375_v14 = vadd.f32 %v8438_v21, %v3344_v33  ;;  %v4007_v31 = vadd.f32 %v4000_v38, %v3976_v52  ;;  %v3335_v33 = vsel %vm1569_vm15, %v8353_v51, %v10190_v17 }
0x1964   : > { %v3427_v28 = vsel %vm10181_vm4, %v10180_v1, %v3422_v24  ;;  %v8677_v13 = vsel %vm10182_vm13, %v3422_v24, %v8429_v55  ;;  %3734 = vrot.lane.b32.xlu0 %v8521_v42, %s10183_s27  ;;  %4378 = vrot.lane.b32.xlu1 %v8502_v29, %s10151_s19  ;;  %v10187_v42 = vld [vmem:[#allocation93_spill] sm:$0xff]  ;;  %vm10193_vm4 = vcmask 850944   ;;  %v4009_v1 = vadd.f32 %v10191_v9, %v3978_v3 }
0x1965   : > { %v3434_v25 = vadd.f32 %v3427_v28, %v3403_v7  ;;  %v3999_v39 = vsel %vm887_vm9, %v10187_v42, %v10186_v0  ;;  %v3406_v29 = vadd.f32 %v8587_v44, %v3375_v14  ;;  %v3366_v15 = vsel %vm10193_vm4, %v8403_v53, %v10192_v62  ;;  %vm10194_vm13 = vmmov %vm10193_vm4  ;;  %v10202_v42 = vld [vmem:[#allocation104_spill] sm:$0xff] }
0x1966   : > { %v8696_v12 = vpop.permute.xlu0 %4172  ;;  %v4006_v18 = vadd.f32 %v3999_v39, %v3975_v8  ;;  %v3367_v51 = vsel %vm10194_vm13, %v10192_v62, %v8438_v21  ;;  %v3342_v21 = vadd.f32 %v3335_v33, %v3311_v36  ;;  %v10197_v8 = vld [vmem:[#allocation97_spill] sm:$0xff]  ;;  %v4061_v39 = vsel %vm10194_vm13, %v10202_v42, %v8462_v47 }
0x1967   : > { %v3460_v35 = vadd.f32 %v8550_v50, %v3434_v25  ;;  %v3426_v59 = vpop.permute.xlu1 %3425  ;;  %v4030_v40 = vsel %vm1569_vm15, %v10197_v8, %v10196_v34  ;;  %v4031_v25 = vsel %vm1569_vm15, %v10196_v34, %v10198_v32  ;;  %v10208_v36 = vld [vmem:[#allocation117_spill] sm:$0xff] }
0x1968   : > { %v3429_v23 = vsel %vm10189_vm14, %v8429_v55, %v3426_v59  ;;  %v3437_v4 = vadd.f32 %v3426_v59, %v3406_v29  ;;  %3738 = vrot.lane.b32.xlu0 %v8530_v19, %s10183_s27  ;;  %4382 = vrot.lane.b32.xlu1 %v8508_v6, %s10151_s19  ;;  %v3336_v55 = vsel %vm1569_vm15, %v10190_v17, %v10178_v49  ;;  %s5125_s19 = scalar_lea.vmem %s9259_s17, 384 }
0x1969   : > { %v3486_v16 = vadd.f32 %v8641_v20, %v3460_v35  ;;  %v4001_v6 = vsel %vm887_vm9, %v10188_v43, %v10191_v9  ;;  %v3343_v28 = vadd.f32 %v3336_v55, %v3312_v11  ;;  %v3373_v61 = vadd.f32 %v3366_v15, %v3342_v21  ;;  %v10203_v43 = vld [vmem:[#allocation107_spill] sm:$0xff]  ;;  %p5126_p4 = scmp.ne.s32.totalorder %s9259_s17, %s5125_s19 }
0x196a   : > { %v3463_v2 = vadd.f32 %v8581_v57, %v3437_v4  ;;  %v8717_v19 = vpop.permute.xlu0 %3500  ;;  %v4037_v3 = vadd.f32 %v4030_v40, %v4006_v18  ;;  %v4040_v11 = vadd.f32 %v10208_v36, %v4009_v1  ;;  %v10209_v18 = vld [vmem:[#allocation115_spill] sm:$0xff] }
0x196b   : > { %v3512_v7 = vadd.f32 %v8717_v19, %v3486_v16  ;;  %v4118_v24 = vpop.permute.xlu1 %4117  ;;  %v3374_v0 = vadd.f32 %v3367_v51, %v3343_v28  ;;  %p5127_p6 = pnand %p5126_p4, %p5396_p12 }
0x196c   : > { %v4123_v49 = vsel %vm10189_vm14, %v8450_v22, %v4118_v24  ;;  %v4124_v14 = vsel %vm10195_vm0, %v4118_v24, %v8498_v46  ;;  %4432 = vrot.lane.b32.xlu0 %v8534_v63, %s10183_s27  ;;  %3710 = vrot.lane.b32.xlu1 %v8516_v5, %s10160_s6  ;;  %v3489_v53 = vadd.f32 %v8667_v45, %v3463_v2  ;;  %vm10200_vm0 = vcmask 719872   ;;  %vm10204_vm14 = vmmov %vm10194_vm13 }
0x196d   : > { %v4008_v22 = vadd.f32 %v4001_v6, %v3977_v37  ;;  %v3397_v63 = vsel %vm10200_vm0, %v8561_v41, %v10199_v26  ;;  %vm10201_vm4 = vmmov %vm10200_vm0  ;;  %v4062_v41 = vsel %vm10204_vm14, %v8462_v47, %v10203_v43  ;;  %vm10205_vm0 = vcmask 711680   ;;  %v10207_v37 = vld [vmem:[#allocation112_spill] sm:$0xff]  ;;  %p5128_p8 = pneg %p5127_p6 }
0x196e   : > { %v3398_v5 = vsel %vm10201_vm4, %v10199_v26, %v8587_v44  ;;  %v8751_v27 = vpop.permute.xlu0 %3504  ;;  %v4038_v44 = vadd.f32 %v4031_v25, %v4007_v31  ;;  %v3404_v35 = vadd.f32 %v3397_v63, %v3373_v61  ;;  %v4092_v4 = vsel %vm10201_vm4, %v10207_v37, %v8615_v60  ;;  %vm10210_vm13 = vmmov %vm10201_vm4  ;;  %v10216_v26 = vld [vmem:[#allocation75_spill] sm:$0xff]  ;;  %v10220_v37 = vld [vmem:[#allocation57_spill] sm:$0xff] }
0x196f   : > { %v3515_v29 = vadd.f32 %v8751_v27, %v3489_v53  ;;  %v4122_v52 = vpop.permute.xlu1 %4121  ;;  %v3405_v59 = vadd.f32 %v3398_v5, %v3374_v0  ;;  %v4032_v47 = vsel %vm1569_vm15, %v10198_v32, %v10208_v36  ;;  %v4063_v31 = vsel %vm10204_vm14, %v10203_v43, %v8512_v10  ;;  %vm10214_vm15 = vmmov %vm10201_vm4  ;;  %v10217_v63 = vld [vmem:[#allocation19_spill] sm:$0xff]  ;;  %v5055_v43 = vld [vmem:[#allocation3 + $0x38] sm:$0xff] }
0x1970   : > { %v4125_v38 = vsel %vm10205_vm0, %v8498_v46, %v4122_v52  ;;  %3760 = vrot.lane.b32.xlu0 %v8485_v54, %s10206_s25  ;;  %4404 = vrot.lane.b32.xlu1 %v8471_v58, %s10160_s6  ;;  %v4068_v46 = vadd.f32 %v4061_v39, %v4037_v3  ;;  %v4093_v54 = vsel %vm10210_vm13, %v8615_v60, %v10209_v18  ;;  %v10211_v60 = vld [vmem:[#allocation118_spill] sm:$0xff]  ;;  %vm10218_vm0 = vcmask 695296  }
0x1971   : > { %v4069_v58 = vadd.f32 %v4062_v41, %v4038_v44  ;;  %v3435_v17 = vadd.f32 %v8677_v13, %v3404_v35  ;;  %v3436_v33 = vadd.f32 %v3429_v23, %v3405_v59  ;;  %v4039_v62 = vadd.f32 %v4032_v47, %v4008_v22  ;;  %v10212_v13 = vld [vmem:[#allocation76_spill] sm:$0xff]  ;;  %v10213_v23 = vld [vmem:[#allocation74_spill] sm:$0xff]  ;;  %vm10219_vm4 = vmmov %vm10218_vm0 }
0x1972   : > { %v8776_v16 = vpop.permute.xlu0 %4198  ;;  %v4099_v2 = vadd.f32 %v4092_v4, %v4068_v46  ;;  %v4451_v53 = vmul.f32 %v10213_v23, %v10212_v13  ;;  %v4071_v1 = vadd.f32 %v8512_v10, %v4040_v11  ;;  %v10215_v10 = vld [vmem:[#allocation120_spill] sm:$0xff]  ;;  %v4424_v5 = vmul.f32 %v10217_v63, %v10216_v26  ;;  %vm10221_vm13 = vmmov %vm10218_vm0 }
0x1973   : > { %v3451_v55 = vpop.permute.xlu1 %3450  ;;  %v4100_v15 = vadd.f32 %v4093_v54, %v4069_v58  ;;  %v4426_v41 = vmul.f32 %v5055_v43, %v10216_v26  ;;  %vm10222_vm14 = vmmov %vm10218_vm0 }
0x1974   : > { %v3454_v9 = vsel %vm1046_vm12, %v8550_v50, %v3451_v55  ;;  %v3455_v6 = vsel %vm1046_vm12, %v3451_v55, %v8581_v57  ;;  %3764 = vrot.lane.b32.xlu0 %v8488_v30, %s10206_s25  ;;  %4408 = vrot.lane.b32.xlu1 %v10211_v60, %s10160_s6  ;;  %v4094_v50 = vsel %vm10214_vm15, %v10209_v18, %v8646_v48  ;;  %vm10223_vm15 = vcmask 687104   ;;  %s5254_s6 = smov [#allocation9]  }
0x1975   : > { %v3461_v51 = vadd.f32 %v3454_v9, %v3435_v17  ;;  %v3462_v24 = vadd.f32 %v3455_v6, %v3436_v33  ;;  %v4130_v57 = vadd.f32 %v4123_v49, %v4099_v2  ;;  %v4070_v30 = vadd.f32 %v4063_v31, %v4039_v62 }
0x1976   : > { %v8796_v21 = vpop.permute.xlu0 %3526  ;;  %v4131_v28 = vadd.f32 %v4124_v14, %v4100_v15  ;;  %v4102_v40 = vadd.f32 %v8646_v48, %v4071_v1  ;;  %v4452_v2 = vmul.f32 %v5055_v43, %v10212_v13 }
0x1977   : > { %v3538_v34 = vadd.f32 %v8796_v21, %v3512_v7  ;;  %v4145_v8 = vpop.permute.xlu1 %4144  ;;  %v4101_v25 = vadd.f32 %v4094_v50, %v4070_v30 }
0x1978   : > { %v4150_v22 = vsel %vm1046_vm12, %v4145_v8, %v8609_v56  ;;  %v4156_v32 = vadd.f32 %v4145_v8, %v4130_v57  ;;  %4458 = vrot.lane.b32.xlu0 %v4451_v53, %s10206_s25  ;;  %3736 = vrot.lane.b32.xlu1 %v10215_v10, %s10183_s27  ;;  %v4133_v14 = vadd.f32 %v4122_v52, %v4102_v40 }
0x1979   : > { %v4157_v49 = vadd.f32 %v4150_v22, %v4131_v28  ;;  %v4132_v7 = vadd.f32 %v4125_v38, %v4101_v25 }
0x197a   : > { %v3531_v61 = vpop.permute.xlu0 %3530 }
0x197b   : > { %v3541_v0 = vadd.f32 %v3531_v61, %v3515_v29  ;;  %v4149_v42 = vpop.permute.xlu1 %4148 }
0x197c   : > { %v4151_v48 = vsel %vm1046_vm12, %v8609_v56, %v4149_v42  ;;  %v4159_v39 = vadd.f32 %v4149_v42, %v4133_v14  ;;  %4430 = vrot.lane.b32.xlu1 %v4424_v5, %s10183_s27  ;;  %v5056_v56 = vld [vmem:[#allocation2 + $0x30] sm:$0xff] }
0x197d   : > { %v4158_v3 = vadd.f32 %v4151_v48, %v4132_v7  ;;  %v3755_v4 = vmul.f32 %v5056_v56, %v10220_v37 }
0x197e   : > { %v4225_v44 = vpop.permute.xlu0 %4224 }
0x197f   : > { %v3477_v35 = vpop.permute.xlu1 %3476 }
0x1980   : > { %v3480_v59 = vsel %vm10218_vm0, %v8641_v20, %v3477_v35  ;;  %v3481_v52 = vsel %vm10219_vm4, %v3477_v35, %v8667_v45  ;;  %4434 = vrot.lane.b32.xlu1 %v4426_v41, %s10183_s27  ;;  %v4450_v45 = vmul.f32 %v10217_v63, %v10212_v13  ;;  %vm10224_vm0 = vmmov %vm10223_vm15  ;;  %s5129_s27 = sshll.u32 %s5254_s6, 4  ;;  %s5130_s27 = int_to_ptr.vmem [resolvable:$false] %s5129_s27 }
0x1981   : > { %v3487_v29 = vadd.f32 %v3480_v59, %v3461_v51  ;;  %v3488_v38 = vadd.f32 %v3481_v52, %v3462_v24  ;;  %vm10225_vm4 = vmmov %vm10224_vm0  ;;  %p5132_p10 = scmp.lt.s32.totalorder %s9259_s17, %s5130_s27 }
0x1982   : > { %v3553_v36 = vpop.permute.xlu0 %3552 }
0x1983   : > { %v3564_v47 = vadd.f32 %v3553_v36, %v3538_v34  ;;  %v4171_v11 = vpop.permute.xlu1 %4170 }
0x1984   : > { %v4176_v46 = vsel %vm10221_vm13, %v4171_v11, %v8696_v12  ;;  %v4182_v18 = vadd.f32 %v4171_v11, %v4156_v32  ;;  %3762 = vrot.lane.b32.xlu1 %v3755_v4, %s10206_s25  ;;  %vm10226_vm13 = vmmov %vm10224_vm0 }
0x1985   : > { %v4183_v20 = vadd.f32 %v4176_v46, %v4157_v49 }
0x1986   : > { %v3557_v54 = vpop.permute.xlu0 %3556 }
0x1987   : > { %v3567_v58 = vadd.f32 %v3557_v54, %v3541_v0  ;;  %v4175_v31 = vpop.permute.xlu1 %4174 }
0x1988   : > { %v4177_v17 = vsel %vm10222_vm14, %v8696_v12, %v4175_v31  ;;  %v4185_v33 = vadd.f32 %v4175_v31, %v4159_v39  ;;  %4456 = vrot.lane.b32.xlu1 %v4450_v45, %s10206_s25  ;;  %vm10227_vm14 = vcmask 556032  }
0x1989   : > { %v4184_v55 = vadd.f32 %v4177_v17, %v4158_v3 }
0x198a   : > { %v4251_v9 = vpop.permute.xlu0 %4250 }
0x198b   : > { %v3503_v6 = vpop.permute.xlu1 %3502 }
0x198c   : > { %v3506_v60 = vsel %vm10223_vm15, %v8717_v19, %v3503_v6  ;;  %v3507_v62 = vsel %vm10224_vm0, %v3503_v6, %v8751_v27  ;;  %4460 = vrot.lane.b32.xlu1 %v4452_v2, %s10206_s25  ;;  %vm10228_vm15 = vmmov %vm10227_vm14  ;;  %s5131_s25 = scalar_lea.vmem %s5130_s27, 768 }
0x198d   : > { %v3513_v15 = vadd.f32 %v3506_v60, %v3487_v29  ;;  %v3514_v51 = vadd.f32 %v3507_v62, %v3488_v38  ;;  %vm10229_vm0 = vmmov %vm10227_vm14  ;;  %p5133_p11 = scmp.lt.s32.totalorder %s5131_s25, %s5125_s19 }
0x198e   : > { %v3579_v24 = vpop.permute.xlu0 %3578 }
0x198f   : > { %v8831_v12 = vadd.f32 %v3579_v24, %v3564_v47  ;;  %v4197_v23 = vpop.permute.xlu1 %4196  ;;  %p5134_p3 = por %p5133_p11, %p5132_p10 }
0x1990   : > { %v4202_v53 = vsel %vm10225_vm4, %v4197_v23, %v8776_v16  ;;  %v4208_v13 = vadd.f32 %v4197_v23, %v4182_v18  ;;  %vm10230_vm4 = vmmov %vm10229_vm0 }
0x1991   : > { %v4209_v1 = vadd.f32 %v4202_v53, %v4183_v20  ;;  %p5135_p7 = pnand %p5134_p3, %p5128_p8 }
0x1992   : > { %v3583_v50 = vpop.permute.xlu0 %3582 }
0x1993   : > { %v3593_v57 = vadd.f32 %v3583_v50, %v3567_v58  ;;  %v4201_v30 = vpop.permute.xlu1 %4200 }
0x1994   : > { %v4203_v19 = vsel %vm10226_vm13, %v8776_v16, %v4201_v30  ;;  %v4211_v27 = vadd.f32 %v4201_v30, %v4185_v33  ;;  %vm10231_vm13 = vcmask 547840  }
0x1995   : > { %v4210_v28 = vadd.f32 %v4203_v19, %v4184_v55 }
0x1996   : > { %v4277_v34 = vpop.permute.xlu0 %4276 }
0x1997   : > { %v3529_v8 = vpop.permute.xlu1 %3528 }
0x1998   : > { %v3532_v40 = vsel %vm10227_vm14, %v8796_v21, %v3529_v8  ;;  %v3533_v22 = vsel %vm10228_vm15, %v3529_v8, %v3531_v61  ;;  %vm10232_vm14 = vmmov %vm10231_vm13  ;;  %v10240_v8 = vld [vmem:[#allocation38_spill] sm:$0xff] }
0x1999   : > { %v3539_v32 = vadd.f32 %v3532_v40, %v3513_v15  ;;  %v3540_v10 = vadd.f32 %v3533_v22, %v3514_v51  ;;  %vm10233_vm15 = vmmov %vm10231_vm13  ;;  %v10241_v40 = vld [vmem:[#allocation114_spill] sm:$0xff] }
0x199a   : > { %v8840_v25 = vpop.permute.xlu0 %3604  ;;  %v2613_v22 = vmul.f32 %v10241_v40, %v10240_v8 }
0x199b   : > { %v4223_v49 = vpop.permute.xlu1 %4222 }
0x199c   : > { %v4228_v26 = vsel %vm10229_vm0, %v4223_v49, %v4225_v44  ;;  %v4234_v63 = vadd.f32 %v4223_v49, %v4208_v13  ;;  %vm10234_vm0 = vmmov %vm10231_vm13  ;;  %v10243_v49 = vld [vmem:[#allocation67_spill] sm:$0xff] }
0x199d   : > { %v4235_v5 = vadd.f32 %v4228_v26, %v4209_v1 }
0x199e   : > { %v8843_v14 = vpop.permute.xlu0 %3608 }
0x199f   : > { %v8846_v16 = vadd.f32 %v8843_v14, %v3593_v57  ;;  %v4227_v7 = vpop.permute.xlu1 %4226 }
0x19a0   : > { %v4229_v0 = vsel %vm10230_vm4, %v4225_v44, %v4227_v7  ;;  %v4237_v21 = vadd.f32 %v4227_v7, %v4211_v27  ;;  %vm10235_vm4 = vcmask 539648   ;;  %v5057_v7 = vld [vmem:[#allocation2 + $0x8] sm:$0xff] }
0x19a1   : > { %v4236_v42 = vadd.f32 %v4229_v0, %v4210_v28  ;;  %v2614_v0 = vmul.f32 %v5057_v7, %v10240_v8  ;;  %v10255_v7 = vld [vmem:[#allocation68_spill] sm:$0xff] }
0x19a2   : > { %v8849_v61 = vpop.permute.xlu0 %4302 }
0x19a3   : > { %v3555_v48 = vpop.permute.xlu1 %3554 }
0x19a4   : > { %v3558_v39 = vsel %vm10231_vm13, %v3553_v36, %v3555_v48  ;;  %v3559_v3 = vsel %vm10232_vm14, %v3555_v48, %v3557_v54  ;;  %vm10236_vm13 = vmmov %vm10235_vm4 }
0x19a5   : > { %v3565_v43 = vadd.f32 %v3558_v39, %v3539_v32  ;;  %v3566_v41 = vadd.f32 %v3559_v3, %v3540_v10  ;;  %vm10237_vm14 = vmmov %vm10235_vm4  ;;  %v10242_v10 = vld [vmem:[#allocation47_spill] sm:$0xff] }
0x19a6   : > { %v8853_v35 = vpop.permute.xlu0 %3630  ;;  %v2637_v26 = vsel %vm653_vm5, %v10243_v49, %v10242_v10  ;;  %v5058_v39 = vld [vmem:[#allocation2 + $0x10] sm:$0xff] }
0x19a7   : > { %v4249_v59 = vpop.permute.xlu1 %4248  ;;  %v2615_v3 = vmul.f32 %v5058_v39, %v10240_v8  ;;  %v10256_v39 = vld [vmem:[#allocation32_spill] sm:$0xff] }
0x19a8   : > { %v4254_v52 = vsel %vm10233_vm15, %v4249_v59, %v4251_v9  ;;  %v4260_v29 = vadd.f32 %v4249_v59, %v4234_v63  ;;  %vm10238_vm15 = vmmov %vm10235_vm4  ;;  %v10244_v63 = vld [vmem:[#allocation60_spill] sm:$0xff] }
0x19a9   : > { %v4261_v38 = vadd.f32 %v4254_v52, %v4235_v5  ;;  %v2638_v5 = vsel %vm653_vm5, %v10242_v10, %v10244_v63  ;;  %v10246_v59 = vld [vmem:[#allocation44_spill] sm:$0xff]  ;;  %v10253_v10 = vld [vmem:[#allocation69_spill] sm:$0xff] }
0x19aa   : > { %v8856_v56 = vpop.permute.xlu0 %3634  ;;  %v10247_v52 = vld [vmem:[#allocation56_spill] sm:$0xff] }
0x19ab   : > { %v4253_v44 = vpop.permute.xlu1 %4252 }
0x19ac   : > { %v4255_v37 = vsel %vm10234_vm0, %v4251_v9, %v4253_v44  ;;  %v4263_v4 = vadd.f32 %v4253_v44, %v4237_v21  ;;  %vm10239_vm0 = vcmask 531456   ;;  %v10245_v21 = vld [vmem:[#allocation66_spill] sm:$0xff] }
0x19ad   : > { %v4262_v47 = vadd.f32 %v4255_v37, %v4236_v42  ;;  %v2639_v42 = vsel %vm653_vm5, %v10244_v63, %v10245_v21  ;;  %v2644_v37 = vadd.f32 %v2637_v26, %v2613_v22 }
0x19ae   : > { %v8859_v11 = vpop.permute.xlu0 %4328 }
0x19af   : > { %v3581_v36 = vpop.permute.xlu1 %3580 }
0x19b0   : > { %v3584_v46 = vsel %vm10235_vm4, %v3579_v24, %v3581_v36  ;;  %v3585_v18 = vsel %vm10236_vm13, %v3581_v36, %v3583_v50  ;;  %vm10265_vm4 = vcmask 719872  }
0x19b1   : > { %v8863_v20 = vadd.f32 %v3584_v46, %v3565_v43  ;;  %v8865_v45 = vadd.f32 %v3585_v18, %v3566_v41  ;;  %v5059_v43 = vld [vmem:[#allocation2 + $0x18] sm:$0xff]  ;;  %v2646_v18 = vadd.f32 %v2639_v42, %v2615_v3  ;;  %vm10276_vm13 = vmmov %vm10265_vm4 }
0x19b2   : > { %v8867_v54 = vpop.permute.xlu0 %3656  ;;  %v2616_v41 = vmul.f32 %v5059_v43, %v10240_v8 }
0x19b3   : > { %v4275_v58 = vpop.permute.xlu1 %4274 }
0x19b4   : > { %v4280_v31 = vsel %vm10237_vm14, %v4275_v58, %v4277_v34  ;;  %v8870_v17 = vadd.f32 %v4275_v58, %v4260_v29  ;;  %v2668_v29 = vsel %vm716_vm6, %v10247_v52, %v10246_v59  ;;  %v2647_v58 = vadd.f32 %v10245_v21, %v2616_v41  ;;  %vm10307_vm14 = vmmov %vm10239_vm0 }
0x19b5   : > { %v4287_v33 = vadd.f32 %v4280_v31, %v4261_v38  ;;  %v10248_v38 = vld [vmem:[#allocation39_spill] sm:$0xff]  ;;  %v10250_v31 = vld [vmem:[#allocation49_spill] sm:$0xff]  ;;  %v2675_v8 = vadd.f32 %v2668_v29, %v2644_v37 }
0x19b6   : > { %v8875_v6 = vpop.permute.xlu0 %3660  ;;  %v2669_v44 = vsel %vm716_vm6, %v10246_v59, %v10248_v38  ;;  %v10259_v29 = vld [vmem:[#allocation33_spill] sm:$0xff] }
0x19b7   : > { %v4279_v55 = vpop.permute.xlu1 %4278 }
0x19b8   : > { %v4281_v2 = vsel %vm10238_vm15, %v4277_v34, %v4279_v55  ;;  %v8873_v9 = vadd.f32 %v4279_v55, %v4263_v4  ;;  %v2645_v4 = vadd.f32 %v2638_v5, %v2614_v0  ;;  %v10254_v5 = vld [vmem:[#allocation58_spill] sm:$0xff]  ;;  %vm10308_vm15 = vmmov %vm10239_vm0 }
0x19b9   : > { %v8877_v60 = vadd.f32 %v4281_v2, %v4262_v47  ;;  %v10249_v47 = vld [vmem:[#allocation43_spill] sm:$0xff]  ;;  %v2726_v0 = vsel %vm834_vm8, %v10255_v7, %v10254_v5  ;;  %v2727_v3 = vsel %vm834_vm8, %v10254_v5, %v10256_v39 }
0x19ba   : > { %v8881_v15 = vpop.permute.xlu0 %4354  ;;  %v2670_v36 = vsel %vm716_vm6, %v10248_v38, %v10249_v47  ;;  %v10252_v2 = vld [vmem:[#allocation31_spill] sm:$0xff]  ;;  %v2676_v22 = vadd.f32 %v2669_v44, %v2645_v4  ;;  %v2678_v63 = vadd.f32 %v10249_v47, %v2647_v58  ;;  %v10260_v38 = vld [vmem:[#allocation40_spill] sm:$0xff] }
0x19bb   : > { %v8879_v62 = vpop.permute.xlu1 %3606  ;;  %v2701_v49 = vsel %vm779_vm7, %v10252_v2, %v10253_v10  ;;  %v2677_v26 = vadd.f32 %v2670_v36, %v2646_v18  ;;  %v2752_v44 = vsel %vm887_vm9, %v10260_v38, %v10259_v29  ;;  %v10261_v47 = vld [vmem:[#allocation28_spill] sm:$0xff] }
0x19bc   : > { %v2709_v52 = vadd.f32 %v10253_v10, %v2678_v63  ;;  %v2753_v36 = vsel %vm887_vm9, %v10259_v29, %v10261_v47 }
0x19bd   : > { %v2708_v59 = vadd.f32 %v2701_v49, %v2677_v26  ;;  %v10266_v49 = vld [vmem:[#allocation46_spill] sm:$0xff] }
0x19be   : > { %v8892_v13 = vpop.permute.xlu0 %3682  ;;  %v2735_v18 = vadd.f32 %v10256_v39, %v2709_v52  ;;  %v10267_v26 = vld [vmem:[#allocation34_spill] sm:$0xff]  ;;  %v5060_v39 = vld [vmem:[#allocation3 + $0x10] sm:$0xff] }
0x19bf   : > { %v8883_v51 = vpop.permute.xlu1 %4300  ;;  %v2734_v58 = vadd.f32 %v2727_v3, %v2708_v59  ;;  %v2879_v63 = vsel %vm653_vm5, %v10267_v26, %v10266_v49  ;;  %v5061_v52 = vld [vmem:[#allocation3 + $0x8] sm:$0xff] }
0x19c0   : > { %v4306_v24 = vsel %vm10239_vm0, %v8883_v51, %v8849_v61 }
0x19c1   : > { %v8888_v23 = vadd.f32 %v4306_v24, %v4287_v33  ;;  %v10251_v33 = vld [vmem:[#allocation62_spill] sm:$0xff]  ;;  %v2700_v24 = vsel %vm779_vm7, %v10250_v31, %v10252_v2  ;;  %v2760_v2 = vadd.f32 %v2753_v36, %v2734_v58  ;;  %v10275_v58 = vld [vmem:[#allocation35_spill] sm:$0xff] }
0x19c2   : > { %v8896_v50 = vpop.permute.xlu0 %3686  ;;  %v2699_v55 = vsel %vm779_vm7, %v10251_v33, %v10250_v31  ;;  %v2707_v42 = vadd.f32 %v2700_v24, %v2676_v22  ;;  %v2761_v24 = vadd.f32 %v10261_v47, %v2735_v18  ;;  %v10264_v22 = vld [vmem:[#allocation21_spill] sm:$0xff]  ;;  %v10273_v47 = vld [vmem:[#allocation51_spill] sm:$0xff] }
0x19c3   : > { %v8890_v53 = vpop.permute.xlu1 %4304  ;;  %v2706_v21 = vadd.f32 %v2699_v55, %v2675_v8  ;;  %v10263_v8 = vld [vmem:[#allocation20_spill] sm:$0xff] }
0x19c4   : > { %v2733_v4 = vadd.f32 %v2726_v0, %v2707_v42  ;;  %v2778_v10 = vsel %vm10265_vm4, %v10264_v22, %v10263_v8 }
0x19c5   : > { %v2732_v37 = vadd.f32 %v10255_v7, %v2706_v21  ;;  %v10269_v7 = vld [vmem:[#allocation41_spill] sm:$0xff]  ;;  %v10270_v21 = vld [vmem:[#allocation63_spill] sm:$0xff] }
0x19c6   : > { %v8902_v19 = vpop.permute.xlu0 %4380  ;;  %v2759_v33 = vadd.f32 %v2752_v44, %v2733_v4  ;;  %v2853_v0 = vmul.f32 %v10241_v40, %v10269_v7  ;;  %v2878_v42 = vsel %vm653_vm5, %v10270_v21, %v10267_v26  ;;  %v2855_v3 = vmul.f32 %v5060_v39, %v10269_v7  ;;  %v10272_v40 = vld [vmem:[#allocation37_spill] sm:$0xff]  ;;  %v10277_v26 = vld [vmem:[#allocation71_spill] sm:$0xff] }
0x19c7   : > { %v8894_v1 = vpop.permute.xlu1 %3632  ;;  %v2758_v31 = vadd.f32 %v10260_v38, %v2732_v37  ;;  %v2854_v29 = vmul.f32 %v5061_v52, %v10269_v7  ;;  %v10271_v38 = vld [vmem:[#allocation29_spill] sm:$0xff]  ;;  %v5062_v37 = vld [vmem:[#allocation3 + $0x18] sm:$0xff]  ;;  %v2910_v36 = vsel %vm716_vm6, %v10273_v47, %v10272_v40  ;;  %v2909_v39 = vsel %vm716_vm6, %v10277_v26, %v10273_v47 }
0x19c8   : > { %v2877_v44 = vsel %vm653_vm5, %v10271_v38, %v10270_v21  ;;  %v2856_v4 = vmul.f32 %v5062_v37, %v10269_v7  ;;  %v8998_v18 = vadd.f32 %v2778_v10, %v2759_v33  ;;  %v10278_v38 = vld [vmem:[#allocation24_spill] sm:$0xff]  ;;  %v10279_v33 = vld [vmem:[#allocation22_spill] sm:$0xff]  ;;  %v10282_v47 = vld [vmem:[#allocation45_spill] sm:$0xff]  ;;  %vm10288_vm5 = vcmask 711680  }
0x19c9   : > { %v8980_v5 = vadd.f32 %v10264_v22, %v2758_v31  ;;  %v2779_v31 = vsel %vm10276_vm13, %v10263_v8, %v10275_v58  ;;  %v2886_v22 = vadd.f32 %v2879_v63, %v2855_v3  ;;  %v2885_v21 = vadd.f32 %v2878_v42, %v2854_v29  ;;  %v10280_v10 = vld [vmem:[#allocation52_spill] sm:$0xff]  ;;  %v10283_v29 = vld [vmem:[#allocation26_spill] sm:$0xff]  ;;  %vm10310_vm0 = vmmov %vm10288_vm5 }
0x19ca   : > { %v8906_v28 = vpop.permute.xlu0 %3708  ;;  %10274 = vst [vmem:[#allocation124_spill] sm:$0xff] %v8998_v18  ;;  %v2887_v7 = vadd.f32 %v10266_v49, %v2856_v4  ;;  %v2908_v37 = vsel %vm716_vm6, %v10278_v38, %v10277_v26  ;;  %v9016_v8 = vadd.f32 %v10275_v58, %v2761_v24  ;;  %v2884_v63 = vadd.f32 %v2877_v44, %v2853_v0  ;;  %v10284_v26 = vld [vmem:[#allocation36_spill] sm:$0xff]  ;;  %v10285_v38 = vld [vmem:[#allocation54_spill] sm:$0xff]  ;;  %v10287_v24 = vld [vmem:[#allocation15_spill] sm:$0xff] }
0x19cb   : > { %v8898_v57 = vpop.permute.xlu1 %4326  ;;  %10268 = vst [vmem:[#allocation122_spill] sm:$0xff] %v8980_v5  ;;  %v2941_v5 = vsel %vm779_vm7, %v10280_v10, %v10279_v33  ;;  %v2917_v3 = vadd.f32 %v2910_v36, %v2886_v22  ;;  %v2940_v18 = vsel %vm779_vm7, %v10282_v47, %v10280_v10  ;;  %v2916_v42 = vadd.f32 %v2909_v39, %v2885_v21  ;;  %v10289_v58 = vld [vmem:[#allocation53_spill] sm:$0xff]  ;;  %vm10294_vm6 = vmmov %vm10288_vm5 }
0x19cc   : > { %10281 = vst [vmem:[#allocation127_spill] sm:$0xff] %v9016_v8  ;;  %v2918_v49 = vadd.f32 %v10272_v40, %v2887_v7  ;;  %v2939_v4 = vsel %vm779_vm7, %v10283_v29, %v10282_v47  ;;  %v2915_v44 = vadd.f32 %v2908_v37, %v2884_v63  ;;  %v2966_v22 = vsel %vm834_vm8, %v10289_v58, %v10285_v38  ;;  %v10291_v47 = vld [vmem:[#allocation50_spill] sm:$0xff]  ;;  %vm10298_vm7 = vmmov %vm10265_vm4 }
0x19cd   : > { %v2948_v36 = vadd.f32 %v2941_v5, %v2917_v3  ;;  %v2786_v21 = vadd.f32 %v2779_v31, %v2760_v2  ;;  %v2947_v7 = vadd.f32 %v2940_v18, %v2916_v42  ;;  %v10292_v29 = vld [vmem:[#allocation18_spill] sm:$0xff]  ;;  %v10295_v3 = vld [vmem:[#allocation65_spill] sm:$0xff]  ;;  %v10296_v31 = vld [vmem:[#allocation27_spill] sm:$0xff] }
0x19ce   : > { %v8924_v48 = vpop.permute.xlu0 %3712  ;;  %v2949_v10 = vadd.f32 %v10279_v33, %v2918_v49  ;;  %v2993_v8 = vsel %vm887_vm9, %v10292_v29, %v10291_v47  ;;  %v2946_v37 = vadd.f32 %v2939_v4, %v2915_v44  ;;  %v10297_v33 = vld [vmem:[#allocation72_spill] sm:$0xff]  ;;  %v3616_v4 = vadd.f32 %v8840_v25, %v8831_v12 }
0x19cf   : > { %v8900_v30 = vpop.permute.xlu1 %4330  ;;  %v2973_v18 = vadd.f32 %v2966_v22, %v2947_v7  ;;  %v3019_v42 = vsel %vm10298_vm7, %v10297_v33, %v10296_v31  ;;  %v10303_v22 = vld [vmem:[#allocation59_spill] sm:$0xff]  ;;  %v10305_v7 = vld [vmem:[#allocation61_spill] sm:$0xff] }
0x19d0   : > { %v2975_v2 = vadd.f32 %v10284_v26, %v2949_v10  ;;  %v2972_v49 = vadd.f32 %v10289_v58, %v2946_v37  ;;  %v10304_v58 = vld [vmem:[#allocation73_spill] sm:$0xff] }
0x19d2   : > { %v8956_v43 = vpop.permute.xlu0 %4406  ;;  %v9081_v12 = vadd.f32 %v10291_v47, %v2975_v2  ;;  %v10309_v47 = vld [vmem:[#allocation42_spill] sm:$0xff] }
0x19d3   : > { %v8904_v27 = vpop.permute.xlu1 %3658  ;;  %10257 = vst [vmem:[#allocation119_spill] sm:$0xff] %v8956_v43  ;;  %v2967_v43 = vsel %vm834_vm8, %v10285_v38, %v10284_v26  ;;  %v2992_v38 = vsel %vm887_vm9, %v10295_v3, %v10292_v29  ;;  %vm10300_vm8 = vmmov %vm10265_vm4  ;;  %v9078_v29 = vadd.f32 %v10295_v3, %v2972_v49  ;;  %v3611_v3 = vsel %vm10308_vm15, %v8879_v62, %v8843_v14  ;;  %v10312_v49 = vld [vmem:[#allocation48_spill] sm:$0xff] }
0x19d4   : > { %v2974_v63 = vadd.f32 %v2967_v43, %v2948_v36  ;;  %v10302_v36 = vld [vmem:[#allocation70_spill] sm:$0xff]  ;;  %vm10306_vm9 = vmmov %vm10288_vm5 }
0x19d5   : > { %v3045_v10 = vsel %vm10306_vm9, %v10305_v7, %v10304_v58  ;;  %vm10313_vm4 = vmmov %vm10307_vm14 }
0x19d6   : > { %v8988_v59 = vpop.permute.xlu0 %3734  ;;  %v4307_v14 = vsel %vm10313_vm4, %v8849_v61, %v8890_v53  ;;  %v4315_v61 = vadd.f32 %v8890_v53, %v8873_v9 }
0x19d7   : > { %v8908_v34 = vpop.permute.xlu1 %4352 }
0x19da   : > { %v9034_v39 = vpop.permute.xlu0 %3738 }
0x19db   : > { %v8912_v32 = vpop.permute.xlu1 %4356 }
0x19df   : > { %v8937_v46 = vpop.permute.xlu1 %3684 }
0x19e3   : > { %v8958_v41 = vpop.permute.xlu1 %4378 }
0x19e4   : > { %10258 = vst [vmem:[#allocation121_spill] sm:$0xff] %v8958_v41  ;;  %v3000_v41 = vadd.f32 %v2993_v8, %v2974_v63  ;;  %v2999_v8 = vadd.f32 %v2992_v38, %v2973_v18  ;;  %v3642_v63 = vadd.f32 %v8853_v35, %v3616_v4  ;;  %v3645_v38 = vadd.f32 %v8856_v56, %v8846_v16 }
0x19e5   : > { %v3610_v18 = vsel %vm10307_vm14, %v8840_v25, %v8879_v62  ;;  %v3636_v62 = vsel %vm380_vm1, %v8853_v35, %v8894_v1  ;;  %v4332_v35 = vsel %vm380_vm1, %v8898_v57, %v8859_v11 }
0x19e6   : > { %v3026_v37 = vadd.f32 %v3019_v42, %v3000_v41  ;;  %v9099_v41 = vsel %vm10310_vm0, %v10309_v47, %v10305_v7  ;;  %v10311_v42 = vld [vmem:[#allocation55_spill] sm:$0xff]  ;;  %v3668_v16 = vadd.f32 %v8867_v54, %v3642_v63  ;;  %v3671_v25 = vadd.f32 %v8875_v6, %v3645_v38 }
0x19e7   : > { %v8970_v55 = vpop.permute.xlu1 %4382  ;;  %v3618_v7 = vadd.f32 %v3611_v3, %v8865_v45 }
0x19e8   : > { %10262 = vst [vmem:[#allocation123_spill] sm:$0xff] %v8970_v55  ;;  %v10286_v55 = vld [vmem:[#allocation16_spill] sm:$0xff]  ;;  %v9101_v2 = vadd.f32 %v3045_v10, %v3026_v37  ;;  %v3694_v10 = vadd.f32 %v8892_v13, %v3668_v16  ;;  %v4312_v37 = vadd.f32 %v8883_v51, %v8870_v17  ;;  %v3697_v63 = vadd.f32 %v8896_v50, %v3671_v25 }
0x19e9   : > { %v2805_v0 = vsel %vm10288_vm5, %v10287_v24, %v10286_v55  ;;  %v10293_v55 = vld [vmem:[#allocation23_spill] sm:$0xff]  ;;  %v3663_v17 = vsel %vm2233_vm3, %v8904_v27, %v8875_v6  ;;  %v4358_v6 = vsel %vm2233_vm3, %v8908_v34, %v8881_v15  ;;  %v4341_v16 = vadd.f32 %v8900_v30, %v4315_v61 }
0x19ea   : > { %v9045_v5 = vsel %vm10294_vm6, %v10293_v55, %v10287_v24  ;;  %v10299_v24 = vld [vmem:[#allocation30_spill] sm:$0xff]  ;;  %v3720_v9 = vadd.f32 %v8906_v28, %v3694_v10  ;;  %v4338_v53 = vadd.f32 %v8898_v57, %v4312_v37  ;;  %v3723_v57 = vadd.f32 %v8924_v48, %v3697_v63 }
0x19eb   : > { %v9006_v52 = vpop.permute.xlu1 %3710  ;;  %v3018_v43 = vsel %vm10300_vm8, %v10299_v24, %v10297_v33  ;;  %v9084_v33 = vpop.permute.xlu0 %4432 }
0x19ef   : > { %v9036_v40 = vpop.permute.xlu1 %4404  ;;  %v3761_v51 = vpop.permute.xlu0 %3760 }
0x19f0   : > { %10290 = vst [vmem:[#allocation125_spill] sm:$0xff] %v9036_v40  ;;  %v9050_v40 = vadd.f32 %v2805_v0, %v2786_v21  ;;  %v10301_v0 = vld [vmem:[#allocation17_spill] sm:$0xff] }
0x19f1   : > { %v9067_v26 = vsel %vm1046_vm12, %v10302_v36, %v10301_v0  ;;  %v9072_v21 = vsel %vm1046_vm12, %v10301_v0, %v10303_v22  ;;  %v9086_v36 = vadd.f32 %v3018_v43, %v2999_v8  ;;  %v9106_v43 = vsel %vm1046_vm12, %v10312_v49, %v10311_v42 }
0x19f2   : > { %v3637_v0 = vsel %vm380_vm1, %v8894_v1, %v8856_v56  ;;  %v3617_v8 = vadd.f32 %v3610_v18, %v8863_v20  ;;  %v3662_v56 = vsel %vm2233_vm3, %v8867_v54, %v8904_v27  ;;  %v4314_v20 = vadd.f32 %v4307_v14, %v8877_v60 }
0x19f3   : > { %v9062_v44 = vpop.permute.xlu1 %4408  ;;  %v3644_v1 = vadd.f32 %v3637_v0, %v3618_v7  ;;  %v4333_v18 = vsel %vm380_vm1, %v8859_v11, %v8900_v30  ;;  %v3688_v54 = vsel %vm2286_vm2, %v8892_v13, %v8937_v46  ;;  %v4339_v60 = vadd.f32 %v4332_v35, %v8888_v23  ;;  %v3765_v10 = vpop.permute.xlu0 %3764 }
0x19f4   : > { %v3643_v45 = vadd.f32 %v3636_v62, %v3617_v8  ;;  %v3689_v27 = vsel %vm2286_vm2, %v8937_v46, %v8896_v50  ;;  %v3714_v13 = vsel %vm2339_vm11, %v8906_v28, %v9006_v52  ;;  %v4340_v25 = vadd.f32 %v4333_v18, %v4314_v20 }
0x19f5   : > { %v3670_v11 = vadd.f32 %v3663_v17, %v3644_v1  ;;  %v3746_v23 = vadd.f32 %v8988_v59, %v3720_v9  ;;  %v3715_v62 = vsel %vm2339_vm11, %v9006_v52, %v8924_v48  ;;  %v4364_v50 = vadd.f32 %v8908_v34, %v4338_v53  ;;  %v10314_v34 = vld [vmem:[#allocation121_spill] sm:$0xff] }
0x19f6   : > { %v3669_v3 = vadd.f32 %v3662_v56, %v3643_v45  ;;  %v4365_v46 = vadd.f32 %v4358_v6, %v4339_v60  ;;  %v3749_v7 = vadd.f32 %v9034_v39, %v3723_v57  ;;  %v4359_v28 = vsel %vm2233_vm3, %v8881_v15, %v8912_v32  ;;  %v10315_v56 = vld [vmem:[#allocation123_spill] sm:$0xff] }
0x19f7   : > { %v3737_v4 = vpop.permute.xlu1 %3736  ;;  %v3696_v8 = vadd.f32 %v3689_v27, %v3670_v11  ;;  %v4367_v48 = vadd.f32 %v8912_v32, %v4341_v16  ;;  %v4384_v52 = vsel %vm2286_vm2, %v10314_v34, %v8902_v19  ;;  %v4390_v61 = vadd.f32 %v10314_v34, %v4364_v50  ;;  %v10316_v15 = vld [vmem:[#allocation119_spill] sm:$0xff]  ;;  %v10317_v45 = vld [vmem:[#allocation125_spill] sm:$0xff] }
0x19f8   : > { %v3695_v14 = vadd.f32 %v3688_v54, %v3669_v3  ;;  %v3740_v30 = vsel %vm2392_vm10, %v8988_v59, %v3737_v4  ;;  %v3741_v63 = vsel %vm2392_vm10, %v3737_v4, %v9034_v39  ;;  %v3772_v35 = vadd.f32 %v3761_v51, %v3746_v23 }
0x19f9   : > { %v3722_v59 = vadd.f32 %v3715_v62, %v3696_v8  ;;  %v4385_v20 = vsel %vm2286_vm2, %v8902_v19, %v10315_v56  ;;  %v4410_v1 = vsel %vm2339_vm11, %v10317_v45, %v10316_v15  ;;  %v4416_v32 = vadd.f32 %v10317_v45, %v4390_v61  ;;  %v10321_v8 = vld [vmem:[#allocation25_spill] sm:$0xff] }
0x19fa   : > { %v3721_v37 = vadd.f32 %v3714_v13, %v3695_v14  ;;  %vm10318_vm3 = vcmask 359424   ;;  %v4366_v18 = vadd.f32 %v4359_v28, %v4340_v25  ;;  %v4391_v54 = vadd.f32 %v4384_v52, %v4365_v46  ;;  %v4459_v13 = vpop.permute.xlu0 %4458 }
0x19fb   : > { %v4431_v38 = vpop.permute.xlu1 %4430  ;;  %v3748_v4 = vadd.f32 %v3741_v63, %v3722_v59  ;;  %vm10319_vm13 = vmmov %vm10318_vm3  ;;  %v4393_v60 = vadd.f32 %v10315_v56, %v4367_v48  ;;  %v4411_v19 = vsel %vm2339_vm11, %v10316_v15, %v9062_v44  ;;  %v3776_v16 = vmax.f32 %v3772_v35, 0.0 }
0x19fc   : > { %v3747_v17 = vadd.f32 %v3740_v30, %v3721_v37  ;;  %v4436_v6 = vsel %vm2392_vm10, %v4431_v38, %v9084_v33  ;;  %v4442_v27 = vadd.f32 %v4431_v38, %v4416_v32  ;;  %v4392_v11 = vadd.f32 %v4385_v20, %v4366_v18  ;;  %vm10320_vm2 = vmmov %vm10318_vm3  ;;  %v10325_v32 = vld [vmem:[#allocation127_spill] sm:$0xff] }
0x19fd   : > { %v4419_v25 = vadd.f32 %v9062_v44, %v4393_v60  ;;  %v3071_v30 = vsel %vm1046_vm12, %v10311_v42, %v10321_v8  ;;  %v3775_v63 = vadd.f32 %v3765_v10, %v3749_v7  ;;  %v3027_v44 = vadd.f32 %v10296_v31, %v9081_v12 }
0x19fe   : > { %v4418_v38 = vadd.f32 %v4411_v19, %v4392_v11  ;;  %v3078_v42 = vadd.f32 %v3071_v30, %v9101_v2  ;;  %v3024_v31 = vadd.f32 %v10299_v24, %v9078_v29  ;;  %v10326_v24 = vld [vmem:[#allocation16_spill] sm:$0xff]  ;;  %vm10329_vm11 = vcmask 171008  }
0x19ff   : > { %v4435_v0 = vpop.permute.xlu1 %4434  ;;  %v3053_v15 = vadd.f32 %v10304_v58, %v3027_v44  ;;  %v3779_v45 = vmax.f32 %v3775_v63, 0.0  ;;  %v2813_v29 = vadd.f32 %v10326_v24, %v10325_v32  ;;  %vm10330_vm12 = vmmov %vm10329_vm11  ;;  %v5064_v32 = vld [vmem:[%s5447_s18] sm:$0xff] }
0x1a00   : > { %v4437_v62 = vsel %vm2392_vm10, %v9084_v33, %v4435_v0  ;;  %v4445_v48 = vadd.f32 %v4435_v0, %v4419_v25  ;;  %v3051_v33 = vadd.f32 %v9099_v41, %v9086_v36  ;;  %vm10323_vm10 = vmmov %vm10320_vm2  ;;  %v10324_v0 = vld [vmem:[#allocation124_spill] sm:$0xff]  ;;  %v2838_v41 = vadd.f32 %v9072_v21, %v9050_v40  ;;  %v10327_v40 = vld [vmem:[#allocation122_spill] sm:$0xff] }
0x1a01   : > { %v4444_v61 = vadd.f32 %v4437_v62, %v4418_v38  ;;  %v2810_v21 = vadd.f32 %v10293_v55, %v10327_v40  ;;  %vm10331_vm5 = vmmov %vm10329_vm11  ;;  %v5066_v40 = vld [vmem:[%s5447_s18 + $0x8] sm:$0xff] }
0x1a02   : > { %v3077_v12 = vadd.f32 %v9106_v43, %v3051_v33  ;;  %v3079_v43 = vadd.f32 %v10321_v8, %v3053_v15  ;;  %vm10332_vm6 = vmmov %vm10331_vm5  ;;  %v4522_v15 = vld [vmem:[%s9310_s8] sm:$0xff] }
0x1a03   : > { %v3763_v39 = vpop.permute.xlu1 %3762  ;;  %vm10333_vm7 = vmmov %vm10331_vm5 }
0x1a04   : > { %v3766_v9 = vsel %vm10318_vm3, %v3761_v51, %v3763_v39  ;;  %v3767_v53 = vsel %vm10319_vm13, %v3763_v39, %v3765_v10  ;;  %v4417_v51 = vadd.f32 %v4410_v1, %v4391_v54  ;;  %v2811_v10 = vadd.f32 %v9045_v5, %v10324_v0  ;;  %vm10334_vm8 = vmmov %vm10331_vm5 }
0x1a05   : > { %v3773_v3 = vadd.f32 %v3766_v9, %v3747_v17  ;;  %v3774_v57 = vadd.f32 %v3767_v53, %v3748_v4  ;;  %v3050_v17 = vadd.f32 %v10309_v47, %v3024_v31  ;;  %v3082_v4 = vmax.f32 %v3078_v42, 0.0  ;;  %v10328_v47 = vld [vmem:[#allocation70_spill] sm:$0xff]  ;;  %vm10335_vm9 = vmmov %vm10331_vm5  ;;  %v5063_v31 = vld [vmem:[#allocation2] sm:$0xff] }
0x1a06   : > { %v4443_v28 = vadd.f32 %v4436_v6, %v4417_v51  ;;  %v2837_v1 = vadd.f32 %v9067_v26, %v2811_v10  ;;  %v3081_v53 = vmax.f32 %v3077_v12, 0.0  ;;  %v2839_v26 = vadd.f32 %v10303_v22, %v2813_v29  ;;  %vm10336_vm14 = vmmov %vm10331_vm5 }
0x1a07   : > { %v3777_v23 = vmax.f32 %v3773_v3, 0.0  ;;  %v4457_v14 = vpop.permute.xlu1 %4456  ;;  %v3778_v34 = vmax.f32 %v3774_v57, 0.0  ;;  %v3076_v58 = vadd.f32 %v10312_v49, %v3050_v17  ;;  %v2842_v54 = vmax.f32 %v2838_v41, 0.0  ;;  %vm10337_vm15 = vmmov %vm10331_vm5 }
0x1a08   : > { %v4468_v50 = vadd.f32 %v4457_v14, %v4442_v27  ;;  %v4462_v46 = vsel %vm10320_vm2, %v4457_v14, %v4459_v13  ;;  %v2836_v60 = vadd.f32 %v10328_v47, %v2810_v21  ;;  %v2841_v3 = vmax.f32 %v2837_v1, 0.0  ;;  %vm10338_vm0 = vmmov %vm10331_vm5 }
0x1a09   : > { %v5016_v37 = vpack.i.bf16 %v3777_v23, %v3776_v16  ;;  %v4469_v59 = vadd.f32 %v4462_v46, %v4443_v28  ;;  %v3083_v19 = vmax.f32 %v3079_v43, 0.0  ;;  %v4516_v6 = vpack.c.bf16 %v3082_v4, %v2842_v54  ;;  %vm10339_vm4 = vmmov %vm10338_vm0  ;;  %v5065_v4 = vld [vmem:[%s5447_s18 + $0x10] sm:$0xff]  ;;  %s4650_s18 = scalar_lea.sflag [#allocation6], %s5441_s28 }
0x1a0a   : > { %v4472_v52 = vmax.f32 %v4468_v50, 0.0  ;;  %v3080_v27 = vmax.f32 %v3076_v58, 0.0  ;;  %v4515_v57 = vpack.c.bf16 %v3081_v53, %v2841_v3  ;;  %v2843_v16 = vmax.f32 %v2839_v26, 0.0  ;;  %vm10340_vm3 = vmmov %vm10338_vm0 }
0x1a0b   : > { %5017 = vrot.lane.b32.xlu0 %v5016_v37, %s10322_s26  ;;  %v4461_v35 = vpop.permute.xlu1 %4460  ;;  %v4473_v5 = vmax.f32 %v4469_v59, 0.0  ;;  %v2840_v55 = vmax.f32 %v2836_v60, 0.0  ;;  %v4523_v17 = vpack.c.bf16 %v4522_v15, %v4522_v15  ;;  %vm4561_vm13 = vcmask 261120  }
0x1a0c   : > { %v5021_v56 = vpack.i.bf16 %v4472_v52, %v3778_v34  ;;  %v4471_v20 = vadd.f32 %v4461_v35, %v4445_v48  ;;  %v4463_v7 = vsel %vm10323_vm10, %v4459_v13, %v4461_v35  ;;  %v4517_v49 = vpack.c.bf16 %v3083_v19, %v2843_v16 }
0x1a0d   : > { %v4470_v36 = vadd.f32 %v4463_v7, %v4444_v61  ;;  %v4514_v22 = vpack.c.bf16 %v3080_v27, %v2840_v55 }
0x1a0e   : > { %v4475_v2 = vmax.f32 %v4471_v20, 0.0  ;;  %5022 = vrot.lane.b32.xlu1 %v5021_v56, %s10322_s26 }
0x1a0f   : > { %v4474_v39 = vmax.f32 %v4470_v36, 0.0 }
0x1a10   : > { %v5031_v9 = vpack.i.bf16 %v4475_v2, %v3779_v45 }
0x1a11   : > { %v5026_v18 = vpack.i.bf16 %v4474_v39, %v4473_v5 }
0x1a12   : > { %5032 = vrot.lane.b32.xlu1 %v5031_v9, %s10322_s26 }
0x1a13   : > { %5027 = vrot.lane.b32.xlu0 %v5026_v18, %s10322_s26 }
0x1a16   : > { %4536 = vrot.lane.b32.xlu1 %v4516_v6, %s10322_s26 }
0x1a17   : > { %4534 = vrot.lane.b32.xlu0 %v4515_v57, %s10322_s26 }
0x1a1a   : > { %4538 = vrot.lane.b32.xlu1 %v4517_v49, %s10322_s26 }
0x1a1b   : > { %4532 = vrot.lane.b32.xlu0 %v4514_v22, %s10322_s26 }
0x1a7d   : > { %v5018_v13 = vpop.permute.xlu0 %5017 }
0x1a7e   : > { %v5020_v51 = vunpack.i.h.bf16 %v5018_v13  ;;  %v5019_v23 = vunpack.i.l.bf16 %v5018_v13 }
0x1a80   : > { %v5023_v11 = vpop.permute.xlu1 %5022  ;;  %v4488_v28 = vsel %vm10329_vm11, %v5019_v23, %v5020_v51 }
0x1a81   : > { %v5024_v14 = vunpack.i.l.bf16 %v5023_v11  ;;  %v5025_v50 = vunpack.i.h.bf16 %v5023_v11 }
0x1a83   : > { %v4489_v37 = vsel %vm10330_vm12, %v5020_v51, %v5024_v14  ;;  %v4518_v56 = vpack.c.bf16 %v5025_v50, %v5019_v23 }
0x1a84   : > { %v5033_v25 = vpop.permute.xlu1 %5032 }
0x1a85   : > { %v5028_v62 = vpop.permute.xlu0 %5027  ;;  %v5035_v30 = vunpack.i.h.bf16 %v5033_v25  ;;  %v5034_v38 = vunpack.i.l.bf16 %v5033_v25 }
0x1a86   : > { %v5030_v46 = vunpack.i.h.bf16 %v5028_v62  ;;  %v5029_v8 = vunpack.i.l.bf16 %v5028_v62 }
0x1a87   : > { %v4490_v59 = vsel %vm10334_vm8, %v5024_v14, %v5034_v38 }
0x1a88   : > { %v4507_v63 = vsel %vm10331_vm5, %v5025_v50, %v5029_v8  ;;  %v4508_v48 = vsel %vm10332_vm6, %v5029_v8, %v5030_v46  ;;  %v4537_v34 = vpop.permute.xlu1 %4536  ;;  %v4509_v35 = vsel %vm10335_vm9, %v5030_v46, %v5035_v30 }
0x1a89   : > { %v4519_v52 = vpack.c.bf16 %v4507_v63, %v4488_v28  ;;  %v4520_v44 = vpack.c.bf16 %v4508_v48, %v4489_v37  ;;  %v4535_v33 = vpop.permute.xlu0 %4534  ;;  %v4521_v0 = vpack.c.bf16 %v4509_v35, %v4490_v59 }
0x1a8a   : > { %v4550_v61 = vsel %vm10333_vm7, %v4535_v33, %v4537_v34 }
0x1a8b   : > { %4565 = vmatprep.subr.bf16.mxu0 %v4550_v61  ;;  %4542 = vrot.lane.b32.xlu0 %v4519_v52, %s10322_s26 }
0x1a8c   : > { %4544 = vrot.lane.b32.xlu1 %v4520_v44, %s10322_s26  ;;  %v4539_v42 = vpop.permute.xlu1 %4538 }
0x1a8d   : > { %v4551_v20 = vsel %vm10336_vm14, %v4537_v34, %v4539_v42  ;;  %v4533_v7 = vpop.permute.xlu0 %4532 }
0x1a8e   : > { %v4549_v10 = vsel %vm10337_vm15, %v4533_v7, %v4535_v33  ;;  %4771 = vmatpush3.bf16.msra.mxu1 %v4551_v20 }
0x1a8f   : > { %4566 = vmatpush1.bf16.msra.mxu0 %v4549_v10  ;;  %4540 = vrot.lane.b32.xlu0 %v4518_v56, %s10322_s26 }
0x1a90   : > { %4546 = vrot.lane.b32.xlu1 %v4521_v0, %s10322_s26  ;;  %4772 = vmatprep.subr.bf16.mxu1 %v5063_v31 }
0x1afd   : > { %v4543_v12 = vpop.permute.xlu0 %4542 }
0x1afe   : > { %v4545_v36 = vpop.permute.xlu1 %4544 }
0x1aff   : > { %v4553_v41 = vsel %vm10338_vm0, %v4543_v12, %v4545_v36 }
0x1b00   : > { %4567 = vmatprep.subr.bf16.mxu0 %v4553_v41 }
0x1b01   : > { %v4541_v45 = vpop.permute.xlu0 %4540 }
0x1b02   : > { %v4552_v2 = vsel %vm10339_vm4, %v4541_v45, %v4543_v12  ;;  %v4547_v1 = vpop.permute.xlu1 %4546 }
0x1b03   : > { %v4554_v5 = vsel %vm10340_vm3, %v4545_v36, %v4547_v1  ;;  %4568 = vmatpush1.bf16.msra.mxu0 %v4552_v2 }
0x1b04   : > { %4773 = vmatpush3.bf16.msra.mxu1 %v4554_v5 }
0x1b06   : > { %4754 = vmatmul.mubr.msk.bf16.vlgmr.msra.gmra.mrb[4].mxu0 %vm4561_vm13, %v4523_v17 }
0x1b07   : > { %4775 = vmatmul.mubr.msk.bf16.vlgmr.msra.gmra.mrb[4].mxu1 %vm4561_vm13, %v4523_v17 }
0x1bd9   : > { %v4599_v39 = vpop.f32.mrb[4].mxu0 }
0x1bda   : > { %v4600_v24 = vadd.f32 %v5064_v32, %v4599_v39  ;;  %v4640_v29 = vpop.f32.mrb[4].mxu1  ;;  %v4601_v43 = vpop.f32.mrb[5].mxu0 }
0x1bdb   : > { %v4641_v9 = vadd.f32 %v5065_v4, %v4640_v29  ;;  %v4602_v21 = vadd.f32 %v5066_v40, %v4601_v43  ;;  %v4776_v58 = vpop.f32.mrb[5].mxu1  ;;  %v4603_v53 = vpop.f32.mrb[6].mxu0 }
0x1bdc   : > { %4646 = vst [vmem:[%s363_s15] sm:$0xff] %v4600_v24  ;;  %v4643_v18 = vpop.f32.mrb[6].mxu1  ;;  %v4604_v26 = vpop.f32.mrb[7].mxu0 }
0x1bdd   : > { %4648 = vst.msk [vmem:[%s363_s15 + $0x10] sm:$0xff] %vm380_vm1, %v4641_v9  ;;  %4647 = vst [vmem:[%s363_s15 + $0x8] sm:$0xff] %v4602_v21  ;;  %v4777_v54 = vpop.f32.mrb[7].mxu1 }
0x1bde   : > { %5138 = shalt.err (!%p5135_p7)
}
0x1bdf   : > { %s5139_s28 = scalar_lea.hbm %s9257_s13, 384  ;;  %s5143_s21 = scalar_lea.hbm %s9311_s9, 768 }
0x1be0   : > { %p5140_p9 = scmp.ne.s32.totalorder %s9257_s13, %s5139_s28  ;;  %p5144_p0 = scmp.lt.u32.totalorder %s9257_s13, %s9311_s9 }
0x1be1   : > { %p5145_p13 = scmp.lt.u32.totalorder %s5143_s21, %s5139_s28  ;;  %p5147_p4 = scmp.lt.u32.totalorder %s5139_s28, %s9257_s13 }
0x1be2   : > { %p5141_p2 = pnand %p5140_p9, %p5396_p12 }
0x1be3   : > { %p5146_p1 = por %p5145_p13, %p5144_p0 }
0x1be4   : > { %p5142_p5 = pneg %p5141_p2 }
0x1be5   : > { %p5148_p6 = por %p5147_p4, %p5146_p1 }
0x1be7   : > { %p5149_p8 = pnand %p5148_p6, %p5142_p5 }
0x1be9   : > { %5152 = shalt.err (!%p5149_p8)
}
0x1bea   : > { %4788 = dma.vmem_to_hbm [thread:$0]  (%p5396_p12), %s9259_s17, 384, %s9257_s13, %s4650_s18  }
0x1beb PF: > { %s4676_s15 = sand.u32 1, %s5183_s30   ;;  %p10342_p10 = scmp.ne.s32.totalorder %s9649_s16, 0 }
0x1bec   : > { %p10343_p11 = scmp.ge.s32.totalorder %s5195_s12, 2  ;;  %s4677_s20 = scalar_lea.sflag [#allocation6], %s4676_s15 }
0x1bee   : > { %p4799_p3 = pnand %p10343_p11, %p10342_p10 }
0x1bf0   : > { %5178 = dma.done.wait (!%p4799_p3), %s4677_s20, 384  }
0x1bf1   : > { %5180 = vsyncadd (!%p4799_p3), %s4677_s20, 4294966912  ;;  %s10344_s12 = sld [smem:[#allocation13_spill]]  ;;  %s10345_s22 = sld [smem:[#allocation14_spill]] }
0x1bf2   : > { %s10346_s30 = smov %s5187_s10  ;;  %s10347_s10 = smov %s5191_s11 }
0x1bf7   : > { %p23_p7 = scmp.ge.s32.totalorder %s10344_s12, 4   ;;  %s10348_s11 = smov %s10345_s22 }
0x1bf9   :  { %25 = sbr.rel (!%p23_p7) target bundleno = 8 (0x8), region = 105 }
0x1c00   :  { %4682 = vsyncpa [#allocation5], 1 }
0x1c01   :  { %4684 = vsyncpa [#allocation5 + $0x1], 1 }
0x1c02   :  { %4685 = vsyncpa [#allocation8], 1 }
0x1c03   :  { %4686 = vsyncpa [#allocation6], 1 }
0x1c04   :  { %4688 = vsyncpa [#allocation6 + $0x1], 1 }

</bundles_post_ra>
